<compile_context>
chip_gen: v7x
topology: tpu7x:2x2x1
jax: 0.10.0
libtpu: 0.0.40
codegen_flags: <defaults>
</compile_context>

<pallas_src>
import math

import jax
import jax.numpy as jnp
import numpy as np
from jax.experimental import pallas as pl
from jax.experimental.pallas import tpu as pltpu

# Fixed SymbolNet geometry (45x45 glyphs -> fc1 input 64*22*22 = 30976).
H_IMG = 45                    # input spatial size
PH, PW = 49, 48               # padded canvas for the fused conv kernel
CANVAS = PH * PW              # 2352 flat canvas rows per image
POOL = 22                     # pooled spatial size (floor(45/2))
POOL_W = 24                   # wide pooled columns stored per row (last 2 junk)
FC1_IN = 64 * POOL * POOL     # 30976
FC1_OUT = 128
N_CLASS = 14


# -----------------------------------------------------------------------------
# Fused per-image kernel: conv1(+relu) -> padded canvas -> conv2 -> 2x2 maxpool.
# Input is a 16-wide conv1 im2col (9 taps + bias/mask column) laid out on the
# zero-padded (49,48) canvas; everything else stays in VMEM.
# -----------------------------------------------------------------------------
def _conv_pool_kernel(cols_ref, w1_ref, w2_ref, b2_ref, out_ref, cols48, canvas96):
    # cols_ref : (1, CANVAS, 16) bf16  conv1 im2col (taps 0..8, mask col 9)
    # w1_ref   : (48, 96)  bf16  block-diag conv1 weight (bias via mask column)
    # w2_ref   : (3, 96, 64) bf16  conv2 weights: [dy, 32*dx + cin, cout]
    # b2_ref   : (1, 64) f32
    # out_ref  : (1, 22*24, 64) bf16  pooled output (24 wide cols, last 2 junk)
    # cols48   : VMEM (CANVAS, 48) bf16 scratch: dx-shifted conv1 im2col
    # canvas96 : VMEM (CANVAS, 96) bf16 scratch: dx-shifted relu(conv1) canvas

    # --- phase 1: 3 dx-shifted copies of the 16-wide im2col (dest aligned) ---
    cols48[:, 0:16] = cols_ref[0, :, :]
    cols48[0:2344, 16:32] = cols_ref[0, 1:2345, :]
    cols48[0:2344, 32:48] = cols_ref[0, 2:2346, :]
    cols48[2344:2352, 16:48] = jnp.zeros((8, 32), jnp.bfloat16)

    # --- phase 2: conv1 (+bias via mask column) + relu -> 96-wide canvas ----
    @pl.loop(0, 3)
    def _conv1(c):
        r0 = pl.multiple_of(c * 784, 16)
        h = jnp.dot(cols48[pl.ds(r0, 784), :], w1_ref[...],
                    preferred_element_type=jnp.float32)
        canvas96[pl.ds(r0, 784), :] = jnp.maximum(h, 0.0).astype(jnp.bfloat16)

    # --- phase 3: conv2 (3 x K=96 dots per y-pair) + fused 2x2 max-pool -----
    w2 = w2_ref[...]          # hoisted: (3, 96, 64) bf16
    b2 = b2_ref[...]          # hoisted: (1, 64) f32

    @pl.loop(0, 22)
    def _conv2(py):
        base = pl.multiple_of(py * 96, 16)
        acc = jnp.dot(canvas96[pl.ds(base, 96), :], w2[0],
                      preferred_element_type=jnp.float32)
        acc += jnp.dot(canvas96[pl.ds(base + 48, 96), :], w2[1],
                       preferred_element_type=jnp.float32)
        acc += jnp.dot(canvas96[pl.ds(base + 96, 96), :], w2[2],
                       preferred_element_type=jnp.float32)
        acc += b2                                       # (96,64): row = ypar*48 + x
        m = jnp.maximum(acc[:48, :], acc[48:, :])       # max over y parity -> (48,64)
        pooled = jnp.max(m.reshape(24, 2, 64), axis=1)  # max over x parity -> (24,64)
        o0 = pl.multiple_of(py * 24, 8)
        out_ref[0, pl.ds(o0, 24), :] = pooled.astype(out_ref.dtype)


def conv_pool_pallas(cols, w1b, w2p, b2):
    N = cols.shape[0]
    return pl.pallas_call(
        _conv_pool_kernel,
        out_shape=jax.ShapeDtypeStruct((N, POOL * POOL_W, 64), jnp.bfloat16),
        grid=(N,),
        in_specs=[
            pl.BlockSpec((1, CANVAS, 16), lambda n: (n, 0, 0)),
            pl.BlockSpec((48, 96), lambda n: (0, 0)),
            pl.BlockSpec((3, 96, 64), lambda n: (0, 0, 0)),
            pl.BlockSpec((1, 64), lambda n: (0, 0)),
        ],
        out_specs=pl.BlockSpec((1, POOL * POOL_W, 64), lambda n: (n, 0, 0)),
        scratch_shapes=[pltpu.VMEM((CANVAS, 48), jnp.bfloat16),
                        pltpu.VMEM((CANVAS, 96), jnp.bfloat16)],
        compiler_params=pltpu.CompilerParams(dimension_semantics=("parallel",)),
    )(cols, w1b, w2p, b2)


# -----------------------------------------------------------------------------
# Fused head: fc1 (int8 weights, K-streamed) + BatchNorm1d(eval) + relu +
# fc2 + softmax.  dropout layers are identity in eval mode.
# -----------------------------------------------------------------------------
def _fc_kernel(x_ref, w1_ref, s_ref, t_ref, w2_ref, b2_ref, o_ref, acc_ref):
    k = pl.program_id(0)

    @pl.when(k == 0)
    def _():
        acc_ref[...] = jnp.zeros_like(acc_ref)

    w1 = w1_ref[...].astype(jnp.bfloat16)          # int8 -> bf16 (scale folded below)
    acc_ref[...] += jnp.dot(x_ref[...], w1, preferred_element_type=jnp.float32)

    @pl.when(k == pl.num_programs(0) - 1)
    def _():
        h = acc_ref[...] * s_ref[...] + t_ref[...]  # dequant scale * BN scale + shift
        h = jnp.maximum(h, 0.0)
        logits = jnp.dot(h.astype(jnp.bfloat16), w2_ref[...],
                         preferred_element_type=jnp.float32) + b2_ref[...]
        m = jnp.max(logits, axis=-1, keepdims=True)
        e = jnp.exp(logits - m)
        inv = pl.reciprocal(jnp.sum(e, axis=-1, keepdims=True), approx=True)
        o_ref[...] = (e * inv).astype(o_ref.dtype)


def fc_head_pallas(x, w1_q, scale, shift, w2, b2, tk=FC1_IN // 2):
    """softmax(relu((x @ dequant(w1_q)) * scale + shift) @ w2 + b2)."""
    M, K = x.shape
    H = w1_q.shape[1]
    C = w2.shape[1]
    assert K % tk == 0 and tk % 128 == 0, (K, tk)
    return pl.pallas_call(
        _fc_kernel,
        out_shape=jax.ShapeDtypeStruct((M, C), jnp.float32),
        grid=(K // tk,),
        in_specs=[
            pl.BlockSpec((M, tk), lambda k: (0, k)),
            pl.BlockSpec((tk, H), lambda k: (k, 0)),
            pl.BlockSpec((1, H), lambda k: (0, 0)),
            pl.BlockSpec((1, H), lambda k: (0, 0)),
            pl.BlockSpec((H, C), lambda k: (0, 0)),
            pl.BlockSpec((1, C), lambda k: (0, 0)),
        ],
        out_specs=pl.BlockSpec((M, C), lambda k: (0, 0)),
        scratch_shapes=[pltpu.VMEM((M, H), jnp.float32)],
        compiler_params=pltpu.CompilerParams(dimension_semantics=("arbitrary",)),
    )(x, w1_q, scale, shift, w2, b2)


# -----------------------------------------------------------------------------
# Parameter init (PyTorch layout) and one-time packing.
# -----------------------------------------------------------------------------
def init_params(key):
    ks = jax.random.split(key, 8)

    def unif(k, shape, fan_in):
        bound = 1.0 / math.sqrt(fan_in)
        return jax.random.uniform(k, shape, jnp.float32, -bound, bound)

    return {
        "conv1_w": unif(ks[0], (32, 1, 3, 3), 9),
        "conv1_b": unif(ks[1], (32,), 9),
        "conv2_w": unif(ks[2], (64, 32, 3, 3), 32 * 9),
        "conv2_b": unif(ks[3], (64,), 32 * 9),
        "fc1_w": unif(ks[4], (FC1_OUT, FC1_IN), FC1_IN),
        "fc1_b": unif(ks[5], (FC1_OUT,), FC1_IN),
        "fc2_w": unif(ks[6], (N_CLASS, FC1_OUT), FC1_OUT),
        "fc2_b": unif(ks[7], (N_CLASS,), FC1_OUT),
        # BatchNorm1d(128), eval-mode running stats / affine params
        "bn_gamma": jnp.ones((FC1_OUT,), jnp.float32),
        "bn_beta": jnp.zeros((FC1_OUT,), jnp.float32),
        "bn_mean": jnp.zeros((FC1_OUT,), jnp.float32),
        "bn_var": jnp.ones((FC1_OUT,), jnp.float32),
        "bn_eps": 1e-5,
    }


def pack_params(P):
    """One-time repack: fused-conv weights, int8 fc1, folded BN, (K,N) layouts."""
    bf16, f32 = jnp.bfloat16, jnp.float32

    # conv1: 9 tap rows + bias row (applied via the im2col mask column).
    w1m = jnp.zeros((16, 32), f32)
    w1m = w1m.at[:9, :].set(P["conv1_w"].transpose(2, 3, 1, 0).reshape(9, 32))
    w1m = w1m.at[9, :].set(P["conv1_b"])
    w1b = jnp.zeros((48, 96), f32)
    for dx in range(3):
        w1b = w1b.at[16 * dx:16 * dx + 16, 32 * dx:32 * dx + 32].set(w1m)

    # conv2: per-dy (32*dx + cin, cout) blocks matching the 96-wide canvas.
    w2p = P["conv2_w"].transpose(2, 3, 1, 0).reshape(3, 96, 64).astype(bf16)

    # fc1: rows permuted to the pooled NHWC flatten order, then int8 quantized
    # with per-output-column scales folded into the eval-mode BatchNorm scale.
    fc1_kn = (P["fc1_w"].reshape(FC1_OUT, 64, POOL, POOL)
              .transpose(2, 3, 1, 0).reshape(FC1_IN, FC1_OUT))
    amax = jnp.maximum(jnp.max(jnp.abs(fc1_kn), axis=0), 1e-8)
    qscale = amax / 127.0
    fc1_q = jnp.clip(jnp.round(fc1_kn / qscale), -127.0, 127.0).astype(jnp.int8)
    bn_s = P["bn_gamma"] / jnp.sqrt(P["bn_var"] + P["bn_eps"])
    fc_scale = (qscale * bn_s).astype(f32).reshape(1, FC1_OUT)
    fc_shift = (P["fc1_b"] * bn_s + P["bn_beta"]
                - P["bn_mean"] * bn_s).astype(f32).reshape(1, FC1_OUT)

    return {
        "w1b": w1b.astype(bf16),
        "w2p": w2p,
        "b2": P["conv2_b"].reshape(1, 64).astype(f32),
        "fc1_q": fc1_q,
        "fc_scale": fc_scale,
        "fc_shift": fc_shift,
        "fc2_w": P["fc2_w"].T.astype(bf16),
        "fc2_b": P["fc2_b"].reshape(1, N_CLASS).astype(f32),
    }


# -----------------------------------------------------------------------------
# SymbolNet / HWFNet forward (eval mode).
# -----------------------------------------------------------------------------
def _conv1_cols(img_bf16):
    """16-wide conv1 im2col on the zero-padded (49,48) canvas (tiny XLA glue)."""
    N = img_bf16.shape[0]
    p2 = jnp.pad(img_bf16, ((0, 0), (1, 1), (1, 1)))           # (N,47,47)
    taps = [p2[:, dy:dy + H_IMG, dx:dx + H_IMG]
            for dy in range(3) for dx in range(3)]
    taps.append(jnp.ones_like(taps[0]))                        # bias/mask column
    stack = jnp.stack(taps, axis=-1)                           # (N,45,45,10)
    cols = jnp.pad(stack, ((0, 0), (1, 3), (1, 2), (0, 6)))    # (N,49,48,16)
    return cols.reshape(N, CANVAS, 16)


def symbolnet_forward(x_nchw, KP):
    N = x_nchw.shape[0]
    img = x_nchw.reshape(N, H_IMG, H_IMG).astype(jnp.bfloat16)

    # fused conv1 + relu + conv2 + 2x2 max-pool (one kernel, per-image grid)
    pooled = conv_pool_pallas(_conv1_cols(img), KP["w1b"], KP["w2p"], KP["b2"])

    # drop the 2 junk wide pooled columns, flatten to fc1's (pre-permuted) order
    flat = (pooled.reshape(N, POOL, POOL_W, 64)[:, :, :POOL, :]
            .reshape(N, FC1_IN))

    # dropout(0.25)/dropout(0.5) are identity in eval mode.
    return fc_head_pallas(flat, KP["fc1_q"], KP["fc_scale"], KP["fc_shift"],
                          KP["fc2_w"], KP["fc2_b"])             # (N, 14)


def hwfnet_forward(img_seq, img_seq_len, KP):
    """img_seq: (B, L, 1, 45, 45) -> per-position symbol probabilities (B, L, 14)."""
    B, L = img_seq.shape[0], img_seq.shape[1]
    inp = img_seq.reshape((B * L,) + img_seq.shape[2:])
    symbol = symbolnet_forward(inp, KP).reshape(B, L, N_CLASS)
    # TODO(synk): downstream Distribution/Query symbolic expression evaluation
    # (python string eval of formulas, wandb logging) is non-tensor logic with
    # no Pallas equivalent.
    del img_seq_len
    return symbol


# -----------------------------------------------------------------------------
# Pure-JAX reference (f32, PyTorch-layout params) for validation.
# -----------------------------------------------------------------------------
def symbolnet_reference(x_nchw, P):
    x = jnp.transpose(x_nchw, (0, 2, 3, 1)).astype(jnp.float32)
    dn = ("NHWC", "HWIO", "NHWC")
    y = jax.lax.conv_general_dilated(
        x, jnp.transpose(P["conv1_w"], (2, 3, 1, 0)), (1, 1), "SAME",
        dimension_numbers=dn) + P["conv1_b"]
    y = jax.nn.relu(y)
    y = jax.lax.conv_general_dilated(
        y, jnp.transpose(P["conv2_w"], (2, 3, 1, 0)), (1, 1), "SAME",
        dimension_numbers=dn) + P["conv2_b"]
    Hc = (y.shape[1] // 2) * 2
    y = y[:, :Hc, :Hc, :]
    y = jax.lax.reduce_window(y, -jnp.inf, jax.lax.max,
                              (1, 2, 2, 1), (1, 2, 2, 1), "VALID")
    flat = jnp.transpose(y, (0, 3, 1, 2)).reshape(y.shape[0], -1)
    h = flat @ P["fc1_w"].T + P["fc1_b"]
    scale = P["bn_gamma"] / jnp.sqrt(P["bn_var"] + P["bn_eps"])
    h = (h - P["bn_mean"]) * scale + P["bn_beta"]
    h = jax.nn.relu(h)
    o = h @ P["fc2_w"].T + P["fc2_b"]
    return jax.nn.softmax(o, axis=1)


if __name__ == "__main__":
    key = jax.random.PRNGKey(0)
    kp, kx = jax.random.split(key)
    P = init_params(kp)
    KP = pack_params(P)     # one-time weight repack (no per-forward transposes)

    batch_size, formula_length = 2, 3
    img_seq = jax.random.normal(kx, (batch_size, formula_length, 1, H_IMG, H_IMG),
                                dtype=jnp.float32)
    img_seq_len = jnp.array([3, 1], dtype=jnp.int32)

    fwd = jax.jit(hwfnet_forward)
    out = jax.block_until_ready(fwd(img_seq, img_seq_len, KP))
    assert out.shape == (batch_size, formula_length, N_CLASS)

    ref = symbolnet_reference(
        img_seq.reshape(batch_size * formula_length, 1, H_IMG, H_IMG), P
    ).reshape(batch_size, formula_length, N_CLASS)
    ref = jax.block_until_ready(ref)
    np.testing.assert_allclose(np.asarray(out), np.asarray(ref), rtol=5e-2, atol=1e-2)

    print("KERNEL_OK")
</pallas_src>

<mosaic_0001>
module attributes {stable_mosaic.version = 11 : i64} {
  func.func @_conv_pool_kernel(%arg0: i32, %arg1: memref<1x2352x16xbf16, #tpu.memory_space<vmem>>, %arg2: memref<48x96xbf16, #tpu.memory_space<vmem>>, %arg3: memref<3x96x64xbf16, #tpu.memory_space<vmem>>, %arg4: memref<1x64xf32, #tpu.memory_space<vmem>>, %arg5: memref<1x528x64xbf16, #tpu.memory_space<vmem>>, %arg6: memref<2352x48xbf16, #tpu.memory_space<vmem>>, %arg7: memref<2352x96xbf16, #tpu.memory_space<vmem>>) attributes {dimension_semantics = [#tpu.dimension_semantics<parallel>], iteration_bounds = array<i64: 6>, scalar_prefetch = 0 : i64, scratch_operands = 2 : i64, tpu.core_type = #tpu.core_type<tc>, window_params = [{transform_indices = @transform_0, window_bounds = array<i64: 1, 2352, 16>}, {pipeline_mode = #tpu.pipeline_mode<synchronous>, transform_indices = @transform_1, window_bounds = array<i64: 48, 96>}, {pipeline_mode = #tpu.pipeline_mode<synchronous>, transform_indices = @transform_2, window_bounds = array<i64: 3, 96, 64>}, {pipeline_mode = #tpu.pipeline_mode<synchronous>, transform_indices = @transform_3, window_bounds = array<i64: 1, 64>}, {transform_indices = @transform_4, window_bounds = array<i64: 1, 528, 64>}]} {
    %c0 = arith.constant 0 : index
    %c0_0 = arith.constant 0 : index
    %c0_1 = arith.constant 0 : index
    %0 = vector.load %arg1[%c0, %c0_0, %c0_1] : memref<1x2352x16xbf16, #tpu.memory_space<vmem>>, vector<1x2352x16xbf16>
    %1 = vector.shape_cast %0 : vector<1x2352x16xbf16> to vector<2352x16xbf16>
    %c0_2 = arith.constant 0 : index
    %c0_3 = arith.constant 0 : index
    %2 = vector.load %arg6[%c0_2, %c0_3] : memref<2352x48xbf16, #tpu.memory_space<vmem>>, vector<2352x16xbf16>
    tpu.vector_store %arg6[%c0_2, %c0_3], %1 {strides = array<i32>} : memref<2352x48xbf16, #tpu.memory_space<vmem>>, vector<2352x16xbf16>,
    %c0_4 = arith.constant 0 : index
    %c1 = arith.constant 1 : index
    %c0_5 = arith.constant 0 : index
    %3 = vector.load %arg1[%c0_4, %c1, %c0_5] : memref<1x2352x16xbf16, #tpu.memory_space<vmem>>, vector<1x2344x16xbf16>
    %4 = vector.shape_cast %3 : vector<1x2344x16xbf16> to vector<2344x16xbf16>
    %c0_6 = arith.constant 0 : index
    %c16 = arith.constant 16 : index
    %5 = vector.load %arg6[%c0_6, %c16] : memref<2352x48xbf16, #tpu.memory_space<vmem>>, vector<2344x16xbf16>
    tpu.vector_store %arg6[%c0_6, %c16], %4 {strides = array<i32>} : memref<2352x48xbf16, #tpu.memory_space<vmem>>, vector<2344x16xbf16>,
    %c0_7 = arith.constant 0 : index
    %c2 = arith.constant 2 : index
    %c0_8 = arith.constant 0 : index
    %6 = vector.load %arg1[%c0_7, %c2, %c0_8] : memref<1x2352x16xbf16, #tpu.memory_space<vmem>>, vector<1x2344x16xbf16>
    %7 = vector.shape_cast %6 : vector<1x2344x16xbf16> to vector<2344x16xbf16>
    %c0_9 = arith.constant 0 : index
    %c32 = arith.constant 32 : index
    %8 = vector.load %arg6[%c0_9, %c32] : memref<2352x48xbf16, #tpu.memory_space<vmem>>, vector<2344x16xbf16>
    tpu.vector_store %arg6[%c0_9, %c32], %7 {strides = array<i32>} : memref<2352x48xbf16, #tpu.memory_space<vmem>>, vector<2344x16xbf16>,
    %cst = arith.constant 0.000000e+00 : bf16
    %9 = vector.broadcast %cst : bf16 to vector<8x32xbf16>
    %c2344 = arith.constant 2344 : index
    %c16_10 = arith.constant 16 : index
    %10 = vector.load %arg6[%c2344, %c16_10] : memref<2352x48xbf16, #tpu.memory_space<vmem>>, vector<8x32xbf16>
    tpu.vector_store %arg6[%c2344, %c16_10], %9 {strides = array<i32>} : memref<2352x48xbf16, #tpu.memory_space<vmem>>, vector<8x32xbf16>,
    %c0_i32 = arith.constant 0 : i32
    %c3_i32 = arith.constant 3 : i32
    %11 = arith.addi %c0_i32, %c3_i32 : i32
    %c1_i32 = arith.constant 1 : i32
    scf.for %arg8 = %c0_i32 to %11 step %c1_i32  : i32 {
      %c1_i32_20 = arith.constant 1 : i32
      %15 = arith.muli %arg8, %c1_i32_20 : i32
      %c0_i32_21 = arith.constant 0 : i32
      %16 = arith.addi %c0_i32_21, %15 : i32
      %c784_i32 = arith.constant 784 : i32
      %17 = arith.muli %16, %c784_i32 : i32
      %18 = tpu.assume_multiple %17, 16 : i32
      %19 = arith.index_cast %18 : i32 to index
      %c0_22 = arith.constant 0 : index
      %20 = vector.load %arg6[%19, %c0_22] : memref<2352x48xbf16, #tpu.memory_space<vmem>>, vector<784x48xbf16>
      %c0_23 = arith.constant 0 : index
      %c0_24 = arith.constant 0 : index
      %21 = vector.load %arg2[%c0_23, %c0_24] : memref<48x96xbf16, #tpu.memory_space<vmem>>, vector<48x96xbf16>
      %cst_25 = arith.constant dense<0.000000e+00> : vector<784x96xf32>
      %22 = tpu.matmul %20, %21, %cst_25 {dimension_numbers = #tpu.dot_dimension_numbers<[1], [0], [0], [1], [0, 0, 1, 1], [], []>} : vector<784x48xbf16>, vector<48x96xbf16>, vector<784x96xf32> -> vector<784x96xf32>
      %cst_26 = arith.constant 0.000000e+00 : f32
      %23 = vector.broadcast %cst_26 : f32 to vector<784x96xf32>
      %24 = arith.maximumf %22, %23 : vector<784x96xf32>
      %25 = arith.truncf %24 : vector<784x96xf32> to vector<784x96xbf16>
      %26 = arith.index_cast %18 : i32 to index
      %c0_27 = arith.constant 0 : index
      %27 = vector.load %arg7[%26, %c0_27] : memref<2352x96xbf16, #tpu.memory_space<vmem>>, vector<784x96xbf16>
      tpu.vector_store %arg7[%26, %c0_27], %25 {strides = array<i32>} : memref<2352x96xbf16, #tpu.memory_space<vmem>>, vector<784x96xbf16>,
    }
    %c3_i32_11 = arith.constant 3 : i32
    %c0_12 = arith.constant 0 : index
    %c0_13 = arith.constant 0 : index
    %c0_14 = arith.constant 0 : index
    %12 = vector.load %arg3[%c0_12, %c0_13, %c0_14] : memref<3x96x64xbf16, #tpu.memory_space<vmem>>, vector<3x96x64xbf16>
    %c0_15 = arith.constant 0 : index
    %c0_16 = arith.constant 0 : index
    %13 = vector.load %arg4[%c0_15, %c0_16] : memref<1x64xf32, #tpu.memory_space<vmem>>, vector<1x64xf32>
    %c0_i32_17 = arith.constant 0 : i32
    %c22_i32 = arith.constant 22 : i32
    %14 = arith.addi %c0_i32_17, %c22_i32 : i32
    %c1_i32_18 = arith.constant 1 : i32
    scf.for %arg8 = %c0_i32_17 to %14 step %c1_i32_18  : i32 {
      %c1_i32_20 = arith.constant 1 : i32
      %15 = arith.muli %arg8, %c1_i32_20 : i32
      %c0_i32_21 = arith.constant 0 : i32
      %16 = arith.addi %c0_i32_21, %15 : i32
      %c96_i32 = arith.constant 96 : i32
      %17 = arith.muli %16, %c96_i32 : i32
      %18 = tpu.assume_multiple %17, 16 : i32
      %19 = arith.index_cast %18 : i32 to index
      %c0_22 = arith.constant 0 : index
      %20 = vector.load %arg7[%19, %c0_22] : memref<2352x96xbf16, #tpu.memory_space<vmem>>, vector<96x96xbf16>
      %21 = vector.extract_strided_slice %12 {offsets = [0, 0, 0], sizes = [1, 96, 64], strides = [1, 1, 1]} : vector<3x96x64xbf16> to vector<1x96x64xbf16>
      %22 = vector.shape_cast %21 : vector<1x96x64xbf16> to vector<96x64xbf16>
      %cst_23 = arith.constant dense<0.000000e+00> : vector<96x64xf32>
      %23 = tpu.matmul %20, %22, %cst_23 {dimension_numbers = #tpu.dot_dimension_numbers<[1], [0], [0], [1], [0, 0, 1, 1], [], []>} : vector<96x96xbf16>, vector<96x64xbf16>, vector<96x64xf32> -> vector<96x64xf32>
      %c48_i32 = arith.constant 48 : i32
      %24 = arith.addi %18, %c48_i32 : i32
      %25 = arith.index_cast %24 : i32 to index
      %c0_24 = arith.constant 0 : index
      %26 = vector.load %arg7[%25, %c0_24] : memref<2352x96xbf16, #tpu.memory_space<vmem>>, vector<96x96xbf16>
      %27 = vector.extract_strided_slice %12 {offsets = [1, 0, 0], sizes = [1, 96, 64], strides = [1, 1, 1]} : vector<3x96x64xbf16> to vector<1x96x64xbf16>
      %28 = vector.shape_cast %27 : vector<1x96x64xbf16> to vector<96x64xbf16>
      %cst_25 = arith.constant dense<0.000000e+00> : vector<96x64xf32>
      %29 = tpu.matmul %26, %28, %cst_25 {dimension_numbers = #tpu.dot_dimension_numbers<[1], [0], [0], [1], [0, 0, 1, 1], [], []>} : vector<96x96xbf16>, vector<96x64xbf16>, vector<96x64xf32> -> vector<96x64xf32>
      %30 = arith.addf %23, %29 : vector<96x64xf32>
      %c96_i32_26 = arith.constant 96 : i32
      %31 = arith.addi %18, %c96_i32_26 : i32
      %32 = arith.index_cast %31 : i32 to index
      %c0_27 = arith.constant 0 : index
      %33 = vector.load %arg7[%32, %c0_27] : memref<2352x96xbf16, #tpu.memory_space<vmem>>, vector<96x96xbf16>
      %34 = vector.extract_strided_slice %12 {offsets = [2, 0, 0], sizes = [1, 96, 64], strides = [1, 1, 1]} : vector<3x96x64xbf16> to vector<1x96x64xbf16>
      %35 = vector.shape_cast %34 : vector<1x96x64xbf16> to vector<96x64xbf16>
      %cst_28 = arith.constant dense<0.000000e+00> : vector<96x64xf32>
      %36 = tpu.matmul %33, %35, %cst_28 {dimension_numbers = #tpu.dot_dimension_numbers<[1], [0], [0], [1], [0, 0, 1, 1], [], []>} : vector<96x96xbf16>, vector<96x64xbf16>, vector<96x64xf32> -> vector<96x64xf32>
      %37 = arith.addf %30, %36 : vector<96x64xf32>
      %38 = vector.broadcast %13 : vector<1x64xf32> to vector<96x64xf32>
      %39 = arith.addf %37, %38 : vector<96x64xf32>
      %40 = vector.extract_strided_slice %39 {offsets = [0, 0], sizes = [48, 64], strides = [1, 1]} : vector<96x64xf32> to vector<48x64xf32>
      %41 = vector.extract_strided_slice %39 {offsets = [48, 0], sizes = [48, 64], strides = [1, 1]} : vector<96x64xf32> to vector<48x64xf32>
      %42 = arith.maximumf %40, %41 : vector<48x64xf32>
      %43 = vector.shape_cast %42 : vector<48x64xf32> to vector<24x2x64xf32>
      %cst_29 = arith.constant dense<0xFF800000> : vector<24x64xf32>
      %44 = vector.multi_reduction <maximumf>, %43, %cst_29 [1] : vector<24x2x64xf32> to vector<24x64xf32>
      %c24_i32 = arith.constant 24 : i32
      %45 = arith.muli %16, %c24_i32 : i32
      %46 = tpu.assume_multiple %45, 8 : i32
      %47 = arith.truncf %44 : vector<24x64xf32> to vector<24x64xbf16>
      %c0_30 = arith.constant 0 : index
      %48 = arith.index_cast %46 : i32 to index
      %c0_31 = arith.constant 0 : index
      %49 = vector.load %arg5[%c0_30, %48, %c0_31] : memref<1x528x64xbf16, #tpu.memory_space<vmem>>, vector<1x24x64xbf16>
      %50 = vector.shape_cast %49 : vector<1x24x64xbf16> to vector<24x64xbf16>
      %51 = vector.shape_cast %47 : vector<24x64xbf16> to vector<1x24x64xbf16>
      tpu.vector_store %arg5[%c0_30, %48, %c0_31], %51 {strides = array<i32>} : memref<1x528x64xbf16, #tpu.memory_space<vmem>>, vector<1x24x64xbf16>,
    }
    %c22_i32_19 = arith.constant 22 : i32
    return
  }
  func.func @transform_0(%arg0: i32) -> (i32, i32, i32) {
    %c0_i32 = arith.constant 0 : i32
    %c0_i32_0 = arith.constant 0 : i32
    %c0_i32_1 = arith.constant 0 : i32
    return %arg0, %c0_i32, %c0_i32_0 : i32, i32, i32
  }
  func.func @transform_1(%arg0: i32) -> (i32, i32) {
    %c0_i32 = arith.constant 0 : i32
    %c0_i32_0 = arith.constant 0 : i32
    %c0_i32_1 = arith.constant 0 : i32
    return %c0_i32, %c0_i32_0 : i32, i32
  }
  func.func @transform_2(%arg0: i32) -> (i32, i32, i32) {
    %c0_i32 = arith.constant 0 : i32
    %c0_i32_0 = arith.constant 0 : i32
    %c0_i32_1 = arith.constant 0 : i32
    %c0_i32_2 = arith.constant 0 : i32
    return %c0_i32, %c0_i32_0, %c0_i32_1 : i32, i32, i32
  }
  func.func @transform_3(%arg0: i32) -> (i32, i32) {
    %c0_i32 = arith.constant 0 : i32
    %c0_i32_0 = arith.constant 0 : i32
    %c0_i32_1 = arith.constant 0 : i32
    return %c0_i32, %c0_i32_0 : i32, i32
  }
  func.func @transform_4(%arg0: i32) -> (i32, i32, i32) {
    %c0_i32 = arith.constant 0 : i32
    %c0_i32_0 = arith.constant 0 : i32
    %c0_i32_1 = arith.constant 0 : i32
    return %arg0, %c0_i32, %c0_i32_0 : i32, i32, i32
  }
}

module attributes {stable_mosaic.version = 11 : i64} {
  func.func @_fc_kernel(%arg0: i32, %arg1: memref<6x15488xbf16, #tpu.memory_space<vmem>>, %arg2: memref<15488x128xi8, #tpu.memory_space<vmem>>, %arg3: memref<1x128xf32, #tpu.memory_space<vmem>>, %arg4: memref<1x128xf32, #tpu.memory_space<vmem>>, %arg5: memref<128x14xbf16, #tpu.memory_space<vmem>>, %arg6: memref<1x14xf32, #tpu.memory_space<vmem>>, %arg7: memref<6x14xf32, #tpu.memory_space<vmem>>, %arg8: memref<6x128xf32, #tpu.memory_space<vmem>>) attributes {dimension_semantics = [#tpu.dimension_semantics<arbitrary>], iteration_bounds = array<i64: 2>, scalar_prefetch = 0 : i64, scratch_operands = 1 : i64, tpu.core_type = #tpu.core_type<tc>, window_params = [{transform_indices = @transform_0, window_bounds = array<i64: 6, 15488>}, {transform_indices = @transform_1, window_bounds = array<i64: 15488, 128>}, {pipeline_mode = #tpu.pipeline_mode<synchronous>, transform_indices = @transform_2, window_bounds = array<i64: 1, 128>}, {pipeline_mode = #tpu.pipeline_mode<synchronous>, transform_indices = @transform_3, window_bounds = array<i64: 1, 128>}, {pipeline_mode = #tpu.pipeline_mode<synchronous>, transform_indices = @transform_4, window_bounds = array<i64: 128, 14>}, {pipeline_mode = #tpu.pipeline_mode<synchronous>, transform_indices = @transform_5, window_bounds = array<i64: 1, 14>}, {pipeline_mode = #tpu.pipeline_mode<synchronous>, transform_indices = @transform_6, window_bounds = array<i64: 6, 14>}]} {
    %c0_i32 = arith.constant 0 : i32
    %0 = arith.cmpi eq, %arg0, %c0_i32 : i32
    %1 = arith.extui %0 : i1 to i32
    %c0_i32_0 = arith.constant 0 : i32
    %2 = arith.cmpi ne, %1, %c0_i32_0 : i32
    scf.if %2 {
      %cst_9 = arith.constant 0.000000e+00 : f32
      %13 = vector.broadcast %cst_9 : f32 to vector<6x128xf32>
      %c0_10 = arith.constant 0 : index
      %c0_11 = arith.constant 0 : index
      %14 = vector.load %arg8[%c0_10, %c0_11] : memref<6x128xf32, #tpu.memory_space<vmem>>, vector<6x128xf32>
      tpu.vector_store %arg8[%c0_10, %c0_11], %13 {strides = array<i32>} : memref<6x128xf32, #tpu.memory_space<vmem>>, vector<6x128xf32>,
    } else {
    }
    %c0 = arith.constant 0 : index
    %c0_1 = arith.constant 0 : index
    %3 = vector.load %arg2[%c0, %c0_1] : memref<15488x128xi8, #tpu.memory_space<vmem>>, vector<15488x128xi8>
    %4 = arith.sitofp %3 : vector<15488x128xi8> to vector<15488x128xbf16>
    %c0_2 = arith.constant 0 : index
    %c0_3 = arith.constant 0 : index
    %5 = vector.load %arg8[%c0_2, %c0_3] : memref<6x128xf32, #tpu.memory_space<vmem>>, vector<6x128xf32>
    %c0_4 = arith.constant 0 : index
    %c0_5 = arith.constant 0 : index
    %6 = vector.load %arg1[%c0_4, %c0_5] : memref<6x15488xbf16, #tpu.memory_space<vmem>>, vector<6x15488xbf16>
    %cst = arith.constant dense<0.000000e+00> : vector<6x128xf32>
    %7 = tpu.matmul %6, %4, %cst {dimension_numbers = #tpu.dot_dimension_numbers<[1], [0], [0], [1], [0, 0, 1, 1], [], []>} : vector<6x15488xbf16>, vector<15488x128xbf16>, vector<6x128xf32> -> vector<6x128xf32>
    %8 = arith.addf %5, %7 : vector<6x128xf32>
    %c0_6 = arith.constant 0 : index
    %c0_7 = arith.constant 0 : index
    %9 = vector.load %arg8[%c0_6, %c0_7] : memref<6x128xf32, #tpu.memory_space<vmem>>, vector<6x128xf32>
    tpu.vector_store %arg8[%c0_6, %c0_7], %8 {strides = array<i32>} : memref<6x128xf32, #tpu.memory_space<vmem>>, vector<6x128xf32>,
    %c1_i32 = arith.constant 1 : i32
    %10 = arith.cmpi eq, %arg0, %c1_i32 : i32
    %11 = arith.extui %10 : i1 to i32
    %c0_i32_8 = arith.constant 0 : i32
    %12 = arith.cmpi ne, %11, %c0_i32_8 : i32
    scf.if %12 {
      %c0_9 = arith.constant 0 : index
      %c0_10 = arith.constant 0 : index
      %13 = vector.load %arg8[%c0_9, %c0_10] : memref<6x128xf32, #tpu.memory_space<vmem>>, vector<6x128xf32>
      %c0_11 = arith.constant 0 : index
      %c0_12 = arith.constant 0 : index
      %14 = vector.load %arg3[%c0_11, %c0_12] : memref<1x128xf32, #tpu.memory_space<vmem>>, vector<1x128xf32>
      %15 = vector.broadcast %14 : vector<1x128xf32> to vector<6x128xf32>
      %16 = arith.mulf %13, %15 : vector<6x128xf32>
      %c0_13 = arith.constant 0 : index
      %c0_14 = arith.constant 0 : index
      %17 = vector.load %arg4[%c0_13, %c0_14] : memref<1x128xf32, #tpu.memory_space<vmem>>, vector<1x128xf32>
      %18 = vector.broadcast %17 : vector<1x128xf32> to vector<6x128xf32>
      %19 = arith.addf %16, %18 : vector<6x128xf32>
      %cst_15 = arith.constant 0.000000e+00 : f32
      %20 = vector.broadcast %cst_15 : f32 to vector<6x128xf32>
      %21 = arith.maximumf %19, %20 : vector<6x128xf32>
      %22 = arith.truncf %21 : vector<6x128xf32> to vector<6x128xbf16>
      %c0_16 = arith.constant 0 : index
      %c0_17 = arith.constant 0 : index
      %23 = vector.load %arg5[%c0_16, %c0_17] : memref<128x14xbf16, #tpu.memory_space<vmem>>, vector<128x14xbf16>
      %cst_18 = arith.constant dense<0.000000e+00> : vector<6x14xf32>
      %24 = tpu.matmul %22, %23, %cst_18 {dimension_numbers = #tpu.dot_dimension_numbers<[1], [0], [0], [1], [0, 0, 1, 1], [], []>} : vector<6x128xbf16>, vector<128x14xbf16>, vector<6x14xf32> -> vector<6x14xf32>
      %c0_19 = arith.constant 0 : index
      %c0_20 = arith.constant 0 : index
      %25 = vector.load %arg6[%c0_19, %c0_20] : memref<1x14xf32, #tpu.memory_space<vmem>>, vector<1x14xf32>
      %26 = vector.broadcast %25 : vector<1x14xf32> to vector<6x14xf32>
      %27 = arith.addf %24, %26 : vector<6x14xf32>
      %cst_21 = arith.constant dense<0xFF800000> : vector<6xf32>
      %28 = vector.multi_reduction <maximumf>, %27, %cst_21 [1] : vector<6x14xf32> to vector<6xf32>
      %29 = vector.shape_cast %28 : vector<6xf32> to vector<6x1xf32>
      %30 = vector.broadcast %29 : vector<6x1xf32> to vector<6x14xf32>
      %31 = arith.subf %27, %30 : vector<6x14xf32>
      %32 = math.exp %31 : vector<6x14xf32>
      %cst_22 = arith.constant dense<0.000000e+00> : vector<6xf32>
      %33 = vector.multi_reduction <add>, %32, %cst_22 [1] : vector<6x14xf32> to vector<6xf32>
      %34 = vector.shape_cast %33 : vector<6xf32> to vector<6x1xf32>
      %35 = tpu.reciprocal %34 {approx = true} : vector<6x1xf32> -> vector<6x1xf32>
      %36 = vector.broadcast %35 : vector<6x1xf32> to vector<6x14xf32>
      %37 = arith.mulf %32, %36 : vector<6x14xf32>
      %c0_23 = arith.constant 0 : index
      %c0_24 = arith.constant 0 : index
      %38 = vector.load %arg7[%c0_23, %c0_24] : memref<6x14xf32, #tpu.memory_space<vmem>>, vector<6x14xf32>
      tpu.vector_store %arg7[%c0_23, %c0_24], %37 {strides = array<i32>} : memref<6x14xf32, #tpu.memory_space<vmem>>, vector<6x14xf32>,
    } else {
    }
    return
  }
  func.func @transform_0(%arg0: i32) -> (i32, i32) {
    %c0_i32 = arith.constant 0 : i32
    %c0_i32_0 = arith.constant 0 : i32
    return %c0_i32, %arg0 : i32, i32
  }
  func.func @transform_1(%arg0: i32) -> (i32, i32) {
    %c0_i32 = arith.constant 0 : i32
    %c0_i32_0 = arith.constant 0 : i32
    return %arg0, %c0_i32 : i32, i32
  }
  func.func @transform_2(%arg0: i32) -> (i32, i32) {
    %c0_i32 = arith.constant 0 : i32
    %c0_i32_0 = arith.constant 0 : i32
    %c0_i32_1 = arith.constant 0 : i32
    return %c0_i32, %c0_i32_0 : i32, i32
  }
  func.func @transform_3(%arg0: i32) -> (i32, i32) {
    %c0_i32 = arith.constant 0 : i32
    %c0_i32_0 = arith.constant 0 : i32
    %c0_i32_1 = arith.constant 0 : i32
    return %c0_i32, %c0_i32_0 : i32, i32
  }
  func.func @transform_4(%arg0: i32) -> (i32, i32) {
    %c0_i32 = arith.constant 0 : i32
    %c0_i32_0 = arith.constant 0 : i32
    %c0_i32_1 = arith.constant 0 : i32
    return %c0_i32, %c0_i32_0 : i32, i32
  }
  func.func @transform_5(%arg0: i32) -> (i32, i32) {
    %c0_i32 = arith.constant 0 : i32
    %c0_i32_0 = arith.constant 0 : i32
    %c0_i32_1 = arith.constant 0 : i32
    return %c0_i32, %c0_i32_0 : i32, i32
  }
  func.func @transform_6(%arg0: i32) -> (i32, i32) {
    %c0_i32 = arith.constant 0 : i32
    %c0_i32_0 = arith.constant 0 : i32
    %c0_i32_1 = arith.constant 0 : i32
    return %c0_i32, %c0_i32_0 : i32, i32
  }
}

</mosaic_0001>

<bundles_post_ra>
// kernel: hwfnet_forward.2
= control target key start
LH: loop header
LB: loop body
LE: loop exit
PB: predicated region body
PF: predicated region fallthrough
CT: control target
= control target key end

     0   :  { %s9676_s15 = smov 0   ;;  %s12828_s0 = inlined_call_operand.vmem [shape: bf16[6,2352,16], index: 0, kind: input, shape index: {}]   ;;  %s12829_s1 = inlined_call_operand.vmem [shape: bf16[48,96], index: 1, kind: input, shape index: {}]   ;;  %s12830_s2 = inlined_call_operand.vmem [shape: bf16[3,96,64], index: 2, kind: input, shape index: {}]   ;;  %s12831_s3 = inlined_call_operand.vmem [shape: f32[1,64], index: 3, kind: input, shape index: {}]   ;;  %s12832_s4 = inlined_call_operand.vmem [shape: bf16[6,528,64], index: 4, kind: output, shape index: {}]  }
   0x1 LB: > { %s8148_s16 = sadd.s32 4294967295, %s9635_s15   ;;  %p8152_p0 = scmp.ge.s32.totalorder %s9635_s15, 1  ;;  %s9635_s15 = sphi %s9676_s15, %s14_s15  }
   0x2   : > { %p162_p1 = scmp.lt.s32.totalorder %s9635_s15, 7 }
   0x4   : > { %p163_p2 = pnand %p8152_p0, %p162_p1 }
   0x5   : > { %p188_p3 = scmp.lt.s32.totalorder (!%p163_p2), %s8148_s16, 5  ;;  %vm2552_vm0 = vsmask.f32 (!%p163_p2), 7424  ;;  %s9645_s25 = smov (!%p163_p2), 16   ;;  %vm1375_vm1 = vcmask (!%p163_p2), 130048   ;;  %vm4169_vm2 = vcmask (!%p163_p2), 261248  }
   0x6   : > { %166 = sbr.rel (%p163_p2) target bundleno = 1502 (0x5de), region = 36  ;;  %vm5347_vm3 = vcmask (!%p163_p2), 1046528   ;;  %s9646_s26 = smov (!%p163_p2), 32   ;;  %vm6231_vm4 = vcmask (!%p163_p2), 392324   ;;  %vm6082_vm5 = vcmask (!%p163_p2), 392448   ;;  %vm4316_vm6 = vcmask (!%p163_p2), 257152  }
   0x7   : > { %vm6229_vm7 = vcmask (!%p163_p2), 388352   ;;  %s12116_s27 = smov (!%p163_p2), 0  }
   0xd   : > { %s12862_s16 = smov (!%p188_p3, %s8148_s16), 5 }
   0xe   : > { %s9145_s17 = smul.u32 1176, %s12862_s16 }
   0xf   : > { %s9146_s18 = smul.u32 264, %s12862_s16 }
  0x10   : > { %s9687_s21 = scalar_lea.vmem %s12828_s0, %s9145_s17 }
  0x11   : > { %s9692_s24 = scalar_lea.vmem %s12832_s4, %s9146_s18  ;;  %v9177_v0 = vld [vmem:[%s9687_s21 + $0x10] sm:$0xff]   ;;  %v9178_v1 = vld [vmem:[%s9687_s21 + $0x18] sm:$0xff]   ;;  %v9179_v5 = vld [vmem:[%s9687_s21] sm:$0xff]  }
  0x12   : > { %v2569_v2 = vshll.u32 %v9177_v0, 16  ;;  %v2573_v3 = vshrl.u32 %v9177_v0, 16  ;;  %v2577_v4 = vshll.u32 %v9178_v1, 16  ;;  %v9180_v6 = vld [vmem:[%s9687_s21 + $0x8] sm:$0xff]   ;;  %v2581_v7 = vshrl.u32 %v9178_v1, 16  ;;  %v9181_v12 = vld [vmem:[%s9687_s21 + $0x20] sm:$0xff]  }
  0x13   : > { %v2554_v10 = vshrl.u32 %v9179_v5, 16  ;;  %v2556_v11 = vshll.u32 %v9179_v5, 16  ;;  %v9182_v13 = vld [vmem:[%s9687_s21 + $0x28] sm:$0xff]   ;;  %v2561_v14 = vshll.u32 %v9180_v6, 16  ;;  %v2565_v15 = vshrl.u32 %v9180_v6, 16  ;;  %v9183_v21 = vld [vmem:[%s9687_s21 + $0x30] sm:$0xff]  }
  0x14   : > { %v2571_v8 = vrot.slane %v2569_v2, 1  ;;  %v2579_v9 = vrot.slane %v2577_v4, 1  ;;  %v2585_v19 = vshll.u32 %v9181_v12, 16  ;;  %v2593_v22 = vshll.u32 %v9182_v13, 16  ;;  %v9184_v25 = vld [vmem:[%s9687_s21 + $0x38] sm:$0xff]   ;;  %v9185_v29 = vld [vmem:[%s9687_s21 + $0x40] sm:$0xff]  }
  0x15   : > { %v2558_v17 = vrot.slane %v2556_v11, 1  ;;  %v2563_v20 = vrot.slane %v2561_v14, 1  ;;  %v2597_v23 = vshrl.u32 %v9182_v13, 16  ;;  %v2589_v24 = vshrl.u32 %v9181_v12, 16  ;;  %v9186_v36 = vld [vmem:[%s9687_s21 + $0x48] sm:$0xff]   ;;  %v9187_v45 = vld [vmem:[%s9687_s21 + $0x50] sm:$0xff]  }
  0x16   : > { %v2575_v16 = vor.u32 %v2573_v3, %v2571_v8  ;;  %v2583_v18 = vor.u32 %v2581_v7, %v2579_v9  ;;  %v2587_v28 = vrot.slane %v2585_v19, 1  ;;  %v2595_v31 = vrot.slane %v2593_v22, 1  ;;  %v9188_v48 = vld [vmem:[%s9687_s21 + $0x58] sm:$0xff]   ;;  %v9189_v56 = vld [vmem:[%s9687_s21 + $0x60] sm:$0xff]   ;;  %v9190_v58 = vld [vmem:[%s9687_s21 + $0x68] sm:$0xff]  }
  0x17   : > { %v2559_v27 = vor.u32 %v2558_v17, %v2554_v10  ;;  %v2567_v30 = vor.u32 %v2565_v15, %v2563_v20  ;;  %v2601_v32 = vshll.u32 %v9183_v21, 16  ;;  %v2609_v35 = vshll.u32 %v9184_v25, 16  ;;  %v9191_v61 = vld [vmem:[%s9687_s21 + $0x70] sm:$0xff]   ;;  %v9192_v10 = vld [vmem:[%s9687_s21 + $0x78] sm:$0xff]   ;;  %v9193_v12 = vld [vmem:[%s9687_s21 + $0x80] sm:$0xff]  }
  0x18   : > { %v2580_v26 = vsel %vm2552_vm0, %v2575_v16, %v2579_v9  ;;  %v2588_v34 = vsel %vm2552_vm0, %v2583_v18, %v2587_v28  ;;  %v2599_v37 = vor.u32 %v2597_v23, %v2595_v31  ;;  %v2591_v39 = vor.u32 %v2589_v24, %v2587_v28  ;;  %v9194_v16 = vld [vmem:[%s9687_s21 + $0x88] sm:$0xff]   ;;  %v9196_v24 = vld [vmem:[%s9687_s21 + $0x98] sm:$0xff]  }
  0x19   : > { %3732 = vrot.lane.b32.xlu1 %v2580_v26, %s9645_s25  ;;  %v2564_v33 = vsel %vm2552_vm0, %v2559_v27, %v2563_v20  ;;  %v2603_v38 = vrot.slane %v2601_v32, 1  ;;  %v2613_v40 = vshrl.u32 %v9184_v25, 16  ;;  %v2572_v41 = vsel %vm2552_vm0, %v2567_v30, %v2571_v8  ;;  %v9195_v20 = vld [vmem:[%s9687_s21 + $0x90] sm:$0xff]  }
  0x1a   : > { %3728 = vrot.lane.b32.xlu0 %v2564_v33, %s9645_s25  ;;  %v2611_v42 = vrot.slane %v2609_v35, 1  ;;  %v2617_v43 = vshll.u32 %v9185_v29, 16  ;;  %v2605_v44 = vshrl.u32 %v9183_v21, 16  ;;  %v2625_v46 = vshll.u32 %v9186_v36, 16 }
  0x1b   : > { %v2629_v47 = vshrl.u32 %v9186_v36, 16  ;;  %v2604_v49 = vsel %vm2552_vm0, %v2599_v37, %v2603_v38  ;;  %v2633_v52 = vshll.u32 %v9187_v45, 16  ;;  %v2621_v55 = vshrl.u32 %v9185_v29, 16 }
  0x1c   : > { %v2615_v50 = vor.u32 %v2613_v40, %v2611_v42  ;;  %v2619_v51 = vrot.slane %v2617_v43, 1  ;;  %v2607_v53 = vor.u32 %v2605_v44, %v2603_v38  ;;  %v2627_v54 = vrot.slane %v2625_v46, 1  ;;  %v9198_v40 = vld [vmem:[%s9687_s21 + $0xa8] sm:$0xff]  }
  0x1d   : > { %3734 = vrot.lane.b32.xlu1 %v2588_v34, %s9645_s25  ;;  %v2641_v57 = vshll.u32 %v9188_v48, 16  ;;  %v2596_v59 = vsel %vm2552_vm0, %v2591_v39, %v2595_v31  ;;  %v2645_v60 = vshrl.u32 %v9188_v48, 16  ;;  %v2635_v62 = vrot.slane %v2633_v52, 1  ;;  %v9197_v34 = vld [vmem:[%s9687_s21 + $0xa0] sm:$0xff]   ;;  %v9199_v48 = vld [vmem:[%s9687_s21 + $0xb0] sm:$0xff]   ;;  %v9200_v52 = vld [vmem:[%s9687_s21 + $0xb8] sm:$0xff]  }
  0x1e   : > { %3730 = vrot.lane.b32.xlu0 %v2572_v41, %s9645_s25  ;;  %v2649_v63 = vshll.u32 %v9189_v56, 16  ;;  %v2620_v0 = vsel %vm2552_vm0, %v2615_v50, %v2619_v51  ;;  %v2631_v1 = vor.u32 %v2629_v47, %v2627_v54  ;;  %v2657_v3 = vshll.u32 %v9190_v58, 16 }
  0x1f   : > { %v2643_v2 = vrot.slane %v2641_v57, 1  ;;  %v2612_v4 = vsel %vm2552_vm0, %v2607_v53, %v2611_v42  ;;  %v2637_v5 = vshrl.u32 %v9187_v45, 16  ;;  %v2623_v6 = vor.u32 %v2621_v55, %v2619_v51 }
  0x20   : > { %v2651_v7 = vrot.slane %v2649_v63, 1  ;;  %v2661_v8 = vshrl.u32 %v9190_v58, 16  ;;  %v2665_v9 = vshll.u32 %v9191_v61, 16  ;;  %v2659_v11 = vrot.slane %v2657_v3, 1  ;;  %v9201_v58 = vld [vmem:[%s9687_s21 + $0xc0] sm:$0xff]  }
  0x21   : > { %3738 = vrot.lane.b32.xlu1 %v2604_v49, %s9645_s25  ;;  %v2636_v13 = vsel %vm2552_vm0, %v2631_v1, %v2635_v62  ;;  %v2647_v14 = vor.u32 %v2645_v60, %v2643_v2  ;;  %v2673_v15 = vshll.u32 %v9192_v10, 16  ;;  %v2628_v17 = vsel %vm2552_vm0, %v2623_v6, %v2627_v54  ;;  %v9202_v60 = vld [vmem:[%s9687_s21 + $0xc8] sm:$0xff]  }
  0x22   : > { %3736 = vrot.lane.b32.xlu0 %v2596_v59, %s9645_s25  ;;  %v2639_v18 = vor.u32 %v2637_v5, %v2635_v62  ;;  %v2653_v19 = vshrl.u32 %v9189_v56, 16  ;;  %v2667_v21 = vrot.slane %v2665_v9, 1  ;;  %v2677_v22 = vshrl.u32 %v9192_v10, 16 }
  0x23   : > { %v2681_v23 = vshll.u32 %v9193_v12, 16  ;;  %v2652_v25 = vsel %vm2552_vm0, %v2647_v14, %v2651_v7  ;;  %v2663_v26 = vor.u32 %v2661_v8, %v2659_v11  ;;  %v2675_v27 = vrot.slane %v2673_v15, 1 }
  0x24   : > { %v2689_v28 = vshll.u32 %v9194_v16, 16  ;;  %v2669_v29 = vshrl.u32 %v9191_v61, 16  ;;  %v2644_v30 = vsel %vm2552_vm0, %v2639_v18, %v2643_v2  ;;  %v2655_v31 = vor.u32 %v2653_v19, %v2651_v7  ;;  %v9203_v7 = vld [vmem:[%s9687_s21 + $0xd0] sm:$0xff]   ;;  %v9761_v18 = vld [vmem:[%s9687_s21 + $0xe0] sm:$0xff]   ;;  %v9206_v19 = vld [vmem:[%s9687_s21 + $0xe8] sm:$0xff]  }
  0x25   : > { %3742 = vrot.lane.b32.xlu1 %v2620_v0, %s9645_s25  ;;  %v2693_v32 = vshrl.u32 %v9194_v16, 16  ;;  %v2697_v33 = vshll.u32 %v9195_v20, 16  ;;  %v2683_v35 = vrot.slane %v2681_v23, 1  ;;  %v2705_v36 = vshll.u32 %v9196_v24, 16 }
  0x26   : > { %3740 = vrot.lane.b32.xlu0 %v2612_v4, %s9645_s25  ;;  %v2668_v37 = vsel %vm2552_vm0, %v2663_v26, %v2667_v21  ;;  %v2679_v38 = vor.u32 %v2677_v22, %v2675_v27  ;;  %v2691_v39 = vrot.slane %v2689_v28, 1  ;;  %v2671_v41 = vor.u32 %v2669_v29, %v2667_v21  ;;  %v9771_v28 = vld [vmem:[%s9687_s21 + $0xf8] sm:$0xff]  }
  0x27   : > { %v2660_v42 = vsel %vm2552_vm0, %v2655_v31, %v2659_v11  ;;  %v2685_v43 = vshrl.u32 %v9193_v12, 16  ;;  %v2713_v44 = vshll.u32 %v9197_v34, 16  ;;  %v2699_v45 = vrot.slane %v2697_v33, 1  ;;  %v9204_v12 = vld [vmem:[%s9687_s21 + $0xd8] sm:$0xff]  }
  0x28   : > { %v2707_v46 = vrot.slane %v2705_v36, 1  ;;  %v2709_v47 = vshrl.u32 %v9196_v24, 16  ;;  %v2684_v49 = vsel %vm2552_vm0, %v2679_v38, %v2683_v35  ;;  %v2695_v50 = vor.u32 %v2693_v32, %v2691_v39 }
  0x29   : > { %3746 = vrot.lane.b32.xlu1 %v2636_v13, %s9645_s25  ;;  %v2721_v51 = vshll.u32 %v9198_v40, 16  ;;  %v2676_v53 = vsel %vm2552_vm0, %v2671_v41, %v2675_v27  ;;  %v2687_v54 = vor.u32 %v2685_v43, %v2683_v35  ;;  %v2715_v55 = vrot.slane %v2713_v44, 1  ;;  %v9777_v35 = vld [vmem:[%s9687_s21 + $0x100] sm:$0xff]   ;;  %v9785_v43 = vld [vmem:[%s9687_s21 + $0x108] sm:$0xff]  }
  0x2a   : > { %3744 = vrot.lane.b32.xlu0 %v2628_v17, %s9645_s25  ;;  %v2701_v56 = vshrl.u32 %v9195_v20, 16  ;;  %v2725_v57 = vshrl.u32 %v9198_v40, 16  ;;  %v2729_v59 = vshll.u32 %v9199_v48, 16  ;;  %v2700_v61 = vsel %vm2552_vm0, %v2695_v50, %v2699_v45 }
  0x2b   : > { %v2711_v62 = vor.u32 %v2709_v47, %v2707_v46  ;;  %v2723_v63 = vrot.slane %v2721_v51, 1  ;;  %v2737_v0 = vshll.u32 %v9200_v52, 16  ;;  %v2692_v1 = vsel %vm2552_vm0, %v2687_v54, %v2691_v39  ;;  %v9797_v51 = vld [vmem:[%s9687_s21 + $0x120] sm:$0xff]  }
  0x2c   : > { %v2703_v2 = vor.u32 %v2701_v56, %v2699_v45  ;;  %v2717_v3 = vshrl.u32 %v9197_v34, 16  ;;  %v2745_v4 = vshll.u32 %v9201_v58, 16  ;;  %v2731_v5 = vrot.slane %v2729_v59, 1 }
  0x2d   : > { %3750 = vrot.lane.b32.xlu1 %v2652_v25, %s9645_s25  ;;  %v2741_v6 = vshrl.u32 %v9200_v52, 16  ;;  %v2753_v8 = vshll.u32 %v9202_v60, 16  ;;  %v2716_v9 = vsel %vm2552_vm0, %v2711_v62, %v2715_v55  ;;  %v2727_v10 = vor.u32 %v2725_v57, %v2723_v63  ;;  %v9767_v25 = vld [vmem:[%s9687_s21 + $0xf0] sm:$0xff]  }
  0x2e   : > { %3748 = vrot.lane.b32.xlu0 %v2644_v30, %s9645_s25  ;;  %v2739_v11 = vrot.slane %v2737_v0, 1  ;;  %v2733_v13 = vshrl.u32 %v9199_v48, 16  ;;  %v2708_v14 = vsel %vm2552_vm0, %v2703_v2, %v2707_v46  ;;  %v2719_v15 = vor.u32 %v2717_v3, %v2715_v55  ;;  %v9789_v48 = vld [vmem:[%s9687_s21 + $0x110] sm:$0xff]  }
  0x2f   : > { %v2747_v16 = vrot.slane %v2745_v4, 1  ;;  %v2757_v17 = vshrl.u32 %v9202_v60, 16  ;;  %v2755_v20 = vrot.slane %v2753_v8, 1  ;;  %v2761_v21 = vshll.u32 %v9203_v7, 16  ;;  %v9805_v60 = vld [vmem:[%s9687_s21 + $0x128] sm:$0xff]   ;;  %v9814_v3 = vld [vmem:[%s9687_s21 + $0x130] sm:$0xff]  }
  0x30   : > { %v2732_v22 = vsel %vm2552_vm0, %v2727_v10, %v2731_v5  ;;  %v2743_v23 = vor.u32 %v2741_v6, %v2739_v11  ;;  %v2769_v24 = vshll.u32 %v9204_v12, 16  ;;  %v2735_v26 = vor.u32 %v2733_v13, %v2731_v5 }
  0x31   : > { %3754 = vrot.lane.b32.xlu1 %v2668_v37, %s9645_s25  ;;  %v2749_v27 = vshrl.u32 %v9201_v58, 16  ;;  %v2724_v29 = vsel %vm2552_vm0, %v2719_v15, %v2723_v63  ;;  %v2777_v30 = vshll.u32 %v9761_v18, 16  ;;  %v2785_v31 = vshll.u32 %v9206_v19, 16 }
  0x32   : > { %3752 = vrot.lane.b32.xlu0 %v2660_v42, %s9645_s25  ;;  %v2763_v32 = vrot.slane %v2761_v21, 1  ;;  %v2773_v33 = vshrl.u32 %v9204_v12, 16  ;;  %v2765_v34 = vshrl.u32 %v9203_v7, 16  ;;  %v2748_v36 = vsel %vm2552_vm0, %v2743_v23, %v2747_v16  ;;  %v9841_v23 = vld [vmem:[%s9687_s21 + $0x150] sm:$0xff]  }
  0x33   : > { %v2759_v37 = vor.u32 %v2757_v17, %v2755_v20  ;;  %v2771_v38 = vrot.slane %v2769_v24, 1  ;;  %v2793_v39 = vshll.u32 %v9767_v25, 16  ;;  %v2740_v40 = vsel %vm2552_vm0, %v2735_v26, %v2739_v11  ;;  %v9823_v11 = vld [vmem:[%s9687_s21 + $0x138] sm:$0xff]   ;;  %v9832_v17 = vld [vmem:[%s9687_s21 + $0x148] sm:$0xff]  }
  0x34   : > { %v2751_v41 = vor.u32 %v2749_v27, %v2747_v16  ;;  %v2801_v42 = vshll.u32 %v9771_v28, 16  ;;  %v2779_v44 = vrot.slane %v2777_v30, 1  ;;  %v2787_v45 = vrot.slane %v2785_v31, 1  ;;  %v9829_v16 = vld [vmem:[%s9687_s21 + $0x140] sm:$0xff]  }
  0x35   : > { %3758 = vrot.lane.b32.xlu1 %v2684_v49, %s9645_s25  ;;  %v2789_v46 = vshrl.u32 %v9206_v19, 16  ;;  %v2781_v47 = vshrl.u32 %v9761_v18, 16  ;;  %v9792_v49 = vld [vmem:[%s9687_s21 + $0x118] sm:$0xff]   ;;  %v2809_v50 = vshll.u32 %v9777_v35, 16  ;;  %v2764_v52 = vsel %vm2552_vm0, %v2759_v37, %v2763_v32 }
  0x36   : > { %3756 = vrot.lane.b32.xlu0 %v2676_v53, %s9645_s25  ;;  %v2775_v53 = vor.u32 %v2773_v33, %v2771_v38  ;;  %v2795_v54 = vrot.slane %v2793_v39, 1  ;;  %v2805_v55 = vshrl.u32 %v9771_v28, 16  ;;  %v2767_v56 = vor.u32 %v2765_v34, %v2763_v32  ;;  %v9849_v28 = vld [vmem:[%s9687_s21 + $0x158] sm:$0xff]   ;;  %v9865_v39 = vld [vmem:[%s9687_s21 + $0x168] sm:$0xff]  }
  0x37   : > { %v2803_v57 = vrot.slane %v2801_v42, 1  ;;  %v2797_v58 = vshrl.u32 %v9767_v25, 16  ;;  %v2817_v59 = vshll.u32 %v9785_v43, 16  ;;  %v2825_v62 = vshll.u32 %v9789_v48, 16 }
  0x38   : > { %v2833_v63 = vshll.u32 %v9792_v49, 16  ;;  %v2811_v0 = vrot.slane %v2809_v50, 1  ;;  %v2841_v2 = vshll.u32 %v9797_v51, 16  ;;  %v2780_v4 = vsel %vm2552_vm0, %v2775_v53, %v2779_v44 }
  0x39   : > { %3762 = vrot.lane.b32.xlu1 %v2700_v61, %s9645_s25  ;;  %v2756_v61 = vsel %vm2552_vm0, %v2751_v41, %v2755_v20  ;;  %v2791_v5 = vor.u32 %v2789_v46, %v2787_v45  ;;  %v2821_v6 = vshrl.u32 %v9785_v43, 16  ;;  %v2837_v7 = vshrl.u32 %v9792_v49, 16  ;;  %v9871_v43 = vld [vmem:[%s9687_s21 + $0x170] sm:$0xff]  }
  0x3a   : > { %3760 = vrot.lane.b32.xlu0 %v2692_v1, %s9645_s25  ;;  %v2813_v1 = vshrl.u32 %v9777_v35, 16  ;;  %v2772_v8 = vsel %vm2552_vm0, %v2767_v56, %v2771_v38  ;;  %v2849_v10 = vshll.u32 %v9805_v60, 16  ;;  %v2819_v12 = vrot.slane %v2817_v59, 1  ;;  %v9860_v35 = vld [vmem:[%s9687_s21 + $0x160] sm:$0xff]  }
  0x3b   : > { %v2827_v13 = vrot.slane %v2825_v62, 1  ;;  %v2829_v15 = vshrl.u32 %v9789_v48, 16  ;;  %v9835_v18 = vrot.slane %v2841_v2, 1  ;;  %v2857_v19 = vshll.u32 %v9814_v3, 16  ;;  %v9881_v48 = vld [vmem:[%s9687_s21 + $0x178] sm:$0xff]   ;;  %v9902_v62 = vld [vmem:[%s9687_s21 + $0x188] sm:$0xff]  }
  0x3c   : > { %v2796_v20 = vsel %vm2552_vm0, %v2791_v5, %v2795_v54  ;;  %v2807_v21 = vor.u32 %v2805_v55, %v2803_v57  ;;  %v2799_v24 = vor.u32 %v2797_v58, %v2795_v54  ;;  %v9844_v25 = vrot.slane %v2849_v10, 1  ;;  %v9891_v55 = vld [vmem:[%s9687_s21 + $0x180] sm:$0xff]   ;;  %v9910_v2 = vld [vmem:[%s9687_s21 + $0x190] sm:$0xff]  }
  0x3d   : > { %3766 = vrot.lane.b32.xlu1 %v2716_v9, %s9645_s25  ;;  %v2783_v9 = vor.u32 %v2781_v47, %v2779_v44  ;;  %v2845_v26 = vshrl.u32 %v9797_v51, 16  ;;  %v2865_v27 = vshll.u32 %v9823_v11, 16  ;;  %v2873_v30 = vshll.u32 %v9829_v16, 16 }
  0x3e   : > { %3764 = vrot.lane.b32.xlu0 %v2708_v14, %s9645_s25  ;;  %v9825_v14 = vrot.slane %v2833_v63, 1  ;;  %v2881_v31 = vshll.u32 %v9832_v17, 16  ;;  %v9855_v32 = vrot.slane %v2857_v19, 1  ;;  %v2869_v33 = vshrl.u32 %v9823_v11, 16  ;;  %v9236_v19 = vld [vmem:[%s9687_s21 + $0x10] sm:$0xff]  }
  0x3f   : > { %v2861_v34 = vshrl.u32 %v9814_v3, 16  ;;  %v2823_v37 = vor.u32 %v2821_v6, %v2819_v12  ;;  %v2889_v38 = vshll.u32 %v9841_v23, 16  ;;  %v2815_v41 = vor.u32 %v2813_v1, %v2811_v0  ;;  %1378 = vst.msk [vmem:[#allocation2 + $0x10] sm:$0xff] %vm1375_vm1, %v9236_v19 }
  0x40   : > { %v2897_v42 = vshll.u32 %v9849_v28, 16  ;;  %v9873_v44 = vrot.slane %v2865_v27, 1  ;;  %v9877_v46 = vrot.slane %v2881_v31, 1  ;;  %v2885_v47 = vshrl.u32 %v9832_v17, 16  ;;  %v9946_v27 = vld [vmem:[%s9687_s21 + $0x1a0] sm:$0xff]  }
  0x41   : > { %3770 = vrot.lane.b32.xlu1 %v2732_v22, %s9645_s25  ;;  %v2853_v22 = vshrl.u32 %v9805_v60, 16  ;;  %v2877_v49 = vshrl.u32 %v9829_v16, 16  ;;  %v2905_v50 = vshll.u32 %v9860_v35, 16  ;;  %v2828_v51 = vsel %vm2552_vm0, %v2823_v37, %v2827_v13 }
  0x42   : > { %3768 = vrot.lane.b32.xlu0 %v2724_v29, %s9645_s25  ;;  %v2788_v29 = vsel %vm2552_vm0, %v2783_v9, %v2787_v45  ;;  %v9875_v45 = vrot.slane %v2873_v30, 1  ;;  %v2831_v53 = vor.u32 %v2829_v15, %v2827_v13  ;;  %v9888_v54 = vrot.slane %v2889_v38, 1  ;;  %v9962_v38 = vld [vmem:[%s9687_s21 + $0x1a8] sm:$0xff]  }
  0x43   : > { %v9894_v56 = vrot.slane %v2897_v42, 1  ;;  %v2913_v58 = vshll.u32 %v9865_v39, 16  ;;  %v2921_v59 = vshll.u32 %v9871_v43, 16  ;;  %v2820_v60 = vsel %vm2552_vm0, %v2815_v41, %v2819_v12  ;;  %v9241_v42 = vld [vmem:[%s9687_s21 + $0x8] sm:$0xff]  }
  0x44   : > { %v9905_v63 = vrot.slane %v2905_v50, 1  ;;  %v2909_v1 = vshrl.u32 %v9860_v35, 16  ;;  %v2855_v5 = vor.u32 %v2853_v22, %v9844_v25  ;;  %v2917_v6 = vshrl.u32 %v9865_v39, 16  ;;  %1377 = vst.msk [vmem:[#allocation2 + $0x8] sm:$0xff] %vm1375_vm1, %v9241_v42  ;;  %v9253_v42 = vld [vmem:[%s9687_s21 + $0x40] sm:$0xff]  }
  0x45   : > { %3774 = vrot.lane.b32.xlu1 %v2748_v36, %s9645_s25  ;;  %v2812_v36 = vsel %vm2552_vm0, %v2807_v21, %v2811_v0  ;;  %v2893_v0 = vshrl.u32 %v9841_v23, 16  ;;  %v2847_v9 = vor.u32 %v2845_v26, %v9835_v18  ;;  %v9921_v10 = vrot.slane %v2913_v58, 1  ;;  %1384 = vst.msk [vmem:[#allocation2 + $0x40] sm:$0xff] %vm1375_vm1, %v9253_v42 }
  0x46   : > { %3772 = vrot.lane.b32.xlu0 %v2740_v40, %s9645_s25  ;;  %v2804_v40 = vsel %vm2552_vm0, %v2799_v24, %v2803_v57  ;;  %v2901_v57 = vshrl.u32 %v9849_v28, 16  ;;  %v2933_v11 = vshrl.u32 %v9881_v48, 16  ;;  %v9924_v12 = vrot.slane %v2921_v59, 1  ;;  %v9940_v24 = vld [vmem:[%s9687_s21 + $0x198] sm:$0xff]   ;;  %v9244_v59 = vld [vmem:[%s9687_s21 + $0x28] sm:$0xff]  }
  0x47   : > { %v2925_v15 = vshrl.u32 %v9871_v43, 16  ;;  %v2945_v17 = vshll.u32 %v9902_v62, 16  ;;  %v2871_v21 = vor.u32 %v2869_v33, %v9873_v44  ;;  %v2949_v26 = vshrl.u32 %v9902_v62, 16  ;;  %1381 = vst.msk [vmem:[#allocation2 + $0x28] sm:$0xff] %vm1375_vm1, %v9244_v59 }
  0x48   : > { %v2863_v30 = vor.u32 %v2861_v34, %v9855_v32  ;;  %v2941_v33 = vshrl.u32 %v9891_v55, 16  ;;  %v2957_v37 = vshrl.u32 %v9910_v2, 16  ;;  %v2887_v3 = vor.u32 %v2885_v47, %v9877_v46  ;;  %v9240_v34 = vld [vmem:[%s9687_s21 + $0x18] sm:$0xff]  }
  0x49   : > { %3778 = vrot.lane.b32.xlu1 %v2764_v52, %s9645_s25  ;;  %v2839_v52 = vor.u32 %v2837_v7, %v9825_v14  ;;  %v2937_v7 = vshll.u32 %v9891_v55, 16  ;;  %v9954_v31 = vrot.slane %v2945_v17, 1  ;;  %v2969_v41 = vshll.u32 %v9946_v27, 16  ;;  %1379 = vst.msk [vmem:[#allocation2 + $0x18] sm:$0xff] %vm1375_vm1, %v9240_v34 }
  0x4a   : > { %3776 = vrot.lane.b32.xlu0 %v2756_v61, %s9645_s25  ;;  %v2929_v61 = vshll.u32 %v9881_v48, 16  ;;  %v2868_v50 = vsel %vm2552_vm0, %v2863_v30, %v9873_v44  ;;  %v2965_v47 = vshrl.u32 %v9940_v24, 16  ;;  %v2981_v58 = vshrl.u32 %v9962_v38, 16  ;;  %v10055_v30 = vld [vmem:[%s9687_s21 + $0x1d8] sm:$0xff]  }
  0x4b   : > { %v9937_v22 = vrot.slane %v2937_v7, 1  ;;  %v2892_v16 = vsel %vm2552_vm0, %v2887_v3, %v9888_v54  ;;  %v2903_v44 = vor.u32 %v2901_v57, %v9894_v56  ;;  %v2895_v28 = vor.u32 %v2893_v0, %v9888_v54  ;;  %v10012_v7 = vld [vmem:[%s9687_s21 + $0x1c8] sm:$0xff]  }
  0x4c   : > { %v9926_v13 = vrot.slane %v2929_v61, 1  ;;  %v10000_v61 = vrot.slane %v2969_v41, 1  ;;  %v2919_v54 = vor.u32 %v2917_v6, %v9921_v10  ;;  %v2911_v39 = vor.u32 %v2909_v1, %v9905_v63  ;;  %v10070_v41 = vld [vmem:[%s9687_s21 + $0x1e0] sm:$0xff]  }
  0x4d   : > { %3782 = vrot.lane.b32.xlu1 %v2780_v4, %s9645_s25  ;;  %v2844_v4 = vsel %vm2552_vm0, %v2839_v52, %v9835_v18  ;;  %v2860_v18 = vsel %vm2552_vm0, %v2855_v5, %v9855_v32  ;;  %v2961_v32 = vshll.u32 %v9940_v24, 16  ;;  %v9982_v52 = vld [vmem:[%s9687_s21 + $0x1b8] sm:$0xff]   ;;  %v2908_v23 = vsel %vm2552_vm0, %v2903_v44, %v9905_v63 }
  0x4e   : > { %3780 = vrot.lane.b32.xlu0 %v2772_v8, %s9645_s25  ;;  %v2836_v8 = vsel %vm2552_vm0, %v2831_v53, %v9825_v14  ;;  %v2953_v14 = vshll.u32 %v9910_v2, 16  ;;  %v2977_v53 = vshll.u32 %v9962_v38, 16  ;;  %v2993_v57 = vshll.u32 %v9982_v52, 16  ;;  %v10151_v38 = vld [vmem:[%s9687_s21 + $0x210] sm:$0xff]  }
  0x4f   : > { %v2997_v17 = vshrl.u32 %v9982_v52, 16  ;;  %v2924_v35 = vsel %vm2552_vm0, %v2919_v54, %v9924_v12  ;;  %v2927_v3 = vor.u32 %v2925_v15, %v9924_v12  ;;  %v3013_v34 = vshrl.u32 %v10012_v7, 16  ;;  %v9260_v54 = vld [vmem:[%s9687_s21 + $0x68] sm:$0xff]  }
  0x50   : > { %v10040_v6 = vrot.slane %v2993_v57, 1  ;;  %v2951_v43 = vor.u32 %v2949_v26, %v9954_v31  ;;  %v3025_v15 = vshll.u32 %v10055_v30, 16  ;;  %v2943_v26 = vor.u32 %v2941_v33, %v9937_v22  ;;  %v10113_v33 = vld [vmem:[%s9687_s21 + $0x200] sm:$0xff]   ;;  %1389 = vst.msk [vmem:[#allocation2 + $0x68] sm:$0xff] %vm1375_vm1, %v9260_v54 }
  0x51   : > { %3786 = vrot.lane.b32.xlu1 %v2796_v20, %s9645_s25  ;;  %v9237_v20 = vld [vmem:[%s9687_s21] sm:$0xff]   ;;  %v2932_v62 = vsel %vm2552_vm0, %v2927_v3, %v9926_v13  ;;  %v3033_v44 = vshll.u32 %v10070_v41, 16 }
  0x52   : > { %3784 = vrot.lane.b32.xlu0 %v2788_v29, %s9645_s25  ;;  %1376 = vst.msk [vmem:[#allocation2] sm:$0xff] %vm1375_vm1, %v9237_v20  ;;  %v2852_v29 = vsel %vm2552_vm0, %v2847_v9, %v9844_v25  ;;  %v2876_v25 = vsel %vm2552_vm0, %v2871_v21, %v9875_v45  ;;  %v10028_v9 = vld [vmem:[%s9687_s21 + $0x1d0] sm:$0xff]   ;;  %v3009_v21 = vshll.u32 %v10012_v7, 16  ;;  %v2948_v57 = vsel %vm2552_vm0, %v2943_v26, %v9954_v31 }
  0x53   : > { %v9249_v20 = vld [vmem:[%s9687_s21 + $0x30] sm:$0xff]   ;;  %v3017_v63 = vshll.u32 %v10028_v9, 16  ;;  %v3021_v59 = vshrl.u32 %v10028_v9, 16 }
  0x54   : > { %1382 = vst.msk [vmem:[#allocation2 + $0x30] sm:$0xff] %vm1375_vm1, %v9249_v20  ;;  %v3037_v20 = vshrl.u32 %v10070_v41, 16  ;;  %v10203_v26 = vld [vmem:[%s9687_s21 + $0x230] sm:$0xff]  }
  0x55   : > { %3790 = vrot.lane.b32.xlu1 %v2812_v36, %s9645_s25  ;;  %v9958_v36 = vrot.slane %v2953_v14, 1  ;;  %v9248_v14 = vld [vmem:[%s9687_s21 + $0x38] sm:$0xff]   ;;  %v10080_v12 = vrot.slane %v3017_v63, 1 }
  0x56   : > { %3788 = vrot.lane.b32.xlu0 %v2804_v40, %s9645_s25  ;;  %v9965_v40 = vld [vmem:[%s9687_s21 + $0x1b0] sm:$0xff]   ;;  %1383 = vst.msk [vmem:[#allocation2 + $0x38] sm:$0xff] %vm1375_vm1, %v9248_v14  ;;  %v9264_v63 = vld [vmem:[%s9687_s21 + $0x78] sm:$0xff]  }
  0x57   : > { %v2959_v24 = vor.u32 %v2957_v37, %v9958_v36  ;;  %v3065_v37 = vshll.u32 %v10113_v33, 16  ;;  %1391 = vst.msk [vmem:[#allocation2 + $0x78] sm:$0xff] %vm1375_vm1, %v9264_v63  ;;  %v10263_v63 = vld [vmem:[%s9687_s21 + $0x248] sm:$0xff]  }
  0x59   : > { %3794 = vrot.lane.b32.xlu1 %v2828_v51, %s9645_s25  ;;  %v2879_v51 = vor.u32 %v2877_v49, %v9875_v45  ;;  %v9994_v45 = vrot.slane %v2961_v32, 1  ;;  %v2985_v49 = vshll.u32 %v9965_v40, 16  ;;  %v10066_v32 = vrot.slane %v3009_v21, 1  ;;  %v10148_v21 = vld [vmem:[%s9687_s21 + $0x208] sm:$0xff]  }
  0x5a   : > { %3792 = vrot.lane.b32.xlu0 %v2820_v60, %s9645_s25  ;;  %v9245_v60 = vld [vmem:[%s9687_s21 + $0x20] sm:$0xff]   ;;  %v10169_v42 = vrot.slane %v3065_v37, 1  ;;  %v9276_v37 = vld [vmem:[%s9687_s21 + $0xa8] sm:$0xff]  }
  0x5b   : > { %v2884_v5 = vsel %vm2552_vm0, %v2879_v51, %v9877_v46  ;;  %1380 = vst.msk [vmem:[#allocation2 + $0x20] sm:$0xff] %vm1375_vm1, %v9245_v60  ;;  %v2973_v46 = vshrl.u32 %v9946_v27, 16  ;;  %v10025_v0 = vrot.slane %v2985_v49, 1  ;;  %v9256_v51 = vld [vmem:[%s9687_s21 + $0x58] sm:$0xff]   ;;  %v9257_v60 = vld [vmem:[%s9687_s21 + $0x50] sm:$0xff]   ;;  %v2967_v55 = vor.u32 %v2965_v47, %v9994_v45  ;;  %1397 = vst.msk [vmem:[#allocation2 + $0xa8] sm:$0xff] %vm1375_vm1, %v9276_v37 }
  0x5c   : > { %v10100_v49 = vld [vmem:[%s9687_s21 + $0x1f8] sm:$0xff]   ;;  %1387 = vst.msk [vmem:[#allocation2 + $0x58] sm:$0xff] %vm1375_vm1, %v9256_v51  ;;  %1386 = vst.msk [vmem:[#allocation2 + $0x50] sm:$0xff] %vm1375_vm1, %v9257_v60  ;;  %v10125_v47 = vrot.slane %v3033_v44, 1  ;;  %v9268_v51 = vld [vmem:[%s9687_s21 + $0x88] sm:$0xff]  }
  0x5d   : > { %3798 = vrot.lane.b32.xlu1 %v2844_v4, %s9645_s25  ;;  %v10003_v4 = vld [vmem:[%s9687_s21 + $0x1c0] sm:$0xff]   ;;  %v2972_v31 = vsel %vm2552_vm0, %v2967_v55, %v10000_v61  ;;  %v10172_v27 = vld [vmem:[%s9687_s21 + $0x218] sm:$0xff]   ;;  %1393 = vst.msk [vmem:[#allocation2 + $0x88] sm:$0xff] %vm1375_vm1, %v9268_v51  ;;  %v9281_v51 = vld [vmem:[%s9687_s21 + $0xb0] sm:$0xff]  }
  0x5e   : > { %3796 = vrot.lane.b32.xlu0 %v2836_v8, %s9645_s25  ;;  %v10017_v8 = vrot.slane %v2977_v53, 1  ;;  %v3001_v19 = vshll.u32 %v10003_v4, 16  ;;  %v3005_v1 = vshrl.u32 %v10003_v4, 16  ;;  %v3029_v53 = vshrl.u32 %v10055_v30, 16  ;;  %1398 = vst.msk [vmem:[#allocation2 + $0xb0] sm:$0xff] %vm1375_vm1, %v9281_v51  ;;  %v9293_v51 = vld [vmem:[%s9687_s21 + $0xe0] sm:$0xff]  }
  0x5f   : > { %v3093_v55 = vshrl.u32 %v10172_v27, 16  ;;  %1404 = vst.msk [vmem:[#allocation2 + $0xe0] sm:$0xff] %vm1375_vm1, %v9293_v51 }
  0x60   : > { %v10058_v48 = vrot.slane %v3001_v19, 1  ;;  %v9261_v19 = vld [vmem:[%s9687_s21 + $0x60] sm:$0xff]   ;;  %v2983_v2 = vor.u32 %v2981_v58, %v10017_v8  ;;  %v2964_v58 = vsel %vm2552_vm0, %v2959_v24, %v9994_v45  ;;  %v2999_v45 = vor.u32 %v2997_v17, %v10040_v6 }
  0x61   : > { %3802 = vrot.lane.b32.xlu1 %v2860_v18, %s9645_s25  ;;  %v2900_v18 = vsel %vm2552_vm0, %v2895_v28, %v9894_v56  ;;  %v2989_v56 = vshrl.u32 %v9965_v40, 16  ;;  %1388 = vst.msk [vmem:[#allocation2 + $0x60] sm:$0xff] %vm1375_vm1, %v9261_v19  ;;  %v3069_v40 = vshrl.u32 %v10113_v33, 16  ;;  %v3113_v24 = vshll.u32 %v10203_v26, 16  ;;  %v10243_v19 = vld [vmem:[%s9687_s21 + $0x238] sm:$0xff]   ;;  %v10339_v33 = vld [vmem:[%s9687_s21 + $0x268] sm:$0xff]  }
  0x62   : > { %3800 = vrot.lane.b32.xlu0 %v2852_v29, %s9645_s25  ;;  %v2935_v29 = vor.u32 %v2933_v11, %v9926_v13  ;;  %v9252_v11 = vld [vmem:[%s9687_s21 + $0x48] sm:$0xff]   ;;  %v2956_v13 = vsel %vm2552_vm0, %v2951_v43, %v9958_v36  ;;  %v2988_v3 = vsel %vm2552_vm0, %v2983_v2, %v10025_v0  ;;  %v3007_v7 = vor.u32 %v3005_v1, %v10058_v48 }
  0x63   : > { %1385 = vst.msk [vmem:[#allocation2 + $0x48] sm:$0xff] %vm1375_vm1, %v9252_v11  ;;  %v2991_v17 = vor.u32 %v2989_v56, %v10025_v0  ;;  %v10188_v43 = vld [vmem:[%s9687_s21 + $0x228] sm:$0xff]   ;;  %v9269_v0 = vld [vmem:[%s9687_s21 + $0x80] sm:$0xff]   ;;  %v3089_v56 = vshll.u32 %v10172_v27, 16 }
  0x64   : > { %1392 = vst.msk [vmem:[#allocation2 + $0x80] sm:$0xff] %vm1375_vm1, %v9269_v0  ;;  %v3012_v30 = vsel %vm2552_vm0, %v3007_v7, %v10066_v32  ;;  %v3109_v2 = vshrl.u32 %v10188_v43, 16  ;;  %v9284_v7 = vld [vmem:[%s9687_s21 + $0xc8] sm:$0xff]  }
  0x65   : > { %3806 = vrot.lane.b32.xlu1 %v2876_v25, %s9645_s25  ;;  %v2916_v25 = vsel %vm2552_vm0, %v2911_v39, %v9921_v10  ;;  %v2940_v10 = vsel %vm2552_vm0, %v2935_v29, %v9937_v22  ;;  %v3061_v39 = vshrl.u32 %v10100_v49, 16  ;;  %v2975_v29 = vor.u32 %v2973_v46, %v10000_v61  ;;  %v10178_v46 = vld [vmem:[%s9687_s21 + $0x220] sm:$0xff]   ;;  %1401 = vst.msk [vmem:[#allocation2 + $0xc8] sm:$0xff] %vm1375_vm1, %v9284_v7  ;;  %v9297_v7 = vld [vmem:[%s9687_s21 + $0xf0] sm:$0xff]  }
  0x66   : > { %3804 = vrot.lane.b32.xlu0 %v2868_v50, %s9645_s25  ;;  %v10084_v50 = vld [vmem:[%s9687_s21 + $0x1e8] sm:$0xff]   ;;  %v3073_v61 = vshll.u32 %v10148_v21, 16  ;;  %v2996_v44 = vsel %vm2552_vm0, %v2991_v17, %v10040_v6  ;;  %v3097_v60 = vshll.u32 %v10178_v46, 16  ;;  %v9273_v6 = vld [vmem:[%s9687_s21 + $0x90] sm:$0xff]   ;;  %v3101_v54 = vshrl.u32 %v10178_v46, 16  ;;  %1406 = vst.msk [vmem:[#allocation2 + $0xf0] sm:$0xff] %vm1375_vm1, %v9297_v7 }
  0x67   : > { %v3041_v22 = vshll.u32 %v10084_v50, 16  ;;  %v3045_v14 = vshrl.u32 %v10084_v50, 16  ;;  %v2980_v52 = vsel %vm2552_vm0, %v2975_v29, %v10017_v8  ;;  %v3015_v8 = vor.u32 %v3013_v34, %v10066_v32  ;;  %1394 = vst.msk [vmem:[#allocation2 + $0x90] sm:$0xff] %vm1375_vm1, %v9273_v6 }
  0x68   : > { %v10211_v34 = vrot.slane %v3073_v61, 1  ;;  %v10260_v29 = vrot.slane %v3113_v24, 1  ;;  %v3125_v61 = vshrl.u32 %v10243_v19, 16  ;;  %v3141_v6 = vshrl.u32 %v10263_v63, 16 }
  0x69   : > { %3810 = vrot.lane.b32.xlu1 %v2892_v16, %s9645_s25  ;;  %v10091_v16 = vld [vmem:[%s9687_s21 + $0x1f0] sm:$0xff]   ;;  %v10138_v36 = vrot.slane %v3041_v22, 1  ;;  %v9272_v22 = vld [vmem:[%s9687_s21 + $0x98] sm:$0xff]   ;;  %v3020_v4 = vsel %vm2552_vm0, %v3015_v8, %v10080_v12  ;;  %v10301_v8 = vld [vmem:[%s9687_s21 + $0x260] sm:$0xff]  }
  0x6a   : > { %3808 = vrot.lane.b32.xlu0 %v2884_v5, %s9645_s25  ;;  %v10116_v5 = vrot.slane %v3025_v15, 1  ;;  %v3049_v28 = vshll.u32 %v10091_v16, 16  ;;  %v3053_v11 = vshrl.u32 %v10091_v16, 16  ;;  %v3081_v15 = vshll.u32 %v10151_v38, 16  ;;  %1395 = vst.msk [vmem:[#allocation2 + $0x98] sm:$0xff] %vm1375_vm1, %v9272_v22 }
  0x6b   : > { %v3047_v9 = vor.u32 %v3045_v14, %v10138_v36  ;;  %v3039_v14 = vor.u32 %v3037_v20, %v10125_v47  ;;  %v9280_v20 = vld [vmem:[%s9687_s21 + $0xb8] sm:$0xff]  }
  0x6c   : > { %v3031_v1 = vor.u32 %v3029_v53, %v10116_v5  ;;  %v3023_v53 = vor.u32 %v3021_v59, %v10080_v12  ;;  %v9277_v59 = vld [vmem:[%s9687_s21 + $0xa0] sm:$0xff]   ;;  %1399 = vst.msk [vmem:[#allocation2 + $0xb8] sm:$0xff] %vm1375_vm1, %v9280_v20  ;;  %v9292_v20 = vld [vmem:[%s9687_s21 + $0xe8] sm:$0xff]  }
  0x6d   : > { %3814 = vrot.lane.b32.xlu1 %v2908_v23, %s9645_s25  ;;  %v3057_v23 = vshll.u32 %v10100_v49, 16  ;;  %1396 = vst.msk [vmem:[#allocation2 + $0xa0] sm:$0xff] %vm1375_vm1, %v9277_v59  ;;  %1405 = vst.msk [vmem:[#allocation2 + $0xe8] sm:$0xff] %vm1375_vm1, %v9292_v20 }
  0x6e   : > { %3812 = vrot.lane.b32.xlu0 %v2900_v18, %s9645_s25  ;;  %v10144_v18 = vrot.slane %v3049_v28, 1  ;;  %v3105_v28 = vshll.u32 %v10188_v43, 16  ;;  %v3036_v32 = vsel %vm2552_vm0, %v3031_v1, %v10125_v47  ;;  %v3028_v50 = vsel %vm2552_vm0, %v3023_v53, %v10116_v5 }
  0x70   : > { %v10256_v12 = vrot.slane %v3105_v28, 1  ;;  %v3052_v41 = vsel %vm2552_vm0, %v3047_v9, %v10144_v18  ;;  %v3055_v49 = vor.u32 %v3053_v11, %v10144_v18  ;;  %v3161_v28 = vshll.u32 %v10301_v8, 16 }
  0x71   : > { %3818 = vrot.lane.b32.xlu1 %v2924_v35, %s9645_s25  ;;  %v10158_v35 = vrot.slane %v3057_v23, 1  ;;  %v10239_v23 = vrot.slane %v3097_v60, 1  ;;  %v9285_v60 = vld [vmem:[%s9687_s21 + $0xc0] sm:$0xff]  }
  0x72   : > { %3816 = vrot.lane.b32.xlu0 %v2916_v25, %s9645_s25  ;;  %v9265_v25 = vld [vmem:[%s9687_s21 + $0x70] sm:$0xff]   ;;  %1400 = vst.msk [vmem:[#allocation2 + $0xc0] sm:$0xff] %vm1375_vm1, %v9285_v60 }
  0x73   : > { %1390 = vst.msk [vmem:[#allocation2 + $0x70] sm:$0xff] %vm1375_vm1, %v9265_v25  ;;  %v3121_v25 = vshll.u32 %v10243_v19, 16  ;;  %v3063_v5 = vor.u32 %v3061_v39, %v10158_v35  ;;  %v3137_v39 = vshll.u32 %v10263_v63, 16  ;;  %v3103_v43 = vor.u32 %v3101_v54, %v10239_v23 }
  0x75   : > { %3822 = vrot.lane.b32.xlu1 %v2940_v10, %s9645_s25  ;;  %v3077_v10 = vshrl.u32 %v10148_v21, 16  ;;  %v3068_v16 = vsel %vm2552_vm0, %v3063_v5, %v10169_v42  ;;  %v3060_v21 = vsel %vm2552_vm0, %v3055_v49, %v10158_v35  ;;  %v10329_v1 = vrot.slane %v3137_v39, 1  ;;  %v10398_v39 = vld [vmem:[%s9687_s21 + $0x290] sm:$0xff]  }
  0x76   : > { %3820 = vrot.lane.b32.xlu0 %v2932_v62, %s9645_s25  ;;  %v3004_v62 = vsel %vm2552_vm0, %v2999_v45, %v10058_v48  ;;  %v3085_v48 = vshrl.u32 %v10151_v38, 16  ;;  %v3108_v19 = vsel %vm2552_vm0, %v3103_v43, %v10256_v12  ;;  %v9305_v43 = vld [vmem:[%s9687_s21 + $0x110] sm:$0xff]  }
  0x77   : > { %1410 = vst.msk [vmem:[#allocation2 + $0x110] sm:$0xff] %vm1375_vm1, %v9305_v43 }
  0x79   : > { %3826 = vrot.lane.b32.xlu1 %v2956_v13, %s9645_s25  ;;  %v10216_v13 = vrot.slane %v3081_v15, 1  ;;  %v3117_v15 = vshrl.u32 %v10203_v26, 16 }
  0x7a   : > { %3824 = vrot.lane.b32.xlu0 %v2948_v57, %s9645_s25  ;;  %v10229_v57 = vrot.slane %v3089_v56, 1  ;;  %v10305_v56 = vrot.slane %v3121_v25, 1 }
  0x7b   : > { %v3087_v27 = vor.u32 %v3085_v48, %v10216_v13  ;;  %v10382_v48 = vld [vmem:[%s9687_s21 + $0x288] sm:$0xff]  }
  0x7c   : > { %v3095_v53 = vor.u32 %v3093_v55, %v10229_v57  ;;  %v10362_v55 = vrot.slane %v3161_v28, 1  ;;  %v10441_v28 = vld [vmem:[%s9687_s21 + $0x298] sm:$0xff]  }
  0x7d   : > { %3830 = vrot.lane.b32.xlu1 %v2972_v31, %s9645_s25  ;;  %v10246_v31 = vld [vmem:[%s9687_s21 + $0x240] sm:$0xff]  }
  0x7e   : > { %3828 = vrot.lane.b32.xlu0 %v2964_v58, %s9645_s25  ;;  %v3129_v47 = vshll.u32 %v10246_v31, 16  ;;  %v3133_v11 = vshrl.u32 %v10246_v31, 16  ;;  %v3100_v38 = vsel %vm2552_vm0, %v3095_v53, %v10239_v23  ;;  %v3205_v53 = vshrl.u32 %v10382_v48, 16 }
  0x80   : > { %v10315_v18 = vrot.slane %v3129_v47, 1 }
  0x81   : > { %3834 = vrot.lane.b32.xlu1 %v2988_v3, %s9645_s25  ;;  %v10274_v3 = vld [vmem:[%s9687_s21 + $0x250] sm:$0xff]  }
  0x82   : > { %3832 = vrot.lane.b32.xlu0 %v2980_v52, %s9645_s25  ;;  %v10280_v52 = vld [vmem:[%s9687_s21 + $0x258] sm:$0xff]   ;;  %v3149_v35 = vshrl.u32 %v10274_v3, 16 }
  0x83   : > { %v3157_v37 = vshrl.u32 %v10280_v52, 16 }
  0x85   : > { %3838 = vrot.lane.b32.xlu1 %v3004_v62, %s9645_s25  ;;  %v3044_v62 = vsel %vm2552_vm0, %v3039_v14, %v10138_v36  ;;  %v3079_v36 = vor.u32 %v3077_v10, %v10211_v34  ;;  %v3071_v10 = vor.u32 %v3069_v40, %v10169_v42  ;;  %v10342_v42 = vld [vmem:[%s9687_s21 + $0x270] sm:$0xff]   ;;  %v10365_v14 = vld [vmem:[%s9687_s21 + $0x278] sm:$0xff]  }
  0x86   : > { %3836 = vrot.lane.b32.xlu0 %v2996_v44, %s9645_s25  ;;  %v3145_v44 = vshll.u32 %v10274_v3, 16  ;;  %v3177_v47 = vshll.u32 %v10342_v42, 16  ;;  %v3185_v49 = vshll.u32 %v10365_v14, 16  ;;  %v3189_v60 = vshrl.u32 %v10365_v14, 16  ;;  %v10538_v14 = vld [vmem:[%s9687_s21 + $0x2c8] sm:$0xff]  }
  0x87   : > { %v3084_v40 = vsel %vm2552_vm0, %v3079_v36, %v10216_v13  ;;  %v3173_v13 = vshrl.u32 %v10339_v33, 16  ;;  %v9296_v36 = vld [vmem:[%s9687_s21 + $0xf8] sm:$0xff]  }
  0x88   : > { %1407 = vst.msk [vmem:[#allocation2 + $0xf8] sm:$0xff] %vm1375_vm1, %v9296_v36 }
  0x89   : > { %3842 = vrot.lane.b32.xlu1 %v3020_v4, %s9645_s25  ;;  %v3153_v4 = vshll.u32 %v10280_v52, 16 }
  0x8a   : > { %3840 = vrot.lane.b32.xlu0 %v3012_v30, %s9645_s25  ;;  %v10335_v30 = vrot.slane %v3145_v44, 1  ;;  %v10412_v44 = vrot.slane %v3177_v47, 1  ;;  %v9304_v47 = vld [vmem:[%s9687_s21 + $0x118] sm:$0xff]  }
  0x8b   : > { %v3733_v58 = vpop.permute.xlu1 %3732  ;;  %v10353_v59 = vrot.slane %v3153_v4, 1  ;;  %1411 = vst.msk [vmem:[#allocation2 + $0x118] sm:$0xff] %vm1375_vm1, %v9304_v47 }
  0x8c   : > { %4172 = vst.msk [vmem:[#allocation2 + $0x10] sm:$0xff] %vm4169_vm2, %v3733_v58  ;;  %v3729_v45 = vpop.permute.xlu0 %3728  ;;  %v9289_v58 = vld [vmem:[%s9687_s21 + $0xd0] sm:$0xff]  }
  0x8d   : > { %3846 = vrot.lane.b32.xlu1 %v3036_v32, %s9645_s25  ;;  %4170 = vst.msk [vmem:[#allocation2] sm:$0xff] %vm4169_vm2, %v3729_v45  ;;  %v9288_v32 = vld [vmem:[%s9687_s21 + $0xd8] sm:$0xff]   ;;  %v3169_v45 = vshll.u32 %v10339_v33, 16 }
  0x8e   : > { %3844 = vrot.lane.b32.xlu0 %v3028_v50, %s9645_s25  ;;  %v3076_v50 = vsel %vm2552_vm0, %v3071_v10, %v10211_v34  ;;  %1403 = vst.msk [vmem:[#allocation2 + $0xd8] sm:$0xff] %vm1375_vm1, %v9288_v32  ;;  %1402 = vst.msk [vmem:[#allocation2 + $0xd0] sm:$0xff] %vm1375_vm1, %v9289_v58  ;;  %v3111_v34 = vor.u32 %v3109_v2, %v10256_v12  ;;  %v3165_v2 = vshrl.u32 %v10301_v8, 16  ;;  %v3209_v10 = vshll.u32 %v10398_v39, 16  ;;  %v9300_v32 = vld [vmem:[%s9687_s21 + $0x108] sm:$0xff]   ;;  %v9301_v58 = vld [vmem:[%s9687_s21 + $0x100] sm:$0xff]  }
  0x8f   : > { %v3735_v17 = vpop.permute.xlu1 %3734  ;;  %v10407_v23 = vrot.slane %v3169_v45, 1  ;;  %v3143_v12 = vor.u32 %v3141_v6, %v10329_v1  ;;  %v3135_v6 = vor.u32 %v3133_v11, %v10315_v18  ;;  %1409 = vst.msk [vmem:[#allocation2 + $0x108] sm:$0xff] %vm1375_vm1, %v9300_v32  ;;  %v10473_v11 = vld [vmem:[%s9687_s21 + $0x2b0] sm:$0xff]   ;;  %1408 = vst.msk [vmem:[#allocation2 + $0x100] sm:$0xff] %vm1375_vm1, %v9301_v58 }
  0x90   : > { %4173 = vst.msk [vmem:[#allocation2 + $0x18] sm:$0xff] %vm4169_vm2, %v3735_v17  ;;  %v3731_v0 = vpop.permute.xlu0 %3730  ;;  %v3092_v17 = vsel %vm2552_vm0, %v3087_v27, %v10229_v57  ;;  %v3116_v46 = vsel %vm2552_vm0, %v3111_v34, %v10260_v29  ;;  %v3127_v57 = vor.u32 %v3125_v61, %v10305_v56  ;;  %v3119_v61 = vor.u32 %v3117_v15, %v10260_v29  ;;  %v10479_v34 = vld [vmem:[%s9687_s21 + $0x2b8] sm:$0xff]  }
  0x91   : > { %3850 = vrot.lane.b32.xlu1 %v3052_v41, %s9645_s25  ;;  %4171 = vst.msk [vmem:[#allocation2 + $0x8] sm:$0xff] %vm4169_vm2, %v3731_v0  ;;  %v10371_v41 = vld [vmem:[%s9687_s21 + $0x280] sm:$0xff]   ;;  %v10459_v27 = vrot.slane %v3209_v10, 1  ;;  %v3148_v31 = vsel %vm2552_vm0, %v3143_v12, %v10335_v30  ;;  %v3140_v52 = vsel %vm2552_vm0, %v3135_v6, %v10329_v1  ;;  %v3175_v3 = vor.u32 %v3173_v13, %v10407_v23  ;;  %v9313_v6 = vld [vmem:[%s9687_s21 + $0x130] sm:$0xff]  }
  0x92   : > { %3848 = vrot.lane.b32.xlu0 %v3044_v62, %s9645_s25  ;;  %v3193_v54 = vshll.u32 %v10371_v41, 16  ;;  %v3132_v26 = vsel %vm2552_vm0, %v3127_v57, %v10315_v18  ;;  %v3197_v15 = vshrl.u32 %v10371_v41, 16  ;;  %v3124_v63 = vsel %vm2552_vm0, %v3119_v61, %v10305_v56  ;;  %1414 = vst.msk [vmem:[#allocation2 + $0x130] sm:$0xff] %vm1375_vm1, %v9313_v6 }
  0x93   : > { %v3739_v22 = vpop.permute.xlu1 %3738  ;;  %v3159_v56 = vor.u32 %v3157_v37, %v10353_v59  ;;  %v3217_v18 = vshll.u32 %v10441_v28, 16  ;;  %v3151_v37 = vor.u32 %v3149_v35, %v10335_v30  ;;  %v10500_v30 = vld [vmem:[%s9687_s21 + $0x2c0] sm:$0xff]   ;;  %v3167_v13 = vor.u32 %v3165_v2, %v10362_v55 }
  0x94   : > { %4175 = vst.msk [vmem:[#allocation2 + $0x28] sm:$0xff] %vm4169_vm2, %v3739_v22  ;;  %v3737_v24 = vpop.permute.xlu0 %3736  ;;  %v3201_v22 = vshll.u32 %v10382_v48, 16  ;;  %v10437_v29 = vrot.slane %v3193_v54, 1  ;;  %v9308_v54 = vld [vmem:[%s9687_s21 + $0x128] sm:$0xff]   ;;  %v3180_v8 = vsel %vm2552_vm0, %v3175_v3, %v10412_v44  ;;  %v3257_v2 = vshll.u32 %v10500_v30, 16 }
  0x95   : > { %3854 = vrot.lane.b32.xlu1 %v3068_v16, %s9645_s25  ;;  %4174 = vst.msk [vmem:[#allocation2 + $0x20] sm:$0xff] %vm4169_vm2, %v3737_v24  ;;  %v3181_v16 = vshrl.u32 %v10342_v42, 16  ;;  %v10444_v24 = vld [vmem:[%s9687_s21 + $0x2a0] sm:$0xff]   ;;  %v3164_v51 = vsel %vm2552_vm0, %v3159_v56, %v10362_v55  ;;  %v3156_v33 = vsel %vm2552_vm0, %v3151_v37, %v10353_v59  ;;  %v3172_v10 = vsel %vm2552_vm0, %v3167_v13, %v10407_v23  ;;  %v9316_v37 = vld [vmem:[%s9687_s21 + $0x148] sm:$0xff]  }
  0x96   : > { %3852 = vrot.lane.b32.xlu0 %v3060_v21, %s9645_s25  ;;  %v10426_v21 = vrot.slane %v3185_v49, 1  ;;  %v3241_v49 = vshll.u32 %v10473_v11, 16  ;;  %v3229_v57 = vshrl.u32 %v10444_v24, 16  ;;  %1413 = vst.msk [vmem:[#allocation2 + $0x128] sm:$0xff] %vm1375_vm1, %v9308_v54  ;;  %v3253_v12 = vshrl.u32 %v10479_v34, 16  ;;  %1417 = vst.msk [vmem:[#allocation2 + $0x148] sm:$0xff] %vm1375_vm1, %v9316_v37 }
  0x97   : > { %v3743_v9 = vpop.permute.xlu1 %3742  ;;  %v3269_v56 = vshrl.u32 %v10538_v14, 16 }
  0x98   : > { %4177 = vst.msk [vmem:[#allocation2 + $0x38] sm:$0xff] %vm4169_vm2, %v3743_v9  ;;  %v3741_v25 = vpop.permute.xlu0 %3740  ;;  %v10455_v9 = vrot.slane %v3201_v22, 1  ;;  %v3191_v59 = vor.u32 %v3189_v60, %v10426_v21  ;;  %v10534_v22 = vrot.slane %v3241_v49, 1  ;;  %v10541_v60 = vld [vmem:[%s9687_s21 + $0x2d0] sm:$0xff]   ;;  %v9320_v49 = vld [vmem:[%s9687_s21 + $0x158] sm:$0xff]  }
  0x99   : > { %3858 = vrot.lane.b32.xlu1 %v3084_v40, %s9645_s25  ;;  %4176 = vst.msk [vmem:[#allocation2 + $0x30] sm:$0xff] %vm4169_vm2, %v3741_v25  ;;  %v10462_v25 = vld [vmem:[%s9687_s21 + $0x2a8] sm:$0xff]  }
  0x9a   : > { %3856 = vrot.lane.b32.xlu0 %v3076_v50, %s9645_s25  ;;  %v3233_v1 = vshll.u32 %v10462_v25, 16  ;;  %v3237_v7 = vshrl.u32 %v10462_v25, 16  ;;  %v3196_v23 = vsel %vm2552_vm0, %v3191_v59, %v10437_v29  ;;  %v3207_v42 = vor.u32 %v3205_v53, %v10455_v9  ;;  %1419 = vst.msk [vmem:[#allocation2 + $0x158] sm:$0xff] %vm1375_vm1, %v9320_v49  ;;  %v10643_v59 = vld [vmem:[%s9687_s21 + $0x300] sm:$0xff]  }
  0x9b   : > { %v3747_v5 = vpop.permute.xlu1 %3746  ;;  %v3199_v53 = vor.u32 %v3197_v15, %v10437_v29  ;;  %v3261_v29 = vshrl.u32 %v10500_v30, 16  ;;  %v9317_v15 = vld [vmem:[%s9687_s21 + $0x140] sm:$0xff]  }
  0x9c   : > { %4179 = vst.msk [vmem:[#allocation2 + $0x48] sm:$0xff] %vm4169_vm2, %v3747_v5  ;;  %v3745_v62 = vpop.permute.xlu0 %3744  ;;  %v3225_v5 = vshll.u32 %v10444_v24, 16  ;;  %v10528_v55 = vrot.slane %v3233_v1, 1 }
  0x9d   : > { %3862 = vrot.lane.b32.xlu1 %v3100_v38, %s9645_s25  ;;  %4178 = vst.msk [vmem:[#allocation2 + $0x40] sm:$0xff] %vm4169_vm2, %v3745_v62  ;;  %v3221_v38 = vshrl.u32 %v10441_v28, 16  ;;  %v10504_v62 = vrot.slane %v3217_v18, 1  ;;  %v10581_v18 = vld [vmem:[%s9687_s21 + $0x2e8] sm:$0xff]   ;;  %v3204_v28 = vsel %vm2552_vm0, %v3199_v53, %v10455_v9  ;;  %v9329_v53 = vld [vmem:[%s9687_s21 + $0x170] sm:$0xff]  }
  0x9e   : > { %3860 = vrot.lane.b32.xlu0 %v3092_v17, %s9645_s25  ;;  %v3213_v17 = vshrl.u32 %v10398_v39, 16  ;;  %1416 = vst.msk [vmem:[#allocation2 + $0x140] sm:$0xff] %vm1375_vm1, %v9317_v15  ;;  %v3239_v9 = vor.u32 %v3237_v7, %v10528_v55  ;;  %1422 = vst.msk [vmem:[#allocation2 + $0x170] sm:$0xff] %vm1375_vm1, %v9329_v53  ;;  %v9332_v15 = vld [vmem:[%s9687_s21 + $0x188] sm:$0xff]   ;;  %v9345_v53 = vld [vmem:[%s9687_s21 + $0x1b0] sm:$0xff]  }
  0x9f   : > { %v3751_v0 = vpop.permute.xlu1 %3750  ;;  %v3223_v41 = vor.u32 %v3221_v38, %v10504_v62  ;;  %1425 = vst.msk [vmem:[#allocation2 + $0x188] sm:$0xff] %vm1375_vm1, %v9332_v15  ;;  %1430 = vst.msk [vmem:[#allocation2 + $0x1b0] sm:$0xff] %vm1375_vm1, %v9345_v53  ;;  %v10833_v15 = vld [vmem:[%s9687_s21 + $0x358] sm:$0xff]  }
  0xa0   : > { %4181 = vst.msk [vmem:[#allocation2 + $0x58] sm:$0xff] %vm4169_vm2, %v3751_v0  ;;  %v3749_v4 = vpop.permute.xlu0 %3748  ;;  %v9309_v0 = vld [vmem:[%s9687_s21 + $0x120] sm:$0xff]   ;;  %v3215_v38 = vor.u32 %v3213_v17, %v10459_v27  ;;  %v3297_v17 = vshll.u32 %v10581_v18, 16  ;;  %v3244_v24 = vsel %vm2552_vm0, %v3239_v9, %v10534_v22 }
  0xa1   : > { %3866 = vrot.lane.b32.xlu1 %v3116_v46, %s9645_s25  ;;  %4180 = vst.msk [vmem:[#allocation2 + $0x50] sm:$0xff] %vm4169_vm2, %v3749_v4  ;;  %v10514_v46 = vrot.slane %v3225_v5, 1  ;;  %v3245_v4 = vshrl.u32 %v10473_v11, 16 }
  0xa2   : > { %3864 = vrot.lane.b32.xlu0 %v3108_v19, %s9645_s25  ;;  %v3249_v19 = vshll.u32 %v10479_v34, 16  ;;  %1412 = vst.msk [vmem:[#allocation2 + $0x120] sm:$0xff] %vm1375_vm1, %v9309_v0  ;;  %v3220_v25 = vsel %vm2552_vm0, %v3215_v38, %v10504_v62  ;;  %v9324_v62 = vld [vmem:[%s9687_s21 + $0x168] sm:$0xff]  }
  0xa3   : > { %v3755_v40 = vpop.permute.xlu1 %3754  ;;  %v3228_v39 = vsel %vm2552_vm0, %v3223_v41, %v10514_v46  ;;  %1421 = vst.msk [vmem:[#allocation2 + $0x168] sm:$0xff] %vm1375_vm1, %v9324_v62  ;;  %v10761_v62 = vld [vmem:[%s9687_s21 + $0x338] sm:$0xff]  }
  0xa4   : > { %4183 = vst.msk [vmem:[#allocation2 + $0x68] sm:$0xff] %vm4169_vm2, %v3755_v40  ;;  %v3753_v50 = vpop.permute.xlu0 %3752  ;;  %v9312_v40 = vld [vmem:[%s9687_s21 + $0x138] sm:$0xff]  }
  0xa5   : > { %3870 = vrot.lane.b32.xlu1 %v3132_v26, %s9645_s25  ;;  %4182 = vst.msk [vmem:[#allocation2 + $0x60] sm:$0xff] %vm4169_vm2, %v3753_v50  ;;  %v3183_v26 = vor.u32 %v3181_v16, %v10412_v44  ;;  %v10561_v44 = vrot.slane %v3257_v2, 1  ;;  %v10564_v16 = vld [vmem:[%s9687_s21 + $0x2d8] sm:$0xff]   ;;  %v3265_v50 = vshll.u32 %v10538_v14, 16 }
  0xa6   : > { %3868 = vrot.lane.b32.xlu0 %v3124_v63, %s9645_s25  ;;  %v10552_v63 = vrot.slane %v3249_v19, 1  ;;  %1415 = vst.msk [vmem:[#allocation2 + $0x138] sm:$0xff] %vm1375_vm1, %v9312_v40  ;;  %v3281_v47 = vshll.u32 %v10564_v16, 16 }
  0xa7   : > { %v3759_v45 = vpop.permute.xlu1 %3758  ;;  %v3188_v48 = vsel %vm2552_vm0, %v3183_v26, %v10426_v21  ;;  %v3212_v21 = vsel %vm2552_vm0, %v3207_v42, %v10459_v27  ;;  %v10606_v43 = vrot.slane %v3265_v50, 1  ;;  %v3285_v27 = vshrl.u32 %v10564_v16, 16 }
  0xa8   : > { %4185 = vst.msk [vmem:[#allocation2 + $0x78] sm:$0xff] %vm4169_vm2, %v3759_v45  ;;  %v3757_v20 = vpop.permute.xlu0 %3756  ;;  %v10625_v54 = vrot.slane %v3281_v47, 1  ;;  %v3263_v14 = vor.u32 %v3261_v29, %v10561_v44  ;;  %v3325_v29 = vshrl.u32 %v10643_v59, 16 }
  0xa9   : > { %3874 = vrot.lane.b32.xlu1 %v3148_v31, %s9645_s25  ;;  %4184 = vst.msk [vmem:[#allocation2 + $0x70] sm:$0xff] %vm4169_vm2, %v3757_v20  ;;  %v10570_v31 = vld [vmem:[%s9687_s21 + $0x2e0] sm:$0xff]   ;;  %v10597_v20 = vld [vmem:[%s9687_s21 + $0x2f0] sm:$0xff]  }
  0xaa   : > { %3872 = vrot.lane.b32.xlu0 %v3140_v52, %s9645_s25  ;;  %v3273_v52 = vshll.u32 %v10541_v60, 16  ;;  %v3305_v0 = vshll.u32 %v10597_v20, 16  ;;  %v3293_v19 = vshrl.u32 %v10570_v31, 16 }
  0xab   : > { %v3763_v35 = vpop.permute.xlu1 %3762 }
  0xac   : > { %4187 = vst.msk [vmem:[#allocation2 + $0x88] sm:$0xff] %vm4169_vm2, %v3763_v35  ;;  %v3761_v36 = vpop.permute.xlu0 %3760  ;;  %v10611_v1 = vrot.slane %v3273_v52, 1  ;;  %v3277_v35 = vshrl.u32 %v10541_v60, 16  ;;  %v10658_v40 = vrot.slane %v3305_v0, 1  ;;  %v10699_v52 = vld [vmem:[%s9687_s21 + $0x320] sm:$0xff]   ;;  %v10735_v60 = vld [vmem:[%s9687_s21 + $0x328] sm:$0xff]  }
  0xad   : > { %3878 = vrot.lane.b32.xlu1 %v3164_v51, %s9645_s25  ;;  %4186 = vst.msk [vmem:[#allocation2 + $0x80] sm:$0xff] %vm4169_vm2, %v3761_v36  ;;  %v3289_v51 = vshll.u32 %v10570_v31, 16  ;;  %v3231_v36 = vor.u32 %v3229_v57, %v10514_v46  ;;  %v3255_v46 = vor.u32 %v3253_v12, %v10552_v63  ;;  %v10654_v57 = vrot.slane %v3297_v17, 1 }
  0xae   : > { %3876 = vrot.lane.b32.xlu0 %v3156_v33, %s9645_s25  ;;  %v9321_v33 = vld [vmem:[%s9687_s21 + $0x150] sm:$0xff]   ;;  %v3247_v12 = vor.u32 %v3245_v4, %v10534_v22  ;;  %v3321_v22 = vshll.u32 %v10643_v59, 16  ;;  %v9328_v4 = vld [vmem:[%s9687_s21 + $0x178] sm:$0xff]  }
  0xaf   : > { %v3767_v61 = vpop.permute.xlu1 %3766  ;;  %1418 = vst.msk [vmem:[#allocation2 + $0x150] sm:$0xff] %vm1375_vm1, %v9321_v33  ;;  %v10636_v7 = vrot.slane %v3289_v51, 1  ;;  %v3236_v34 = vsel %vm2552_vm0, %v3231_v36, %v10528_v55  ;;  %v3260_v11 = vsel %vm2552_vm0, %v3255_v46, %v10561_v44  ;;  %v3271_v55 = vor.u32 %v3269_v56, %v10606_v43  ;;  %1423 = vst.msk [vmem:[#allocation2 + $0x178] sm:$0xff] %vm1375_vm1, %v9328_v4  ;;  %v9337_v36 = vld [vmem:[%s9687_s21 + $0x190] sm:$0xff]  }
  0xb0   : > { %4189 = vst.msk [vmem:[#allocation2 + $0x98] sm:$0xff] %vm4169_vm2, %v3767_v61  ;;  %v3765_v32 = vpop.permute.xlu0 %3764  ;;  %v3301_v61 = vshrl.u32 %v10581_v18, 16  ;;  %v10711_v44 = vrot.slane %v3321_v22, 1  ;;  %v3268_v51 = vsel %vm2552_vm0, %v3263_v14, %v10606_v43  ;;  %v3353_v33 = vshll.u32 %v10699_v52, 16 }
  0xb1   : > { %3882 = vrot.lane.b32.xlu1 %v3180_v8, %s9645_s25  ;;  %4188 = vst.msk [vmem:[#allocation2 + $0x90] sm:$0xff] %vm4169_vm2, %v3765_v32  ;;  %v10640_v8 = vld [vmem:[%s9687_s21 + $0x2f8] sm:$0xff]   ;;  %v10661_v32 = vld [vmem:[%s9687_s21 + $0x308] sm:$0xff]   ;;  %v3276_v30 = vsel %vm2552_vm0, %v3271_v55, %v10611_v1  ;;  %v3295_v18 = vor.u32 %v3293_v19, %v10636_v7  ;;  %v3361_v46 = vshll.u32 %v10735_v60, 16 }
  0xb2   : > { %3880 = vrot.lane.b32.xlu0 %v3172_v10, %s9645_s25  ;;  %v9325_v10 = vld [vmem:[%s9687_s21 + $0x160] sm:$0xff]   ;;  %v3313_v6 = vshll.u32 %v10640_v8, 16  ;;  %v3317_v16 = vshrl.u32 %v10640_v8, 16  ;;  %v3329_v56 = vshll.u32 %v10661_v32, 16  ;;  %1426 = vst.msk [vmem:[#allocation2 + $0x190] sm:$0xff] %vm1375_vm1, %v9337_v36  ;;  %v10778_v19 = vld [vmem:[%s9687_s21 + $0x348] sm:$0xff]   ;;  %v3327_v14 = vor.u32 %v3325_v29, %v10711_v44 }
  0xb3   : > { %v3771_v58 = vpop.permute.xlu1 %3770  ;;  %1420 = vst.msk [vmem:[#allocation2 + $0x160] sm:$0xff] %vm1375_vm1, %v9325_v10  ;;  %v10767_v10 = vld [vmem:[%s9687_s21 + $0x340] sm:$0xff]   ;;  %v10871_v36 = vld [vmem:[%s9687_s21 + $0x378] sm:$0xff]  }
  0xb4   : > { %4191 = vst.msk [vmem:[#allocation2 + $0xa8] sm:$0xff] %vm4169_vm2, %v3771_v58  ;;  %v3769_v45 = vpop.permute.xlu0 %3768  ;;  %v10678_v58 = vld [vmem:[%s9687_s21 + $0x318] sm:$0xff]   ;;  %v10725_v49 = vrot.slane %v3329_v56, 1  ;;  %v3385_v55 = vshll.u32 %v10767_v10, 16  ;;  %v3381_v56 = vshrl.u32 %v10761_v62, 16  ;;  %v3389_v29 = vshrl.u32 %v10767_v10, 16 }
  0xb5   : > { %3886 = vrot.lane.b32.xlu1 %v3196_v23, %s9645_s25  ;;  %4190 = vst.msk [vmem:[#allocation2 + $0xa0] sm:$0xff] %vm4169_vm2, %v3769_v45  ;;  %v10672_v23 = vld [vmem:[%s9687_s21 + $0x310] sm:$0xff]   ;;  %v3252_v45 = vsel %vm2552_vm0, %v3247_v12, %v10552_v63  ;;  %v3287_v63 = vor.u32 %v3285_v27, %v10625_v54  ;;  %v3345_v38 = vshll.u32 %v10678_v58, 16  ;;  %v3303_v27 = vor.u32 %v3301_v61, %v10654_v57 }
  0xb6   : > { %3884 = vrot.lane.b32.xlu0 %v3188_v48, %s9645_s25  ;;  %v3309_v48 = vshrl.u32 %v10597_v20, 16  ;;  %v3337_v41 = vshll.u32 %v10672_v23, 16  ;;  %v3341_v43 = vshrl.u32 %v10672_v23, 16  ;;  %v3349_v17 = vshrl.u32 %v10678_v58, 16 }
  0xb7   : > { %v3775_v5 = vpop.permute.xlu1 %3774  ;;  %v10758_v61 = vrot.slane %v3353_v33, 1  ;;  %v3308_v31 = vsel %vm2552_vm0, %v3303_v27, %v10658_v40  ;;  %v3300_v12 = vsel %vm2552_vm0, %v3295_v18, %v10654_v57  ;;  %v3377_v58 = vshll.u32 %v10761_v62, 16  ;;  %v9352_v62 = vld [vmem:[%s9687_s21 + $0x1d8] sm:$0xff]  }
  0xb8   : > { %4193 = vst.msk [vmem:[#allocation2 + $0xb8] sm:$0xff] %vm4169_vm2, %v3775_v5  ;;  %v3773_v3 = vpop.permute.xlu0 %3772  ;;  %v9333_v5 = vld [vmem:[%s9687_s21 + $0x180] sm:$0xff]   ;;  %v10731_v9 = vrot.slane %v3337_v41, 1  ;;  %v3311_v8 = vor.u32 %v3309_v48, %v10658_v40  ;;  %v10801_v40 = vrot.slane %v3361_v46, 1  ;;  %v9344_v48 = vld [vmem:[%s9687_s21 + $0x1b8] sm:$0xff]  }
  0xb9   : > { %3890 = vrot.lane.b32.xlu1 %v3212_v21, %s9645_s25  ;;  %4192 = vst.msk [vmem:[#allocation2 + $0xb0] sm:$0xff] %vm4169_vm2, %v3773_v3  ;;  %v10703_v21 = vrot.slane %v3313_v6, 1  ;;  %v3279_v3 = vor.u32 %v3277_v35, %v10611_v1  ;;  %v10738_v1 = vld [vmem:[%s9687_s21 + $0x330] sm:$0xff]   ;;  %v3292_v35 = vsel %vm2552_vm0, %v3287_v63, %v10636_v7  ;;  %v3365_v7 = vshrl.u32 %v10735_v60, 16 }
  0xba   : > { %3888 = vrot.lane.b32.xlu0 %v3204_v28, %s9645_s25  ;;  %v3333_v28 = vshrl.u32 %v10661_v32, 16  ;;  %1424 = vst.msk [vmem:[#allocation2 + $0x180] sm:$0xff] %vm1375_vm1, %v9333_v5  ;;  %v3369_v32 = vshll.u32 %v10738_v1, 16  ;;  %v3357_v6 = vshrl.u32 %v10699_v52, 16  ;;  %1431 = vst.msk [vmem:[#allocation2 + $0x1b8] sm:$0xff] %vm1375_vm1, %v9344_v48  ;;  %v10836_v5 = vld [vmem:[%s9687_s21 + $0x360] sm:$0xff]  }
  0xbb   : > { %v3779_v13 = vpop.permute.xlu1 %3778  ;;  %v3417_v18 = vshll.u32 %v10836_v5, 16  ;;  %1435 = vst.msk [vmem:[#allocation2 + $0x1d8] sm:$0xff] %vm1375_vm1, %v9352_v62  ;;  %v10929_v48 = vld [vmem:[%s9687_s21 + $0x390] sm:$0xff]  }
  0xbc   : > { %4195 = vst.msk [vmem:[#allocation2 + $0xc8] sm:$0xff] %vm4169_vm2, %v3779_v13  ;;  %v3777_v2 = vpop.permute.xlu0 %3776  ;;  %v9336_v13 = vld [vmem:[%s9687_s21 + $0x198] sm:$0xff]   ;;  %v3335_v57 = vor.u32 %v3333_v28, %v10725_v49  ;;  %v10806_v4 = vrot.slane %v3369_v32, 1  ;;  %v3397_v28 = vshrl.u32 %v10778_v19, 16  ;;  %v3469_v62 = vshrl.u32 %v10929_v48, 16 }
  0xbd   : > { %3894 = vrot.lane.b32.xlu1 %v3228_v39, %s9645_s25  ;;  %4194 = vst.msk [vmem:[#allocation2 + $0xc0] sm:$0xff] %vm4169_vm2, %v3777_v2  ;;  %v3284_v2 = vsel %vm2552_vm0, %v3279_v3, %v10625_v54  ;;  %v3319_v54 = vor.u32 %v3317_v16, %v10703_v21  ;;  %v3343_v3 = vor.u32 %v3341_v43, %v10731_v9  ;;  %v10865_v43 = vld [vmem:[%s9687_s21 + $0x370] sm:$0xff]  }
  0xbe   : > { %3892 = vrot.lane.b32.xlu0 %v3220_v25, %s9645_s25  ;;  %v10749_v25 = vrot.slane %v3345_v38, 1  ;;  %1427 = vst.msk [vmem:[#allocation2 + $0x198] sm:$0xff] %vm1375_vm1, %v9336_v13  ;;  %v3340_v59 = vsel %vm2552_vm0, %v3335_v57, %v10731_v9  ;;  %v9348_v38 = vld [vmem:[%s9687_s21 + $0x1c8] sm:$0xff]   ;;  %v3409_v9 = vshll.u32 %v10833_v15, 16 }
  0xbf   : > { %v3783_v26 = vpop.permute.xlu1 %3782  ;;  %v3324_v20 = vsel %vm2552_vm0, %v3319_v54, %v10711_v44  ;;  %v10829_v44 = vrot.slane %v3385_v55, 1  ;;  %1433 = vst.msk [vmem:[#allocation2 + $0x1c8] sm:$0xff] %vm1375_vm1, %v9348_v38  ;;  %v10965_v38 = vld [vmem:[%s9687_s21 + $0x3a8] sm:$0xff]  }
  0xc0   : > { %4197 = vst.msk [vmem:[#allocation2 + $0xd8] sm:$0xff] %vm4169_vm2, %v3783_v26  ;;  %v3781_v42 = vpop.permute.xlu0 %3780  ;;  %v3348_v60 = vsel %vm2552_vm0, %v3343_v3, %v10749_v25  ;;  %v3465_v3 = vshll.u32 %v10929_v48, 16 }
  0xc1   : > { %3898 = vrot.lane.b32.xlu1 %v3244_v24, %s9645_s25  ;;  %4196 = vst.msk [vmem:[#allocation2 + $0xd0] sm:$0xff] %vm4169_vm2, %v3781_v42  ;;  %v9341_v42 = vld [vmem:[%s9687_s21 + $0x1a0] sm:$0xff]  }
  0xc2   : > { %3896 = vrot.lane.b32.xlu0 %v3236_v34, %s9645_s25  ;;  %v9340_v34 = vld [vmem:[%s9687_s21 + $0x1a8] sm:$0xff]   ;;  %1428 = vst.msk [vmem:[#allocation2 + $0x1a0] sm:$0xff] %vm1375_vm1, %v9341_v42  ;;  %v9357_v42 = vld [vmem:[%s9687_s21 + $0x1e0] sm:$0xff]  }
  0xc3   : > { %v3787_v50 = vpop.permute.xlu1 %3786  ;;  %1429 = vst.msk [vmem:[#allocation2 + $0x1a8] sm:$0xff] %vm1375_vm1, %v9340_v34  ;;  %1436 = vst.msk [vmem:[#allocation2 + $0x1e0] sm:$0xff] %vm1375_vm1, %v9357_v42 }
  0xc4   : > { %4199 = vst.msk [vmem:[#allocation2 + $0xe8] sm:$0xff] %vm4169_vm2, %v3787_v50  ;;  %v3785_v37 = vpop.permute.xlu0 %3784  ;;  %v3373_v50 = vshrl.u32 %v10738_v1, 16 }
  0xc5   : > { %3902 = vrot.lane.b32.xlu1 %v3260_v11, %s9645_s25  ;;  %4198 = vst.msk [vmem:[#allocation2 + $0xe0] sm:$0xff] %vm4169_vm2, %v3785_v37  ;;  %v10794_v11 = vld [vmem:[%s9687_s21 + $0x350] sm:$0xff]   ;;  %v3393_v37 = vshll.u32 %v10778_v19, 16  ;;  %v10894_v19 = vrot.slane %v3409_v9, 1 }
  0xc6   : > { %3900 = vrot.lane.b32.xlu0 %v3252_v45, %s9645_s25  ;;  %v3316_v45 = vsel %vm2552_vm0, %v3311_v8, %v10703_v21  ;;  %v3401_v63 = vshll.u32 %v10794_v11, 16  ;;  %v3351_v21 = vor.u32 %v3349_v17, %v10749_v25  ;;  %v10854_v17 = vld [vmem:[%s9687_s21 + $0x368] sm:$0xff]   ;;  %v3405_v46 = vshrl.u32 %v10794_v11, 16  ;;  %v10979_v9 = vld [vmem:[%s9687_s21 + $0x3b0] sm:$0xff]  }
  0xc7   : > { %v3791_v47 = vpop.permute.xlu1 %3790  ;;  %v10847_v33 = vrot.slane %v3393_v37, 1  ;;  %v3425_v52 = vshll.u32 %v10854_v17, 16  ;;  %v3375_v34 = vor.u32 %v3373_v50, %v10806_v4  ;;  %v3421_v8 = vshrl.u32 %v10836_v5, 16  ;;  %v10926_v50 = vld [vmem:[%s9687_s21 + $0x388] sm:$0xff]  }
  0xc8   : > { %4201 = vst.msk [vmem:[#allocation2 + $0xf8] sm:$0xff] %vm4169_vm2, %v3791_v47  ;;  %v3789_v39 = vpop.permute.xlu0 %3788  ;;  %v10851_v27 = vrot.slane %v3401_v63, 1  ;;  %v3356_v23 = vsel %vm2552_vm0, %v3351_v21, %v10758_v61  ;;  %v3441_v11 = vshll.u32 %v10871_v36, 16  ;;  %v9361_v63 = vld [vmem:[%s9687_s21 + $0x1f0] sm:$0xff]   ;;  %v10950_v21 = vld [vmem:[%s9687_s21 + $0x398] sm:$0xff]  }
  0xc9   : > { %3906 = vrot.lane.b32.xlu1 %v3276_v30, %s9645_s25  ;;  %4200 = vst.msk [vmem:[#allocation2 + $0xf0] sm:$0xff] %vm4169_vm2, %v3789_v39  ;;  %v10820_v30 = vrot.slane %v3377_v58, 1  ;;  %v9349_v39 = vld [vmem:[%s9687_s21 + $0x1c0] sm:$0xff]   ;;  %v3429_v58 = vshrl.u32 %v10854_v17, 16  ;;  %v10916_v57 = vrot.slane %v3425_v52, 1  ;;  %v3489_v52 = vshll.u32 %v10965_v38, 16 }
  0xca   : > { %3904 = vrot.lane.b32.xlu0 %v3268_v51, %s9645_s25  ;;  %v3332_v51 = vsel %vm2552_vm0, %v3327_v14, %v10725_v49  ;;  %v3367_v49 = vor.u32 %v3365_v7, %v10801_v40  ;;  %1432 = vst.msk [vmem:[#allocation2 + $0x1c0] sm:$0xff] %vm1375_vm1, %v9349_v39  ;;  %v3445_v14 = vshrl.u32 %v10871_v36, 16  ;;  %1438 = vst.msk [vmem:[#allocation2 + $0x1f0] sm:$0xff] %vm1375_vm1, %v9361_v63  ;;  %v9364_v39 = vld [vmem:[%s9687_s21 + $0x208] sm:$0xff]  }
  0xcb   : > { %v3795_v0 = vpop.permute.xlu1 %3794  ;;  %v3383_v25 = vor.u32 %v3381_v56, %v10820_v30  ;;  %v3380_v53 = vsel %vm2552_vm0, %v3375_v34, %v10820_v30  ;;  %v9360_v56 = vld [vmem:[%s9687_s21 + $0x1f8] sm:$0xff]   ;;  %1441 = vst.msk [vmem:[#allocation2 + $0x208] sm:$0xff] %vm1375_vm1, %v9364_v39 }
  0xcc   : > { %4203 = vst.msk [vmem:[#allocation2 + $0x108] sm:$0xff] %vm4169_vm2, %v3795_v0  ;;  %v3793_v24 = vpop.permute.xlu0 %3792  ;;  %v3413_v0 = vshrl.u32 %v10833_v15, 16  ;;  %v3372_v54 = vsel %vm2552_vm0, %v3367_v49, %v10806_v4  ;;  %v3437_v4 = vshrl.u32 %v10865_v43, 16  ;;  %v10956_v15 = vld [vmem:[%s9687_s21 + $0x3a0] sm:$0xff]   ;;  %v3473_v49 = vshll.u32 %v10950_v21, 16 }
  0xcd   : > { %3910 = vrot.lane.b32.xlu1 %v3292_v35, %s9645_s25  ;;  %4202 = vst.msk [vmem:[#allocation2 + $0x100] sm:$0xff] %vm4169_vm2, %v3793_v24  ;;  %v3388_v1 = vsel %vm2552_vm0, %v3383_v25, %v10829_v44  ;;  %v3477_v25 = vshrl.u32 %v10950_v21, 16  ;;  %v9377_v21 = vld [vmem:[%s9687_s21 + $0x230] sm:$0xff]  }
  0xce   : > { %3908 = vrot.lane.b32.xlu0 %v3284_v2, %s9645_s25  ;;  %v3359_v2 = vor.u32 %v3357_v6, %v10758_v61  ;;  %v10890_v61 = vld [vmem:[%s9687_s21 + $0x380] sm:$0xff]   ;;  %v9356_v6 = vld [vmem:[%s9687_s21 + $0x1e8] sm:$0xff]   ;;  %1439 = vst.msk [vmem:[#allocation2 + $0x1f8] sm:$0xff] %vm1375_vm1, %v9360_v56  ;;  %1446 = vst.msk [vmem:[#allocation2 + $0x230] sm:$0xff] %vm1375_vm1, %v9377_v21 }
  0xcf   : > { %v3799_v26 = vpop.permute.xlu1 %3798  ;;  %1437 = vst.msk [vmem:[#allocation2 + $0x1e8] sm:$0xff] %vm1375_vm1, %v9356_v6  ;;  %v3453_v17 = vshrl.u32 %v10890_v61, 16  ;;  %v11019_v6 = vld [vmem:[%s9687_s21 + $0x3c0] sm:$0xff]  }
  0xd0   : > { %4205 = vst.msk [vmem:[#allocation2 + $0x118] sm:$0xff] %vm4169_vm2, %v3799_v26  ;;  %v3797_v16 = vpop.permute.xlu0 %3796  ;;  %v3433_v26 = vshll.u32 %v10865_v43, 16  ;;  %v3364_v32 = vsel %vm2552_vm0, %v3359_v2, %v10801_v40  ;;  %v3449_v40 = vshll.u32 %v10890_v61, 16  ;;  %v11053_v56 = vld [vmem:[%s9687_s21 + $0x3e0] sm:$0xff]   ;;  %v3517_v39 = vshrl.u32 %v11019_v6, 16 }
  0xd1   : > { %3914 = vrot.lane.b32.xlu1 %v3308_v31, %s9645_s25  ;;  %4204 = vst.msk [vmem:[#allocation2 + $0x110] sm:$0xff] %vm4169_vm2, %v3797_v16  ;;  %v9353_v31 = vld [vmem:[%s9687_s21 + $0x1d0] sm:$0xff]  }
  0xd2   : > { %3912 = vrot.lane.b32.xlu0 %v3300_v12, %s9645_s25  ;;  %1434 = vst.msk [vmem:[#allocation2 + $0x1d0] sm:$0xff] %vm1375_vm1, %v9353_v31  ;;  %v10904_v12 = vrot.slane %v3417_v18, 1  ;;  %v10947_v10 = vrot.slane %v3449_v40, 1  ;;  %v3467_v18 = vrot.slane %v3465_v3, 1 }
  0xd3   : > { %v3803_v22 = vpop.permute.xlu1 %3802 }
  0xd4   : > { %4207 = vst.msk [vmem:[#allocation2 + $0x128] sm:$0xff] %vm4169_vm2, %v3803_v22  ;;  %v3801_v41 = vpop.permute.xlu0 %3800  ;;  %v10922_v22 = vrot.slane %v3433_v26, 1 }
  0xd5   : > { %3918 = vrot.lane.b32.xlu1 %v3324_v20, %s9645_s25  ;;  %4206 = vst.msk [vmem:[#allocation2 + $0x120] sm:$0xff] %vm4169_vm2, %v3801_v41  ;;  %v3399_v20 = vor.u32 %v3397_v28, %v10847_v33  ;;  %v10940_v41 = vrot.slane %v3441_v11, 1  ;;  %v3461_v28 = vshrl.u32 %v10926_v50, 16 }
  0xd6   : > { %3916 = vrot.lane.b32.xlu0 %v3316_v45, %s9645_s25  ;;  %v3391_v45 = vor.u32 %v3389_v29, %v10829_v44  ;;  %v3457_v29 = vshll.u32 %v10926_v50, 16  ;;  %v3455_v50 = vor.u32 %v3453_v17, %v10947_v10  ;;  %v9381_v17 = vld [vmem:[%s9687_s21 + $0x240] sm:$0xff]  }
  0xd7   : > { %v3807_v47 = vpop.permute.xlu1 %3806  ;;  %v3404_v30 = vsel %vm2552_vm0, %v3399_v20, %v10851_v27  ;;  %v11031_v20 = vld [vmem:[%s9687_s21 + $0x3c8] sm:$0xff]   ;;  %1448 = vst.msk [vmem:[#allocation2 + $0x240] sm:$0xff] %vm1375_vm1, %v9381_v17 }
  0xd8   : > { %4209 = vst.msk [vmem:[#allocation2 + $0x138] sm:$0xff] %vm4169_vm2, %v3807_v47  ;;  %v3805_v35 = vpop.permute.xlu0 %3804  ;;  %v3396_v5 = vsel %vm2552_vm0, %v3391_v45, %v10847_v33  ;;  %v3407_v47 = vor.u32 %v3405_v46, %v10851_v27  ;;  %v3431_v33 = vor.u32 %v3429_v58, %v10916_v57  ;;  %v9365_v27 = vld [vmem:[%s9687_s21 + $0x200] sm:$0xff]   ;;  %v10986_v36 = vrot.slane %v3457_v29, 1  ;;  %v9369_v46 = vld [vmem:[%s9687_s21 + $0x210] sm:$0xff]   ;;  %v9372_v58 = vld [vmem:[%s9687_s21 + $0x228] sm:$0xff]  }
  0xd9   : > { %3922 = vrot.lane.b32.xlu1 %v3340_v59, %s9645_s25  ;;  %4208 = vst.msk [vmem:[#allocation2 + $0x130] sm:$0xff] %vm4169_vm2, %v3805_v35  ;;  %v3415_v59 = vor.u32 %v3413_v0, %v10894_v19  ;;  %v3423_v0 = vor.u32 %v3421_v8, %v10904_v12  ;;  %v11016_v8 = vld [vmem:[%s9687_s21 + $0x3b8] sm:$0xff]   ;;  %v3471_v29 = vor.u32 %v3469_v62, %v3467_v18 }
  0xda   : > { %3920 = vrot.lane.b32.xlu0 %v3332_v51, %s9645_s25  ;;  %1440 = vst.msk [vmem:[#allocation2 + $0x200] sm:$0xff] %vm1375_vm1, %v9365_v27  ;;  %v3436_v31 = vsel %vm2552_vm0, %v3431_v33, %v10922_v22  ;;  %1442 = vst.msk [vmem:[#allocation2 + $0x210] sm:$0xff] %vm1375_vm1, %v9369_v46  ;;  %v3463_v11 = vor.u32 %v3461_v28, %v10986_v36  ;;  %v3505_v48 = vshll.u32 %v11016_v8, 16  ;;  %v3509_v63 = vshrl.u32 %v11016_v8, 16  ;;  %v9380_v33 = vld [vmem:[%s9687_s21 + $0x248] sm:$0xff]  }
  0xdb   : > { %v3811_v13 = vpop.permute.xlu1 %3810  ;;  %v3420_v35 = vsel %vm2552_vm0, %v3415_v59, %v10904_v12  ;;  %v3428_v26 = vsel %vm2552_vm0, %v3423_v0, %v10916_v57  ;;  %v3485_v12 = vshrl.u32 %v10956_v15, 16  ;;  %v9373_v57 = vld [vmem:[%s9687_s21 + $0x220] sm:$0xff]   ;;  %1445 = vst.msk [vmem:[#allocation2 + $0x228] sm:$0xff] %vm1375_vm1, %v9372_v58  ;;  %1449 = vst.msk [vmem:[#allocation2 + $0x248] sm:$0xff] %vm1375_vm1, %v9380_v33  ;;  %v11177_v33 = vld [vmem:[%s9687_s21 + $0x428] sm:$0xff]  }
  0xdc   : > { %4211 = vst.msk [vmem:[#allocation2 + $0x148] sm:$0xff] %vm4169_vm2, %v3811_v13  ;;  %v3809_v24 = vpop.permute.xlu0 %3808  ;;  %v3412_v13 = vsel %vm2552_vm0, %v3407_v47, %v10894_v19  ;;  %v3497_v19 = vshll.u32 %v10979_v9, 16 }
  0xdd   : > { %3926 = vrot.lane.b32.xlu1 %v3356_v23, %s9645_s25  ;;  %4210 = vst.msk [vmem:[#allocation2 + $0x140] sm:$0xff] %vm4169_vm2, %v3809_v24  ;;  %v9368_v24 = vld [vmem:[%s9687_s21 + $0x218] sm:$0xff]  }
  0xde   : > { %3924 = vrot.lane.b32.xlu0 %v3348_v60, %s9645_s25  ;;  %v3481_v60 = vshll.u32 %v10956_v15, 16  ;;  %1443 = vst.msk [vmem:[#allocation2 + $0x218] sm:$0xff] %vm1375_vm1, %v9368_v24  ;;  %1444 = vst.msk [vmem:[#allocation2 + $0x220] sm:$0xff] %vm1375_vm1, %v9373_v57  ;;  %v11066_v15 = vrot.slane %v3505_v48, 1  ;;  %v11099_v24 = vld [vmem:[%s9687_s21 + $0x3f0] sm:$0xff]   ;;  %v9388_v57 = vld [vmem:[%s9687_s21 + $0x268] sm:$0xff]  }
  0xdf   : > { %v3815_v7 = vpop.permute.xlu1 %3814  ;;  %1453 = vst.msk [vmem:[#allocation2 + $0x268] sm:$0xff] %vm1375_vm1, %v9388_v57  ;;  %v3621_v57 = vshrl.u32 %v11177_v33, 16 }
  0xe0   : > { %4213 = vst.msk [vmem:[#allocation2 + $0x158] sm:$0xff] %vm4169_vm2, %v3815_v7  ;;  %v3813_v16 = vpop.permute.xlu0 %3812  ;;  %v11001_v7 = vrot.slane %v3473_v49, 1  ;;  %v11012_v34 = vrot.slane %v3481_v60, 1  ;;  %v3545_v49 = vshll.u32 %v11053_v56, 16 }
  0xe1   : > { %3930 = vrot.lane.b32.xlu1 %v3372_v54, %s9645_s25  ;;  %4212 = vst.msk [vmem:[#allocation2 + $0x150] sm:$0xff] %vm4169_vm2, %v3813_v16  ;;  %v3447_v54 = vor.u32 %v3445_v14, %v10940_v41  ;;  %v3493_v16 = vshrl.u32 %v10965_v38, 16  ;;  %v3513_v14 = vshll.u32 %v11019_v6, 16 }
  0xe2   : > { %3928 = vrot.lane.b32.xlu0 %v3364_v32, %s9645_s25  ;;  %v3439_v32 = vor.u32 %v3437_v4, %v10922_v22  ;;  %v11038_v22 = vld [vmem:[%s9687_s21 + $0x3d0] sm:$0xff]  }
  0xe3   : > { %v3819_v55 = vpop.permute.xlu1 %3818  ;;  %v3452_v43 = vsel %vm2552_vm0, %v3447_v54, %v10947_v10  ;;  %v3501_v10 = vshrl.u32 %v10979_v9, 16  ;;  %v3515_v28 = vrot.slane %v3513_v14, 1  ;;  %v3529_v38 = vshll.u32 %v11038_v22, 16 }
  0xe4   : > { %4215 = vst.msk [vmem:[#allocation2 + $0x168] sm:$0xff] %vm4169_vm2, %v3819_v55  ;;  %v3817_v37 = vpop.permute.xlu0 %3816  ;;  %v11035_v55 = vrot.slane %v3497_v19, 1  ;;  %v3444_v4 = vsel %vm2552_vm0, %v3439_v32, %v10940_v41  ;;  %v3479_v41 = vor.u32 %v3477_v25, %v11001_v7  ;;  %v3476_v9 = vsel %vm2552_vm0, %v3471_v29, %v11001_v7  ;;  %v11108_v25 = vld [vmem:[%s9687_s21 + $0x3f8] sm:$0xff]   ;;  %v9385_v19 = vld [vmem:[%s9687_s21 + $0x250] sm:$0xff]  }
  0xe5   : > { %3934 = vrot.lane.b32.xlu1 %v3388_v1, %s9645_s25  ;;  %4214 = vst.msk [vmem:[#allocation2 + $0x160] sm:$0xff] %vm4169_vm2, %v3817_v37  ;;  %v11028_v1 = vrot.slane %v3489_v52, 1  ;;  %v3468_v37 = vsel %vm2552_vm0, %v3463_v11, %v3467_v18  ;;  %v3533_v62 = vshrl.u32 %v11038_v22, 16  ;;  %v9384_v52 = vld [vmem:[%s9687_s21 + $0x258] sm:$0xff]   ;;  %v11112_v7 = vrot.slane %v3545_v49, 1  ;;  %v11135_v11 = vld [vmem:[%s9687_s21 + $0x410] sm:$0xff]  }
  0xe6   : > { %3932 = vrot.lane.b32.xlu0 %v3380_v53, %s9645_s25  ;;  %v11047_v53 = vld [vmem:[%s9687_s21 + $0x3d8] sm:$0xff]   ;;  %v3503_v32 = vor.u32 %v3501_v10, %v11035_v55  ;;  %1451 = vst.msk [vmem:[#allocation2 + $0x258] sm:$0xff] %vm1375_vm1, %v9384_v52  ;;  %1450 = vst.msk [vmem:[#allocation2 + $0x250] sm:$0xff] %vm1375_vm1, %v9385_v19  ;;  %v3569_v22 = vshll.u32 %v11108_v25, 16  ;;  %v9393_v10 = vld [vmem:[%s9687_s21 + $0x270] sm:$0xff]  }
  0xe7   : > { %v3823_v44 = vpop.permute.xlu1 %3822  ;;  %v3495_v3 = vor.u32 %v3493_v16, %v11028_v1  ;;  %v3541_v18 = vshrl.u32 %v11047_v53, 16  ;;  %1454 = vst.msk [vmem:[#allocation2 + $0x270] sm:$0xff] %vm1375_vm1, %v9393_v10  ;;  %v9400_v19 = vld [vmem:[%s9687_s21 + $0x298] sm:$0xff]  }
  0xe8   : > { %4217 = vst.msk [vmem:[#allocation2 + $0x178] sm:$0xff] %vm4169_vm2, %v3823_v44  ;;  %v3821_v51 = vpop.permute.xlu0 %3820  ;;  %v3460_v44 = vsel %vm2552_vm0, %v3455_v50, %v10986_v36  ;;  %v11091_v36 = vld [vmem:[%s9687_s21 + $0x3e8] sm:$0xff]   ;;  %v3571_v29 = vrot.slane %v3569_v22, 1 }
  0xe9   : > { %3938 = vrot.lane.b32.xlu1 %v3404_v30, %s9645_s25  ;;  %4216 = vst.msk [vmem:[#allocation2 + $0x170] sm:$0xff] %vm4169_vm2, %v3821_v51  ;;  %v9376_v30 = vld [vmem:[%s9687_s21 + $0x238] sm:$0xff]   ;;  %v3484_v51 = vsel %vm2552_vm0, %v3479_v41, %v11012_v34  ;;  %v3500_v46 = vsel %vm2552_vm0, %v3495_v3, %v11035_v55  ;;  %v3557_v6 = vshrl.u32 %v11091_v36, 16  ;;  %v3519_v55 = vor.u32 %v3517_v39, %v3515_v28 }
  0xea   : > { %3936 = vrot.lane.b32.xlu0 %v3396_v5, %s9645_s25  ;;  %v3521_v5 = vshll.u32 %v11031_v20, 16  ;;  %1447 = vst.msk [vmem:[#allocation2 + $0x238] sm:$0xff] %vm1375_vm1, %v9376_v30  ;;  %1459 = vst.msk [vmem:[#allocation2 + $0x298] sm:$0xff] %vm1375_vm1, %v9400_v19  ;;  %v11294_v19 = vld [vmem:[%s9687_s21 + $0x478] sm:$0xff]  }
  0xeb   : > { %v3827_v23 = vpop.permute.xlu1 %3826 }
  0xec   : > { %4219 = vst.msk [vmem:[#allocation2 + $0x188] sm:$0xff] %vm4169_vm2, %v3827_v23  ;;  %v3825_v2 = vpop.permute.xlu0 %3824  ;;  %v3525_v23 = vshrl.u32 %v11031_v20, 16  ;;  %v11088_v0 = vrot.slane %v3521_v5, 1  ;;  %v3549_v20 = vshrl.u32 %v11053_v56, 16 }
  0xed   : > { %3942 = vrot.lane.b32.xlu1 %v3420_v35, %s9645_s25  ;;  %4218 = vst.msk [vmem:[#allocation2 + $0x180] sm:$0xff] %vm4169_vm2, %v3825_v2  ;;  %v3537_v35 = vshll.u32 %v11047_v53, 16  ;;  %v3531_v2 = vrot.slane %v3529_v38, 1 }
  0xee   : > { %3940 = vrot.lane.b32.xlu0 %v3412_v13, %s9645_s25  ;;  %v3487_v13 = vor.u32 %v3485_v12, %v11012_v34  ;;  %v3553_v34 = vshll.u32 %v11091_v36, 16  ;;  %v11121_v12 = vld [vmem:[%s9687_s21 + $0x400] sm:$0xff]   ;;  %v3527_v58 = vor.u32 %v3525_v23, %v11088_v0  ;;  %v3524_v21 = vsel %vm2552_vm0, %v3519_v55, %v11088_v0  ;;  %v9396_v23 = vld [vmem:[%s9687_s21 + $0x288] sm:$0xff]  }
  0xef   : > { %v3831_v61 = vpop.permute.xlu1 %3830  ;;  %v11105_v54 = vrot.slane %v3537_v35, 1  ;;  %v3577_v53 = vshll.u32 %v11121_v12, 16  ;;  %v3581_v39 = vshrl.u32 %v11121_v12, 16  ;;  %v11174_v35 = vld [vmem:[%s9687_s21 + $0x420] sm:$0xff]   ;;  %1457 = vst.msk [vmem:[#allocation2 + $0x288] sm:$0xff] %vm1375_vm1, %v9396_v23 }
  0xf0   : > { %4221 = vst.msk [vmem:[#allocation2 + $0x198] sm:$0xff] %vm4169_vm2, %v3831_v61  ;;  %v3829_v42 = vpop.permute.xlu0 %3828  ;;  %v3555_v48 = vrot.slane %v3553_v34, 1  ;;  %v9397_v0 = vld [vmem:[%s9687_s21 + $0x280] sm:$0xff]   ;;  %v9401_v34 = vld [vmem:[%s9687_s21 + $0x290] sm:$0xff]  }
  0xf1   : > { %3946 = vrot.lane.b32.xlu1 %v3436_v31, %s9645_s25  ;;  %4220 = vst.msk [vmem:[#allocation2 + $0x190] sm:$0xff] %vm4169_vm2, %v3829_v42  ;;  %v3511_v31 = vor.u32 %v3509_v63, %v11066_v15  ;;  %v11127_v42 = vld [vmem:[%s9687_s21 + $0x408] sm:$0xff]   ;;  %v3543_v14 = vor.u32 %v3541_v18, %v11105_v54  ;;  %v3573_v63 = vshrl.u32 %v11108_v25, 16  ;;  %v11204_v25 = vld [vmem:[%s9687_s21 + $0x438] sm:$0xff]   ;;  %v9405_v55 = vld [vmem:[%s9687_s21 + $0x2a0] sm:$0xff]  }
  0xf2   : > { %3944 = vrot.lane.b32.xlu0 %v3428_v26, %s9645_s25  ;;  %v3492_v26 = vsel %vm2552_vm0, %v3487_v13, %v11028_v1  ;;  %v3585_v30 = vshll.u32 %v11127_v42, 16  ;;  %v3589_v3 = vshrl.u32 %v11127_v42, 16  ;;  %1456 = vst.msk [vmem:[#allocation2 + $0x280] sm:$0xff] %vm1375_vm1, %v9397_v0  ;;  %v11216_v42 = vld [vmem:[%s9687_s21 + $0x440] sm:$0xff]   ;;  %1458 = vst.msk [vmem:[#allocation2 + $0x290] sm:$0xff] %vm1375_vm1, %v9401_v34  ;;  %v9416_v34 = vld [vmem:[%s9687_s21 + $0x2d8] sm:$0xff]  }
  0xf3   : > { %v3835_v40 = vpop.permute.xlu1 %3834  ;;  %v3516_v16 = vsel %vm2552_vm0, %v3511_v31, %v3515_v28  ;;  %v11164_v28 = vld [vmem:[%s9687_s21 + $0x418] sm:$0xff]   ;;  %v3548_v38 = vsel %vm2552_vm0, %v3543_v14, %v11112_v7  ;;  %v11240_v14 = vld [vmem:[%s9687_s21 + $0x450] sm:$0xff]   ;;  %1460 = vst.msk [vmem:[#allocation2 + $0x2a0] sm:$0xff] %vm1375_vm1, %v9405_v55  ;;  %v3645_v0 = vshrl.u32 %v11216_v42, 16  ;;  %1467 = vst.msk [vmem:[#allocation2 + $0x2d8] sm:$0xff] %vm1375_vm1, %v9416_v34 }
  0xf4   : > { %4223 = vst.msk [vmem:[#allocation2 + $0x1a8] sm:$0xff] %vm4169_vm2, %v3835_v40  ;;  %v3833_v45 = vpop.permute.xlu0 %3832  ;;  %v3508_v40 = vsel %vm2552_vm0, %v3503_v32, %v11066_v15  ;;  %v3593_v15 = vshll.u32 %v11135_v11, 16  ;;  %v9419_v34 = vld [vmem:[%s9687_s21 + $0x18] sm:$0xff]  }
  0xf5   : > { %3950 = vrot.lane.b32.xlu1 %v3452_v43, %s9645_s25  ;;  %4222 = vst.msk [vmem:[#allocation2 + $0x1a0] sm:$0xff] %vm4169_vm2, %v3833_v45  ;;  %v3561_v43 = vshll.u32 %v11099_v24, 16  ;;  %v3532_v45 = vsel %vm2552_vm0, %v3527_v58, %v3531_v2 }
  0xf6   : > { %3948 = vrot.lane.b32.xlu0 %v3444_v4, %s9645_s25  ;;  %v9389_v4 = vld [vmem:[%s9687_s21 + $0x260] sm:$0xff]   ;;  %v11187_v13 = vrot.slane %v3593_v15, 1 }
  0xf7   : > { %v3839_v59 = vpop.permute.xlu1 %3838  ;;  %v3563_v56 = vrot.slane %v3561_v43, 1  ;;  %1452 = vst.msk [vmem:[#allocation2 + $0x260] sm:$0xff] %vm1375_vm1, %v9389_v4  ;;  %v3613_v43 = vshrl.u32 %v11174_v35, 16  ;;  %v3633_v4 = vshll.u32 %v11204_v25, 16 }
  0xf8   : > { %4225 = vst.msk [vmem:[#allocation2 + $0x1b8] sm:$0xff] %vm4169_vm2, %v3839_v59  ;;  %v3837_v47 = vpop.permute.xlu0 %3836  ;;  %v9392_v59 = vld [vmem:[%s9687_s21 + $0x278] sm:$0xff]  }
  0xf9   : > { %3954 = vrot.lane.b32.xlu1 %v3468_v37, %s9645_s25  ;;  %4224 = vst.msk [vmem:[#allocation2 + $0x1b0] sm:$0xff] %vm4169_vm2, %v3837_v47  ;;  %v3565_v37 = vshrl.u32 %v11099_v24, 16  ;;  %v3579_v47 = vrot.slane %v3577_v53, 1  ;;  %v3609_v24 = vshll.u32 %v11174_v35, 16  ;;  %v3635_v15 = vrot.slane %v3633_v4, 1 }
  0xfa   : > { %3952 = vrot.lane.b32.xlu0 %v3460_v44, %s9645_s25  ;;  %v3535_v44 = vor.u32 %v3533_v62, %v3531_v2  ;;  %1455 = vst.msk [vmem:[#allocation2 + $0x278] sm:$0xff] %vm1375_vm1, %v9392_v59  ;;  %v3605_v2 = vshrl.u32 %v11164_v28, 16  ;;  %v3575_v62 = vor.u32 %v3573_v63, %v3571_v29  ;;  %v11247_v63 = vld [vmem:[%s9687_s21 + $0x458] sm:$0xff]   ;;  %v3657_v35 = vshll.u32 %v11240_v14, 16 }
  0xfb   : > { %v3843_v27 = vpop.permute.xlu1 %3842 }
  0xfc   : > { %4227 = vst.msk [vmem:[#allocation2 + $0x1c8] sm:$0xff] %vm4169_vm2, %v3843_v27  ;;  %v3841_v60 = vpop.permute.xlu0 %3840  ;;  %v11180_v27 = vrot.slane %v3585_v30, 1  ;;  %v3540_v49 = vsel %vm2552_vm0, %v3535_v44, %v11105_v54  ;;  %v3597_v54 = vshrl.u32 %v11135_v11, 16  ;;  %v3580_v12 = vsel %vm2552_vm0, %v3575_v62, %v3579_v47  ;;  %v11250_v30 = vld [vmem:[%s9687_s21 + $0x460] sm:$0xff]   ;;  %v9408_v44 = vld [vmem:[%s9687_s21 + $0x2b8] sm:$0xff]   ;;  %v11283_v62 = vld [vmem:[%s9687_s21 + $0x470] sm:$0xff]  }
  0xfd   : > { %3958 = vrot.lane.b32.xlu1 %v3484_v51, %s9645_s25  ;;  %4226 = vst.msk [vmem:[#allocation2 + $0x1c0] sm:$0xff] %vm4169_vm2, %v3841_v60  ;;  %v3559_v51 = vor.u32 %v3557_v6, %v3555_v48  ;;  %v3601_v60 = vshll.u32 %v11164_v28, 16  ;;  %v3611_v6 = vrot.slane %v3609_v24, 1  ;;  %v3673_v23 = vshll.u32 %v11250_v30, 16 }
  0xfe   : > { %3956 = vrot.lane.b32.xlu0 %v3476_v9, %s9645_s25  ;;  %v3551_v9 = vor.u32 %v3549_v20, %v11112_v7  ;;  %v3617_v7 = vshll.u32 %v11177_v33, 16  ;;  %v3599_v10 = vor.u32 %v3597_v54, %v11187_v13  ;;  %1463 = vst.msk [vmem:[#allocation2 + $0x2b8] sm:$0xff] %vm1375_vm1, %v9408_v44  ;;  %v3661_v54 = vshrl.u32 %v11240_v14, 16 }
  0xff   : > { %v3847_v61 = vpop.permute.xlu1 %3846  ;;  %v3564_v18 = vsel %vm2552_vm0, %v3559_v51, %v3563_v56  ;;  %v3603_v32 = vrot.slane %v3601_v60, 1  ;;  %v3701_v14 = vshrl.u32 %v11294_v19, 16 }
 0x100   : > { %4229 = vst.msk [vmem:[#allocation2 + $0x1d8] sm:$0xff] %vm4169_vm2, %v3847_v61  ;;  %v3845_v8 = vpop.permute.xlu0 %3844  ;;  %v3556_v52 = vsel %vm2552_vm0, %v3551_v9, %v3555_v48  ;;  %v3567_v61 = vor.u32 %v3565_v37, %v3563_v56  ;;  %v11225_v20 = vrot.slane %v3617_v7, 1  ;;  %v9412_v9 = vld [vmem:[%s9687_s21 + $0x2c8] sm:$0xff]   ;;  %v3675_v7 = vrot.slane %v3673_v23, 1 }
 0x101   : > { %3962 = vrot.lane.b32.xlu1 %v3500_v46, %s9645_s25  ;;  %4228 = vst.msk [vmem:[#allocation2 + $0x1d0] sm:$0xff] %vm4169_vm2, %v3845_v8  ;;  %v11198_v46 = vld [vmem:[%s9687_s21 + $0x430] sm:$0xff]   ;;  %v3591_v8 = vor.u32 %v3589_v3, %v11180_v27  ;;  %v3607_v53 = vor.u32 %v3605_v2, %v3603_v32  ;;  %v3604_v33 = vsel %vm2552_vm0, %v3599_v10, %v3603_v32 }
 0x102   : > { %3960 = vrot.lane.b32.xlu0 %v3492_v26, %s9645_s25  ;;  %v3625_v58 = vshll.u32 %v11198_v46, 16  ;;  %v3572_v11 = vsel %vm2552_vm0, %v3567_v61, %v3571_v29  ;;  %v3623_v28 = vor.u32 %v3621_v57, %v11225_v20  ;;  %1465 = vst.msk [vmem:[#allocation2 + $0x2c8] sm:$0xff] %vm1375_vm1, %v9412_v9  ;;  %v3669_v61 = vshrl.u32 %v11247_v63, 16  ;;  %v11328_v10 = vld [vmem:[%s9687_s21 + $0x490] sm:$0x1f]  }
 0x103   : > { %v3851_v1 = vpop.permute.xlu1 %3850  ;;  %v3596_v48 = vsel %vm2552_vm0, %v3591_v8, %v11187_v13  ;;  %v3697_v57 = vshll.u32 %v11294_v19, 16  ;;  %v9418_v19 = vld [vmem:[%s9687_s21 + $0x10] sm:$0xff]  }
 0x104   : > { %4231 = vst.msk [vmem:[#allocation2 + $0x1e8] sm:$0xff] %vm4169_vm2, %v3851_v1  ;;  %v3849_v50 = vpop.permute.xlu0 %3848  ;;  %v3583_v1 = vor.u32 %v3581_v39, %v3579_v47  ;;  %v3627_v37 = vrot.slane %v3625_v58, 1  ;;  %v3612_v47 = vsel %vm2552_vm0, %v3607_v53, %v3611_v6  ;;  %v9410_v53 = vld [vmem:[%s9687_s21 + $0x488] sm:$0xff]  }
 0x105   : > { %3966 = vrot.lane.b32.xlu1 %v3516_v16, %s9645_s25  ;;  %4230 = vst.msk [vmem:[#allocation2 + $0x1e0] sm:$0xff] %vm4169_vm2, %v3849_v50  ;;  %v11233_v50 = vld [vmem:[%s9687_s21 + $0x448] sm:$0xff]  }
 0x106   : > { %3964 = vrot.lane.b32.xlu0 %v3508_v40, %s9645_s25  ;;  %v9404_v40 = vld [vmem:[%s9687_s21 + $0x2a8] sm:$0xff]   ;;  %v3588_v59 = vsel %vm2552_vm0, %v3583_v1, %v11180_v27  ;;  %v3649_v51 = vshll.u32 %v11233_v50, 16  ;;  %v3653_v39 = vshrl.u32 %v11233_v50, 16  ;;  %v3665_v27 = vshll.u32 %v11247_v63, 16 }
 0x107   : > { %v3855_v41 = vpop.permute.xlu1 %3854  ;;  %1461 = vst.msk [vmem:[#allocation2 + $0x2a8] sm:$0xff] %vm1375_vm1, %v9404_v40  ;;  %v3628_v60 = vsel %vm2552_vm0, %v3623_v28, %v3627_v37  ;;  %v3677_v1 = vshrl.u32 %v11250_v30, 16  ;;  %v3699_v63 = vrot.slane %v3697_v57, 1  ;;  %v9423_v57 = vld [vmem:[%s9687_s21 + $0x28] sm:$0xff]  }
 0x108   : > { %4233 = vst.msk [vmem:[#allocation2 + $0x1f8] sm:$0xff] %vm4169_vm2, %v3855_v41  ;;  %v3853_v5 = vpop.permute.xlu0 %3852  ;;  %v3629_v41 = vshrl.u32 %v11198_v46, 16 }
 0x109   : > { %3970 = vrot.lane.b32.xlu1 %v3532_v45, %s9645_s25  ;;  %4232 = vst.msk [vmem:[#allocation2 + $0x1f0] sm:$0xff] %vm4169_vm2, %v3853_v5  ;;  %v3641_v45 = vshll.u32 %v11216_v42, 16  ;;  %v9409_v5 = vld [vmem:[%s9687_s21 + $0x2b0] sm:$0xff]  }
 0x10a   : > { %3968 = vrot.lane.b32.xlu0 %v3524_v21, %s9645_s25  ;;  %v3637_v21 = vshrl.u32 %v11204_v25, 16  ;;  %1462 = vst.msk [vmem:[#allocation2 + $0x2b0] sm:$0xff] %vm1375_vm1, %v9409_v5  ;;  %v3631_v46 = vor.u32 %v3629_v41, %v3627_v37  ;;  %v9417_v42 = vld [vmem:[%s9687_s21 + $0x2d0] sm:$0xff]  }
 0x10b   : > { %v3859_v17 = vpop.permute.xlu1 %3858  ;;  %1466 = vst.msk [vmem:[#allocation2 + $0x2d0] sm:$0xff] %vm1375_vm1, %v9417_v42 }
 0x10c   : > { %4235 = vst.msk [vmem:[#allocation2 + $0x208] sm:$0xff] %vm4169_vm2, %v3859_v17  ;;  %v3857_v36 = vpop.permute.xlu0 %3856  ;;  %v3615_v17 = vor.u32 %v3613_v43, %v3611_v6  ;;  %v3639_v2 = vor.u32 %v3637_v21, %v3635_v15  ;;  %v3689_v6 = vshll.u32 %v11283_v62, 16  ;;  %v3636_v58 = vsel %vm2552_vm0, %v3631_v46, %v3635_v15  ;;  %v9424_v15 = vld [vmem:[%s9687_s21 + $0x2f8] sm:$0xff]  }
 0x10d   : > { %3974 = vrot.lane.b32.xlu1 %v3548_v38, %s9645_s25  ;;  %4234 = vst.msk [vmem:[#allocation2 + $0x200] sm:$0xff] %vm4169_vm2, %v3857_v36  ;;  %v3643_v38 = vrot.slane %v3641_v45, 1  ;;  %v9413_v36 = vld [vmem:[%s9687_s21 + $0x2c0] sm:$0xff]  }
 0x10e   : > { %3972 = vrot.lane.b32.xlu0 %v3540_v49, %s9645_s25  ;;  %v11274_v49 = vld [vmem:[%s9687_s21 + $0x468] sm:$0xff]   ;;  %1464 = vst.msk [vmem:[#allocation2 + $0x2c0] sm:$0xff] %vm1375_vm1, %v9413_v36  ;;  %v3620_v25 = vsel %vm2552_vm0, %v3615_v17, %v11225_v20  ;;  %v11310_v20 = vld [vmem:[%s9687_s21 + $0x480] sm:$0xff]   ;;  %1471 = vst.msk [vmem:[#allocation2 + $0x2f8] sm:$0xff] %vm1375_vm1, %v9424_v15 }
 0x10f   : > { %v3863_v31 = vpop.permute.xlu1 %3862  ;;  %v3681_v32 = vshll.u32 %v11274_v49, 16  ;;  %v3647_v43 = vor.u32 %v3645_v0, %v3643_v38  ;;  %v3705_v30 = vshll.u32 %v11310_v20, 16  ;;  %v9431_v15 = vld [vmem:[%s9687_s21 + $0x48] sm:$0xff]  }
 0x110   : > { %4237 = vst.msk [vmem:[#allocation2 + $0x218] sm:$0xff] %vm4169_vm2, %v3863_v31  ;;  %v3861_v26 = vpop.permute.xlu0 %3860  ;;  %v3659_v31 = vrot.slane %v3657_v35, 1  ;;  %v3717_v35 = vshrl.u32 %v9410_v53, 16 }
 0x111   : > { %3978 = vrot.lane.b32.xlu1 %v3564_v18, %s9645_s25  ;;  %4236 = vst.msk [vmem:[#allocation2 + $0x210] sm:$0xff] %vm4169_vm2, %v3861_v26  ;;  %v3651_v18 = vrot.slane %v3649_v51, 1  ;;  %v3683_v55 = vrot.slane %v3681_v32, 1  ;;  %v3707_v51 = vrot.slane %v3705_v30, 1 }
 0x112   : > { %3976 = vrot.lane.b32.xlu0 %v3556_v52, %s9645_s25  ;;  %v3667_v52 = vrot.slane %v3665_v27, 1  ;;  %v3663_v41 = vor.u32 %v3661_v54, %v3659_v31  ;;  %v3703_v27 = vor.u32 %v3701_v14, %v3699_v63  ;;  %v9432_v54 = vld [vmem:[%s9687_s21 + $0x318] sm:$0xff]  }
 0x113   : > { %v3867_v16 = vpop.permute.xlu1 %3866  ;;  %v3655_v8 = vor.u32 %v3653_v39, %v3651_v18  ;;  %v3652_v37 = vsel %vm2552_vm0, %v3647_v43, %v3651_v18  ;;  %1475 = vst.msk [vmem:[#allocation2 + $0x318] sm:$0xff] %vm1375_vm1, %v9432_v54  ;;  %v9457_v54 = vld [vmem:[%s9687_s21 + $0x370] sm:$0xff]  }
 0x114   : > { %4239 = vst.msk [vmem:[#allocation2 + $0x228] sm:$0xff] %vm4169_vm2, %v3867_v16  ;;  %v3865_v22 = vpop.permute.xlu0 %3864  ;;  %v3671_v50 = vor.u32 %v3669_v61, %v3667_v52  ;;  %v3668_v28 = vsel %vm2552_vm0, %v3663_v41, %v3667_v52  ;;  %v9433_v52 = vld [vmem:[%s9687_s21 + $0x310] sm:$0xff]   ;;  %v5357_v41 = vrot.slane %v9423_v57, 1 }
 0x115   : > { %3982 = vrot.lane.b32.xlu1 %v3580_v12, %s9645_s25  ;;  %4238 = vst.msk [vmem:[#allocation2 + $0x220] sm:$0xff] %vm4169_vm2, %v3865_v22  ;;  %v3644_v12 = vsel %vm2552_vm0, %v3639_v2, %v3643_v38  ;;  %v9420_v22 = vld [vmem:[%s9687_s21 + $0x2e8] sm:$0xff]   ;;  %v3660_v4 = vsel %vm2552_vm0, %v3655_v8, %v3659_v31  ;;  %v3679_v38 = vor.u32 %v3677_v1, %v3675_v7 }
 0x116   : > { %3980 = vrot.lane.b32.xlu0 %v3572_v11, %s9645_s25  ;;  %v3685_v11 = vshrl.u32 %v11274_v49, 16  ;;  %1469 = vst.msk [vmem:[#allocation2 + $0x2e8] sm:$0xff] %vm1375_vm1, %v9420_v22  ;;  %v3676_v21 = vsel %vm2552_vm0, %v3671_v50, %v3675_v7  ;;  %v9428_v49 = vld [vmem:[%s9687_s21 + $0x308] sm:$0xff]   ;;  %1474 = vst.msk [vmem:[#allocation2 + $0x310] sm:$0xff] %vm1375_vm1, %v9433_v52  ;;  %v9440_v22 = vld [vmem:[%s9687_s21 + $0x338] sm:$0xff]  }
 0x117   : > { %v3871_v56 = vpop.permute.xlu1 %3870  ;;  %v3684_v0 = vsel %vm2552_vm0, %v3679_v38, %v3683_v55  ;;  %v11352_v2 = vld [vmem:[%s9687_s21 + $0x8] sm:$0xff]   ;;  %1473 = vst.msk [vmem:[#allocation2 + $0x308] sm:$0xff] %vm1375_vm1, %v9428_v49  ;;  %1479 = vst.msk [vmem:[#allocation2 + $0x338] sm:$0xff] %vm1375_vm1, %v9440_v22  ;;  %v9442_v52 = vld [vmem:[%s9687_s21 + $0x70] sm:$0xff]  }
 0x118   : > { %4241 = vst.msk [vmem:[#allocation2 + $0x238] sm:$0xff] %vm4169_vm2, %v3871_v56  ;;  %v3869_v29 = vpop.permute.xlu0 %3868  ;;  %v9421_v56 = vld [vmem:[%s9687_s21 + $0x2e0] sm:$0xff]   ;;  %v3687_v44 = vor.u32 %v3685_v11, %v3683_v55  ;;  %v5349_v32 = vrot.slane %v11352_v2, 1  ;;  %v5353_v55 = vrot.slane %v9419_v34, 1  ;;  %v9452_v49 = vld [vmem:[%s9687_s21 + $0x368] sm:$0xff]   ;;  %v9450_v22 = vld [vmem:[%s9687_s21 + $0x90] sm:$0xff]  }
 0x119   : > { %3986 = vrot.lane.b32.xlu1 %v3596_v48, %s9645_s25  ;;  %4240 = vst.msk [vmem:[#allocation2 + $0x230] sm:$0xff] %vm4169_vm2, %v3869_v29  ;;  %v3691_v48 = vrot.slane %v3689_v6, 1  ;;  %v3713_v29 = vshll.u32 %v9410_v53, 16  ;;  %v9436_v6 = vld [vmem:[%s9687_s21 + $0x328] sm:$0xff]   ;;  %v9422_v11 = vld [vmem:[%s9687_s21 + $0x20] sm:$0xff]   ;;  %v9426_v53 = vld [vmem:[%s9687_s21 + $0x30] sm:$0xff]  }
 0x11a   : > { %3984 = vrot.lane.b32.xlu0 %v3588_v59, %s9645_s25  ;;  %1468 = vst.msk [vmem:[#allocation2 + $0x2e0] sm:$0xff] %vm1375_vm1, %v9421_v56  ;;  %1477 = vst.msk [vmem:[#allocation2 + $0x328] sm:$0xff] %vm1375_vm1, %v9436_v6  ;;  %v5355_v14 = vrot.slane %v9422_v11, 1  ;;  %v9427_v56 = vld [vmem:[%s9687_s21 + $0x38] sm:$0xff]   ;;  %v9460_v34 = vld [vmem:[%s9687_s21 + $0x388] sm:$0xff]  }
 0x11b   : > { %v3875_v3 = vpop.permute.xlu1 %3874  ;;  %v3692_v17 = vsel %vm2552_vm0, %v3687_v44, %v3691_v48  ;;  %v3715_v23 = vrot.slane %v3713_v29, 1  ;;  %v5359_v29 = vrot.slane %v9426_v53, 1  ;;  %1485 = vst.msk [vmem:[#allocation2 + $0x368] sm:$0xff] %vm1375_vm1, %v9452_v49  ;;  %1486 = vst.msk [vmem:[#allocation2 + $0x370] sm:$0xff] %vm1375_vm1, %v9457_v54  ;;  %v9462_v49 = vld [vmem:[%s9687_s21 + $0xc0] sm:$0xff]  }
 0x11c   : > { %4243 = vst.msk [vmem:[#allocation2 + $0x248] sm:$0xff] %vm4169_vm2, %v3875_v3  ;;  %v3873_v13 = vpop.permute.xlu0 %3872  ;;  %v3693_v3 = vshrl.u32 %v11283_v62, 16  ;;  %v9414_v62 = vld [vmem:[%s9687_s21] sm:$0xfe]   ;;  %v5395_v54 = vrot.slane %v9462_v49, 1 }
 0x11d   : > { %3990 = vrot.lane.b32.xlu1 %v3612_v47, %s9645_s25  ;;  %4242 = vst.msk [vmem:[#allocation2 + $0x240] sm:$0xff] %vm4169_vm2, %v3873_v13  ;;  %v9425_v47 = vld [vmem:[%s9687_s21 + $0x2f0] sm:$0xff]   ;;  %v9429_v13 = vld [vmem:[%s9687_s21 + $0x300] sm:$0xff]   ;;  %v3719_v46 = vor.u32 %v3717_v35, %v3715_v23  ;;  %v5348_v8 = vrot.slane %v9414_v62, 1 }
 0x11e   : > { %3988 = vrot.lane.b32.xlu0 %v3604_v33, %s9645_s25  ;;  %v3721_v33 = vshll.u32 %v11328_v10, 16  ;;  %1470 = vst.msk [vmem:[#allocation2 + $0x2f0] sm:$0xff] %vm1375_vm1, %v9425_v47  ;;  %v3695_v36 = vor.u32 %v3693_v3, %v3691_v48  ;;  %1472 = vst.msk [vmem:[#allocation2 + $0x300] sm:$0xff] %vm1375_vm1, %v9429_v13  ;;  %v9441_v48 = vld [vmem:[%s9687_s21 + $0x330] sm:$0xff]   ;;  %v5361_v47 = vrot.slane %v9427_v56, 1  ;;  %v5356_v3 = vsel %vm5347_vm3, %v5353_v55, %v5355_v14  ;;  %v9453_v13 = vld [vmem:[%s9687_s21 + $0x360] sm:$0xff]  }
 0x11f   : > { %v3879_v24 = vpop.permute.xlu1 %3878  ;;  %1478 = vst.msk [vmem:[#allocation2 + $0x330] sm:$0xff] %vm1375_vm1, %v9441_v48  ;;  %1484 = vst.msk [vmem:[#allocation2 + $0x360] sm:$0xff] %vm1375_vm1, %v9453_v13  ;;  %v9451_v48 = vld [vmem:[%s9687_s21 + $0x98] sm:$0xff]  }
 0x120   : > { %4245 = vst.msk [vmem:[#allocation2 + $0x258] sm:$0xff] %vm4169_vm2, %v3879_v24  ;;  %v3877_v26 = vpop.permute.xlu0 %3876  ;;  %v3708_v24 = vsel %vm2552_vm0, %v3703_v27, %v3707_v51  ;;  %v3723_v31 = vrot.slane %v3721_v33, 1  ;;  %v3700_v61 = vsel %vm2552_vm0, %v3695_v36, %v3699_v63  ;;  %v9444_v63 = vld [vmem:[%s9687_s21 + $0x348] sm:$0xff]   ;;  %v5362_v27 = vsel %vm5347_vm3, %v5359_v29, %v5361_v47  ;;  %v9438_v36 = vld [vmem:[%s9687_s21 + $0x60] sm:$0xff]  }
 0x121   : > { %3994 = vrot.lane.b32.xlu1 %v3628_v60, %s9645_s25  ;;  %4244 = vst.msk [vmem:[#allocation2 + $0x250] sm:$0xff] %vm4169_vm2, %v3877_v26  ;;  %v3709_v60 = vshrl.u32 %v11310_v20, 16  ;;  %v5351_v20 = vrot.slane %v9418_v19, 1  ;;  %v9443_v19 = vld [vmem:[%s9687_s21 + $0x78] sm:$0xff]  }
 0x122   : > { %3992 = vrot.lane.b32.xlu0 %v3620_v25, %s9645_s25  ;;  %1481 = vst.msk [vmem:[#allocation2 + $0x348] sm:$0xff] %vm1375_vm1, %v9444_v63  ;;  %1489 = vst.msk [vmem:[#allocation2 + $0x388] sm:$0xff] %vm1375_vm1, %v9460_v34  ;;  %v9454_v63 = vld [vmem:[%s9687_s21 + $0xa0] sm:$0xff]  }
 0x123   : > { %v3883_v16 = vpop.permute.xlu1 %3882  ;;  %v3711_v7 = vor.u32 %v3709_v60, %v3707_v51  ;;  %v9449_v51 = vld [vmem:[%s9687_s21 + $0x350] sm:$0xff]   ;;  %v9470_v34 = vld [vmem:[%s9687_s21 + $0xe0] sm:$0xff]  }
 0x124   : > { %4247 = vst.msk [vmem:[#allocation2 + $0x268] sm:$0xff] %vm4169_vm2, %v3883_v16  ;;  %v3881_v40 = vpop.permute.xlu0 %3880  ;;  %v3725_v16 = vshrl.u32 %v11328_v10, 16  ;;  %v5352_v10 = vsel %vm5347_vm3, %v5349_v32, %v5351_v20 }
 0x125   : > { %3998 = vrot.lane.b32.xlu1 %v3644_v12, %s9645_s25  ;;  %4246 = vst.msk [vmem:[#allocation2 + $0x260] sm:$0xff] %vm4169_vm2, %v3881_v40  ;;  %v3724_v12 = vsel %vm2552_vm0, %v3719_v46, %v3723_v31  ;;  %v3716_v43 = vsel %vm2552_vm0, %v3711_v7, %v3715_v23  ;;  %v5350_v40 = vsel %vm5347_vm3, %v5348_v8, %v5349_v32  ;;  %v5365_v23 = vrot.slane %v9431_v15, 1  ;;  %v9456_v46 = vld [vmem:[%s9687_s21 + $0x378] sm:$0xff]   ;;  %v9461_v8 = vld [vmem:[%s9687_s21 + $0x380] sm:$0xff]  }
 0x126   : > { %3996 = vrot.lane.b32.xlu0 %v3636_v58, %s9645_s25  ;;  %v9437_v58 = vld [vmem:[%s9687_s21 + $0x320] sm:$0xff]   ;;  %v3727_v50 = vor.u32 %v3725_v16, %v3723_v31  ;;  %1482 = vst.msk [vmem:[#allocation2 + $0x350] sm:$0xff] %vm1375_vm1, %v9449_v51  ;;  %1487 = vst.msk [vmem:[#allocation2 + $0x378] sm:$0xff] %vm1375_vm1, %v9456_v46  ;;  %v5371_v7 = vrot.slane %v9438_v36, 1  ;;  %v5387_v51 = vrot.slane %v9454_v63, 1  ;;  %v9466_v46 = vld [vmem:[%s9687_s21 + $0xd0] sm:$0xff]  }
 0x127   : > { %v3887_v45 = vpop.permute.xlu1 %3886  ;;  %1476 = vst.msk [vmem:[#allocation2 + $0x320] sm:$0xff] %vm1375_vm1, %v9437_v58  ;;  %v5375_v58 = vrot.slane %v9442_v52, 1  ;;  %1488 = vst.msk [vmem:[#allocation2 + $0x380] sm:$0xff] %vm1375_vm1, %v9461_v8  ;;  %v5399_v8 = vrot.slane %v9466_v46, 1 }
 0x128   : > { %4249 = vst.msk [vmem:[#allocation2 + $0x278] sm:$0xff] %vm4169_vm2, %v3887_v45  ;;  %v3885_v59 = vpop.permute.xlu0 %3884 }
 0x129   : > { %4002 = vrot.lane.b32.xlu1 %v3660_v4, %s9645_s25  ;;  %4248 = vst.msk [vmem:[#allocation2 + $0x270] sm:$0xff] %vm4169_vm2, %v3885_v59  ;;  %v9445_v59 = vld [vmem:[%s9687_s21 + $0x340] sm:$0xff]  }
 0x12a   : > { %4000 = vrot.lane.b32.xlu0 %v3652_v37, %s9645_s25  ;;  %v5354_v37 = vsel %vm5347_vm3, %v5351_v20, %v5353_v55  ;;  %1480 = vst.msk [vmem:[#allocation2 + $0x340] sm:$0xff] %vm1375_vm1, %v9445_v59  ;;  %v9464_v20 = vld [vmem:[%s9687_s21 + $0x398] sm:$0xff]   ;;  %v5383_v59 = vrot.slane %v9450_v22, 1 }
 0x12b   : > { %v3891_v5 = vpop.permute.xlu1 %3890  ;;  %1491 = vst.msk [vmem:[#allocation2 + $0x398] sm:$0xff] %vm1375_vm1, %v9464_v20  ;;  %v9474_v20 = vld [vmem:[%s9687_s21 + $0xf0] sm:$0xff]  }
 0x12c   : > { %4251 = vst.msk [vmem:[#allocation2 + $0x288] sm:$0xff] %vm4169_vm2, %v3891_v5  ;;  %v3889_v39 = vpop.permute.xlu0 %3888  ;;  %v5358_v5 = vsel %vm5347_vm3, %v5355_v14, %v5357_v41  ;;  %v9468_v14 = vld [vmem:[%s9687_s21 + $0x3a8] sm:$0xff]  }
 0x12d   : > { %4006 = vrot.lane.b32.xlu1 %v3676_v21, %s9645_s25  ;;  %4250 = vst.msk [vmem:[#allocation2 + $0x280] sm:$0xff] %vm4169_vm2, %v3889_v39  ;;  %v9430_v21 = vld [vmem:[%s9687_s21 + $0x40] sm:$0xff]   ;;  %v9434_v39 = vld [vmem:[%s9687_s21 + $0x50] sm:$0xff]  }
 0x12e   : > { %4004 = vrot.lane.b32.xlu0 %v3668_v28, %s9645_s25  ;;  %v9448_v28 = vld [vmem:[%s9687_s21 + $0x358] sm:$0xff]   ;;  %v5363_v33 = vrot.slane %v9430_v21, 1  ;;  %v5367_v2 = vrot.slane %v9434_v39, 1  ;;  %1493 = vst.msk [vmem:[#allocation2 + $0x3a8] sm:$0xff] %vm1375_vm1, %v9468_v14  ;;  %v9478_v14 = vld [vmem:[%s9687_s21 + $0x100] sm:$0xff]  }
 0x12f   : > { %v3895_v9 = vpop.permute.xlu1 %3894  ;;  %1483 = vst.msk [vmem:[#allocation2 + $0x358] sm:$0xff] %vm1375_vm1, %v9448_v28  ;;  %v9458_v28 = vld [vmem:[%s9687_s21 + $0xb0] sm:$0xff]  }
 0x130   : > { %4253 = vst.msk [vmem:[#allocation2 + $0x298] sm:$0xff] %vm4169_vm2, %v3895_v9  ;;  %v3893_v18 = vpop.permute.xlu0 %3892  ;;  %v5366_v62 = vsel %vm5347_vm3, %v5363_v33, %v5365_v23  ;;  %v5368_v6 = vsel %vm5347_vm3, %v5365_v23, %v5367_v2  ;;  %v5391_v13 = vrot.slane %v9458_v28, 1 }
 0x131   : > { %4010 = vrot.lane.b32.xlu1 %v3692_v17, %s9645_s25  ;;  %4252 = vst.msk [vmem:[#allocation2 + $0x290] sm:$0xff] %vm4169_vm2, %v3893_v18  ;;  %v9435_v17 = vld [vmem:[%s9687_s21 + $0x58] sm:$0xff]   ;;  %v9439_v18 = vld [vmem:[%s9687_s21 + $0x68] sm:$0xff]  }
 0x132   : > { %4008 = vrot.lane.b32.xlu0 %v3684_v0, %s9645_s25  ;;  %v5360_v0 = vsel %vm5347_vm3, %v5357_v41, %v5359_v29  ;;  %v5373_v32 = vrot.slane %v9439_v18, 1  ;;  %v9472_v29 = vld [vmem:[%s9687_s21 + $0x3b8] sm:$0xff]  }
 0x133   : > { %v3899_v25 = vpop.permute.xlu1 %3898  ;;  %1495 = vst.msk [vmem:[#allocation2 + $0x3b8] sm:$0xff] %vm1375_vm1, %v9472_v29  ;;  %v9482_v29 = vld [vmem:[%s9687_s21 + $0x110] sm:$0xff]  }
 0x134   : > { %4255 = vst.msk [vmem:[#allocation2 + $0x2a8] sm:$0xff] %vm4169_vm2, %v3899_v25  ;;  %v3897_v26 = vpop.permute.xlu0 %3896  ;;  %v5364_v25 = vsel %vm5347_vm3, %v5361_v47, %v5363_v33  ;;  %v5374_v11 = vsel %vm5347_vm3, %v5371_v7, %v5373_v32  ;;  %v5376_v41 = vsel %vm5347_vm3, %v5373_v32, %v5375_v58  ;;  %v9476_v33 = vld [vmem:[%s9687_s21 + $0x3c8] sm:$0xff]  }
 0x135   : > { %4014 = vrot.lane.b32.xlu1 %v3708_v24, %s9645_s25  ;;  %4254 = vst.msk [vmem:[#allocation2 + $0x2a0] sm:$0xff] %vm4169_vm2, %v3897_v26  ;;  %v5369_v24 = vrot.slane %v9435_v17, 1 }
 0x136   : > { %4012 = vrot.lane.b32.xlu0 %v3700_v61, %s9645_s25  ;;  %1497 = vst.msk [vmem:[#allocation2 + $0x3c8] sm:$0xff] %vm1375_vm1, %v9476_v33  ;;  %v9486_v33 = vld [vmem:[%s9687_s21 + $0x120] sm:$0xff]  }
 0x137   : > { %v3903_v42 = vpop.permute.xlu1 %3902  ;;  %v5370_v26 = vsel %vm5347_vm3, %v5367_v2, %v5369_v24  ;;  %v5372_v55 = vsel %vm5347_vm3, %v5369_v24, %v5371_v7  ;;  %v9480_v2 = vld [vmem:[%s9687_s21 + $0x3d8] sm:$0xff]   ;;  %v9484_v7 = vld [vmem:[%s9687_s21 + $0x3e8] sm:$0xff]  }
 0x138   : > { %4257 = vst.msk [vmem:[#allocation2 + $0x2b8] sm:$0xff] %vm4169_vm2, %v3903_v42  ;;  %v3901_v1 = vpop.permute.xlu0 %3900  ;;  %v9446_v42 = vld [vmem:[%s9687_s21 + $0x80] sm:$0xff]  }
 0x139   : > { %4018 = vrot.lane.b32.xlu1 %v3724_v12, %s9645_s25  ;;  %4256 = vst.msk [vmem:[#allocation2 + $0x2b0] sm:$0xff] %vm4169_vm2, %v3901_v1  ;;  %v5377_v1 = vrot.slane %v9443_v19, 1 }
 0x13a   : > { %4016 = vrot.lane.b32.xlu0 %v3716_v43, %s9645_s25  ;;  %v9447_v43 = vld [vmem:[%s9687_s21 + $0x88] sm:$0xff]   ;;  %1499 = vst.msk [vmem:[#allocation2 + $0x3d8] sm:$0xff] %vm1375_vm1, %v9480_v2  ;;  %1501 = vst.msk [vmem:[#allocation2 + $0x3e8] sm:$0xff] %vm1375_vm1, %v9484_v7  ;;  %v9490_v2 = vld [vmem:[%s9687_s21 + $0x130] sm:$0xff]  }
 0x13b   : > { %v3907_v4 = vpop.permute.xlu1 %3906  ;;  %v5378_v53 = vsel %vm5347_vm3, %v5375_v58, %v5377_v1  ;;  %v9488_v58 = vld [vmem:[%s9687_s21 + $0x3f8] sm:$0xff]   ;;  %v9494_v7 = vld [vmem:[%s9687_s21 + $0x140] sm:$0xff]  }
 0x13c   : > { %4259 = vst.msk [vmem:[#allocation2 + $0x2c8] sm:$0xff] %vm4169_vm2, %v3907_v4  ;;  %v3905_v45 = vpop.permute.xlu0 %3904 }
 0x13d   : > { %5641 = vrot.lane.b32.xlu1 %v5350_v40, %s9646_s26  ;;  %4258 = vst.msk [vmem:[#allocation2 + $0x2c0] sm:$0xff] %vm4169_vm2, %v3905_v45  ;;  %v9465_v40 = vld [vmem:[%s9687_s21 + $0x390] sm:$0xff]   ;;  %v5381_v45 = vrot.slane %v9447_v43, 1 }
 0x13e   : > { %4020 = vrot.lane.b32.xlu0 %v3727_v50, %s9645_s25  ;;  %v5379_v50 = vrot.slane %v9446_v42, 1  ;;  %1490 = vst.msk [vmem:[#allocation2 + $0x390] sm:$0xff] %vm1375_vm1, %v9465_v40  ;;  %1503 = vst.msk [vmem:[#allocation2 + $0x3f8] sm:$0xff] %vm1375_vm1, %v9488_v58  ;;  %v5403_v40 = vrot.slane %v9470_v34, 1  ;;  %v9498_v58 = vld [vmem:[%s9687_s21 + $0x150] sm:$0xff]  }
 0x13f   : > { %v3911_v30 = vpop.permute.xlu1 %3910  ;;  %v5384_v23 = vsel %vm5347_vm3, %v5381_v45, %v5383_v59 }
 0x140   : > { %4261 = vst.msk [vmem:[#allocation2 + $0x2d8] sm:$0xff] %vm4169_vm2, %v3911_v30  ;;  %v3909_v44 = vpop.permute.xlu0 %3908  ;;  %v5382_v21 = vsel %vm5347_vm3, %v5379_v50, %v5381_v45  ;;  %v5380_v47 = vsel %vm5347_vm3, %v5377_v1, %v5379_v50  ;;  %v9492_v50 = vld [vmem:[%s9687_s21 + $0x408] sm:$0xff]  }
 0x141   : > { %5645 = vrot.lane.b32.xlu1 %v5354_v37, %s9646_s26  ;;  %4260 = vst.msk [vmem:[#allocation2 + $0x2d0] sm:$0xff] %vm4169_vm2, %v3909_v44  ;;  %v9469_v37 = vld [vmem:[%s9687_s21 + $0x3a0] sm:$0xff]   ;;  %v5385_v44 = vrot.slane %v9451_v48, 1 }
 0x142   : > { %5643 = vrot.lane.b32.xlu0 %v5352_v10, %s9646_s26  ;;  %v9455_v10 = vld [vmem:[%s9687_s21 + $0xa8] sm:$0xff]   ;;  %1492 = vst.msk [vmem:[#allocation2 + $0x3a0] sm:$0xff] %vm1375_vm1, %v9469_v37  ;;  %1505 = vst.msk [vmem:[#allocation2 + $0x408] sm:$0xff] %vm1375_vm1, %v9492_v50  ;;  %v5407_v37 = vrot.slane %v9474_v20, 1  ;;  %v9502_v50 = vld [vmem:[%s9687_s21 + $0x160] sm:$0xff]  }
 0x143   : > { %v3915_v38 = vpop.permute.xlu1 %3914  ;;  %v5386_v39 = vsel %vm5347_vm3, %v5383_v59, %v5385_v44  ;;  %v5388_v24 = vsel %vm5347_vm3, %v5385_v44, %v5387_v51  ;;  %v9496_v59 = vld [vmem:[%s9687_s21 + $0x418] sm:$0xff]  }
 0x144   : > { %4263 = vst.msk [vmem:[#allocation2 + $0x2e8] sm:$0xff] %vm4169_vm2, %v3915_v38  ;;  %v3913_v35 = vpop.permute.xlu0 %3912 }
 0x145   : > { %5649 = vrot.lane.b32.xlu1 %v5358_v5, %s9646_s26  ;;  %4262 = vst.msk [vmem:[#allocation2 + $0x2e0] sm:$0xff] %vm4169_vm2, %v3913_v35  ;;  %v9473_v5 = vld [vmem:[%s9687_s21 + $0x3b0] sm:$0xff]   ;;  %v5389_v35 = vrot.slane %v9455_v10, 1 }
 0x146   : > { %5647 = vrot.lane.b32.xlu0 %v5356_v3, %s9646_s26  ;;  %v9459_v3 = vld [vmem:[%s9687_s21 + $0xb8] sm:$0xff]   ;;  %1494 = vst.msk [vmem:[#allocation2 + $0x3b0] sm:$0xff] %vm1375_vm1, %v9473_v5  ;;  %1507 = vst.msk [vmem:[#allocation2 + $0x418] sm:$0xff] %vm1375_vm1, %v9496_v59  ;;  %v5411_v5 = vrot.slane %v9478_v14, 1  ;;  %v9506_v59 = vld [vmem:[%s9687_s21 + $0x170] sm:$0xff]  }
 0x147   : > { %v3919_v9 = vpop.permute.xlu1 %3918  ;;  %v5390_v36 = vsel %vm5347_vm3, %v5387_v51, %v5389_v35  ;;  %v5392_v32 = vsel %vm5347_vm3, %v5389_v35, %v5391_v13  ;;  %v9500_v51 = vld [vmem:[%s9687_s21 + $0x428] sm:$0xff]  }
 0x148   : > { %4265 = vst.msk [vmem:[#allocation2 + $0x2f8] sm:$0xff] %vm4169_vm2, %v3919_v9  ;;  %v3917_v60 = vpop.permute.xlu0 %3916 }
 0x149   : > { %5653 = vrot.lane.b32.xlu1 %v5362_v27, %s9646_s26  ;;  %4264 = vst.msk [vmem:[#allocation2 + $0x2f0] sm:$0xff] %vm4169_vm2, %v3917_v60  ;;  %v9477_v27 = vld [vmem:[%s9687_s21 + $0x3c0] sm:$0xff]   ;;  %v5393_v60 = vrot.slane %v9459_v3, 1 }
 0x14a   : > { %5651 = vrot.lane.b32.xlu0 %v5360_v0, %s9646_s26  ;;  %v9463_v0 = vld [vmem:[%s9687_s21 + $0xc8] sm:$0xff]   ;;  %1496 = vst.msk [vmem:[#allocation2 + $0x3c0] sm:$0xff] %vm1375_vm1, %v9477_v27  ;;  %1509 = vst.msk [vmem:[#allocation2 + $0x428] sm:$0xff] %vm1375_vm1, %v9500_v51  ;;  %v5415_v27 = vrot.slane %v9482_v29, 1  ;;  %v9510_v51 = vld [vmem:[%s9687_s21 + $0x180] sm:$0xff]  }
 0x14b   : > { %v3923_v31 = vpop.permute.xlu1 %3922  ;;  %v5394_v52 = vsel %vm5347_vm3, %v5391_v13, %v5393_v60  ;;  %v5396_v1 = vsel %vm5347_vm3, %v5393_v60, %v5395_v54  ;;  %v9504_v13 = vld [vmem:[%s9687_s21 + $0x438] sm:$0xff]  }
 0x14c   : > { %4267 = vst.msk [vmem:[#allocation2 + $0x308] sm:$0xff] %vm4169_vm2, %v3923_v31  ;;  %v3921_v61 = vpop.permute.xlu0 %3920 }
 0x14d   : > { %5657 = vrot.lane.b32.xlu1 %v5366_v62, %s9646_s26  ;;  %4266 = vst.msk [vmem:[#allocation2 + $0x300] sm:$0xff] %vm4169_vm2, %v3921_v61  ;;  %v9481_v62 = vld [vmem:[%s9687_s21 + $0x3d0] sm:$0xff]   ;;  %v5397_v61 = vrot.slane %v9463_v0, 1 }
 0x14e   : > { %5655 = vrot.lane.b32.xlu0 %v5364_v25, %s9646_s26  ;;  %v9467_v25 = vld [vmem:[%s9687_s21 + $0xd8] sm:$0xff]   ;;  %1498 = vst.msk [vmem:[#allocation2 + $0x3d0] sm:$0xff] %vm1375_vm1, %v9481_v62  ;;  %1511 = vst.msk [vmem:[#allocation2 + $0x438] sm:$0xff] %vm1375_vm1, %v9504_v13  ;;  %v5419_v62 = vrot.slane %v9486_v33, 1  ;;  %v5443_v13 = vrot.slane %v9510_v51, 1 }
 0x14f   : > { %v3927_v12 = vpop.permute.xlu1 %3926  ;;  %v5398_v42 = vsel %vm5347_vm3, %v5395_v54, %v5397_v61  ;;  %v5400_v45 = vsel %vm5347_vm3, %v5397_v61, %v5399_v8  ;;  %v9508_v54 = vld [vmem:[%s9687_s21 + $0x448] sm:$0xff]  }
 0x150   : > { %4269 = vst.msk [vmem:[#allocation2 + $0x318] sm:$0xff] %vm4169_vm2, %v3927_v12  ;;  %v3925_v16 = vpop.permute.xlu0 %3924 }
 0x151   : > { %5661 = vrot.lane.b32.xlu1 %v5370_v26, %s9646_s26  ;;  %4268 = vst.msk [vmem:[#allocation2 + $0x310] sm:$0xff] %vm4169_vm2, %v3925_v16  ;;  %v9485_v26 = vld [vmem:[%s9687_s21 + $0x3e0] sm:$0xff]   ;;  %v5401_v16 = vrot.slane %v9467_v25, 1 }
 0x152   : > { %5659 = vrot.lane.b32.xlu0 %v5368_v6, %s9646_s26  ;;  %v9471_v6 = vld [vmem:[%s9687_s21 + $0xe8] sm:$0xff]   ;;  %1500 = vst.msk [vmem:[#allocation2 + $0x3e0] sm:$0xff] %vm1375_vm1, %v9485_v26  ;;  %1513 = vst.msk [vmem:[#allocation2 + $0x448] sm:$0xff] %vm1375_vm1, %v9508_v54  ;;  %v5423_v26 = vrot.slane %v9490_v2, 1  ;;  %v9518_v54 = vld [vmem:[%s9687_s21 + $0x1a0] sm:$0xff]  }
 0x153   : > { %v3931_v57 = vpop.permute.xlu1 %3930  ;;  %v5402_v22 = vsel %vm5347_vm3, %v5399_v8, %v5401_v16  ;;  %v5404_v44 = vsel %vm5347_vm3, %v5401_v16, %v5403_v40  ;;  %v9512_v8 = vld [vmem:[%s9687_s21 + $0x458] sm:$0xff]  }
 0x154   : > { %4271 = vst.msk [vmem:[#allocation2 + $0x328] sm:$0xff] %vm4169_vm2, %v3931_v57  ;;  %v3929_v4 = vpop.permute.xlu0 %3928 }
 0x155   : > { %5665 = vrot.lane.b32.xlu1 %v5374_v11, %s9646_s26  ;;  %4270 = vst.msk [vmem:[#allocation2 + $0x320] sm:$0xff] %vm4169_vm2, %v3929_v4  ;;  %v9489_v11 = vld [vmem:[%s9687_s21 + $0x3f0] sm:$0xff]   ;;  %v5405_v4 = vrot.slane %v9471_v6, 1 }
 0x156   : > { %5663 = vrot.lane.b32.xlu0 %v5372_v55, %s9646_s26  ;;  %v9475_v55 = vld [vmem:[%s9687_s21 + $0xf8] sm:$0xff]   ;;  %1502 = vst.msk [vmem:[#allocation2 + $0x3f0] sm:$0xff] %vm1375_vm1, %v9489_v11  ;;  %1515 = vst.msk [vmem:[#allocation2 + $0x458] sm:$0xff] %vm1375_vm1, %v9512_v8  ;;  %v5427_v11 = vrot.slane %v9494_v7, 1 }
 0x157   : > { %v3935_v56 = vpop.permute.xlu1 %3934  ;;  %v5406_v63 = vsel %vm5347_vm3, %v5403_v40, %v5405_v4  ;;  %v5408_v35 = vsel %vm5347_vm3, %v5405_v4, %v5407_v37  ;;  %v9516_v40 = vld [vmem:[%s9687_s21 + $0x468] sm:$0xff]  }
 0x158   : > { %4273 = vst.msk [vmem:[#allocation2 + $0x338] sm:$0xff] %vm4169_vm2, %v3935_v56  ;;  %v3933_v30 = vpop.permute.xlu0 %3932 }
 0x159   : > { %5669 = vrot.lane.b32.xlu1 %v5378_v53, %s9646_s26  ;;  %4272 = vst.msk [vmem:[#allocation2 + $0x330] sm:$0xff] %vm4169_vm2, %v3933_v30  ;;  %v9493_v53 = vld [vmem:[%s9687_s21 + $0x400] sm:$0xff]   ;;  %v5409_v30 = vrot.slane %v9475_v55, 1 }
 0x15a   : > { %5667 = vrot.lane.b32.xlu0 %v5376_v41, %s9646_s26  ;;  %v9479_v41 = vld [vmem:[%s9687_s21 + $0x108] sm:$0xff]   ;;  %1504 = vst.msk [vmem:[#allocation2 + $0x400] sm:$0xff] %vm1375_vm1, %v9493_v53  ;;  %1517 = vst.msk [vmem:[#allocation2 + $0x468] sm:$0xff] %vm1375_vm1, %v9516_v40  ;;  %v5431_v53 = vrot.slane %v9498_v58, 1 }
 0x15b   : > { %v3939_v15 = vpop.permute.xlu1 %3938  ;;  %v5410_v28 = vsel %vm5347_vm3, %v5407_v37, %v5409_v30  ;;  %v5412_v60 = vsel %vm5347_vm3, %v5409_v30, %v5411_v5  ;;  %v9520_v37 = vld [vmem:[%s9687_s21 + $0x478] sm:$0xff]  }
 0x15c   : > { %4275 = vst.msk [vmem:[#allocation2 + $0x348] sm:$0xff] %vm4169_vm2, %v3939_v15  ;;  %v3937_v38 = vpop.permute.xlu0 %3936 }
 0x15d   : > { %5673 = vrot.lane.b32.xlu1 %v5382_v21, %s9646_s26  ;;  %4274 = vst.msk [vmem:[#allocation2 + $0x340] sm:$0xff] %vm4169_vm2, %v3937_v38  ;;  %v9497_v21 = vld [vmem:[%s9687_s21 + $0x410] sm:$0xff]   ;;  %v5413_v38 = vrot.slane %v9479_v41, 1 }
 0x15e   : > { %5671 = vrot.lane.b32.xlu0 %v5380_v47, %s9646_s26  ;;  %v9483_v47 = vld [vmem:[%s9687_s21 + $0x118] sm:$0xff]   ;;  %1506 = vst.msk [vmem:[#allocation2 + $0x410] sm:$0xff] %vm1375_vm1, %v9497_v21  ;;  %1519 = vst.msk [vmem:[#allocation2 + $0x478] sm:$0xff] %vm1375_vm1, %v9520_v37  ;;  %v5435_v21 = vrot.slane %v9502_v50, 1  ;;  %v9529_v50 = vld [vmem:[%s9687_s21 + $0x1d0] sm:$0xff]  }
 0x15f   : > { %v3943_v17 = vpop.permute.xlu1 %3942  ;;  %v5414_v49 = vsel %vm5347_vm3, %v5411_v5, %v5413_v38  ;;  %v5416_v61 = vsel %vm5347_vm3, %v5413_v38, %v5415_v27  ;;  %v9524_v5 = vld [vmem:[%s9687_s21 + $0x488] sm:$0xff]  }
 0x160   : > { %4277 = vst.msk [vmem:[#allocation2 + $0x358] sm:$0xff] %vm4169_vm2, %v3943_v17  ;;  %v3941_v9 = vpop.permute.xlu0 %3940 }
 0x161   : > { %5677 = vrot.lane.b32.xlu1 %v5386_v39, %s9646_s26  ;;  %4276 = vst.msk [vmem:[#allocation2 + $0x350] sm:$0xff] %vm4169_vm2, %v3941_v9  ;;  %v9501_v39 = vld [vmem:[%s9687_s21 + $0x420] sm:$0xff]   ;;  %v5417_v9 = vrot.slane %v9483_v47, 1 }
 0x162   : > { %5675 = vrot.lane.b32.xlu0 %v5384_v23, %s9646_s26  ;;  %v9487_v23 = vld [vmem:[%s9687_s21 + $0x128] sm:$0xff]   ;;  %1508 = vst.msk [vmem:[#allocation2 + $0x420] sm:$0xff] %vm1375_vm1, %v9501_v39  ;;  %1521 = vst.msk [vmem:[#allocation2 + $0x488] sm:$0xff] %vm1375_vm1, %v9524_v5  ;;  %v5439_v39 = vrot.slane %v9506_v59, 1  ;;  %v9533_v5 = vld [vmem:[%s9687_s21 + $0x1f0] sm:$0xff]  }
 0x163   : > { %v3947_v18 = vpop.permute.xlu1 %3946  ;;  %v5418_v46 = vsel %vm5347_vm3, %v5415_v27, %v5417_v9  ;;  %v5420_v16 = vsel %vm5347_vm3, %v5417_v9, %v5419_v62  ;;  %v9528_v27 = vld [vmem:[%s9687_s21 + $0x490] sm:$0xff]  }
 0x164   : > { %4279 = vst.msk [vmem:[#allocation2 + $0x368] sm:$0xff] %vm4169_vm2, %v3947_v18  ;;  %v3945_v31 = vpop.permute.xlu0 %3944 }
 0x165   : > { %5681 = vrot.lane.b32.xlu1 %v5390_v36, %s9646_s26  ;;  %4278 = vst.msk [vmem:[#allocation2 + $0x360] sm:$0xff] %vm4169_vm2, %v3945_v31  ;;  %v9505_v36 = vld [vmem:[%s9687_s21 + $0x430] sm:$0xff]   ;;  %v5421_v31 = vrot.slane %v9487_v23, 1 }
 0x166   : > { %5679 = vrot.lane.b32.xlu0 %v5388_v24, %s9646_s26  ;;  %v9491_v24 = vld [vmem:[%s9687_s21 + $0x138] sm:$0xff]   ;;  %1510 = vst.msk [vmem:[#allocation2 + $0x430] sm:$0xff] %vm1375_vm1, %v9505_v36  ;;  %1522 = vst.msk [vmem:[#allocation2 + $0x490] sm:$0xff] %vm1375_vm1, %v9528_v27  ;;  %v9647_v36 = vmov 0  }
 0x167   : > { %v3951_v19 = vpop.permute.xlu1 %3950  ;;  %v5422_v34 = vsel %vm5347_vm3, %v5419_v62, %v5421_v31  ;;  %v5424_v4 = vsel %vm5347_vm3, %v5421_v31, %v5423_v26  ;;  %6232 = vst.msk [vmem:[#allocation2 + $0x490] sm:$0xf0] %vm6231_vm4, %v9647_v36  ;;  %v9537_v36 = vld [vmem:[%s9687_s21 + $0x210] sm:$0xff]  }
 0x168   : > { %4281 = vst.msk [vmem:[#allocation2 + $0x378] sm:$0xff] %vm4169_vm2, %v3951_v19  ;;  %v3949_v12 = vpop.permute.xlu0 %3948 }
 0x169   : > { %5685 = vrot.lane.b32.xlu1 %v5394_v52, %s9646_s26  ;;  %4280 = vst.msk [vmem:[#allocation2 + $0x370] sm:$0xff] %vm4169_vm2, %v3949_v12  ;;  %v9509_v52 = vld [vmem:[%s9687_s21 + $0x440] sm:$0xff]   ;;  %v5425_v12 = vrot.slane %v9491_v24, 1 }
 0x16a   : > { %5683 = vrot.lane.b32.xlu0 %v5392_v32, %s9646_s26  ;;  %v9495_v32 = vld [vmem:[%s9687_s21 + $0x148] sm:$0xff]   ;;  %1512 = vst.msk [vmem:[#allocation2 + $0x440] sm:$0xff] %vm1375_vm1, %v9509_v52 }
 0x16b   : > { %v3955_v43 = vpop.permute.xlu1 %3954  ;;  %v5426_v20 = vsel %vm5347_vm3, %v5423_v26, %v5425_v12  ;;  %v5428_v30 = vsel %vm5347_vm3, %v5425_v12, %v5427_v11 }
 0x16c   : > { %4283 = vst.msk [vmem:[#allocation2 + $0x388] sm:$0xff] %vm4169_vm2, %v3955_v43  ;;  %v3953_v57 = vpop.permute.xlu0 %3952 }
 0x16d   : > { %5689 = vrot.lane.b32.xlu1 %v5398_v42, %s9646_s26  ;;  %4282 = vst.msk [vmem:[#allocation2 + $0x380] sm:$0xff] %vm4169_vm2, %v3953_v57  ;;  %v9513_v42 = vld [vmem:[%s9687_s21 + $0x450] sm:$0xff]   ;;  %v5429_v57 = vrot.slane %v9495_v32, 1  ;;  %v5451_v32 = vrot.slane %v9518_v54, 1  ;;  %v9539_v54 = vld [vmem:[%s9687_s21 + $0x220] sm:$0xff]  }
 0x16e   : > { %5687 = vrot.lane.b32.xlu0 %v5396_v1, %s9646_s26  ;;  %v9499_v1 = vld [vmem:[%s9687_s21 + $0x158] sm:$0xff]   ;;  %1514 = vst.msk [vmem:[#allocation2 + $0x450] sm:$0xff] %vm1375_vm1, %v9513_v42 }
 0x16f   : > { %v3959_v48 = vpop.permute.xlu1 %3958  ;;  %v5430_v14 = vsel %vm5347_vm3, %v5427_v11, %v5429_v57  ;;  %v5432_v38 = vsel %vm5347_vm3, %v5429_v57, %v5431_v53  ;;  %v9526_v11 = vld [vmem:[%s9687_s21 + $0x1c0] sm:$0xff]   ;;  %v9527_v57 = vld [vmem:[%s9687_s21 + $0x1c8] sm:$0xff]  }
 0x170   : > { %4285 = vst.msk [vmem:[#allocation2 + $0x398] sm:$0xff] %vm4169_vm2, %v3959_v48  ;;  %v3957_v56 = vpop.permute.xlu0 %3956 }
 0x171   : > { %5693 = vrot.lane.b32.xlu1 %v5402_v22, %s9646_s26  ;;  %4284 = vst.msk [vmem:[#allocation2 + $0x390] sm:$0xff] %vm4169_vm2, %v3957_v56  ;;  %v9517_v22 = vld [vmem:[%s9687_s21 + $0x460] sm:$0xff]   ;;  %v5433_v56 = vrot.slane %v9499_v1, 1 }
 0x172   : > { %5691 = vrot.lane.b32.xlu0 %v5400_v45, %s9646_s26  ;;  %v9503_v45 = vld [vmem:[%s9687_s21 + $0x168] sm:$0xff]   ;;  %1516 = vst.msk [vmem:[#allocation2 + $0x460] sm:$0xff] %vm1375_vm1, %v9517_v22 }
 0x173   : > { %v3963_v10 = vpop.permute.xlu1 %3962  ;;  %v5434_v29 = vsel %vm5347_vm3, %v5431_v53, %v5433_v56  ;;  %v5461_v53 = vrot.slane %v9527_v57, 1  ;;  %v9544_v57 = vld [vmem:[%s9687_s21 + $0x248] sm:$0xff]  }
 0x174   : > { %4287 = vst.msk [vmem:[#allocation2 + $0x3a8] sm:$0xff] %vm4169_vm2, %v3963_v10  ;;  %v3961_v15 = vpop.permute.xlu0 %3960 }
 0x175   : > { %5697 = vrot.lane.b32.xlu1 %v5406_v63, %s9646_s26  ;;  %4286 = vst.msk [vmem:[#allocation2 + $0x3a0] sm:$0xff] %vm4169_vm2, %v3961_v15  ;;  %v9521_v63 = vld [vmem:[%s9687_s21 + $0x470] sm:$0xff]   ;;  %v5437_v15 = vrot.slane %v9503_v45, 1  ;;  %v9530_v45 = vld [vmem:[%s9687_s21 + $0x1d8] sm:$0xff]  }
 0x176   : > { %5695 = vrot.lane.b32.xlu0 %v5404_v44, %s9646_s26  ;;  %v9507_v44 = vld [vmem:[%s9687_s21 + $0x178] sm:$0xff]   ;;  %1518 = vst.msk [vmem:[#allocation2 + $0x470] sm:$0xff] %vm1375_vm1, %v9521_v63  ;;  %v9531_v63 = vld [vmem:[%s9687_s21 + $0x1e0] sm:$0xff]   ;;  %v5465_v59 = vrot.slane %v9530_v45, 1 }
 0x177   : > { %v3967_v3 = vpop.permute.xlu1 %3966  ;;  %v5438_v33 = vsel %vm5347_vm3, %v5435_v21, %v5437_v15  ;;  %v5440_v24 = vsel %vm5347_vm3, %v5437_v15, %v5439_v39  ;;  %v5467_v15 = vrot.slane %v9531_v63, 1  ;;  %v9546_v45 = vld [vmem:[%s9687_s21 + $0x258] sm:$0xff]   ;;  %v9547_v63 = vld [vmem:[%s9687_s21 + $0x260] sm:$0xff]  }
 0x178   : > { %4289 = vst.msk [vmem:[#allocation2 + $0x3b8] sm:$0xff] %vm4169_vm2, %v3967_v3  ;;  %v3965_v17 = vpop.permute.xlu0 %3964 }
 0x179   : > { %5701 = vrot.lane.b32.xlu1 %v5410_v28, %s9646_s26  ;;  %4288 = vst.msk [vmem:[#allocation2 + $0x3b0] sm:$0xff] %vm4169_vm2, %v3965_v17  ;;  %v9525_v28 = vld [vmem:[%s9687_s21 + $0x480] sm:$0xff]   ;;  %v5441_v17 = vrot.slane %v9507_v44, 1 }
 0x17a   : > { %5699 = vrot.lane.b32.xlu0 %v5408_v35, %s9646_s26  ;;  %v9511_v35 = vld [vmem:[%s9687_s21 + $0x188] sm:$0xff]   ;;  %1520 = vst.msk [vmem:[#allocation2 + $0x480] sm:$0xff] %vm1375_vm1, %v9525_v28 }
 0x17b   : > { %v3971_v0 = vpop.permute.xlu1 %3970  ;;  %v5445_v2 = vrot.slane %v9511_v35, 1  ;;  %v5471_v35 = vrot.slane %v9533_v5, 1  ;;  %v9549_v5 = vld [vmem:[%s9687_s21 + $0x270] sm:$0xff]  }
 0x17c   : > { %4291 = vst.msk [vmem:[#allocation2 + $0x3c8] sm:$0xff] %vm4169_vm2, %v3971_v0  ;;  %v3969_v18 = vpop.permute.xlu0 %3968  ;;  %v9514_v0 = vld [vmem:[%s9687_s21 + $0x190] sm:$0xff]  }
 0x17d   : > { %5705 = vrot.lane.b32.xlu1 %v5414_v49, %s9646_s26  ;;  %4290 = vst.msk [vmem:[#allocation2 + $0x3c0] sm:$0xff] %vm4169_vm2, %v3969_v18  ;;  %v5436_v49 = vsel %vm5347_vm3, %v5433_v56, %v5435_v21  ;;  %v9515_v18 = vld [vmem:[%s9687_s21 + $0x198] sm:$0xff]   ;;  %v5447_v31 = vrot.slane %v9514_v0, 1 }
 0x17e   : > { %5703 = vrot.lane.b32.xlu0 %v5412_v60, %s9646_s26  ;;  %v5442_v60 = vsel %vm5347_vm3, %v5439_v39, %v5441_v17  ;;  %v5449_v52 = vrot.slane %v9515_v18, 1  ;;  %v9538_v18 = vld [vmem:[%s9687_s21 + $0x218] sm:$0xff]  }
 0x17f   : > { %v3975_v25 = vpop.permute.xlu1 %3974 }
 0x180   : > { %4293 = vst.msk [vmem:[#allocation2 + $0x3d8] sm:$0xff] %vm4169_vm2, %v3975_v25  ;;  %v3973_v19 = vpop.permute.xlu0 %3972  ;;  %v5446_v25 = vsel %vm5347_vm3, %v5443_v13, %v5445_v2  ;;  %v5450_v12 = vsel %vm5347_vm3, %v5447_v31, %v5449_v52 }
 0x181   : > { %5709 = vrot.lane.b32.xlu1 %v5418_v46, %s9646_s26  ;;  %4292 = vst.msk [vmem:[#allocation2 + $0x3d0] sm:$0xff] %vm4169_vm2, %v3973_v19  ;;  %v5444_v19 = vsel %vm5347_vm3, %v5441_v17, %v5443_v13 }
 0x182   : > { %5707 = vrot.lane.b32.xlu0 %v5416_v61, %s9646_s26  ;;  %v9519_v61 = vld [vmem:[%s9687_s21 + $0x1a8] sm:$0xff]  }
 0x183   : > { %v3979_v6 = vpop.permute.xlu1 %3978  ;;  %v5453_v8 = vrot.slane %v9519_v61, 1  ;;  %v9540_v61 = vld [vmem:[%s9687_s21 + $0x228] sm:$0xff]  }
 0x184   : > { %4295 = vst.msk [vmem:[#allocation2 + $0x3e8] sm:$0xff] %vm4169_vm2, %v3979_v6  ;;  %v3977_v43 = vpop.permute.xlu0 %3976  ;;  %v9523_v6 = vld [vmem:[%s9687_s21 + $0x1b8] sm:$0xff]  }
 0x185   : > { %5713 = vrot.lane.b32.xlu1 %v5422_v34, %s9646_s26  ;;  %4294 = vst.msk [vmem:[#allocation2 + $0x3e0] sm:$0xff] %vm4169_vm2, %v3977_v43  ;;  %v9522_v34 = vld [vmem:[%s9687_s21 + $0x1b0] sm:$0xff]   ;;  %v5454_v1 = vsel %vm5347_vm3, %v5451_v32, %v5453_v8 }
 0x186   : > { %5711 = vrot.lane.b32.xlu0 %v5420_v16, %s9646_s26  ;;  %v5448_v16 = vsel %vm5347_vm3, %v5445_v2, %v5447_v31  ;;  %v5455_v43 = vrot.slane %v9522_v34, 1  ;;  %v5479_v31 = vrot.slane %v9537_v36, 1  ;;  %v9541_v34 = vld [vmem:[%s9687_s21 + $0x230] sm:$0xff]  }
 0x187   : > { %v3983_v55 = vpop.permute.xlu1 %3982  ;;  %v9553_v36 = vld [vmem:[%s9687_s21 + $0x290] sm:$0xff]  }
 0x188   : > { %4297 = vst.msk [vmem:[#allocation2 + $0x3f8] sm:$0xff] %vm4169_vm2, %v3983_v55  ;;  %v3981_v48 = vpop.permute.xlu0 %3980  ;;  %v5452_v55 = vsel %vm5347_vm3, %v5449_v52, %v5451_v32  ;;  %v5456_v56 = vsel %vm5347_vm3, %v5453_v8, %v5455_v43  ;;  %v5481_v52 = vrot.slane %v9538_v18, 1  ;;  %v5483_v32 = vrot.slane %v9539_v54, 1  ;;  %v9554_v18 = vld [vmem:[%s9687_s21 + $0x298] sm:$0xff]   ;;  %v9555_v54 = vld [vmem:[%s9687_s21 + $0x2a0] sm:$0xff]  }
 0x189   : > { %5717 = vrot.lane.b32.xlu1 %v5426_v20, %s9646_s26  ;;  %4296 = vst.msk [vmem:[#allocation2 + $0x3f0] sm:$0xff] %vm4169_vm2, %v3981_v48  ;;  %v5457_v20 = vrot.slane %v9523_v6, 1  ;;  %v5485_v8 = vrot.slane %v9540_v61, 1  ;;  %v9542_v6 = vld [vmem:[%s9687_s21 + $0x238] sm:$0xff]   ;;  %v9556_v61 = vld [vmem:[%s9687_s21 + $0x2a8] sm:$0xff]  }
 0x18a   : > { %5715 = vrot.lane.b32.xlu0 %v5424_v4, %s9646_s26  ;;  %v5459_v4 = vrot.slane %v9526_v11, 1  ;;  %v9543_v11 = vld [vmem:[%s9687_s21 + $0x240] sm:$0xff]  }
 0x18b   : > { %v3987_v41 = vpop.permute.xlu1 %3986  ;;  %v5458_v48 = vsel %vm5347_vm3, %v5455_v43, %v5457_v20  ;;  %v5487_v43 = vrot.slane %v9541_v34, 1  ;;  %v9557_v34 = vld [vmem:[%s9687_s21 + $0x2b0] sm:$0xff]  }
 0x18c   : > { %4299 = vst.msk [vmem:[#allocation2 + $0x408] sm:$0xff] %vm4169_vm2, %v3987_v41  ;;  %v3985_v10 = vpop.permute.xlu0 %3984  ;;  %v5463_v41 = vrot.slane %v9529_v50, 1  ;;  %v5460_v44 = vsel %vm5347_vm3, %v5457_v20, %v5459_v4  ;;  %v5489_v20 = vrot.slane %v9542_v6, 1  ;;  %v9545_v50 = vld [vmem:[%s9687_s21 + $0x250] sm:$0xff]   ;;  %v9558_v6 = vld [vmem:[%s9687_s21 + $0x2b8] sm:$0xff]  }
 0x18d   : > { %5721 = vrot.lane.b32.xlu1 %v5430_v14, %s9646_s26  ;;  %4298 = vst.msk [vmem:[#allocation2 + $0x400] sm:$0xff] %vm4169_vm2, %v3985_v10  ;;  %v9532_v10 = vld [vmem:[%s9687_s21 + $0x1e8] sm:$0xff]  }
 0x18e   : > { %5719 = vrot.lane.b32.xlu0 %v5428_v30, %s9646_s26  ;;  %v5462_v30 = vsel %vm5347_vm3, %v5459_v4, %v5461_v53  ;;  %v5469_v28 = vrot.slane %v9532_v10, 1  ;;  %v5491_v4 = vrot.slane %v9543_v11, 1  ;;  %v9548_v10 = vld [vmem:[%s9687_s21 + $0x268] sm:$0xff]   ;;  %v9559_v11 = vld [vmem:[%s9687_s21 + $0x2c0] sm:$0xff]  }
 0x18f   : > { %v3991_v47 = vpop.permute.xlu1 %3990 }
 0x190   : > { %4301 = vst.msk [vmem:[#allocation2 + $0x418] sm:$0xff] %vm4169_vm2, %v3991_v47  ;;  %v3989_v3 = vpop.permute.xlu0 %3988  ;;  %v5466_v47 = vsel %vm5347_vm3, %v5463_v41, %v5465_v59  ;;  %v5470_v17 = vsel %vm5347_vm3, %v5467_v15, %v5469_v28 }
 0x191   : > { %5725 = vrot.lane.b32.xlu1 %v5434_v29, %s9646_s26  ;;  %4300 = vst.msk [vmem:[#allocation2 + $0x410] sm:$0xff] %vm4169_vm2, %v3989_v3  ;;  %v5464_v3 = vsel %vm5347_vm3, %v5461_v53, %v5463_v41  ;;  %v5493_v53 = vrot.slane %v9544_v57, 1  ;;  %v5495_v41 = vrot.slane %v9545_v50, 1  ;;  %v9560_v57 = vld [vmem:[%s9687_s21 + $0x2c8] sm:$0xff]   ;;  %v9561_v50 = vld [vmem:[%s9687_s21 + $0x2d0] sm:$0xff]  }
 0x192   : > { %5723 = vrot.lane.b32.xlu0 %v5432_v38, %s9646_s26  ;;  %v9534_v38 = vld [vmem:[%s9687_s21 + $0x1f8] sm:$0xff]  }
 0x193   : > { %v3995_v23 = vpop.permute.xlu1 %3994  ;;  %v5473_v27 = vrot.slane %v9534_v38, 1  ;;  %v9550_v38 = vld [vmem:[%s9687_s21 + $0x278] sm:$0xff]  }
 0x194   : > { %4303 = vst.msk [vmem:[#allocation2 + $0x428] sm:$0xff] %vm4169_vm2, %v3995_v23  ;;  %v3993_v9 = vpop.permute.xlu0 %3992  ;;  %v9536_v23 = vld [vmem:[%s9687_s21 + $0x208] sm:$0xff]  }
 0x195   : > { %5729 = vrot.lane.b32.xlu1 %v5438_v33, %s9646_s26  ;;  %4302 = vst.msk [vmem:[#allocation2 + $0x420] sm:$0xff] %vm4169_vm2, %v3993_v9  ;;  %v9535_v33 = vld [vmem:[%s9687_s21 + $0x200] sm:$0xff]   ;;  %v5468_v9 = vsel %vm5347_vm3, %v5465_v59, %v5467_v15  ;;  %v5477_v2 = vrot.slane %v9536_v23, 1  ;;  %v5497_v59 = vrot.slane %v9546_v45, 1  ;;  %v5499_v15 = vrot.slane %v9547_v63, 1  ;;  %v9552_v23 = vld [vmem:[%s9687_s21 + $0x288] sm:$0xff]  }
 0x196   : > { %5727 = vrot.lane.b32.xlu0 %v5436_v49, %s9646_s26  ;;  %v5475_v0 = vrot.slane %v9535_v33, 1  ;;  %v9551_v33 = vld [vmem:[%s9687_s21 + $0x280] sm:$0xff]   ;;  %v9562_v45 = vld [vmem:[%s9687_s21 + $0x2d8] sm:$0xff]  }
 0x197   : > { %v3999_v62 = vpop.permute.xlu1 %3998  ;;  %v9563_v63 = vld [vmem:[%s9687_s21 + $0x2e0] sm:$0xff]  }
 0x198   : > { %4305 = vst.msk [vmem:[#allocation2 + $0x438] sm:$0xff] %vm4169_vm2, %v3999_v62  ;;  %v3997_v46 = vpop.permute.xlu0 %3996 }
 0x199   : > { %5733 = vrot.lane.b32.xlu1 %v5442_v60, %s9646_s26  ;;  %4304 = vst.msk [vmem:[#allocation2 + $0x430] sm:$0xff] %vm4169_vm2, %v3997_v46  ;;  %v5474_v60 = vsel %vm5347_vm3, %v5471_v35, %v5473_v27 }
 0x19a   : > { %5731 = vrot.lane.b32.xlu0 %v5440_v24, %s9646_s26  ;;  %v5472_v24 = vsel %vm5347_vm3, %v5469_v28, %v5471_v35  ;;  %v5501_v28 = vrot.slane %v9548_v10, 1  ;;  %v5503_v35 = vrot.slane %v9549_v5, 1  ;;  %v9564_v10 = vld [vmem:[%s9687_s21 + $0x2e8] sm:$0xff]   ;;  %v5531_v5 = vrot.slane %v9563_v63, 1 }
 0x19b   : > { %v4003_v7 = vpop.permute.xlu1 %4002 }
 0x19c   : > { %4307 = vst.msk [vmem:[#allocation2 + $0x448] sm:$0xff] %vm4169_vm2, %v4003_v7  ;;  %v4001_v26 = vpop.permute.xlu0 %4000 }
 0x19d   : > { %5737 = vrot.lane.b32.xlu1 %v5446_v25, %s9646_s26  ;;  %4306 = vst.msk [vmem:[#allocation2 + $0x440] sm:$0xff] %vm4169_vm2, %v4001_v26  ;;  %v5478_v25 = vsel %vm5347_vm3, %v5475_v0, %v5477_v2 }
 0x19e   : > { %5735 = vrot.lane.b32.xlu0 %v5444_v19, %s9646_s26  ;;  %v5476_v19 = vsel %vm5347_vm3, %v5473_v27, %v5475_v0  ;;  %v5505_v27 = vrot.slane %v9550_v38, 1  ;;  %v5507_v0 = vrot.slane %v9551_v33, 1  ;;  %v9566_v38 = vld [vmem:[%s9687_s21 + $0x2f8] sm:$0xff]  }
 0x19f   : > { %v4007_v42 = vpop.permute.xlu1 %4006 }
 0x1a0   : > { %4309 = vst.msk [vmem:[#allocation2 + $0x458] sm:$0xff] %vm4169_vm2, %v4007_v42  ;;  %v4005_v58 = vpop.permute.xlu0 %4004 }
 0x1a1   : > { %5741 = vrot.lane.b32.xlu1 %v5450_v12, %s9646_s26  ;;  %4308 = vst.msk [vmem:[#allocation2 + $0x450] sm:$0xff] %vm4169_vm2, %v4005_v58  ;;  %v5482_v12 = vsel %vm5347_vm3, %v5479_v31, %v5481_v52 }
 0x1a2   : > { %5739 = vrot.lane.b32.xlu0 %v5448_v16, %s9646_s26  ;;  %v5480_v16 = vsel %vm5347_vm3, %v5477_v2, %v5479_v31  ;;  %v5509_v2 = vrot.slane %v9552_v23, 1  ;;  %v5511_v31 = vrot.slane %v9553_v36, 1  ;;  %v9568_v23 = vld [vmem:[%s9687_s21 + $0x308] sm:$0xff]  }
 0x1a3   : > { %v4011_v40 = vpop.permute.xlu1 %4010 }
 0x1a4   : > { %4311 = vst.msk [vmem:[#allocation2 + $0x468] sm:$0xff] %vm4169_vm2, %v4011_v40  ;;  %v4009_v22 = vpop.permute.xlu0 %4008 }
 0x1a5   : > { %5745 = vrot.lane.b32.xlu1 %v5454_v1, %s9646_s26  ;;  %4310 = vst.msk [vmem:[#allocation2 + $0x460] sm:$0xff] %vm4169_vm2, %v4009_v22  ;;  %v5486_v1 = vsel %vm5347_vm3, %v5483_v32, %v5485_v8 }
 0x1a6   : > { %5743 = vrot.lane.b32.xlu0 %v5452_v55, %s9646_s26  ;;  %v5484_v55 = vsel %vm5347_vm3, %v5481_v52, %v5483_v32  ;;  %v5513_v52 = vrot.slane %v9554_v18, 1  ;;  %v5515_v32 = vrot.slane %v9555_v54, 1  ;;  %v9570_v18 = vld [vmem:[%s9687_s21 + $0x318] sm:$0xff]  }
 0x1a7   : > { %v4015_v14 = vpop.permute.xlu1 %4014 }
 0x1a8   : > { %4313 = vst.msk [vmem:[#allocation2 + $0x478] sm:$0xff] %vm4169_vm2, %v4015_v14  ;;  %v4013_v37 = vpop.permute.xlu0 %4012 }
 0x1a9   : > { %5749 = vrot.lane.b32.xlu1 %v5458_v48, %s9646_s26  ;;  %4312 = vst.msk [vmem:[#allocation2 + $0x470] sm:$0xff] %vm4169_vm2, %v4013_v37  ;;  %v5490_v48 = vsel %vm5347_vm3, %v5487_v43, %v5489_v20 }
 0x1aa   : > { %5747 = vrot.lane.b32.xlu0 %v5456_v56, %s9646_s26  ;;  %v5488_v56 = vsel %vm5347_vm3, %v5485_v8, %v5487_v43  ;;  %v5517_v8 = vrot.slane %v9556_v61, 1  ;;  %v5519_v43 = vrot.slane %v9557_v34, 1  ;;  %v9572_v61 = vld [vmem:[%s9687_s21 + $0x328] sm:$0xff]  }
 0x1ab   : > { %v4019_v21 = vpop.permute.xlu1 %4018 }
 0x1ac   : > { %4315 = vst.msk [vmem:[#allocation2 + $0x488] sm:$0xff] %vm4169_vm2, %v4019_v21  ;;  %v4017_v29 = vpop.permute.xlu0 %4016 }
 0x1ad   : > { %5753 = vrot.lane.b32.xlu1 %v5462_v30, %s9646_s26  ;;  %4314 = vst.msk [vmem:[#allocation2 + $0x480] sm:$0xff] %vm4169_vm2, %v4017_v29  ;;  %v5494_v30 = vsel %vm5347_vm3, %v5491_v4, %v5493_v53 }
 0x1ae   : > { %5751 = vrot.lane.b32.xlu0 %v5460_v44, %s9646_s26  ;;  %v5492_v44 = vsel %vm5347_vm3, %v5489_v20, %v5491_v4  ;;  %v5521_v20 = vrot.slane %v9558_v6, 1  ;;  %v5523_v4 = vrot.slane %v9559_v11, 1  ;;  %v9574_v6 = vld [vmem:[%s9687_s21 + $0x338] sm:$0xff]  }
 0x1af   : > { %v5642_v51 = vpop.permute.xlu1 %5641 }
 0x1b0   : > { %6083 = vst.msk [vmem:[#allocation2] sm:$0xff] %vm6082_vm5, %v5642_v51  ;;  %v4021_v39 = vpop.permute.xlu0 %4020 }
 0x1b1   : > { %5757 = vrot.lane.b32.xlu1 %v5466_v47, %s9646_s26  ;;  %4317 = vst.msk [vmem:[#allocation2 + $0x490] sm:$0xf] %vm4316_vm6, %v4021_v39  ;;  %v5498_v47 = vsel %vm5347_vm3, %v5495_v41, %v5497_v59 }
 0x1b2   : > { %5755 = vrot.lane.b32.xlu0 %v5464_v3, %s9646_s26  ;;  %v5496_v3 = vsel %vm5347_vm3, %v5493_v53, %v5495_v41  ;;  %v5525_v53 = vrot.slane %v9560_v57, 1  ;;  %v5527_v41 = vrot.slane %v9561_v50, 1  ;;  %v9576_v57 = vld [vmem:[%s9687_s21 + $0x348] sm:$0xff]  }
 0x1b3   : > { %v5646_v49 = vpop.permute.xlu1 %5645 }
 0x1b4   : > { %6085 = vst.msk [vmem:[#allocation2 + $0x10] sm:$0xff] %vm6082_vm5, %v5646_v49  ;;  %v5644_v13 = vpop.permute.xlu0 %5643 }
 0x1b5   : > { %5761 = vrot.lane.b32.xlu1 %v5470_v17, %s9646_s26  ;;  %6084 = vst.msk [vmem:[#allocation2 + $0x8] sm:$0xff] %vm6082_vm5, %v5644_v13  ;;  %v5502_v17 = vsel %vm5347_vm3, %v5499_v15, %v5501_v28 }
 0x1b6   : > { %5759 = vrot.lane.b32.xlu0 %v5468_v9, %s9646_s26  ;;  %v5500_v9 = vsel %vm5347_vm3, %v5497_v59, %v5499_v15  ;;  %v5529_v59 = vrot.slane %v9562_v45, 1  ;;  %v9578_v45 = vld [vmem:[%s9687_s21 + $0x358] sm:$0xff]  }
 0x1b7   : > { %v5650_v62 = vpop.permute.xlu1 %5649 }
 0x1b8   : > { %6087 = vst.msk [vmem:[#allocation2 + $0x20] sm:$0xff] %vm6082_vm5, %v5650_v62  ;;  %v5648_v46 = vpop.permute.xlu0 %5647  ;;  %v5530_v15 = vsel %vm5347_vm3, %v5527_v41, %v5529_v59 }
 0x1b9   : > { %5765 = vrot.lane.b32.xlu1 %v5474_v60, %s9646_s26  ;;  %6086 = vst.msk [vmem:[#allocation2 + $0x18] sm:$0xff] %vm6082_vm5, %v5648_v46  ;;  %v5506_v60 = vsel %vm5347_vm3, %v5503_v35, %v5505_v27 }
 0x1ba   : > { %5763 = vrot.lane.b32.xlu0 %v5472_v24, %s9646_s26  ;;  %v5504_v24 = vsel %vm5347_vm3, %v5501_v28, %v5503_v35  ;;  %v9565_v28 = vld [vmem:[%s9687_s21 + $0x2f0] sm:$0xff]  }
 0x1bb   : > { %v5654_v7 = vpop.permute.xlu1 %5653  ;;  %v5535_v33 = vrot.slane %v9565_v28, 1  ;;  %v9581_v28 = vld [vmem:[%s9687_s21 + $0x370] sm:$0xff]  }
 0x1bc   : > { %6089 = vst.msk [vmem:[#allocation2 + $0x30] sm:$0xff] %vm6082_vm5, %v5654_v7  ;;  %v5652_v26 = vpop.permute.xlu0 %5651 }
 0x1bd   : > { %5769 = vrot.lane.b32.xlu1 %v5478_v25, %s9646_s26  ;;  %6088 = vst.msk [vmem:[#allocation2 + $0x28] sm:$0xff] %vm6082_vm5, %v5652_v26  ;;  %v5510_v25 = vsel %vm5347_vm3, %v5507_v0, %v5509_v2 }
 0x1be   : > { %5767 = vrot.lane.b32.xlu0 %v5476_v19, %s9646_s26  ;;  %v5508_v19 = vsel %vm5347_vm3, %v5505_v27, %v5507_v0  ;;  %v9567_v27 = vld [vmem:[%s9687_s21 + $0x300] sm:$0xff]  }
 0x1bf   : > { %v5658_v42 = vpop.permute.xlu1 %5657  ;;  %v5539_v36 = vrot.slane %v9567_v27, 1  ;;  %v9583_v27 = vld [vmem:[%s9687_s21 + $0x380] sm:$0xff]  }
 0x1c0   : > { %6091 = vst.msk [vmem:[#allocation2 + $0x40] sm:$0xff] %vm6082_vm5, %v5658_v42  ;;  %v5656_v58 = vpop.permute.xlu0 %5655 }
 0x1c1   : > { %5773 = vrot.lane.b32.xlu1 %v5482_v12, %s9646_s26  ;;  %6090 = vst.msk [vmem:[#allocation2 + $0x38] sm:$0xff] %vm6082_vm5, %v5656_v58  ;;  %v5514_v12 = vsel %vm5347_vm3, %v5511_v31, %v5513_v52 }
 0x1c2   : > { %5771 = vrot.lane.b32.xlu0 %v5480_v16, %s9646_s26  ;;  %v5512_v16 = vsel %vm5347_vm3, %v5509_v2, %v5511_v31  ;;  %v9569_v2 = vld [vmem:[%s9687_s21 + $0x310] sm:$0xff]  }
 0x1c3   : > { %v5662_v40 = vpop.permute.xlu1 %5661  ;;  %v5543_v54 = vrot.slane %v9569_v2, 1  ;;  %v9585_v2 = vld [vmem:[%s9687_s21 + $0x390] sm:$0xff]  }
 0x1c4   : > { %6093 = vst.msk [vmem:[#allocation2 + $0x50] sm:$0xff] %vm6082_vm5, %v5662_v40  ;;  %v5660_v22 = vpop.permute.xlu0 %5659 }
 0x1c5   : > { %5777 = vrot.lane.b32.xlu1 %v5486_v1, %s9646_s26  ;;  %6092 = vst.msk [vmem:[#allocation2 + $0x48] sm:$0xff] %vm6082_vm5, %v5660_v22  ;;  %v5518_v1 = vsel %vm5347_vm3, %v5515_v32, %v5517_v8 }
 0x1c6   : > { %5775 = vrot.lane.b32.xlu0 %v5484_v55, %s9646_s26  ;;  %v5516_v55 = vsel %vm5347_vm3, %v5513_v52, %v5515_v32  ;;  %v9571_v52 = vld [vmem:[%s9687_s21 + $0x320] sm:$0xff]  }
 0x1c7   : > { %v5666_v14 = vpop.permute.xlu1 %5665  ;;  %v5547_v34 = vrot.slane %v9571_v52, 1  ;;  %v9587_v52 = vld [vmem:[%s9687_s21 + $0x3a0] sm:$0xff]  }
 0x1c8   : > { %6095 = vst.msk [vmem:[#allocation2 + $0x60] sm:$0xff] %vm6082_vm5, %v5666_v14  ;;  %v5664_v37 = vpop.permute.xlu0 %5663 }
 0x1c9   : > { %5781 = vrot.lane.b32.xlu1 %v5490_v48, %s9646_s26  ;;  %6094 = vst.msk [vmem:[#allocation2 + $0x58] sm:$0xff] %vm6082_vm5, %v5664_v37  ;;  %v5522_v48 = vsel %vm5347_vm3, %v5519_v43, %v5521_v20 }
 0x1ca   : > { %5779 = vrot.lane.b32.xlu0 %v5488_v56, %s9646_s26  ;;  %v5520_v56 = vsel %vm5347_vm3, %v5517_v8, %v5519_v43  ;;  %v9573_v8 = vld [vmem:[%s9687_s21 + $0x330] sm:$0xff]  }
 0x1cb   : > { %v5670_v21 = vpop.permute.xlu1 %5669  ;;  %v5551_v11 = vrot.slane %v9573_v8, 1  ;;  %v9589_v8 = vld [vmem:[%s9687_s21 + $0x3b0] sm:$0xff]  }
 0x1cc   : > { %6097 = vst.msk [vmem:[#allocation2 + $0x70] sm:$0xff] %vm6082_vm5, %v5670_v21  ;;  %v5668_v29 = vpop.permute.xlu0 %5667 }
 0x1cd   : > { %5785 = vrot.lane.b32.xlu1 %v5494_v30, %s9646_s26  ;;  %6096 = vst.msk [vmem:[#allocation2 + $0x68] sm:$0xff] %vm6082_vm5, %v5668_v29  ;;  %v5526_v30 = vsel %vm5347_vm3, %v5523_v4, %v5525_v53 }
 0x1ce   : > { %5783 = vrot.lane.b32.xlu0 %v5492_v44, %s9646_s26  ;;  %v5524_v44 = vsel %vm5347_vm3, %v5521_v20, %v5523_v4  ;;  %v9575_v20 = vld [vmem:[%s9687_s21 + $0x340] sm:$0xff]  }
 0x1cf   : > { %v5674_v51 = vpop.permute.xlu1 %5673  ;;  %v5555_v50 = vrot.slane %v9575_v20, 1  ;;  %v9591_v20 = vld [vmem:[%s9687_s21 + $0x3c0] sm:$0xff]  }
 0x1d0   : > { %6099 = vst.msk [vmem:[#allocation2 + $0x80] sm:$0xff] %vm6082_vm5, %v5674_v51  ;;  %v5672_v39 = vpop.permute.xlu0 %5671 }
 0x1d1   : > { %5789 = vrot.lane.b32.xlu1 %v5498_v47, %s9646_s26  ;;  %6098 = vst.msk [vmem:[#allocation2 + $0x78] sm:$0xff] %vm6082_vm5, %v5672_v39  ;;  %v5533_v47 = vrot.slane %v9564_v10, 1  ;;  %v9580_v10 = vld [vmem:[%s9687_s21 + $0x368] sm:$0xff]  }
 0x1d2   : > { %5787 = vrot.lane.b32.xlu0 %v5496_v3, %s9646_s26  ;;  %v5528_v3 = vsel %vm5347_vm3, %v5525_v53, %v5527_v41  ;;  %v9577_v53 = vld [vmem:[%s9687_s21 + $0x350] sm:$0xff]  }
 0x1d3   : > { %v5678_v49 = vpop.permute.xlu1 %5677  ;;  %v5534_v35 = vsel %vm5347_vm3, %v5531_v5, %v5533_v47  ;;  %v5559_v63 = vrot.slane %v9577_v53, 1  ;;  %v9593_v53 = vld [vmem:[%s9687_s21 + $0x3d0] sm:$0xff]  }
 0x1d4   : > { %6101 = vst.msk [vmem:[#allocation2 + $0x90] sm:$0xff] %vm6082_vm5, %v5678_v49  ;;  %v5676_v13 = vpop.permute.xlu0 %5675 }
 0x1d5   : > { %5793 = vrot.lane.b32.xlu1 %v5502_v17, %s9646_s26  ;;  %6100 = vst.msk [vmem:[#allocation2 + $0x88] sm:$0xff] %vm6082_vm5, %v5676_v13  ;;  %v5537_v17 = vrot.slane %v9566_v38, 1  ;;  %v9582_v38 = vld [vmem:[%s9687_s21 + $0x378] sm:$0xff]  }
 0x1d6   : > { %5791 = vrot.lane.b32.xlu0 %v5500_v9, %s9646_s26  ;;  %v5532_v9 = vsel %vm5347_vm3, %v5529_v59, %v5531_v5  ;;  %v9579_v59 = vld [vmem:[%s9687_s21 + $0x360] sm:$0xff]  }
 0x1d7   : > { %v5682_v62 = vpop.permute.xlu1 %5681  ;;  %v5538_v0 = vsel %vm5347_vm3, %v5535_v33, %v5537_v17  ;;  %v5563_v5 = vrot.slane %v9579_v59, 1  ;;  %v9595_v59 = vld [vmem:[%s9687_s21 + $0x3e0] sm:$0xff]  }
 0x1d8   : > { %6103 = vst.msk [vmem:[#allocation2 + $0xa0] sm:$0xff] %vm6082_vm5, %v5682_v62  ;;  %v5680_v46 = vpop.permute.xlu0 %5679 }
 0x1d9   : > { %5797 = vrot.lane.b32.xlu1 %v5506_v60, %s9646_s26  ;;  %6102 = vst.msk [vmem:[#allocation2 + $0x98] sm:$0xff] %vm6082_vm5, %v5680_v46  ;;  %v5541_v60 = vrot.slane %v9568_v23, 1  ;;  %v9584_v23 = vld [vmem:[%s9687_s21 + $0x388] sm:$0xff]  }
 0x1da   : > { %5795 = vrot.lane.b32.xlu0 %v5504_v24, %s9646_s26  ;;  %v5536_v24 = vsel %vm5347_vm3, %v5533_v47, %v5535_v33  ;;  %v5565_v47 = vrot.slane %v9580_v10, 1  ;;  %v5567_v33 = vrot.slane %v9581_v28, 1  ;;  %v9596_v10 = vld [vmem:[%s9687_s21 + $0x3e8] sm:$0xff]   ;;  %v9597_v28 = vld [vmem:[%s9687_s21 + $0x3f0] sm:$0xff]  }
 0x1db   : > { %v5686_v7 = vpop.permute.xlu1 %5685  ;;  %v5542_v31 = vsel %vm5347_vm3, %v5539_v36, %v5541_v60 }
 0x1dc   : > { %6105 = vst.msk [vmem:[#allocation2 + $0xb0] sm:$0xff] %vm6082_vm5, %v5686_v7  ;;  %v5684_v26 = vpop.permute.xlu0 %5683 }
 0x1dd   : > { %5801 = vrot.lane.b32.xlu1 %v5510_v25, %s9646_s26  ;;  %6104 = vst.msk [vmem:[#allocation2 + $0xa8] sm:$0xff] %vm6082_vm5, %v5684_v26  ;;  %v5545_v25 = vrot.slane %v9570_v18, 1  ;;  %v9586_v18 = vld [vmem:[%s9687_s21 + $0x398] sm:$0xff]  }
 0x1de   : > { %5799 = vrot.lane.b32.xlu0 %v5508_v19, %s9646_s26  ;;  %v5540_v19 = vsel %vm5347_vm3, %v5537_v17, %v5539_v36  ;;  %v5569_v17 = vrot.slane %v9582_v38, 1  ;;  %v5571_v36 = vrot.slane %v9583_v27, 1  ;;  %v9598_v38 = vld [vmem:[%s9687_s21 + $0x3f8] sm:$0xff]   ;;  %v9599_v27 = vld [vmem:[%s9687_s21 + $0x400] sm:$0xff]  }
 0x1df   : > { %v5690_v42 = vpop.permute.xlu1 %5689  ;;  %v5546_v32 = vsel %vm5347_vm3, %v5543_v54, %v5545_v25 }
 0x1e0   : > { %6107 = vst.msk [vmem:[#allocation2 + $0xc0] sm:$0xff] %vm6082_vm5, %v5690_v42  ;;  %v5688_v58 = vpop.permute.xlu0 %5687 }
 0x1e1   : > { %5805 = vrot.lane.b32.xlu1 %v5514_v12, %s9646_s26  ;;  %6106 = vst.msk [vmem:[#allocation2 + $0xb8] sm:$0xff] %vm6082_vm5, %v5688_v58  ;;  %v5549_v12 = vrot.slane %v9572_v61, 1  ;;  %v9588_v61 = vld [vmem:[%s9687_s21 + $0x3a8] sm:$0xff]  }
 0x1e2   : > { %5803 = vrot.lane.b32.xlu0 %v5512_v16, %s9646_s26  ;;  %v5544_v16 = vsel %vm5347_vm3, %v5541_v60, %v5543_v54  ;;  %v5573_v60 = vrot.slane %v9584_v23, 1  ;;  %v5575_v54 = vrot.slane %v9585_v2, 1  ;;  %v9600_v23 = vld [vmem:[%s9687_s21 + $0x408] sm:$0xff]   ;;  %v9601_v2 = vld [vmem:[%s9687_s21 + $0x410] sm:$0xff]  }
 0x1e3   : > { %v5694_v40 = vpop.permute.xlu1 %5693  ;;  %v5550_v43 = vsel %vm5347_vm3, %v5547_v34, %v5549_v12 }
 0x1e4   : > { %6109 = vst.msk [vmem:[#allocation2 + $0xd0] sm:$0xff] %vm6082_vm5, %v5694_v40  ;;  %v5692_v22 = vpop.permute.xlu0 %5691 }
 0x1e5   : > { %5809 = vrot.lane.b32.xlu1 %v5518_v1, %s9646_s26  ;;  %6108 = vst.msk [vmem:[#allocation2 + $0xc8] sm:$0xff] %vm6082_vm5, %v5692_v22  ;;  %v5553_v1 = vrot.slane %v9574_v6, 1  ;;  %v9590_v6 = vld [vmem:[%s9687_s21 + $0x3b8] sm:$0xff]  }
 0x1e6   : > { %5807 = vrot.lane.b32.xlu0 %v5516_v55, %s9646_s26  ;;  %v5548_v55 = vsel %vm5347_vm3, %v5545_v25, %v5547_v34  ;;  %v5577_v25 = vrot.slane %v9586_v18, 1  ;;  %v5579_v34 = vrot.slane %v9587_v52, 1  ;;  %v9602_v18 = vld [vmem:[%s9687_s21 + $0x418] sm:$0xff]   ;;  %v9603_v52 = vld [vmem:[%s9687_s21 + $0x420] sm:$0xff]  }
 0x1e7   : > { %v5698_v14 = vpop.permute.xlu1 %5697  ;;  %v5554_v4 = vsel %vm5347_vm3, %v5551_v11, %v5553_v1 }
 0x1e8   : > { %6111 = vst.msk [vmem:[#allocation2 + $0xe0] sm:$0xff] %vm6082_vm5, %v5698_v14  ;;  %v5696_v37 = vpop.permute.xlu0 %5695 }
 0x1e9   : > { %5813 = vrot.lane.b32.xlu1 %v5522_v48, %s9646_s26  ;;  %6110 = vst.msk [vmem:[#allocation2 + $0xd8] sm:$0xff] %vm6082_vm5, %v5696_v37  ;;  %v5557_v48 = vrot.slane %v9576_v57, 1  ;;  %v9592_v57 = vld [vmem:[%s9687_s21 + $0x3c8] sm:$0xff]  }
 0x1ea   : > { %5811 = vrot.lane.b32.xlu0 %v5520_v56, %s9646_s26  ;;  %v5552_v56 = vsel %vm5347_vm3, %v5549_v12, %v5551_v11  ;;  %v5581_v12 = vrot.slane %v9588_v61, 1  ;;  %v5583_v11 = vrot.slane %v9589_v8, 1  ;;  %v9604_v61 = vld [vmem:[%s9687_s21 + $0x428] sm:$0xff]   ;;  %v9605_v8 = vld [vmem:[%s9687_s21 + $0x430] sm:$0xff]  }
 0x1eb   : > { %v5702_v21 = vpop.permute.xlu1 %5701  ;;  %v5558_v41 = vsel %vm5347_vm3, %v5555_v50, %v5557_v48 }
 0x1ec   : > { %6113 = vst.msk [vmem:[#allocation2 + $0xf0] sm:$0xff] %vm6082_vm5, %v5702_v21  ;;  %v5700_v29 = vpop.permute.xlu0 %5699 }
 0x1ed   : > { %5817 = vrot.lane.b32.xlu1 %v5526_v30, %s9646_s26  ;;  %6112 = vst.msk [vmem:[#allocation2 + $0xe8] sm:$0xff] %vm6082_vm5, %v5700_v29  ;;  %v5561_v30 = vrot.slane %v9578_v45, 1  ;;  %v9594_v45 = vld [vmem:[%s9687_s21 + $0x3d8] sm:$0xff]  }
 0x1ee   : > { %5815 = vrot.lane.b32.xlu0 %v5524_v44, %s9646_s26  ;;  %v5556_v44 = vsel %vm5347_vm3, %v5553_v1, %v5555_v50  ;;  %v5585_v1 = vrot.slane %v9590_v6, 1  ;;  %v5587_v50 = vrot.slane %v9591_v20, 1  ;;  %v9606_v6 = vld [vmem:[%s9687_s21 + $0x438] sm:$0xff]   ;;  %v9607_v20 = vld [vmem:[%s9687_s21 + $0x440] sm:$0xff]  }
 0x1ef   : > { %v5706_v51 = vpop.permute.xlu1 %5705 }
 0x1f0   : > { %6115 = vst.msk [vmem:[#allocation2 + $0x100] sm:$0xff] %vm6082_vm5, %v5706_v51  ;;  %v5704_v39 = vpop.permute.xlu0 %5703 }
 0x1f1   : > { %5821 = vrot.lane.b32.xlu1 %v5530_v15, %s9646_s26  ;;  %6114 = vst.msk [vmem:[#allocation2 + $0xf8] sm:$0xff] %vm6082_vm5, %v5704_v39  ;;  %v5562_v15 = vsel %vm5347_vm3, %v5559_v63, %v5561_v30 }
 0x1f2   : > { %5819 = vrot.lane.b32.xlu0 %v5528_v3, %s9646_s26  ;;  %v5560_v3 = vsel %vm5347_vm3, %v5557_v48, %v5559_v63  ;;  %v5589_v48 = vrot.slane %v9592_v57, 1  ;;  %v5591_v63 = vrot.slane %v9593_v53, 1  ;;  %v9608_v57 = vld [vmem:[%s9687_s21 + $0x448] sm:$0xff]   ;;  %v9609_v53 = vld [vmem:[%s9687_s21 + $0x450] sm:$0xff]  }
 0x1f3   : > { %v5710_v49 = vpop.permute.xlu1 %5709 }
 0x1f4   : > { %6117 = vst.msk [vmem:[#allocation2 + $0x110] sm:$0xff] %vm6082_vm5, %v5710_v49  ;;  %v5708_v13 = vpop.permute.xlu0 %5707 }
 0x1f5   : > { %5825 = vrot.lane.b32.xlu1 %v5534_v35, %s9646_s26  ;;  %6116 = vst.msk [vmem:[#allocation2 + $0x108] sm:$0xff] %vm6082_vm5, %v5708_v13  ;;  %v5566_v35 = vsel %vm5347_vm3, %v5563_v5, %v5565_v47 }
 0x1f6   : > { %5823 = vrot.lane.b32.xlu0 %v5532_v9, %s9646_s26  ;;  %v5564_v9 = vsel %vm5347_vm3, %v5561_v30, %v5563_v5  ;;  %v5593_v30 = vrot.slane %v9594_v45, 1  ;;  %v5595_v5 = vrot.slane %v9595_v59, 1  ;;  %v9610_v45 = vld [vmem:[%s9687_s21 + $0x458] sm:$0xff]   ;;  %v9611_v59 = vld [vmem:[%s9687_s21 + $0x460] sm:$0xff]  }
 0x1f7   : > { %v5714_v62 = vpop.permute.xlu1 %5713 }
 0x1f8   : > { %6119 = vst.msk [vmem:[#allocation2 + $0x120] sm:$0xff] %vm6082_vm5, %v5714_v62  ;;  %v5712_v46 = vpop.permute.xlu0 %5711 }
 0x1f9   : > { %5829 = vrot.lane.b32.xlu1 %v5538_v0, %s9646_s26  ;;  %6118 = vst.msk [vmem:[#allocation2 + $0x118] sm:$0xff] %vm6082_vm5, %v5712_v46  ;;  %v5570_v0 = vsel %vm5347_vm3, %v5567_v33, %v5569_v17 }
 0x1fa   : > { %5827 = vrot.lane.b32.xlu0 %v5536_v24, %s9646_s26  ;;  %v5568_v24 = vsel %vm5347_vm3, %v5565_v47, %v5567_v33  ;;  %v5597_v47 = vrot.slane %v9596_v10, 1  ;;  %v5599_v33 = vrot.slane %v9597_v28, 1  ;;  %v9612_v10 = vld [vmem:[%s9687_s21 + $0x468] sm:$0xff]   ;;  %v9613_v28 = vld [vmem:[%s9687_s21 + $0x470] sm:$0xff]  }
 0x1fb   : > { %v5718_v7 = vpop.permute.xlu1 %5717 }
 0x1fc   : > { %6121 = vst.msk [vmem:[#allocation2 + $0x130] sm:$0xff] %vm6082_vm5, %v5718_v7  ;;  %v5716_v26 = vpop.permute.xlu0 %5715 }
 0x1fd   : > { %5833 = vrot.lane.b32.xlu1 %v5542_v31, %s9646_s26  ;;  %6120 = vst.msk [vmem:[#allocation2 + $0x128] sm:$0xff] %vm6082_vm5, %v5716_v26  ;;  %v5574_v31 = vsel %vm5347_vm3, %v5571_v36, %v5573_v60 }
 0x1fe   : > { %5831 = vrot.lane.b32.xlu0 %v5540_v19, %s9646_s26  ;;  %v5572_v19 = vsel %vm5347_vm3, %v5569_v17, %v5571_v36  ;;  %v5601_v17 = vrot.slane %v9598_v38, 1  ;;  %v5603_v36 = vrot.slane %v9599_v27, 1  ;;  %v9614_v38 = vld [vmem:[%s9687_s21 + $0x478] sm:$0xff]   ;;  %v9615_v27 = vld [vmem:[%s9687_s21 + $0x480] sm:$0xff]  }
 0x1ff   : > { %v5722_v42 = vpop.permute.xlu1 %5721 }
 0x200   : > { %6123 = vst.msk [vmem:[#allocation2 + $0x140] sm:$0xff] %vm6082_vm5, %v5722_v42  ;;  %v5720_v58 = vpop.permute.xlu0 %5719 }
 0x201   : > { %5837 = vrot.lane.b32.xlu1 %v5546_v32, %s9646_s26  ;;  %6122 = vst.msk [vmem:[#allocation2 + $0x138] sm:$0xff] %vm6082_vm5, %v5720_v58  ;;  %v5578_v32 = vsel %vm5347_vm3, %v5575_v54, %v5577_v25 }
 0x202   : > { %5835 = vrot.lane.b32.xlu0 %v5544_v16, %s9646_s26  ;;  %v5576_v16 = vsel %vm5347_vm3, %v5573_v60, %v5575_v54  ;;  %v5605_v60 = vrot.slane %v9600_v23, 1  ;;  %v5607_v54 = vrot.slane %v9601_v2, 1  ;;  %v9616_v23 = vld [vmem:[%s9687_s21 + $0x488] sm:$0xff]  }
 0x203   : > { %v5726_v40 = vpop.permute.xlu1 %5725 }
 0x204   : > { %6125 = vst.msk [vmem:[#allocation2 + $0x150] sm:$0xff] %vm6082_vm5, %v5726_v40  ;;  %v5724_v22 = vpop.permute.xlu0 %5723 }
 0x205   : > { %5841 = vrot.lane.b32.xlu1 %v5550_v43, %s9646_s26  ;;  %6124 = vst.msk [vmem:[#allocation2 + $0x148] sm:$0xff] %vm6082_vm5, %v5724_v22  ;;  %v5582_v43 = vsel %vm5347_vm3, %v5579_v34, %v5581_v12 }
 0x206   : > { %5839 = vrot.lane.b32.xlu0 %v5548_v55, %s9646_s26  ;;  %v5580_v55 = vsel %vm5347_vm3, %v5577_v25, %v5579_v34  ;;  %v5609_v25 = vrot.slane %v9602_v18, 1  ;;  %v5611_v34 = vrot.slane %v9603_v52, 1 }
 0x207   : > { %v5730_v14 = vpop.permute.xlu1 %5729 }
 0x208   : > { %6127 = vst.msk [vmem:[#allocation2 + $0x160] sm:$0xff] %vm6082_vm5, %v5730_v14  ;;  %v5728_v37 = vpop.permute.xlu0 %5727 }
 0x209   : > { %5845 = vrot.lane.b32.xlu1 %v5554_v4, %s9646_s26  ;;  %6126 = vst.msk [vmem:[#allocation2 + $0x158] sm:$0xff] %vm6082_vm5, %v5728_v37  ;;  %v5586_v4 = vsel %vm5347_vm3, %v5583_v11, %v5585_v1 }
 0x20a   : > { %5843 = vrot.lane.b32.xlu0 %v5552_v56, %s9646_s26  ;;  %v5584_v56 = vsel %vm5347_vm3, %v5581_v12, %v5583_v11  ;;  %v5613_v12 = vrot.slane %v9604_v61, 1  ;;  %v5615_v11 = vrot.slane %v9605_v8, 1 }
 0x20b   : > { %v5734_v21 = vpop.permute.xlu1 %5733 }
 0x20c   : > { %6129 = vst.msk [vmem:[#allocation2 + $0x170] sm:$0xff] %vm6082_vm5, %v5734_v21  ;;  %v5732_v29 = vpop.permute.xlu0 %5731 }
 0x20d   : > { %5849 = vrot.lane.b32.xlu1 %v5558_v41, %s9646_s26  ;;  %6128 = vst.msk [vmem:[#allocation2 + $0x168] sm:$0xff] %vm6082_vm5, %v5732_v29  ;;  %v5590_v41 = vsel %vm5347_vm3, %v5587_v50, %v5589_v48 }
 0x20e   : > { %5847 = vrot.lane.b32.xlu0 %v5556_v44, %s9646_s26  ;;  %v5588_v44 = vsel %vm5347_vm3, %v5585_v1, %v5587_v50  ;;  %v5617_v1 = vrot.slane %v9606_v6, 1  ;;  %v5619_v50 = vrot.slane %v9607_v20, 1 }
 0x20f   : > { %v5738_v51 = vpop.permute.xlu1 %5737 }
 0x210   : > { %6131 = vst.msk [vmem:[#allocation2 + $0x180] sm:$0xff] %vm6082_vm5, %v5738_v51  ;;  %v5736_v39 = vpop.permute.xlu0 %5735 }
 0x211   : > { %5853 = vrot.lane.b32.xlu1 %v5562_v15, %s9646_s26  ;;  %6130 = vst.msk [vmem:[#allocation2 + $0x178] sm:$0xff] %vm6082_vm5, %v5736_v39  ;;  %v5594_v15 = vsel %vm5347_vm3, %v5591_v63, %v5593_v30 }
 0x212   : > { %5851 = vrot.lane.b32.xlu0 %v5560_v3, %s9646_s26  ;;  %v5592_v3 = vsel %vm5347_vm3, %v5589_v48, %v5591_v63  ;;  %v5621_v48 = vrot.slane %v9608_v57, 1  ;;  %v5623_v63 = vrot.slane %v9609_v53, 1 }
 0x213   : > { %v5742_v49 = vpop.permute.xlu1 %5741 }
 0x214   : > { %6133 = vst.msk [vmem:[#allocation2 + $0x190] sm:$0xff] %vm6082_vm5, %v5742_v49  ;;  %v5740_v13 = vpop.permute.xlu0 %5739 }
 0x215   : > { %5857 = vrot.lane.b32.xlu1 %v5566_v35, %s9646_s26  ;;  %6132 = vst.msk [vmem:[#allocation2 + $0x188] sm:$0xff] %vm6082_vm5, %v5740_v13  ;;  %v5598_v35 = vsel %vm5347_vm3, %v5595_v5, %v5597_v47 }
 0x216   : > { %5855 = vrot.lane.b32.xlu0 %v5564_v9, %s9646_s26  ;;  %v5596_v9 = vsel %vm5347_vm3, %v5593_v30, %v5595_v5  ;;  %v5625_v30 = vrot.slane %v9610_v45, 1  ;;  %v5627_v5 = vrot.slane %v9611_v59, 1 }
 0x217   : > { %v5746_v62 = vpop.permute.xlu1 %5745 }
 0x218   : > { %6135 = vst.msk [vmem:[#allocation2 + $0x1a0] sm:$0xff] %vm6082_vm5, %v5746_v62  ;;  %v5744_v46 = vpop.permute.xlu0 %5743 }
 0x219   : > { %5861 = vrot.lane.b32.xlu1 %v5570_v0, %s9646_s26  ;;  %6134 = vst.msk [vmem:[#allocation2 + $0x198] sm:$0xff] %vm6082_vm5, %v5744_v46  ;;  %v5602_v0 = vsel %vm5347_vm3, %v5599_v33, %v5601_v17 }
 0x21a   : > { %5859 = vrot.lane.b32.xlu0 %v5568_v24, %s9646_s26  ;;  %v5600_v24 = vsel %vm5347_vm3, %v5597_v47, %v5599_v33  ;;  %v5629_v47 = vrot.slane %v9612_v10, 1  ;;  %v5631_v33 = vrot.slane %v9613_v28, 1 }
 0x21b   : > { %v5750_v7 = vpop.permute.xlu1 %5749 }
 0x21c   : > { %6137 = vst.msk [vmem:[#allocation2 + $0x1b0] sm:$0xff] %vm6082_vm5, %v5750_v7  ;;  %v5748_v26 = vpop.permute.xlu0 %5747  ;;  %v5632_v18 = vsel %vm5347_vm3, %v5629_v47, %v5631_v33 }
 0x21d   : > { %5865 = vrot.lane.b32.xlu1 %v5574_v31, %s9646_s26  ;;  %6136 = vst.msk [vmem:[#allocation2 + $0x1a8] sm:$0xff] %vm6082_vm5, %v5748_v26  ;;  %v5606_v31 = vsel %vm5347_vm3, %v5603_v36, %v5605_v60 }
 0x21e   : > { %5863 = vrot.lane.b32.xlu0 %v5572_v19, %s9646_s26  ;;  %v5604_v19 = vsel %vm5347_vm3, %v5601_v17, %v5603_v36  ;;  %v5633_v17 = vrot.slane %v9614_v38, 1  ;;  %v5635_v36 = vrot.slane %v9615_v27, 1 }
 0x21f   : > { %v5754_v42 = vpop.permute.xlu1 %5753 }
 0x220   : > { %6139 = vst.msk [vmem:[#allocation2 + $0x1c0] sm:$0xff] %vm6082_vm5, %v5754_v42  ;;  %v5752_v58 = vpop.permute.xlu0 %5751 }
 0x221   : > { %5869 = vrot.lane.b32.xlu1 %v5578_v32, %s9646_s26  ;;  %6138 = vst.msk [vmem:[#allocation2 + $0x1b8] sm:$0xff] %vm6082_vm5, %v5752_v58  ;;  %v5610_v32 = vsel %vm5347_vm3, %v5607_v54, %v5609_v25 }
 0x222   : > { %5867 = vrot.lane.b32.xlu0 %v5576_v16, %s9646_s26  ;;  %v5608_v16 = vsel %vm5347_vm3, %v5605_v60, %v5607_v54  ;;  %v5637_v60 = vrot.slane %v9616_v23, 1  ;;  %v5636_v54 = vsel %vm5347_vm3, %v5633_v17, %v5635_v36 }
 0x223   : > { %v5758_v40 = vpop.permute.xlu1 %5757 }
 0x224   : > { %6141 = vst.msk [vmem:[#allocation2 + $0x1d0] sm:$0xff] %vm6082_vm5, %v5758_v40  ;;  %v5756_v22 = vpop.permute.xlu0 %5755 }
 0x225   : > { %5873 = vrot.lane.b32.xlu1 %v5582_v43, %s9646_s26  ;;  %6140 = vst.msk [vmem:[#allocation2 + $0x1c8] sm:$0xff] %vm6082_vm5, %v5756_v22  ;;  %v5614_v43 = vsel %vm5347_vm3, %v5611_v34, %v5613_v12 }
 0x226   : > { %5871 = vrot.lane.b32.xlu0 %v5580_v55, %s9646_s26  ;;  %v5612_v55 = vsel %vm5347_vm3, %v5609_v25, %v5611_v34 }
 0x227   : > { %v5762_v14 = vpop.permute.xlu1 %5761 }
 0x228   : > { %6143 = vst.msk [vmem:[#allocation2 + $0x1e0] sm:$0xff] %vm6082_vm5, %v5762_v14  ;;  %v5760_v37 = vpop.permute.xlu0 %5759 }
 0x229   : > { %5877 = vrot.lane.b32.xlu1 %v5586_v4, %s9646_s26  ;;  %6142 = vst.msk [vmem:[#allocation2 + $0x1d8] sm:$0xff] %vm6082_vm5, %v5760_v37  ;;  %v5618_v4 = vsel %vm5347_vm3, %v5615_v11, %v5617_v1 }
 0x22a   : > { %5875 = vrot.lane.b32.xlu0 %v5584_v56, %s9646_s26  ;;  %v5616_v56 = vsel %vm5347_vm3, %v5613_v12, %v5615_v11 }
 0x22b   : > { %v5766_v21 = vpop.permute.xlu1 %5765 }
 0x22c   : > { %6145 = vst.msk [vmem:[#allocation2 + $0x1f0] sm:$0xff] %vm6082_vm5, %v5766_v21  ;;  %v5764_v29 = vpop.permute.xlu0 %5763 }
 0x22d   : > { %5881 = vrot.lane.b32.xlu1 %v5590_v41, %s9646_s26  ;;  %6144 = vst.msk [vmem:[#allocation2 + $0x1e8] sm:$0xff] %vm6082_vm5, %v5764_v29  ;;  %v5622_v41 = vsel %vm5347_vm3, %v5619_v50, %v5621_v48 }
 0x22e   : > { %5879 = vrot.lane.b32.xlu0 %v5588_v44, %s9646_s26  ;;  %v5620_v44 = vsel %vm5347_vm3, %v5617_v1, %v5619_v50 }
 0x22f   : > { %v5770_v51 = vpop.permute.xlu1 %5769 }
 0x230   : > { %6147 = vst.msk [vmem:[#allocation2 + $0x200] sm:$0xff] %vm6082_vm5, %v5770_v51  ;;  %v5768_v39 = vpop.permute.xlu0 %5767 }
 0x231   : > { %5885 = vrot.lane.b32.xlu1 %v5594_v15, %s9646_s26  ;;  %6146 = vst.msk [vmem:[#allocation2 + $0x1f8] sm:$0xff] %vm6082_vm5, %v5768_v39  ;;  %v5626_v15 = vsel %vm5347_vm3, %v5623_v63, %v5625_v30 }
 0x232   : > { %5883 = vrot.lane.b32.xlu0 %v5592_v3, %s9646_s26  ;;  %v5624_v3 = vsel %vm5347_vm3, %v5621_v48, %v5623_v63 }
 0x233   : > { %v5774_v49 = vpop.permute.xlu1 %5773 }
 0x234   : > { %6149 = vst.msk [vmem:[#allocation2 + $0x210] sm:$0xff] %vm6082_vm5, %v5774_v49  ;;  %v5772_v13 = vpop.permute.xlu0 %5771 }
 0x235   : > { %5889 = vrot.lane.b32.xlu1 %v5598_v35, %s9646_s26  ;;  %6148 = vst.msk [vmem:[#allocation2 + $0x208] sm:$0xff] %vm6082_vm5, %v5772_v13  ;;  %v5630_v35 = vsel %vm5347_vm3, %v5627_v5, %v5629_v47 }
 0x236   : > { %5887 = vrot.lane.b32.xlu0 %v5596_v9, %s9646_s26  ;;  %v5628_v9 = vsel %vm5347_vm3, %v5625_v30, %v5627_v5 }
 0x237   : > { %v5778_v62 = vpop.permute.xlu1 %5777 }
 0x238   : > { %6151 = vst.msk [vmem:[#allocation2 + $0x220] sm:$0xff] %vm6082_vm5, %v5778_v62  ;;  %v5776_v46 = vpop.permute.xlu0 %5775  ;;  %v9617_v62 = vld [vmem:[%s9687_s21 + $0x490] sm:$0x1f]  }
 0x239   : > { %5893 = vrot.lane.b32.xlu1 %v5602_v0, %s9646_s26  ;;  %6150 = vst.msk [vmem:[#allocation2 + $0x218] sm:$0xff] %vm6082_vm5, %v5776_v46  ;;  %v5634_v0 = vsel %vm5347_vm3, %v5631_v33, %v5633_v17  ;;  %v5638_v46 = vsel %vm5347_vm3, %v5635_v36, %v5637_v60  ;;  %v5639_v25 = vrot.slane %v9617_v62, 1 }
 0x23a   : > { %5891 = vrot.lane.b32.xlu0 %v5600_v24, %s9646_s26 }
 0x23b   : > { %v5782_v7 = vpop.permute.xlu1 %5781 }
 0x23c   : > { %6153 = vst.msk [vmem:[#allocation2 + $0x230] sm:$0xff] %vm6082_vm5, %v5782_v7  ;;  %v5780_v26 = vpop.permute.xlu0 %5779  ;;  %v5640_v7 = vsel %vm5347_vm3, %v5637_v60, %v5639_v25 }
 0x23d   : > { %5897 = vrot.lane.b32.xlu1 %v5606_v31, %s9646_s26  ;;  %6152 = vst.msk [vmem:[#allocation2 + $0x228] sm:$0xff] %vm6082_vm5, %v5780_v26 }
 0x23e   : > { %5895 = vrot.lane.b32.xlu0 %v5604_v19, %s9646_s26 }
 0x23f   : > { %v5786_v42 = vpop.permute.xlu1 %5785 }
 0x240   : > { %6155 = vst.msk [vmem:[#allocation2 + $0x240] sm:$0xff] %vm6082_vm5, %v5786_v42  ;;  %v5784_v58 = vpop.permute.xlu0 %5783 }
 0x241   : > { %5901 = vrot.lane.b32.xlu1 %v5610_v32, %s9646_s26  ;;  %6154 = vst.msk [vmem:[#allocation2 + $0x238] sm:$0xff] %vm6082_vm5, %v5784_v58 }
 0x242   : > { %5899 = vrot.lane.b32.xlu0 %v5608_v16, %s9646_s26 }
 0x243   : > { %v5790_v40 = vpop.permute.xlu1 %5789 }
 0x244   : > { %6157 = vst.msk [vmem:[#allocation2 + $0x250] sm:$0xff] %vm6082_vm5, %v5790_v40  ;;  %v5788_v22 = vpop.permute.xlu0 %5787 }
 0x245   : > { %5905 = vrot.lane.b32.xlu1 %v5614_v43, %s9646_s26  ;;  %6156 = vst.msk [vmem:[#allocation2 + $0x248] sm:$0xff] %vm6082_vm5, %v5788_v22 }
 0x246   : > { %5903 = vrot.lane.b32.xlu0 %v5612_v55, %s9646_s26 }
 0x247   : > { %v5794_v14 = vpop.permute.xlu1 %5793 }
 0x248   : > { %6159 = vst.msk [vmem:[#allocation2 + $0x260] sm:$0xff] %vm6082_vm5, %v5794_v14  ;;  %v5792_v37 = vpop.permute.xlu0 %5791 }
 0x249   : > { %5909 = vrot.lane.b32.xlu1 %v5618_v4, %s9646_s26  ;;  %6158 = vst.msk [vmem:[#allocation2 + $0x258] sm:$0xff] %vm6082_vm5, %v5792_v37 }
 0x24a   : > { %5907 = vrot.lane.b32.xlu0 %v5616_v56, %s9646_s26 }
 0x24b   : > { %v5798_v21 = vpop.permute.xlu1 %5797 }
 0x24c   : > { %6161 = vst.msk [vmem:[#allocation2 + $0x270] sm:$0xff] %vm6082_vm5, %v5798_v21  ;;  %v5796_v29 = vpop.permute.xlu0 %5795 }
 0x24d   : > { %5913 = vrot.lane.b32.xlu1 %v5622_v41, %s9646_s26  ;;  %6160 = vst.msk [vmem:[#allocation2 + $0x268] sm:$0xff] %vm6082_vm5, %v5796_v29 }
 0x24e   : > { %5911 = vrot.lane.b32.xlu0 %v5620_v44, %s9646_s26 }
 0x24f   : > { %v5802_v51 = vpop.permute.xlu1 %5801 }
 0x250   : > { %6163 = vst.msk [vmem:[#allocation2 + $0x280] sm:$0xff] %vm6082_vm5, %v5802_v51  ;;  %v5800_v39 = vpop.permute.xlu0 %5799 }
 0x251   : > { %5917 = vrot.lane.b32.xlu1 %v5626_v15, %s9646_s26  ;;  %6162 = vst.msk [vmem:[#allocation2 + $0x278] sm:$0xff] %vm6082_vm5, %v5800_v39 }
 0x252   : > { %5915 = vrot.lane.b32.xlu0 %v5624_v3, %s9646_s26 }
 0x253   : > { %v5806_v49 = vpop.permute.xlu1 %5805 }
 0x254   : > { %6165 = vst.msk [vmem:[#allocation2 + $0x290] sm:$0xff] %vm6082_vm5, %v5806_v49  ;;  %v5804_v13 = vpop.permute.xlu0 %5803 }
 0x255   : > { %5921 = vrot.lane.b32.xlu1 %v5630_v35, %s9646_s26  ;;  %6164 = vst.msk [vmem:[#allocation2 + $0x288] sm:$0xff] %vm6082_vm5, %v5804_v13 }
 0x256   : > { %5919 = vrot.lane.b32.xlu0 %v5628_v9, %s9646_s26 }
 0x257   : > { %v5810_v2 = vpop.permute.xlu1 %5809 }
 0x258   : > { %6167 = vst.msk [vmem:[#allocation2 + $0x2a0] sm:$0xff] %vm6082_vm5, %v5810_v2  ;;  %v5808_v24 = vpop.permute.xlu0 %5807 }
 0x259   : > { %5925 = vrot.lane.b32.xlu1 %v5634_v0, %s9646_s26  ;;  %6166 = vst.msk [vmem:[#allocation2 + $0x298] sm:$0xff] %vm6082_vm5, %v5808_v24 }
 0x25a   : > { %5923 = vrot.lane.b32.xlu0 %v5632_v18, %s9646_s26 }
 0x25b   : > { %v5814_v31 = vpop.permute.xlu1 %5813 }
 0x25c   : > { %6169 = vst.msk [vmem:[#allocation2 + $0x2b0] sm:$0xff] %vm6082_vm5, %v5814_v31  ;;  %v5812_v52 = vpop.permute.xlu0 %5811 }
 0x25d   : > { %5929 = vrot.lane.b32.xlu1 %v5638_v46, %s9646_s26  ;;  %6168 = vst.msk [vmem:[#allocation2 + $0x2a8] sm:$0xff] %vm6082_vm5, %v5812_v52 }
 0x25e   : > { %5927 = vrot.lane.b32.xlu0 %v5636_v54, %s9646_s26 }
 0x25f   : > { %v5818_v61 = vpop.permute.xlu1 %5817 }
 0x260   : > { %6171 = vst.msk [vmem:[#allocation2 + $0x2c0] sm:$0xff] %vm6082_vm5, %v5818_v61  ;;  %v5816_v19 = vpop.permute.xlu0 %5815 }
 0x261   : > { %5933 = vrot.lane.b32.xlu1 %v5639_v25, %s9646_s26  ;;  %6170 = vst.msk [vmem:[#allocation2 + $0x2b8] sm:$0xff] %vm6082_vm5, %v5816_v19 }
 0x262   : > { %5931 = vrot.lane.b32.xlu0 %v5640_v7, %s9646_s26 }
 0x263   : > { %v5822_v26 = vpop.permute.xlu1 %5821 }
 0x264   : > { %6173 = vst.msk [vmem:[#allocation2 + $0x2d0] sm:$0xff] %vm6082_vm5, %v5822_v26  ;;  %v5820_v32 = vpop.permute.xlu0 %5819 }
 0x265   : > { %6172 = vst.msk [vmem:[#allocation2 + $0x2c8] sm:$0xff] %vm6082_vm5, %v5820_v32 }
 0x267   : > { %v5826_v34 = vpop.permute.xlu1 %5825 }
 0x268   : > { %6175 = vst.msk [vmem:[#allocation2 + $0x2e0] sm:$0xff] %vm6082_vm5, %v5826_v34  ;;  %v5824_v12 = vpop.permute.xlu0 %5823 }
 0x269   : > { %6174 = vst.msk [vmem:[#allocation2 + $0x2d8] sm:$0xff] %vm6082_vm5, %v5824_v12 }
 0x26b   : > { %v5830_v8 = vpop.permute.xlu1 %5829 }
 0x26c   : > { %6177 = vst.msk [vmem:[#allocation2 + $0x2f0] sm:$0xff] %vm6082_vm5, %v5830_v8  ;;  %v5828_v6 = vpop.permute.xlu0 %5827 }
 0x26d   : > { %6176 = vst.msk [vmem:[#allocation2 + $0x2e8] sm:$0xff] %vm6082_vm5, %v5828_v6 }
 0x26f   : > { %v5834_v42 = vpop.permute.xlu1 %5833 }
 0x270   : > { %6179 = vst.msk [vmem:[#allocation2 + $0x300] sm:$0xff] %vm6082_vm5, %v5834_v42  ;;  %v5832_v16 = vpop.permute.xlu0 %5831 }
 0x271   : > { %6178 = vst.msk [vmem:[#allocation2 + $0x2f8] sm:$0xff] %vm6082_vm5, %v5832_v16 }
 0x273   : > { %v5838_v58 = vpop.permute.xlu1 %5837 }
 0x274   : > { %6181 = vst.msk [vmem:[#allocation2 + $0x310] sm:$0xff] %vm6082_vm5, %v5838_v58  ;;  %v5836_v43 = vpop.permute.xlu0 %5835 }
 0x275   : > { %6180 = vst.msk [vmem:[#allocation2 + $0x308] sm:$0xff] %vm6082_vm5, %v5836_v43 }
 0x277   : > { %v5842_v11 = vpop.permute.xlu1 %5841 }
 0x278   : > { %6183 = vst.msk [vmem:[#allocation2 + $0x320] sm:$0xff] %vm6082_vm5, %v5842_v11  ;;  %v5840_v1 = vpop.permute.xlu0 %5839 }
 0x279   : > { %6182 = vst.msk [vmem:[#allocation2 + $0x318] sm:$0xff] %vm6082_vm5, %v5840_v1 }
 0x27b   : > { %v5846_v20 = vpop.permute.xlu1 %5845 }
 0x27c   : > { %6185 = vst.msk [vmem:[#allocation2 + $0x330] sm:$0xff] %vm6082_vm5, %v5846_v20  ;;  %v5844_v57 = vpop.permute.xlu0 %5843 }
 0x27d   : > { %6184 = vst.msk [vmem:[#allocation2 + $0x328] sm:$0xff] %vm6082_vm5, %v5844_v57 }
 0x27f   : > { %v5850_v40 = vpop.permute.xlu1 %5849 }
 0x280   : > { %6187 = vst.msk [vmem:[#allocation2 + $0x340] sm:$0xff] %vm6082_vm5, %v5850_v40  ;;  %v5848_v55 = vpop.permute.xlu0 %5847 }
 0x281   : > { %6186 = vst.msk [vmem:[#allocation2 + $0x338] sm:$0xff] %vm6082_vm5, %v5848_v55 }
 0x283   : > { %v5854_v22 = vpop.permute.xlu1 %5853 }
 0x284   : > { %6189 = vst.msk [vmem:[#allocation2 + $0x350] sm:$0xff] %vm6082_vm5, %v5854_v22  ;;  %v5852_v4 = vpop.permute.xlu0 %5851 }
 0x285   : > { %6188 = vst.msk [vmem:[#allocation2 + $0x348] sm:$0xff] %vm6082_vm5, %v5852_v4 }
 0x287   : > { %v5858_v50 = vpop.permute.xlu1 %5857 }
 0x288   : > { %6191 = vst.msk [vmem:[#allocation2 + $0x360] sm:$0xff] %vm6082_vm5, %v5858_v50  ;;  %v5856_v48 = vpop.permute.xlu0 %5855 }
 0x289   : > { %6190 = vst.msk [vmem:[#allocation2 + $0x358] sm:$0xff] %vm6082_vm5, %v5856_v48 }
 0x28b   : > { %v5862_v53 = vpop.permute.xlu1 %5861 }
 0x28c   : > { %6193 = vst.msk [vmem:[#allocation2 + $0x370] sm:$0xff] %vm6082_vm5, %v5862_v53  ;;  %v5860_v45 = vpop.permute.xlu0 %5859 }
 0x28d   : > { %6192 = vst.msk [vmem:[#allocation2 + $0x368] sm:$0xff] %vm6082_vm5, %v5860_v45 }
 0x28f   : > { %v5866_v14 = vpop.permute.xlu1 %5865 }
 0x290   : > { %6195 = vst.msk [vmem:[#allocation2 + $0x380] sm:$0xff] %vm6082_vm5, %v5866_v14  ;;  %v5864_v56 = vpop.permute.xlu0 %5863 }
 0x291   : > { %6194 = vst.msk [vmem:[#allocation2 + $0x378] sm:$0xff] %vm6082_vm5, %v5864_v56 }
 0x293   : > { %v5870_v37 = vpop.permute.xlu1 %5869 }
 0x294   : > { %6197 = vst.msk [vmem:[#allocation2 + $0x390] sm:$0xff] %vm6082_vm5, %v5870_v37  ;;  %v5868_v41 = vpop.permute.xlu0 %5867 }
 0x295   : > { %6196 = vst.msk [vmem:[#allocation2 + $0x388] sm:$0xff] %vm6082_vm5, %v5868_v41 }
 0x297   : > { %v5874_v63 = vpop.permute.xlu1 %5873 }
 0x298   : > { %6199 = vst.msk [vmem:[#allocation2 + $0x3a0] sm:$0xff] %vm6082_vm5, %v5874_v63  ;;  %v5872_v30 = vpop.permute.xlu0 %5871 }
 0x299   : > { %6198 = vst.msk [vmem:[#allocation2 + $0x398] sm:$0xff] %vm6082_vm5, %v5872_v30 }
 0x29b   : > { %v5878_v59 = vpop.permute.xlu1 %5877 }
 0x29c   : > { %6201 = vst.msk [vmem:[#allocation2 + $0x3b0] sm:$0xff] %vm6082_vm5, %v5878_v59  ;;  %v5876_v10 = vpop.permute.xlu0 %5875 }
 0x29d   : > { %6200 = vst.msk [vmem:[#allocation2 + $0x3a8] sm:$0xff] %vm6082_vm5, %v5876_v10 }
 0x29f   : > { %v5882_v21 = vpop.permute.xlu1 %5881 }
 0x2a0   : > { %6203 = vst.msk [vmem:[#allocation2 + $0x3c0] sm:$0xff] %vm6082_vm5, %v5882_v21  ;;  %v5880_v44 = vpop.permute.xlu0 %5879 }
 0x2a1   : > { %6202 = vst.msk [vmem:[#allocation2 + $0x3b8] sm:$0xff] %vm6082_vm5, %v5880_v44 }
 0x2a3   : > { %v5886_v29 = vpop.permute.xlu1 %5885 }
 0x2a4   : > { %6205 = vst.msk [vmem:[#allocation2 + $0x3d0] sm:$0xff] %vm6082_vm5, %v5886_v29  ;;  %v5884_v15 = vpop.permute.xlu0 %5883 }
 0x2a5   : > { %6204 = vst.msk [vmem:[#allocation2 + $0x3c8] sm:$0xff] %vm6082_vm5, %v5884_v15 }
 0x2a7   : > { %v5890_v5 = vpop.permute.xlu1 %5889 }
 0x2a8   : > { %6207 = vst.msk [vmem:[#allocation2 + $0x3e0] sm:$0xff] %vm6082_vm5, %v5890_v5  ;;  %v5888_v47 = vpop.permute.xlu0 %5887 }
 0x2a9   : > { %6206 = vst.msk [vmem:[#allocation2 + $0x3d8] sm:$0xff] %vm6082_vm5, %v5888_v47 }
 0x2ab   : > { %v5894_v28 = vpop.permute.xlu1 %5893 }
 0x2ac   : > { %6209 = vst.msk [vmem:[#allocation2 + $0x3f0] sm:$0xff] %vm6082_vm5, %v5894_v28  ;;  %v5892_v38 = vpop.permute.xlu0 %5891 }
 0x2ad   : > { %6208 = vst.msk [vmem:[#allocation2 + $0x3e8] sm:$0xff] %vm6082_vm5, %v5892_v38 }
 0x2af   : > { %v5898_v51 = vpop.permute.xlu1 %5897 }
 0x2b0   : > { %6211 = vst.msk [vmem:[#allocation2 + $0x400] sm:$0xff] %vm6082_vm5, %v5898_v51  ;;  %v5896_v3 = vpop.permute.xlu0 %5895 }
 0x2b1   : > { %6210 = vst.msk [vmem:[#allocation2 + $0x3f8] sm:$0xff] %vm6082_vm5, %v5896_v3 }
 0x2b3   : > { %v5902_v39 = vpop.permute.xlu1 %5901 }
 0x2b4   : > { %6213 = vst.msk [vmem:[#allocation2 + $0x410] sm:$0xff] %vm6082_vm5, %v5902_v39  ;;  %v5900_v35 = vpop.permute.xlu0 %5899 }
 0x2b5   : > { %6212 = vst.msk [vmem:[#allocation2 + $0x408] sm:$0xff] %vm6082_vm5, %v5900_v35 }
 0x2b7   : > { %v5906_v33 = vpop.permute.xlu1 %5905 }
 0x2b8   : > { %6215 = vst.msk [vmem:[#allocation2 + $0x420] sm:$0xff] %vm6082_vm5, %v5906_v33  ;;  %v5904_v17 = vpop.permute.xlu0 %5903 }
 0x2b9   : > { %6214 = vst.msk [vmem:[#allocation2 + $0x418] sm:$0xff] %vm6082_vm5, %v5904_v17 }
 0x2bb   : > { %v5910_v27 = vpop.permute.xlu1 %5909 }
 0x2bc   : > { %6217 = vst.msk [vmem:[#allocation2 + $0x430] sm:$0xff] %vm6082_vm5, %v5910_v27  ;;  %v5908_v23 = vpop.permute.xlu0 %5907 }
 0x2bd   : > { %6216 = vst.msk [vmem:[#allocation2 + $0x428] sm:$0xff] %vm6082_vm5, %v5908_v23 }
 0x2bf   : > { %v5914_v49 = vpop.permute.xlu1 %5913 }
 0x2c0   : > { %6219 = vst.msk [vmem:[#allocation2 + $0x440] sm:$0xff] %vm6082_vm5, %v5914_v49  ;;  %v5912_v9 = vpop.permute.xlu0 %5911 }
 0x2c1   : > { %6218 = vst.msk [vmem:[#allocation2 + $0x438] sm:$0xff] %vm6082_vm5, %v5912_v9 }
 0x2c3   : > { %v5918_v13 = vpop.permute.xlu1 %5917 }
 0x2c4   : > { %6221 = vst.msk [vmem:[#allocation2 + $0x450] sm:$0xff] %vm6082_vm5, %v5918_v13  ;;  %v5916_v0 = vpop.permute.xlu0 %5915 }
 0x2c5   : > { %6220 = vst.msk [vmem:[#allocation2 + $0x448] sm:$0xff] %vm6082_vm5, %v5916_v0 }
 0x2c7   : > { %v5922_v36 = vpop.permute.xlu1 %5921 }
 0x2c8   : > { %6223 = vst.msk [vmem:[#allocation2 + $0x460] sm:$0xff] %vm6082_vm5, %v5922_v36  ;;  %v5920_v60 = vpop.permute.xlu0 %5919 }
 0x2c9   : > { %6222 = vst.msk [vmem:[#allocation2 + $0x458] sm:$0xff] %vm6082_vm5, %v5920_v60 }
 0x2cb   : > { %v5926_v2 = vpop.permute.xlu1 %5925 }
 0x2cc   : > { %6225 = vst.msk [vmem:[#allocation2 + $0x470] sm:$0xff] %vm6082_vm5, %v5926_v2  ;;  %v5924_v18 = vpop.permute.xlu0 %5923 }
 0x2cd   : > { %6224 = vst.msk [vmem:[#allocation2 + $0x468] sm:$0xff] %vm6082_vm5, %v5924_v18 }
 0x2cf   : > { %v5930_v62 = vpop.permute.xlu1 %5929 }
 0x2d0   : > { %6227 = vst.msk [vmem:[#allocation2 + $0x480] sm:$0xff] %vm6082_vm5, %v5930_v62  ;;  %v5928_v24 = vpop.permute.xlu0 %5927 }
 0x2d1   : > { %6226 = vst.msk [vmem:[#allocation2 + $0x478] sm:$0xff] %vm6082_vm5, %v5928_v24 }
 0x2d3   : > { %v5934_v46 = vpop.permute.xlu1 %5933 }
 0x2d4   : > { %6230 = vst.msk [vmem:[#allocation2 + $0x490] sm:$0xf] %vm6229_vm7, %v5934_v46  ;;  %v5932_v31 = vpop.permute.xlu0 %5931 }
 0x2d5   : > { %6228 = vst.msk [vmem:[#allocation2 + $0x488] sm:$0xff] %vm6082_vm5, %v5932_v31 }
 0x2d6 LB: >> { %v9618_v54 = vld [vmem:[%s12829_s1] sm:$0xff]   ;;  %v9648_v25 = vmov 0.0   ;;  %v9619_v52 = vld [vmem:[%s12829_s1 + $0x8] sm:$0xff]   ;;  %s6239_s6 = smul.u32 784, %s9639_s27  ;;  %vm9649_vm8 = vmmov 0   ;;  %v9620_v61 = vld [vmem:[%s12829_s1 + $0x10] sm:$0xff]   ;;  %s9639_s27 = sphi %s12116_s27, %s6238_s27  }
 0x2d7   : >> { %8829 = vmatprep.subr.bf16.mxu0 %v9648_v25  ;;  %9103 = vmatprep.subr.bf16.mxu1 %v9648_v25  ;;  %vm6317_vm9 = vcmask 392192   ;;  %vm7039_vm10 = vcmask 785408   ;;  %s6238_s27 = sadd.s32 1, %s9639_s27  }
 0x2d8   : >> { %8830 = vmatpush3.bf16.msra.mxu0 %v9618_v54  ;;  %9106 = vmatpush3.bf16.msra.mxu1 %v9618_v54  ;;  %s12134_s7 = sshra.s32 %s6239_s6, 4  ;;  %p6235_p4 = scmp.ge.s32.totalorder %s6238_s27, 3  }
 0x2d9   : >> { %8831 = vmatprep.subr.bf16.mxu0 %v9648_v25  ;;  %9104 = vmatprep.subr.bf16.mxu1 %v9648_v25  ;;  %s8596_s8 = sshll.u32 %s12134_s7, 3  ;;  %s12630_s16 = smov (%p6235_p4), 0  }
 0x2da   : >> { %8835 = vmatprep.mubr.msk.bf16.mxu0 %vm9649_vm8, %v9648_v25  ;;  %8935 = vmatprep.mubr.msk.bf16.mxu1 %vm9649_vm8, %v9648_v25  ;;  %s12146_s11 = scalar_lea.vmem [#allocation2], %s8596_s8  ;;  %s12342_s12 = scalar_lea.vmem [#allocation3], %s8596_s8 }
 0x2dc   : >> { %8832 = vmatpush3.bf16.msra.mxu0 %v9619_v52  ;;  %9107 = vmatpush3.bf16.msra.mxu1 %v9619_v52  ;;  %v6244_v7 = vld [vmem:[%s12146_s11] sm:$0xff]  ;;  %v6269_v19 = vld [vmem:[%s12146_s11 + $0xc8] sm:$0xff]  ;;  %v6270_v32 = vld [vmem:[%s12146_s11 + $0xd0] sm:$0xff] }
 0x2dd   : >> { %8833 = vmatprep.subr.bf16.mxu0 %v9648_v25  ;;  %9105 = vmatprep.subr.bf16.mxu1 %v9648_v25  ;;  %v6245_v26 = vld [vmem:[%s12146_s11 + $0x8] sm:$0xff]  ;;  %v6246_v34 = vld [vmem:[%s12146_s11 + $0x10] sm:$0xff]  ;;  %v6271_v12 = vld [vmem:[%s12146_s11 + $0xd8] sm:$0xff] }
 0x2de   : >> { %v6247_v8 = vld [vmem:[%s12146_s11 + $0x18] sm:$0xff]  ;;  %v6272_v6 = vld [vmem:[%s12146_s11 + $0xe0] sm:$0xff]  ;;  %v6273_v16 = vld [vmem:[%s12146_s11 + $0xe8] sm:$0xff] }
 0x2df   : >> { %v6248_v42 = vld [vmem:[%s12146_s11 + $0x20] sm:$0xff]  ;;  %v6249_v58 = vld [vmem:[%s12146_s11 + $0x28] sm:$0xff]  ;;  %v6274_v43 = vld [vmem:[%s12146_s11 + $0xf0] sm:$0xff] }
 0x2e0   : >> { %8834 = vmatpush3.bf16.msra.mxu0 %v9620_v61  ;;  %9108 = vmatpush3.bf16.msra.mxu1 %v9620_v61  ;;  %v6250_v11 = vld [vmem:[%s12146_s11 + $0x30] sm:$0xff]  ;;  %v6275_v1 = vld [vmem:[%s12146_s11 + $0xf8] sm:$0xff]  ;;  %v6276_v57 = vld [vmem:[%s12146_s11 + $0x100] sm:$0xff] }
 0x2e1   : >> { %v6251_v20 = vld [vmem:[%s12146_s11 + $0x38] sm:$0xff]  ;;  %v6252_v40 = vld [vmem:[%s12146_s11 + $0x40] sm:$0xff]  ;;  %v6277_v55 = vld [vmem:[%s12146_s11 + $0x108] sm:$0xff] }
 0x2e2   : >> { %v6253_v22 = vld [vmem:[%s12146_s11 + $0x48] sm:$0xff]  ;;  %v6278_v4 = vld [vmem:[%s12146_s11 + $0x110] sm:$0xff]  ;;  %v6279_v48 = vld [vmem:[%s12146_s11 + $0x118] sm:$0xff] }
 0x2e3   : >> { %8836 = vmatmul.mubr.msk.bf16.vlgmr.msra.gmra.mrb[0].mxu0 %vm6317_vm9, %v6244_v7  ;;  %8936 = vmatmul.mubr.msk.bf16.vlgmr.msra.gmra.mrb[0].mxu1 %vm6317_vm9, %v6269_v19  ;;  %v6254_v50 = vld [vmem:[%s12146_s11 + $0x50] sm:$0xff]  ;;  %v6255_v53 = vld [vmem:[%s12146_s11 + $0x58] sm:$0xff]  ;;  %v6280_v45 = vld [vmem:[%s12146_s11 + $0x120] sm:$0xff] }
 0x2e4   : >> { %8839 = vmatprep.mubr.msk.bf16.mxu0 %vm9649_vm8, %v9648_v25  ;;  %8939 = vmatprep.mubr.msk.bf16.mxu1 %vm9649_vm8, %v9648_v25  ;;  %v6256_v14 = vld [vmem:[%s12146_s11 + $0x60] sm:$0xff]  ;;  %v6281_v56 = vld [vmem:[%s12146_s11 + $0x128] sm:$0xff]  ;;  %v6282_v41 = vld [vmem:[%s12146_s11 + $0x130] sm:$0xff] }
 0x2e5   : >> { %v6257_v37 = vld [vmem:[%s12146_s11 + $0x68] sm:$0xff]  ;;  %v6258_v63 = vld [vmem:[%s12146_s11 + $0x70] sm:$0xff]  ;;  %v6283_v30 = vld [vmem:[%s12146_s11 + $0x138] sm:$0xff] }
 0x2e6   : >> { %v6259_v59 = vld [vmem:[%s12146_s11 + $0x78] sm:$0xff]  ;;  %v6284_v10 = vld [vmem:[%s12146_s11 + $0x140] sm:$0xff]  ;;  %v6285_v44 = vld [vmem:[%s12146_s11 + $0x148] sm:$0xff] }
 0x2e7   : >> { %v6260_v21 = vld [vmem:[%s12146_s11 + $0x80] sm:$0xff]  ;;  %v6261_v29 = vld [vmem:[%s12146_s11 + $0x88] sm:$0xff]  ;;  %v6286_v15 = vld [vmem:[%s12146_s11 + $0x150] sm:$0xff] }
 0x2e8   : >> { %v6262_v5 = vld [vmem:[%s12146_s11 + $0x90] sm:$0xff]  ;;  %v6287_v47 = vld [vmem:[%s12146_s11 + $0x158] sm:$0xff]  ;;  %v6288_v38 = vld [vmem:[%s12146_s11 + $0x160] sm:$0xff] }
 0x2e9   : >> { %v6263_v28 = vld [vmem:[%s12146_s11 + $0x98] sm:$0xff]  ;;  %v6264_v51 = vld [vmem:[%s12146_s11 + $0xa0] sm:$0xff]  ;;  %v6289_v3 = vld [vmem:[%s12146_s11 + $0x168] sm:$0xff] }
 0x2ea   : >> { %v6265_v39 = vld [vmem:[%s12146_s11 + $0xa8] sm:$0xff]  ;;  %v6290_v35 = vld [vmem:[%s12146_s11 + $0x170] sm:$0xff]  ;;  %v6291_v17 = vld [vmem:[%s12146_s11 + $0x178] sm:$0xff] }
 0x2eb   : >> { %8840 = vmatmul.mubr.msk.bf16.gmra.mrb[4].mxu0 %vm6317_vm9, %v6245_v26  ;;  %8940 = vmatmul.mubr.msk.bf16.gmra.mrb[4].mxu1 %vm6317_vm9, %v6270_v32  ;;  %v6266_v33 = vld [vmem:[%s12146_s11 + $0xb0] sm:$0xff]  ;;  %v6267_v27 = vld [vmem:[%s12146_s11 + $0xb8] sm:$0xff]  ;;  %v6292_v23 = vld [vmem:[%s12146_s11 + $0x180] sm:$0xff] }
 0x2ec   : >> { %8843 = vmatprep.mubr.msk.bf16.mxu0 %vm9649_vm8, %v9648_v25  ;;  %8943 = vmatprep.mubr.msk.bf16.mxu1 %vm9649_vm8, %v9648_v25  ;;  %v6268_v49 = vld [vmem:[%s12146_s11 + $0xc0] sm:$0xff] }
 0x2f3   : >> { %8844 = vmatmul.mubr.msk.bf16.gmra.mrb[8].mxu0 %vm6317_vm9, %v6246_v34  ;;  %8944 = vmatmul.mubr.msk.bf16.gmra.mrb[8].mxu1 %vm6317_vm9, %v6271_v12 }
 0x2f4   : >> { %8847 = vmatprep.mubr.msk.bf16.mxu0 %vm9649_vm8, %v9648_v25  ;;  %8947 = vmatprep.mubr.msk.bf16.mxu1 %vm9649_vm8, %v9648_v25 }
 0x2fb   : >> { %8848 = vmatmul.mubr.msk.bf16.gmra.mrb[12].mxu0 %vm6317_vm9, %v6247_v8  ;;  %8948 = vmatmul.mubr.msk.bf16.gmra.mrb[12].mxu1 %vm6317_vm9, %v6272_v6 }
 0x2fc   : >> { %8851 = vmatprep.mubr.msk.bf16.mxu0 %vm9649_vm8, %v9648_v25  ;;  %8951 = vmatprep.mubr.msk.bf16.mxu1 %vm9649_vm8, %v9648_v25 }
 0x303   : >> { %8852 = vmatmul.mubr.msk.bf16.gmra.mrb[16].mxu0 %vm6317_vm9, %v6248_v42  ;;  %8952 = vmatmul.mubr.msk.bf16.gmra.mrb[16].mxu1 %vm6317_vm9, %v6273_v16 }
 0x304   : >> { %8855 = vmatprep.mubr.msk.bf16.mxu0 %vm9649_vm8, %v9648_v25  ;;  %8955 = vmatprep.mubr.msk.bf16.mxu1 %vm9649_vm8, %v9648_v25 }
 0x30b   : >> { %8856 = vmatmul.mubr.msk.bf16.gmra.mrb[20].mxu0 %vm6317_vm9, %v6249_v58  ;;  %8956 = vmatmul.mubr.msk.bf16.gmra.mrb[20].mxu1 %vm6317_vm9, %v6274_v43 }
 0x30c   : >> { %8859 = vmatprep.mubr.msk.bf16.mxu0 %vm9649_vm8, %v9648_v25  ;;  %8959 = vmatprep.mubr.msk.bf16.mxu1 %vm9649_vm8, %v9648_v25 }
 0x313   : >> { %8860 = vmatmul.mubr.msk.bf16.gmra.mrb[24].mxu0 %vm6317_vm9, %v6250_v11  ;;  %8960 = vmatmul.mubr.msk.bf16.gmra.mrb[24].mxu1 %vm6317_vm9, %v6275_v1 }
 0x314   : >> { %8863 = vmatprep.mubr.msk.bf16.mxu0 %vm9649_vm8, %v9648_v25  ;;  %8963 = vmatprep.mubr.msk.bf16.mxu1 %vm9649_vm8, %v9648_v25 }
 0x31b   : >> { %8864 = vmatmul.mubr.msk.bf16.gmra.mrb[28].mxu0 %vm6317_vm9, %v6251_v20  ;;  %8964 = vmatmul.mubr.msk.bf16.gmra.mrb[28].mxu1 %vm6317_vm9, %v6276_v57 }
 0x31c   : >> { %8867 = vmatprep.mubr.msk.bf16.mxu0 %vm9649_vm8, %v9648_v25  ;;  %8967 = vmatprep.mubr.msk.bf16.mxu1 %vm9649_vm8, %v9648_v25 }
 0x323   : >> { %8868 = vmatmul.mubr.msk.bf16.gmra.mrb[32].mxu0 %vm6317_vm9, %v6252_v40  ;;  %8968 = vmatmul.mubr.msk.bf16.gmra.mrb[32].mxu1 %vm6317_vm9, %v6277_v55 }
 0x324   : >> { %8871 = vmatprep.mubr.msk.bf16.mxu0 %vm9649_vm8, %v9648_v25  ;;  %8971 = vmatprep.mubr.msk.bf16.mxu1 %vm9649_vm8, %v9648_v25 }
 0x32b   : >> { %8872 = vmatmul.mubr.msk.bf16.gmra.mrb[36].mxu0 %vm6317_vm9, %v6253_v22  ;;  %8972 = vmatmul.mubr.msk.bf16.gmra.mrb[36].mxu1 %vm6317_vm9, %v6278_v4 }
 0x32c   : >> { %8875 = vmatprep.mubr.msk.bf16.mxu0 %vm9649_vm8, %v9648_v25  ;;  %8975 = vmatprep.mubr.msk.bf16.mxu1 %vm9649_vm8, %v9648_v25 }
 0x333   : >> { %8876 = vmatmul.mubr.msk.bf16.gmra.mrb[40].mxu0 %vm6317_vm9, %v6254_v50  ;;  %8976 = vmatmul.mubr.msk.bf16.gmra.mrb[40].mxu1 %vm6317_vm9, %v6279_v48 }
 0x334   : >> { %8879 = vmatprep.mubr.msk.bf16.mxu0 %vm9649_vm8, %v9648_v25  ;;  %8979 = vmatprep.mubr.msk.bf16.mxu1 %vm9649_vm8, %v9648_v25 }
 0x33b   : >> { %8880 = vmatmul.mubr.msk.bf16.gmra.mrb[44].mxu0 %vm6317_vm9, %v6255_v53  ;;  %8980 = vmatmul.mubr.msk.bf16.gmra.mrb[44].mxu1 %vm6317_vm9, %v6280_v45 }
 0x33c   : >> { %8883 = vmatprep.mubr.msk.bf16.mxu0 %vm9649_vm8, %v9648_v25  ;;  %8983 = vmatprep.mubr.msk.bf16.mxu1 %vm9649_vm8, %v9648_v25 }
 0x343   : >> { %8884 = vmatmul.mubr.msk.bf16.gmra.mrb[48].mxu0 %vm6317_vm9, %v6256_v14  ;;  %8984 = vmatmul.mubr.msk.bf16.gmra.mrb[48].mxu1 %vm6317_vm9, %v6281_v56 }
 0x344   : >> { %8887 = vmatprep.mubr.msk.bf16.mxu0 %vm9649_vm8, %v9648_v25  ;;  %8987 = vmatprep.mubr.msk.bf16.mxu1 %vm9649_vm8, %v9648_v25 }
 0x34b   : >> { %8888 = vmatmul.mubr.msk.bf16.gmra.mrb[52].mxu0 %vm6317_vm9, %v6257_v37  ;;  %8988 = vmatmul.mubr.msk.bf16.gmra.mrb[52].mxu1 %vm6317_vm9, %v6282_v41 }
 0x34c   : >> { %8891 = vmatprep.mubr.msk.bf16.mxu0 %vm9649_vm8, %v9648_v25  ;;  %8991 = vmatprep.mubr.msk.bf16.mxu1 %vm9649_vm8, %v9648_v25 }
 0x353   : >> { %8892 = vmatmul.mubr.msk.bf16.gmra.mrb[56].mxu0 %vm6317_vm9, %v6258_v63  ;;  %8992 = vmatmul.mubr.msk.bf16.gmra.mrb[56].mxu1 %vm6317_vm9, %v6283_v30 }
 0x354   : >> { %8895 = vmatprep.mubr.msk.bf16.mxu0 %vm9649_vm8, %v9648_v25  ;;  %8995 = vmatprep.mubr.msk.bf16.mxu1 %vm9649_vm8, %v9648_v25 }
 0x35b   : >> { %8896 = vmatmul.mubr.msk.bf16.gmra.mrb[60].mxu0 %vm6317_vm9, %v6259_v59  ;;  %8996 = vmatmul.mubr.msk.bf16.gmra.mrb[60].mxu1 %vm6317_vm9, %v6284_v10 }
 0x35c   : >> { %8899 = vmatprep.mubr.msk.bf16.mxu0 %vm9649_vm8, %v9648_v25  ;;  %8999 = vmatprep.mubr.msk.bf16.mxu1 %vm9649_vm8, %v9648_v25 }
 0x363   : >> { %8900 = vmatmul.mubr.msk.bf16.gmra.mrb[64].mxu0 %vm6317_vm9, %v6260_v21  ;;  %9000 = vmatmul.mubr.msk.bf16.gmra.mrb[64].mxu1 %vm6317_vm9, %v6285_v44 }
 0x364   : >> { %8903 = vmatprep.mubr.msk.bf16.mxu0 %vm9649_vm8, %v9648_v25  ;;  %9003 = vmatprep.mubr.msk.bf16.mxu1 %vm9649_vm8, %v9648_v25 }
 0x36b   : >> { %8904 = vmatmul.mubr.msk.bf16.gmra.mrb[68].mxu0 %vm6317_vm9, %v6261_v29  ;;  %9004 = vmatmul.mubr.msk.bf16.gmra.mrb[68].mxu1 %vm6317_vm9, %v6286_v15 }
 0x36c   : >> { %8907 = vmatprep.mubr.msk.bf16.mxu0 %vm9649_vm8, %v9648_v25  ;;  %9007 = vmatprep.mubr.msk.bf16.mxu1 %vm9649_vm8, %v9648_v25 }
 0x373   : >> { %8908 = vmatmul.mubr.msk.bf16.gmra.mrb[72].mxu0 %vm6317_vm9, %v6262_v5  ;;  %9008 = vmatmul.mubr.msk.bf16.gmra.mrb[72].mxu1 %vm6317_vm9, %v6287_v47 }
 0x374   : >> { %8911 = vmatprep.mubr.msk.bf16.mxu0 %vm9649_vm8, %v9648_v25  ;;  %9011 = vmatprep.mubr.msk.bf16.mxu1 %vm9649_vm8, %v9648_v25 }
 0x37b   : >> { %8912 = vmatmul.mubr.msk.bf16.gmra.mrb[76].mxu0 %vm6317_vm9, %v6263_v28  ;;  %9012 = vmatmul.mubr.msk.bf16.gmra.mrb[76].mxu1 %vm6317_vm9, %v6288_v38 }
 0x37c   : >> { %8915 = vmatprep.mubr.msk.bf16.mxu0 %vm9649_vm8, %v9648_v25  ;;  %9015 = vmatprep.mubr.msk.bf16.mxu1 %vm9649_vm8, %v9648_v25 }
 0x383   : >> { %8916 = vmatmul.mubr.msk.bf16.gmra.mrb[80].mxu0 %vm6317_vm9, %v6264_v51  ;;  %9016 = vmatmul.mubr.msk.bf16.gmra.mrb[80].mxu1 %vm6317_vm9, %v6289_v3 }
 0x384   : >> { %8919 = vmatprep.mubr.msk.bf16.mxu0 %vm9649_vm8, %v9648_v25  ;;  %9019 = vmatprep.mubr.msk.bf16.mxu1 %vm9649_vm8, %v9648_v25 }
 0x38b   : >> { %8920 = vmatmul.mubr.msk.bf16.gmra.mrb[84].mxu0 %vm6317_vm9, %v6265_v39  ;;  %9020 = vmatmul.mubr.msk.bf16.gmra.mrb[84].mxu1 %vm6317_vm9, %v6290_v35 }
 0x38c   : >> { %8923 = vmatprep.mubr.msk.bf16.mxu0 %vm9649_vm8, %v9648_v25  ;;  %9023 = vmatprep.mubr.msk.bf16.mxu1 %vm9649_vm8, %v9648_v25 }
 0x393   : >> { %8924 = vmatmul.mubr.msk.bf16.gmra.mrb[88].mxu0 %vm6317_vm9, %v6266_v33  ;;  %9024 = vmatmul.mubr.msk.bf16.gmra.mrb[88].mxu1 %vm6317_vm9, %v6291_v17 }
 0x394   : >> { %8927 = vmatprep.mubr.msk.bf16.mxu0 %vm9649_vm8, %v9648_v25  ;;  %9027 = vmatprep.mubr.msk.bf16.mxu1 %vm9649_vm8, %v9648_v25 }
 0x39b   : >> { %8928 = vmatmul.mubr.msk.bf16.gmra.mrb[92].mxu0 %vm6317_vm9, %v6267_v27  ;;  %9028 = vmatmul.mubr.msk.bf16.gmra.mrb[92].mxu1 %vm6317_vm9, %v6292_v23 }
 0x39c   : >> { %8931 = vmatprep.mubr.msk.bf16.mxu0 %vm9649_vm8, %v9648_v25 }
 0x3a3   : >> { %8932 = vmatmul.mubr.msk.bf16.gmra.mrb[96].mxu0 %vm6317_vm9, %v6268_v49 }
 0x3b6   : >> { %v6499_v9 = vpop.f32.mrb[0].mxu0  ;;  %v6699_v13 = vpop.f32.mrb[0].mxu1 }
 0x3b7   : >> { %v8837_v0 = vpop.f32.mrb[1].mxu0  ;;  %v6940_v36 = vmax.f32 %v6699_v13, 0.0  ;;  %v8937_v60 = vpop.f32.mrb[1].mxu1  ;;  %v6890_v62 = vmax.f32 %v6499_v9, 0.0 }
 0x3b8   : >> { %v6502_v2 = vpop.f32.mrb[2].mxu0  ;;  %v6702_v18 = vpop.f32.mrb[2].mxu1 }
 0x3b9   : >> { %v6891_v24 = vmax.f32 %v6502_v2, 0.0  ;;  %v8838_v46 = vpop.f32.mrb[3].mxu0  ;;  %v6941_v31 = vmax.f32 %v6702_v18, 0.0  ;;  %v8938_v54 = vpop.f32.mrb[3].mxu1 }
 0x3bb   : >> { %v6988_v52 = vpack.c.bf16 %v6891_v24, %v6890_v62  ;;  %v7013_v61 = vpack.c.bf16 %v6941_v31, %v6940_v36 }
 0x3bd   : >> { %7040 = vst.msk [vmem:[%s12342_s12] sm:$0xff] %vm7039_vm10, %v6988_v52  ;;  %7065 = vst.msk [vmem:[%s12342_s12 + $0xc8] sm:$0xff] %vm7039_vm10, %v7013_v61 }
 0x3be   : >> { %v6507_v25 = vpop.f32.mrb[4].mxu0  ;;  %v6707_v7 = vpop.f32.mrb[4].mxu1 }
 0x3bf   : >> { %v8841_v19 = vpop.f32.mrb[5].mxu0  ;;  %v6942_v26 = vmax.f32 %v6707_v7, 0.0  ;;  %v8941_v32 = vpop.f32.mrb[5].mxu1  ;;  %v6892_v8 = vmax.f32 %v6507_v25, 0.0 }
 0x3c0   : >> { %v6510_v34 = vpop.f32.mrb[6].mxu0  ;;  %v6710_v12 = vpop.f32.mrb[6].mxu1 }
 0x3c1   : >> { %v6893_v6 = vmax.f32 %v6510_v34, 0.0  ;;  %v8842_v42 = vpop.f32.mrb[7].mxu0  ;;  %v6943_v16 = vmax.f32 %v6710_v12, 0.0  ;;  %v8942_v58 = vpop.f32.mrb[7].mxu1 }
 0x3c3   : >> { %v6989_v43 = vpack.c.bf16 %v6893_v6, %v6892_v8  ;;  %v7014_v11 = vpack.c.bf16 %v6943_v16, %v6942_v26 }
 0x3c5   : >> { %7041 = vst.msk [vmem:[%s12342_s12 + $0x8] sm:$0xff] %vm7039_vm10, %v6989_v43  ;;  %7066 = vst.msk [vmem:[%s12342_s12 + $0xd0] sm:$0xff] %vm7039_vm10, %v7014_v11 }
 0x3c6   : >> { %v6515_v1 = vpop.f32.mrb[8].mxu0  ;;  %v6715_v20 = vpop.f32.mrb[8].mxu1 }
 0x3c7   : >> { %v8845_v57 = vpop.f32.mrb[9].mxu0  ;;  %v6944_v40 = vmax.f32 %v6715_v20, 0.0  ;;  %v8945_v55 = vpop.f32.mrb[9].mxu1  ;;  %v6894_v50 = vmax.f32 %v6515_v1, 0.0 }
 0x3c8   : >> { %v6518_v22 = vpop.f32.mrb[10].mxu0  ;;  %v6718_v4 = vpop.f32.mrb[10].mxu1 }
 0x3c9   : >> { %v6895_v48 = vmax.f32 %v6518_v22, 0.0  ;;  %v8846_v53 = vpop.f32.mrb[11].mxu0  ;;  %v6945_v45 = vmax.f32 %v6718_v4, 0.0  ;;  %v8946_v14 = vpop.f32.mrb[11].mxu1 }
 0x3cb   : >> { %v6990_v56 = vpack.c.bf16 %v6895_v48, %v6894_v50  ;;  %v7015_v37 = vpack.c.bf16 %v6945_v45, %v6944_v40 }
 0x3cd   : >> { %7042 = vst.msk [vmem:[%s12342_s12 + $0x10] sm:$0xff] %vm7039_vm10, %v6990_v56  ;;  %7067 = vst.msk [vmem:[%s12342_s12 + $0xd8] sm:$0xff] %vm7039_vm10, %v7015_v37 }
 0x3ce   : >> { %v6523_v41 = vpop.f32.mrb[12].mxu0  ;;  %v6723_v63 = vpop.f32.mrb[12].mxu1 }
 0x3cf   : >> { %v8849_v30 = vpop.f32.mrb[13].mxu0  ;;  %v6946_v59 = vmax.f32 %v6723_v63, 0.0  ;;  %v8949_v10 = vpop.f32.mrb[13].mxu1  ;;  %v6896_v29 = vmax.f32 %v6523_v41, 0.0 }
 0x3d0   : >> { %v6526_v21 = vpop.f32.mrb[14].mxu0  ;;  %v6726_v44 = vpop.f32.mrb[14].mxu1 }
 0x3d1   : >> { %v6897_v15 = vmax.f32 %v6526_v21, 0.0  ;;  %v8850_v5 = vpop.f32.mrb[15].mxu0  ;;  %v6947_v47 = vmax.f32 %v6726_v44, 0.0  ;;  %v8950_v28 = vpop.f32.mrb[15].mxu1 }
 0x3d3   : >> { %v6991_v38 = vpack.c.bf16 %v6897_v15, %v6896_v29  ;;  %v7016_v51 = vpack.c.bf16 %v6947_v47, %v6946_v59 }
 0x3d5   : >> { %7043 = vst.msk [vmem:[%s12342_s12 + $0x18] sm:$0xff] %vm7039_vm10, %v6991_v38  ;;  %7068 = vst.msk [vmem:[%s12342_s12 + $0xe0] sm:$0xff] %vm7039_vm10, %v7016_v51 }
 0x3d6   : >> { %v6531_v3 = vpop.f32.mrb[16].mxu0  ;;  %v6731_v39 = vpop.f32.mrb[16].mxu1 }
 0x3d7   : >> { %v8853_v35 = vpop.f32.mrb[17].mxu0  ;;  %v6948_v33 = vmax.f32 %v6731_v39, 0.0  ;;  %v8953_v17 = vpop.f32.mrb[17].mxu1  ;;  %v6898_v49 = vmax.f32 %v6531_v3, 0.0 }
 0x3d8   : >> { %v6534_v27 = vpop.f32.mrb[18].mxu0  ;;  %v6734_v23 = vpop.f32.mrb[18].mxu1 }
 0x3d9   : >> { %v6899_v9 = vmax.f32 %v6534_v27, 0.0  ;;  %v8854_v13 = vpop.f32.mrb[19].mxu0  ;;  %v6949_v0 = vmax.f32 %v6734_v23, 0.0  ;;  %v8954_v36 = vpop.f32.mrb[19].mxu1 }
 0x3db   : >> { %v6992_v60 = vpack.c.bf16 %v6899_v9, %v6898_v49  ;;  %v7017_v2 = vpack.c.bf16 %v6949_v0, %v6948_v33 }
 0x3dd   : >> { %7044 = vst.msk [vmem:[%s12342_s12 + $0x20] sm:$0xff] %vm7039_vm10, %v6992_v60  ;;  %7069 = vst.msk [vmem:[%s12342_s12 + $0xe8] sm:$0xff] %vm7039_vm10, %v7017_v2 }
 0x3de   : >> { %v6539_v18 = vpop.f32.mrb[20].mxu0  ;;  %v6739_v62 = vpop.f32.mrb[20].mxu1 }
 0x3df   : >> { %v8857_v24 = vpop.f32.mrb[21].mxu0  ;;  %v6950_v46 = vmax.f32 %v6739_v62, 0.0  ;;  %v8957_v31 = vpop.f32.mrb[21].mxu1  ;;  %v6900_v61 = vmax.f32 %v6539_v18, 0.0 }
 0x3e0   : >> { %v6542_v54 = vpop.f32.mrb[22].mxu0  ;;  %v6742_v52 = vpop.f32.mrb[22].mxu1 }
 0x3e1   : >> { %v6901_v25 = vmax.f32 %v6542_v54, 0.0  ;;  %v8858_v7 = vpop.f32.mrb[23].mxu0  ;;  %v6951_v19 = vmax.f32 %v6742_v52, 0.0  ;;  %v8958_v26 = vpop.f32.mrb[23].mxu1 }
 0x3e3   : >> { %v6993_v32 = vpack.c.bf16 %v6901_v25, %v6900_v61  ;;  %v7018_v34 = vpack.c.bf16 %v6951_v19, %v6950_v46 }
 0x3e5   : >> { %7045 = vst.msk [vmem:[%s12342_s12 + $0x28] sm:$0xff] %vm7039_vm10, %v6993_v32  ;;  %7070 = vst.msk [vmem:[%s12342_s12 + $0xf0] sm:$0xff] %vm7039_vm10, %v7018_v34 }
 0x3e6   : >> { %v6547_v12 = vpop.f32.mrb[24].mxu0  ;;  %v6747_v8 = vpop.f32.mrb[24].mxu1 }
 0x3e7   : >> { %v8861_v6 = vpop.f32.mrb[25].mxu0  ;;  %v6952_v42 = vmax.f32 %v6747_v8, 0.0  ;;  %v8961_v16 = vpop.f32.mrb[25].mxu1  ;;  %v6902_v11 = vmax.f32 %v6547_v12, 0.0 }
 0x3e8   : >> { %v6550_v58 = vpop.f32.mrb[26].mxu0  ;;  %v6750_v43 = vpop.f32.mrb[26].mxu1 }
 0x3e9   : >> { %v6903_v1 = vmax.f32 %v6550_v58, 0.0  ;;  %v8862_v20 = vpop.f32.mrb[27].mxu0  ;;  %v6953_v57 = vmax.f32 %v6750_v43, 0.0  ;;  %v8962_v40 = vpop.f32.mrb[27].mxu1 }
 0x3eb   : >> { %v6994_v55 = vpack.c.bf16 %v6903_v1, %v6902_v11  ;;  %v7019_v22 = vpack.c.bf16 %v6953_v57, %v6952_v42 }
 0x3ed   : >> { %7046 = vst.msk [vmem:[%s12342_s12 + $0x30] sm:$0xff] %vm7039_vm10, %v6994_v55  ;;  %7071 = vst.msk [vmem:[%s12342_s12 + $0xf8] sm:$0xff] %vm7039_vm10, %v7019_v22 }
 0x3ee   : >> { %v6555_v4 = vpop.f32.mrb[28].mxu0  ;;  %v6755_v50 = vpop.f32.mrb[28].mxu1 }
 0x3ef   : >> { %v8865_v48 = vpop.f32.mrb[29].mxu0  ;;  %v6954_v53 = vmax.f32 %v6755_v50, 0.0  ;;  %v8965_v45 = vpop.f32.mrb[29].mxu1  ;;  %v6904_v37 = vmax.f32 %v6555_v4, 0.0 }
 0x3f0   : >> { %v6558_v14 = vpop.f32.mrb[30].mxu0  ;;  %v6758_v56 = vpop.f32.mrb[30].mxu1 }
 0x3f1   : >> { %v6905_v41 = vmax.f32 %v6558_v14, 0.0  ;;  %v8866_v63 = vpop.f32.mrb[31].mxu0  ;;  %v6955_v30 = vmax.f32 %v6758_v56, 0.0  ;;  %v8966_v59 = vpop.f32.mrb[31].mxu1 }
 0x3f3   : >> { %v6995_v10 = vpack.c.bf16 %v6905_v41, %v6904_v37  ;;  %v7020_v21 = vpack.c.bf16 %v6955_v30, %v6954_v53 }
 0x3f5   : >> { %7047 = vst.msk [vmem:[%s12342_s12 + $0x38] sm:$0xff] %vm7039_vm10, %v6995_v10  ;;  %7072 = vst.msk [vmem:[%s12342_s12 + $0x100] sm:$0xff] %vm7039_vm10, %v7020_v21 }
 0x3f6   : >> { %v6563_v44 = vpop.f32.mrb[32].mxu0  ;;  %v6763_v29 = vpop.f32.mrb[32].mxu1 }
 0x3f7   : >> { %v8869_v15 = vpop.f32.mrb[33].mxu0  ;;  %v6956_v5 = vmax.f32 %v6763_v29, 0.0  ;;  %v8969_v47 = vpop.f32.mrb[33].mxu1  ;;  %v6906_v51 = vmax.f32 %v6563_v44, 0.0 }
 0x3f8   : >> { %v6566_v28 = vpop.f32.mrb[34].mxu0  ;;  %v6766_v38 = vpop.f32.mrb[34].mxu1 }
 0x3f9   : >> { %v6907_v3 = vmax.f32 %v6566_v28, 0.0  ;;  %v8870_v39 = vpop.f32.mrb[35].mxu0  ;;  %v6957_v35 = vmax.f32 %v6766_v38, 0.0  ;;  %v8970_v33 = vpop.f32.mrb[35].mxu1 }
 0x3fb   : >> { %v6996_v17 = vpack.c.bf16 %v6907_v3, %v6906_v51  ;;  %v7021_v27 = vpack.c.bf16 %v6957_v35, %v6956_v5 }
 0x3fd   : >> { %7048 = vst.msk [vmem:[%s12342_s12 + $0x40] sm:$0xff] %vm7039_vm10, %v6996_v17  ;;  %7073 = vst.msk [vmem:[%s12342_s12 + $0x108] sm:$0xff] %vm7039_vm10, %v7021_v27 }
 0x3fe   : >> { %v6571_v23 = vpop.f32.mrb[36].mxu0  ;;  %v6771_v49 = vpop.f32.mrb[36].mxu1 }
 0x3ff   : >> { %v8873_v9 = vpop.f32.mrb[37].mxu0  ;;  %v6958_v13 = vmax.f32 %v6771_v49, 0.0  ;;  %v8973_v0 = vpop.f32.mrb[37].mxu1  ;;  %v6908_v2 = vmax.f32 %v6571_v23, 0.0 }
 0x400   : >> { %v6574_v36 = vpop.f32.mrb[38].mxu0  ;;  %v6774_v60 = vpop.f32.mrb[38].mxu1 }
 0x401   : >> { %v6909_v18 = vmax.f32 %v6574_v36, 0.0  ;;  %v8874_v62 = vpop.f32.mrb[39].mxu0  ;;  %v6959_v24 = vmax.f32 %v6774_v60, 0.0  ;;  %v8974_v46 = vpop.f32.mrb[39].mxu1 }
 0x403   : >> { %v6997_v31 = vpack.c.bf16 %v6909_v18, %v6908_v2  ;;  %v7022_v54 = vpack.c.bf16 %v6959_v24, %v6958_v13 }
 0x405   : >> { %7049 = vst.msk [vmem:[%s12342_s12 + $0x48] sm:$0xff] %vm7039_vm10, %v6997_v31  ;;  %7074 = vst.msk [vmem:[%s12342_s12 + $0x110] sm:$0xff] %vm7039_vm10, %v7022_v54 }
 0x406   : >> { %v6579_v52 = vpop.f32.mrb[40].mxu0  ;;  %v6779_v61 = vpop.f32.mrb[40].mxu1 }
 0x407   : >> { %v8877_v25 = vpop.f32.mrb[41].mxu0  ;;  %v6960_v7 = vmax.f32 %v6779_v61, 0.0  ;;  %v8977_v19 = vpop.f32.mrb[41].mxu1  ;;  %v6910_v34 = vmax.f32 %v6579_v52, 0.0 }
 0x408   : >> { %v6582_v26 = vpop.f32.mrb[42].mxu0  ;;  %v6782_v32 = vpop.f32.mrb[42].mxu1 }
 0x409   : >> { %v6911_v12 = vmax.f32 %v6582_v26, 0.0  ;;  %v8878_v8 = vpop.f32.mrb[43].mxu0  ;;  %v6961_v6 = vmax.f32 %v6782_v32, 0.0  ;;  %v8978_v42 = vpop.f32.mrb[43].mxu1 }
 0x40b   : >> { %v6998_v16 = vpack.c.bf16 %v6911_v12, %v6910_v34  ;;  %v7023_v58 = vpack.c.bf16 %v6961_v6, %v6960_v7 }
 0x40d   : >> { %7050 = vst.msk [vmem:[%s12342_s12 + $0x50] sm:$0xff] %vm7039_vm10, %v6998_v16  ;;  %7075 = vst.msk [vmem:[%s12342_s12 + $0x118] sm:$0xff] %vm7039_vm10, %v7023_v58 }
 0x40e   : >> { %v6587_v43 = vpop.f32.mrb[44].mxu0  ;;  %v6787_v11 = vpop.f32.mrb[44].mxu1 }
 0x40f   : >> { %v8881_v1 = vpop.f32.mrb[45].mxu0  ;;  %v6962_v20 = vmax.f32 %v6787_v11, 0.0  ;;  %v8981_v57 = vpop.f32.mrb[45].mxu1  ;;  %v6912_v22 = vmax.f32 %v6587_v43, 0.0 }
 0x410   : >> { %v6590_v40 = vpop.f32.mrb[46].mxu0  ;;  %v6790_v55 = vpop.f32.mrb[46].mxu1 }
 0x411   : >> { %v6913_v4 = vmax.f32 %v6590_v40, 0.0  ;;  %v8882_v50 = vpop.f32.mrb[47].mxu0  ;;  %v6963_v48 = vmax.f32 %v6790_v55, 0.0  ;;  %v8982_v53 = vpop.f32.mrb[47].mxu1 }
 0x413   : >> { %v6999_v45 = vpack.c.bf16 %v6913_v4, %v6912_v22  ;;  %v7024_v14 = vpack.c.bf16 %v6963_v48, %v6962_v20 }
 0x415   : >> { %7051 = vst.msk [vmem:[%s12342_s12 + $0x58] sm:$0xff] %vm7039_vm10, %v6999_v45  ;;  %7076 = vst.msk [vmem:[%s12342_s12 + $0x120] sm:$0xff] %vm7039_vm10, %v7024_v14 }
 0x416   : >> { %v6595_v56 = vpop.f32.mrb[48].mxu0  ;;  %v6795_v37 = vpop.f32.mrb[48].mxu1 }
 0x417   : >> { %v8885_v41 = vpop.f32.mrb[49].mxu0  ;;  %v6964_v63 = vmax.f32 %v6795_v37, 0.0  ;;  %v8985_v30 = vpop.f32.mrb[49].mxu1  ;;  %v6914_v21 = vmax.f32 %v6595_v56, 0.0 }
 0x418   : >> { %v6598_v59 = vpop.f32.mrb[50].mxu0  ;;  %v6798_v10 = vpop.f32.mrb[50].mxu1 }
 0x419   : >> { %v6915_v44 = vmax.f32 %v6598_v59, 0.0  ;;  %v8886_v29 = vpop.f32.mrb[51].mxu0  ;;  %v6965_v15 = vmax.f32 %v6798_v10, 0.0  ;;  %v8986_v5 = vpop.f32.mrb[51].mxu1 }
 0x41b   : >> { %v7000_v47 = vpack.c.bf16 %v6915_v44, %v6914_v21  ;;  %v7025_v28 = vpack.c.bf16 %v6965_v15, %v6964_v63 }
 0x41d   : >> { %7052 = vst.msk [vmem:[%s12342_s12 + $0x60] sm:$0xff] %vm7039_vm10, %v7000_v47  ;;  %7077 = vst.msk [vmem:[%s12342_s12 + $0x128] sm:$0xff] %vm7039_vm10, %v7025_v28 }
 0x41e   : >> { %v6603_v38 = vpop.f32.mrb[52].mxu0  ;;  %v6803_v51 = vpop.f32.mrb[52].mxu1 }
 0x41f   : >> { %v8889_v3 = vpop.f32.mrb[53].mxu0  ;;  %v6966_v39 = vmax.f32 %v6803_v51, 0.0  ;;  %v8989_v35 = vpop.f32.mrb[53].mxu1  ;;  %v6916_v27 = vmax.f32 %v6603_v38, 0.0 }
 0x420   : >> { %v6606_v33 = vpop.f32.mrb[54].mxu0  ;;  %v6806_v17 = vpop.f32.mrb[54].mxu1 }
 0x421   : >> { %v6917_v23 = vmax.f32 %v6606_v33, 0.0  ;;  %v8890_v49 = vpop.f32.mrb[55].mxu0  ;;  %v6967_v9 = vmax.f32 %v6806_v17, 0.0  ;;  %v8990_v13 = vpop.f32.mrb[55].mxu1 }
 0x423   : >> { %v7001_v0 = vpack.c.bf16 %v6917_v23, %v6916_v27  ;;  %v7026_v36 = vpack.c.bf16 %v6967_v9, %v6966_v39 }
 0x425   : >> { %7053 = vst.msk [vmem:[%s12342_s12 + $0x68] sm:$0xff] %vm7039_vm10, %v7001_v0  ;;  %7078 = vst.msk [vmem:[%s12342_s12 + $0x130] sm:$0xff] %vm7039_vm10, %v7026_v36 }
 0x426   : >> { %v6611_v60 = vpop.f32.mrb[56].mxu0  ;;  %v6811_v2 = vpop.f32.mrb[56].mxu1 }
 0x427   : >> { %v8893_v18 = vpop.f32.mrb[57].mxu0  ;;  %v6968_v62 = vmax.f32 %v6811_v2, 0.0  ;;  %v8993_v24 = vpop.f32.mrb[57].mxu1  ;;  %v6918_v54 = vmax.f32 %v6611_v60, 0.0 }
 0x428   : >> { %v6614_v46 = vpop.f32.mrb[58].mxu0  ;;  %v6814_v31 = vpop.f32.mrb[58].mxu1 }
 0x429   : >> { %v6919_v52 = vmax.f32 %v6614_v46, 0.0  ;;  %v8894_v61 = vpop.f32.mrb[59].mxu0  ;;  %v6969_v25 = vmax.f32 %v6814_v31, 0.0  ;;  %v8994_v7 = vpop.f32.mrb[59].mxu1 }
 0x42b   : >> { %v7002_v19 = vpack.c.bf16 %v6919_v52, %v6918_v54  ;;  %v7027_v26 = vpack.c.bf16 %v6969_v25, %v6968_v62 }
 0x42d   : >> { %7054 = vst.msk [vmem:[%s12342_s12 + $0x70] sm:$0xff] %vm7039_vm10, %v7002_v19  ;;  %7079 = vst.msk [vmem:[%s12342_s12 + $0x138] sm:$0xff] %vm7039_vm10, %v7027_v26 }
 0x42e   : >> { %v6619_v32 = vpop.f32.mrb[60].mxu0  ;;  %v6819_v34 = vpop.f32.mrb[60].mxu1 }
 0x42f   : >> { %v8897_v12 = vpop.f32.mrb[61].mxu0  ;;  %v6970_v8 = vmax.f32 %v6819_v34, 0.0  ;;  %v8997_v6 = vpop.f32.mrb[61].mxu1  ;;  %v6920_v58 = vmax.f32 %v6619_v32, 0.0 }
 0x430   : >> { %v6622_v42 = vpop.f32.mrb[62].mxu0  ;;  %v6822_v16 = vpop.f32.mrb[62].mxu1 }
 0x431   : >> { %v6921_v43 = vmax.f32 %v6622_v42, 0.0  ;;  %v8898_v11 = vpop.f32.mrb[63].mxu0  ;;  %v6971_v1 = vmax.f32 %v6822_v16, 0.0  ;;  %v8998_v20 = vpop.f32.mrb[63].mxu1 }
 0x433   : >> { %v7003_v57 = vpack.c.bf16 %v6921_v43, %v6920_v58  ;;  %v7028_v40 = vpack.c.bf16 %v6971_v1, %v6970_v8 }
 0x435   : >> { %7055 = vst.msk [vmem:[%s12342_s12 + $0x78] sm:$0xff] %vm7039_vm10, %v7003_v57  ;;  %7080 = vst.msk [vmem:[%s12342_s12 + $0x140] sm:$0xff] %vm7039_vm10, %v7028_v40 }
 0x436   : >> { %v6627_v55 = vpop.f32.mrb[64].mxu0  ;;  %v6827_v22 = vpop.f32.mrb[64].mxu1 }
 0x437   : >> { %v8901_v4 = vpop.f32.mrb[65].mxu0  ;;  %v6972_v50 = vmax.f32 %v6827_v22, 0.0  ;;  %v9001_v48 = vpop.f32.mrb[65].mxu1  ;;  %v6922_v14 = vmax.f32 %v6627_v55, 0.0 }
 0x438   : >> { %v6630_v53 = vpop.f32.mrb[66].mxu0  ;;  %v6830_v45 = vpop.f32.mrb[66].mxu1 }
 0x439   : >> { %v6923_v56 = vmax.f32 %v6630_v53, 0.0  ;;  %v8902_v37 = vpop.f32.mrb[67].mxu0  ;;  %v6973_v41 = vmax.f32 %v6830_v45, 0.0  ;;  %v9002_v63 = vpop.f32.mrb[67].mxu1 }
 0x43b   : >> { %v7004_v30 = vpack.c.bf16 %v6923_v56, %v6922_v14  ;;  %v7029_v59 = vpack.c.bf16 %v6973_v41, %v6972_v50 }
 0x43d   : >> { %7056 = vst.msk [vmem:[%s12342_s12 + $0x80] sm:$0xff] %vm7039_vm10, %v7004_v30  ;;  %7081 = vst.msk [vmem:[%s12342_s12 + $0x148] sm:$0xff] %vm7039_vm10, %v7029_v59 }
 0x43e   : >> { %v6635_v10 = vpop.f32.mrb[68].mxu0  ;;  %v6835_v21 = vpop.f32.mrb[68].mxu1 }
 0x43f   : >> { %v8905_v44 = vpop.f32.mrb[69].mxu0  ;;  %v6974_v29 = vmax.f32 %v6835_v21, 0.0  ;;  %v9005_v15 = vpop.f32.mrb[69].mxu1  ;;  %v6924_v28 = vmax.f32 %v6635_v10, 0.0 }
 0x440   : >> { %v6638_v5 = vpop.f32.mrb[70].mxu0  ;;  %v6838_v47 = vpop.f32.mrb[70].mxu1 }
 0x441   : >> { %v6925_v38 = vmax.f32 %v6638_v5, 0.0  ;;  %v8906_v51 = vpop.f32.mrb[71].mxu0  ;;  %v6975_v3 = vmax.f32 %v6838_v47, 0.0  ;;  %v9006_v39 = vpop.f32.mrb[71].mxu1 }
 0x443   : >> { %v7005_v35 = vpack.c.bf16 %v6925_v38, %v6924_v28  ;;  %v7030_v33 = vpack.c.bf16 %v6975_v3, %v6974_v29 }
 0x445   : >> { %7057 = vst.msk [vmem:[%s12342_s12 + $0x88] sm:$0xff] %vm7039_vm10, %v7005_v35  ;;  %7082 = vst.msk [vmem:[%s12342_s12 + $0x150] sm:$0xff] %vm7039_vm10, %v7030_v33 }
 0x446   : >> { %v6643_v17 = vpop.f32.mrb[72].mxu0  ;;  %v6843_v27 = vpop.f32.mrb[72].mxu1 }
 0x447   : >> { %v8909_v23 = vpop.f32.mrb[73].mxu0  ;;  %v6976_v49 = vmax.f32 %v6843_v27, 0.0  ;;  %v9009_v9 = vpop.f32.mrb[73].mxu1  ;;  %v6926_v36 = vmax.f32 %v6643_v17, 0.0 }
 0x448   : >> { %v6646_v13 = vpop.f32.mrb[74].mxu0  ;;  %v6846_v0 = vpop.f32.mrb[74].mxu1 }
 0x449   : >> { %v6927_v60 = vmax.f32 %v6646_v13, 0.0  ;;  %v8910_v2 = vpop.f32.mrb[75].mxu0  ;;  %v6977_v18 = vmax.f32 %v6846_v0, 0.0  ;;  %v9010_v62 = vpop.f32.mrb[75].mxu1 }
 0x44b   : >> { %v7006_v24 = vpack.c.bf16 %v6927_v60, %v6926_v36  ;;  %v7031_v46 = vpack.c.bf16 %v6977_v18, %v6976_v49 }
 0x44d   : >> { %7058 = vst.msk [vmem:[%s12342_s12 + $0x90] sm:$0xff] %vm7039_vm10, %v7006_v24  ;;  %7083 = vst.msk [vmem:[%s12342_s12 + $0x158] sm:$0xff] %vm7039_vm10, %v7031_v46 }
 0x44e   : >> { %v6651_v31 = vpop.f32.mrb[76].mxu0  ;;  %v6851_v54 = vpop.f32.mrb[76].mxu1 }
 0x44f   : >> { %v8913_v52 = vpop.f32.mrb[77].mxu0  ;;  %v6978_v61 = vmax.f32 %v6851_v54, 0.0  ;;  %v9013_v25 = vpop.f32.mrb[77].mxu1  ;;  %v6928_v26 = vmax.f32 %v6651_v31, 0.0 }
 0x450   : >> { %v6654_v7 = vpop.f32.mrb[78].mxu0  ;;  %v6854_v19 = vpop.f32.mrb[78].mxu1 }
 0x451   : >> { %v6929_v32 = vmax.f32 %v6654_v7, 0.0  ;;  %v8914_v34 = vpop.f32.mrb[79].mxu0  ;;  %v6979_v12 = vmax.f32 %v6854_v19, 0.0  ;;  %v9014_v8 = vpop.f32.mrb[79].mxu1 }
 0x453   : >> { %v7007_v6 = vpack.c.bf16 %v6929_v32, %v6928_v26  ;;  %v7032_v42 = vpack.c.bf16 %v6979_v12, %v6978_v61 }
 0x455   : >> { %7059 = vst.msk [vmem:[%s12342_s12 + $0x98] sm:$0xff] %vm7039_vm10, %v7007_v6  ;;  %7084 = vst.msk [vmem:[%s12342_s12 + $0x160] sm:$0xff] %vm7039_vm10, %v7032_v42  ;;  %v12448_v42 = vld [vmem:[%s12830_s2] sm:$0xf] (%p6235_p4) }
 0x456   : >> { %v6659_v16 = vpop.f32.mrb[80].mxu0  ;;  %v6859_v58 = vpop.f32.mrb[80].mxu1 }
 0x457   : >> { %v8917_v43 = vpop.f32.mrb[81].mxu0  ;;  %v6980_v11 = vmax.f32 %v6859_v58, 0.0  ;;  %v9017_v1 = vpop.f32.mrb[81].mxu1  ;;  %v6930_v40 = vmax.f32 %v6659_v16, 0.0  ;;  %v12453_v16 = vld [vmem:[%s12830_s2 + $0x4] sm:$0xf] (%p6235_p4) }
 0x458   : >> { %v6662_v20 = vpop.f32.mrb[82].mxu0  ;;  %v6862_v57 = vpop.f32.mrb[82].mxu1  ;;  %12833 = vst [vmem:[#allocation4_spill] sm:$0xff] (%p6235_p4), %v12453_v16  ;;  %v12458_v58 = vld [vmem:[%s12830_s2 + $0x8] sm:$0xf] (%p6235_p4) }
 0x459   : >> { %v6931_v55 = vmax.f32 %v6662_v20, 0.0  ;;  %v8918_v22 = vpop.f32.mrb[83].mxu0  ;;  %v6981_v4 = vmax.f32 %v6862_v57, 0.0  ;;  %v9018_v50 = vpop.f32.mrb[83].mxu1  ;;  %v12463_v43 = vld [vmem:[%s12830_s2 + $0xc] sm:$0xf] (%p6235_p4) }
 0x45a   : > { %v12473_v1 = vld [vmem:[%s12830_s2 + $0x14] sm:$0xf] (%p6235_p4)  ;;  %v12478_v20 = vld [vmem:[%s12830_s2 + $0x18] sm:$0xf] (%p6235_p4)  ;;  %v12483_v57 = vld [vmem:[%s12830_s2 + $0x1c] sm:$0xf] (%p6235_p4) }
 0x45b   : >> { %v7008_v48 = vpack.c.bf16 %v6931_v55, %v6930_v40  ;;  %v7033_v53 = vpack.c.bf16 %v6981_v4, %v6980_v11  ;;  %v12468_v11 = vld [vmem:[%s12830_s2 + $0x10] sm:$0xf] (%p6235_p4)  ;;  %12835 = vst [vmem:[#allocation6_spill] sm:$0xff] (%p6235_p4), %v12473_v1  ;;  %12836 = vst [vmem:[#allocation7_spill] sm:$0xff] (%p6235_p4), %v12478_v20  ;;  %v12488_v40 = vld [vmem:[%s12830_s2 + $0x20] sm:$0xf] (%p6235_p4) }
 0x45c   : > { %12834 = vst [vmem:[#allocation5_spill] sm:$0xff] (%p6235_p4), %v12468_v11  ;;  %v12493_v55 = vld [vmem:[%s12830_s2 + $0x24] sm:$0xf] (%p6235_p4)  ;;  %v12498_v22 = vld [vmem:[%s12830_s2 + $0x28] sm:$0xf] (%p6235_p4) }
 0x45d   : >> { %7060 = vst.msk [vmem:[%s12342_s12 + $0xa0] sm:$0xff] %vm7039_vm10, %v7008_v48  ;;  %7085 = vst.msk [vmem:[%s12342_s12 + $0x168] sm:$0xff] %vm7039_vm10, %v7033_v53  ;;  %v12503_v4 = vld [vmem:[%s12830_s2 + $0x2c] sm:$0xf] (%p6235_p4)  ;;  %v12508_v50 = vld [vmem:[%s12830_s2 + $0x30] sm:$0xf] (%p6235_p4) }
 0x45e   : >> { %v6667_v45 = vpop.f32.mrb[84].mxu0  ;;  %v6867_v14 = vpop.f32.mrb[84].mxu1  ;;  %12837 = vst [vmem:[#allocation8_spill] sm:$0xff] (%p6235_p4), %v12498_v22  ;;  %12838 = vst [vmem:[#allocation9_spill] sm:$0xff] (%p6235_p4), %v12503_v4  ;;  %v12513_v48 = vld [vmem:[%s12830_s2 + $0x34] sm:$0xf] (%p6235_p4) }
 0x45f   : >> { %v8921_v56 = vpop.f32.mrb[85].mxu0  ;;  %v6982_v37 = vmax.f32 %v6867_v14, 0.0  ;;  %v9021_v41 = vpop.f32.mrb[85].mxu1  ;;  %v6932_v59 = vmax.f32 %v6667_v45, 0.0  ;;  %v12518_v53 = vld [vmem:[%s12830_s2 + $0x38] sm:$0xf] (%p6235_p4) }
 0x460   : >> { %v6670_v63 = vpop.f32.mrb[86].mxu0  ;;  %v6870_v30 = vpop.f32.mrb[86].mxu1  ;;  %v12523_v45 = vld [vmem:[%s12830_s2 + $0x3c] sm:$0xf] (%p6235_p4)  ;;  %v12528_v14 = vld [vmem:[%s12830_s2 + $0x40] sm:$0xf] (%p6235_p4) }
 0x461   : >> { %v6933_v10 = vmax.f32 %v6670_v63, 0.0  ;;  %v8922_v21 = vpop.f32.mrb[87].mxu0  ;;  %v6983_v44 = vmax.f32 %v6870_v30, 0.0  ;;  %v9022_v29 = vpop.f32.mrb[87].mxu1  ;;  %12839 = vst [vmem:[#allocation10_spill] sm:$0xff] (%p6235_p4), %v12528_v14 }
 0x462   : > { %v12533_v56 = vld [vmem:[%s12830_s2 + $0x44] sm:$0xf] (%p6235_p4)  ;;  %v12543_v41 = vld [vmem:[%s12830_s2 + $0x4c] sm:$0xf] (%p6235_p4)  ;;  %v12548_v63 = vld [vmem:[%s12830_s2 + $0x50] sm:$0xf] (%p6235_p4) }
 0x463   : >> { %v7009_v15 = vpack.c.bf16 %v6933_v10, %v6932_v59  ;;  %v7034_v5 = vpack.c.bf16 %v6983_v44, %v6982_v37  ;;  %v12538_v37 = vld [vmem:[%s12830_s2 + $0x48] sm:$0xf] (%p6235_p4)  ;;  %v12553_v30 = vld [vmem:[%s12830_s2 + $0x54] sm:$0xf] (%p6235_p4)  ;;  %v12558_v59 = vld [vmem:[%s12830_s2 + $0x58] sm:$0xf] (%p6235_p4) }
 0x464   : > { %v12563_v10 = vld [vmem:[%s12830_s2 + $0x5c] sm:$0xf] (%p6235_p4)  ;;  %v12568_v21 = vld [vmem:[%s12830_s2 + $0x60] sm:$0xf] (%p6235_p4)  ;;  %v12573_v44 = vld [vmem:[%s12830_s2 + $0x64] sm:$0xf] (%p6235_p4) }
 0x465   : >> { %7061 = vst.msk [vmem:[%s12342_s12 + $0xa8] sm:$0xff] %vm7039_vm10, %v7009_v15  ;;  %7086 = vst.msk [vmem:[%s12342_s12 + $0x170] sm:$0xff] %vm7039_vm10, %v7034_v5  ;;  %v12578_v29 = vld [vmem:[%s12830_s2 + $0x68] sm:$0xf] (%p6235_p4)  ;;  %v12583_v15 = vld [vmem:[%s12830_s2 + $0x6c] sm:$0xf] (%p6235_p4) }
 0x466   : >> { %v6675_v47 = vpop.f32.mrb[88].mxu0  ;;  %v6875_v28 = vpop.f32.mrb[88].mxu1  ;;  %12840 = vst [vmem:[#allocation11_spill] sm:$0xff] (%p6235_p4), %v12563_v10  ;;  %12841 = vst [vmem:[#allocation12_spill] sm:$0xff] (%p6235_p4), %v12568_v21  ;;  %v12588_v5 = vld [vmem:[%s12830_s2 + $0x70] sm:$0xf] (%p6235_p4) }
 0x467   : >> { %v8925_v38 = vpop.f32.mrb[89].mxu0  ;;  %v6984_v51 = vmax.f32 %v6875_v28, 0.0  ;;  %v9025_v3 = vpop.f32.mrb[89].mxu1  ;;  %v6934_v33 = vmax.f32 %v6675_v47, 0.0  ;;  %12842 = vst [vmem:[#allocation13_spill] sm:$0xff] (%p6235_p4), %v12578_v29  ;;  %12843 = vst [vmem:[#allocation14_spill] sm:$0xff] (%p6235_p4), %v12583_v15 }
 0x468   : >> { %v6678_v39 = vpop.f32.mrb[90].mxu0  ;;  %v6878_v35 = vpop.f32.mrb[90].mxu1  ;;  %12844 = vst [vmem:[#allocation15_spill] sm:$0xff] (%p6235_p4), %v12588_v5  ;;  %v12593_v47 = vld [vmem:[%s12830_s2 + $0x74] sm:$0xf] (%p6235_p4) }
 0x469   : >> { %v6935_v17 = vmax.f32 %v6678_v39, 0.0  ;;  %v8926_v27 = vpop.f32.mrb[91].mxu0  ;;  %v6985_v23 = vmax.f32 %v6878_v35, 0.0  ;;  %v9026_v49 = vpop.f32.mrb[91].mxu1  ;;  %v12598_v28 = vld [vmem:[%s12830_s2 + $0x78] sm:$0xf] (%p6235_p4) }
 0x46a   : > { %12845 = vst [vmem:[#allocation16_spill] sm:$0xff] (%p6235_p4), %v12598_v28  ;;  %v12603_v38 = vld [vmem:[%s12830_s2 + $0x7c] sm:$0xf] (%p6235_p4)  ;;  %v12613_v3 = vld [vmem:[%s12830_s2 + $0x84] sm:$0xf] (%p6235_p4) }
 0x46b   : >> { %v7010_v9 = vpack.c.bf16 %v6935_v17, %v6934_v33  ;;  %v7035_v13 = vpack.c.bf16 %v6985_v23, %v6984_v51  ;;  %v12608_v51 = vld [vmem:[%s12830_s2 + $0x80] sm:$0xf] (%p6235_p4)  ;;  %12846 = vst [vmem:[#allocation17_spill] sm:$0xff] (%p6235_p4), %v12613_v3  ;;  %v12618_v39 = vld [vmem:[%s12830_s2 + $0x88] sm:$0xf] (%p6235_p4) }
 0x46c   : > { %v12623_v35 = vld [vmem:[%s12830_s2 + $0x8c] sm:$0xf] (%p6235_p4)  ;;  %v12628_v33 = vld [vmem:[%s12831_s3] ss:$0 sm:$0xff] (%p6235_p4) }
 0x46d   : >> { %7062 = vst.msk [vmem:[%s12342_s12 + $0xb0] sm:$0xff] %vm7039_vm10, %v7010_v9  ;;  %7087 = vst.msk [vmem:[%s12342_s12 + $0x178] sm:$0xff] %vm7039_vm10, %v7035_v13 }
 0x46e   : >> { %v6683_v0 = vpop.f32.mrb[92].mxu0  ;;  %v6883_v36 = vpop.f32.mrb[92].mxu1 }
 0x46f   : >> { %v8929_v60 = vpop.f32.mrb[93].mxu0  ;;  %v6986_v2 = vmax.f32 %v6883_v36, 0.0  ;;  %v9029_v18 = vpop.f32.mrb[93].mxu1  ;;  %v6936_v46 = vmax.f32 %v6683_v0, 0.0 }
 0x470   : >> { %v6686_v62 = vpop.f32.mrb[94].mxu0  ;;  %v6886_v24 = vpop.f32.mrb[94].mxu1 }
 0x471   : >> { %v6937_v31 = vmax.f32 %v6686_v62, 0.0  ;;  %v8930_v54 = vpop.f32.mrb[95].mxu0  ;;  %v6987_v52 = vmax.f32 %v6886_v24, 0.0  ;;  %v9030_v61 = vpop.f32.mrb[95].mxu1 }
 0x473   : >> { %v7011_v25 = vpack.c.bf16 %v6937_v31, %v6936_v46  ;;  %v7036_v7 = vpack.c.bf16 %v6987_v52, %v6986_v2 }
 0x475   : >> { %7063 = vst.msk [vmem:[%s12342_s12 + $0xb8] sm:$0xff] %vm7039_vm10, %v7011_v25  ;;  %7088 = vst.msk [vmem:[%s12342_s12 + $0x180] sm:$0xff] %vm7039_vm10, %v7036_v7 }
 0x476   : >> { %v6691_v19 = vpop.f32.mrb[96].mxu0 }
 0x477   : >> { %v8933_v26 = vpop.f32.mrb[97].mxu0  ;;  %v6938_v34 = vmax.f32 %v6691_v19, 0.0  ;;  %6237 = sbr.rel (!%p6235_p4) target bundleno = 726 (0x2d6), region = 86 }
 0x478   : >> { %v6694_v32 = vpop.f32.mrb[98].mxu0 }
 0x479   : >> { %v6939_v12 = vmax.f32 %v6694_v32, 0.0  ;;  %v8934_v8 = vpop.f32.mrb[99].mxu0 }
 0x47b   : >> { %v7012_v6 = vpack.c.bf16 %v6939_v12, %v6938_v34 }
 0x47d   : >> { %7064 = vst.msk [vmem:[%s12342_s12 + $0xc0] sm:$0xff] %vm7039_vm10, %v7012_v6 }
 0x47e LB: >> { %v8652_v17 = vcombine.low %v12508_v50, %v12513_v48  ;;  %v12847_v16 = vld [vmem:[#allocation4_spill] sm:$0xff]  ;;  %v8653_v23 = vcombine.low %v12518_v53, %v12523_v45  ;;  %v8665_v49 = vcombine.low %v12458_v58, %v12463_v43  ;;  %s12644_s17 = smul.u32 96, %s9643_s16  ;;  %v12848_v14 = vld [vmem:[#allocation10_spill] sm:$0xff]  ;;  %v12850_v11 = vld [vmem:[#allocation5_spill] sm:$0xff]  ;;  %v8655_v0 = vcombine.low %v12538_v37, %v12543_v41  ;;  %s9643_s16 = sphi %s12630_s16, %s7131_s16  }
 0x47f   : >> { %v8664_v27 = vcombine.low %v12448_v42, %v12847_v16  ;;  %v8654_v9 = vcombine.low %v12848_v14, %v12533_v56  ;;  %v12849_v1 = vld [vmem:[#allocation6_spill] sm:$0xff]  ;;  %v12851_v20 = vld [vmem:[#allocation7_spill] sm:$0xff]  ;;  %v8656_v18 = vcombine.low %v12548_v63, %v12553_v30  ;;  %v8668_v62 = vcombine.low %v12488_v40, %v12493_v55  ;;  %v12853_v4 = vld [vmem:[#allocation9_spill] sm:$0xff]  ;;  %s7908_s30 = smul.u32 24, %s9643_s16  ;;  %s7131_s16 = sadd.s32 1, %s9643_s16  }
 0x480   : >> { %9031 = vmatprep.subr.bf16.mxu1 %v8652_v17  ;;  %v8666_v13 = vcombine.low %v12850_v11, %v12849_v1  ;;  %s7143_s18 = sadd.s32 48, %s12644_s17  ;;  %s7133_s20 = sshra.s32 %s12644_s17, 4  ;;  %v8667_v36 = vcombine.low %v12851_v20, %v12483_v57  ;;  %v12852_v10 = vld [vmem:[#allocation11_spill] sm:$0xff]  ;;  %v12854_v22 = vld [vmem:[#allocation8_spill] sm:$0xff]  ;;  %v12856_v15 = vld [vmem:[#allocation14_spill] sm:$0xff]  ;;  %vm7739_vm11 = vcmask 517120  }
 0x481   : >> { %9055 = vmatprep.subr.bf16.mxu0 %v8664_v27  ;;  %9032 = vmatpush3.bf16.msra.mxu1 %v8652_v17  ;;  %s7144_s19 = sshra.s32 %s7143_s18, 4  ;;  %s8650_s23 = sshll.u32 %s7133_s20, 3  ;;  %v8657_v24 = vcombine.low %v12558_v59, %v12852_v10  ;;  %v8669_v46 = vcombine.low %v12854_v22, %v12853_v4  ;;  %v12855_v21 = vld [vmem:[#allocation12_spill] sm:$0xff]  ;;  %v12857_v29 = vld [vmem:[#allocation13_spill] sm:$0xff]  ;;  %v12858_v5 = vld [vmem:[#allocation15_spill] sm:$0xff]  ;;  %vm8029_vm12 = vcmask 1041409  }
 0x482   : >> { %9056 = vmatpush3.bf16.msra.mxu0 %v8664_v27  ;;  %9033 = vmatprep.subr.bf16.mxu1 %v8653_v23  ;;  %s8651_s21 = sshll.u32 %s7144_s19, 3  ;;  %s12660_s25 = scalar_lea.vmem [#allocation3], %s8650_s23  ;;  %v8677_v31 = vcombine.low %v12855_v21, %v12573_v44  ;;  %v8678_v61 = vcombine.low %v12857_v29, %v12856_v15  ;;  %v8679_v19 = vcombine.low %v12858_v5, %v12593_v47  ;;  %v12859_v28 = vld [vmem:[#allocation16_spill] sm:$0xff]  ;;  %v12860_v3 = vld [vmem:[#allocation17_spill] sm:$0xff]  ;;  %vm8031_vm13 = vcmask 1042434  }
 0x483   : >> { %9057 = vmatprep.subr.bf16.mxu0 %v8665_v49  ;;  %s12656_s22 = scalar_lea.vmem [#allocation3], %s8651_s21  ;;  %s7425_s26 = sadd.s32 96, %s12644_s17  ;;  %v8680_v34 = vcombine.low %v12859_v28, %v12603_v38  ;;  %v8681_v6 = vcombine.low %v12608_v51, %v12860_v3  ;;  %vm8033_vm14 = vcmask 1043459   ;;  %vm8035_vm15 = vcmask 1044484  }
 0x484   : >> { %v7148_v60 = vld [vmem:[%s12656_s22] sm:$0xff]  ;;  %v7149_v54 = vld [vmem:[%s12656_s22 + $0x8] sm:$0xff]  ;;  %v7150_v25 = vld [vmem:[%s12656_s22 + $0x10] sm:$0xff]  ;;  %s7426_s27 = sshra.s32 %s7425_s26, 4  ;;  %vm8037_vm0 = vcmask 1045509   ;;  %vm8039_vm1 = vcmask 1046534  }
 0x485   : >> { %9034 = vmatpush3.bf16.msra.mxu1 %v8653_v23  ;;  %9043 = vmatprep.mubr.msk.bf16.mxu1 %vm7039_vm10, %v7148_v60  ;;  %v7137_v2 = vld [vmem:[%s12660_s25] sm:$0xff]  ;;  %v7138_v52 = vld [vmem:[%s12660_s25 + $0x8] sm:$0xff]  ;;  %v7139_v7 = vld [vmem:[%s12660_s25 + $0x10] sm:$0xff]  ;;  %s8676_s28 = sshll.u32 %s7426_s27, 3  ;;  %v8682_v23 = vcombine.low %v12618_v39, %v12623_v35  ;;  %vm8041_vm2 = vcmask 1047559   ;;  %vm8067_vm3 = vcmask 519168  }
 0x486   : >> { %9058 = vmatpush3.bf16.msra.mxu0 %v8665_v49  ;;  %9035 = vmatprep.subr.bf16.mxu1 %v8654_v9  ;;  %v7151_v26 = vld [vmem:[%s12656_s22 + $0x18] sm:$0xff]  ;;  %v7152_v12 = vld [vmem:[%s12656_s22 + $0x20] sm:$0xff]  ;;  %v7153_v17 = vld [vmem:[%s12656_s22 + $0x28] sm:$0xff]  ;;  %s7429_s29 = scalar_lea.vmem [#allocation3], %s8676_s28  ;;  %s8063_s5 = sshra.s32 %s7908_s30, 3 }
 0x487   : >> { %9059 = vmatprep.subr.bf16.mxu0 %v8666_v13  ;;  %9067 = vmatprep.mubr.msk.bf16.mxu0 %vm7039_vm10, %v7137_v2  ;;  %v7140_v32 = vld [vmem:[%s12660_s25 + $0x18] sm:$0xff]  ;;  %v7141_v8 = vld [vmem:[%s12660_s25 + $0x20] sm:$0xff]  ;;  %v7142_v27 = vld [vmem:[%s12660_s25 + $0x28] sm:$0xff]  ;;  %s8714_s6 = sshll.u32 %s8063_s5, 2  ;;  %p7128_p5 = scmp.ge.s32.totalorder %s7131_s16, 22  }
 0x488   : >> { %v7430_v49 = vld [vmem:[%s7429_s29] sm:$0xff]  ;;  %v7435_v60 = vld [vmem:[%s7429_s29 + $0x28] sm:$0xff]  ;;  %s12773_s7 = scalar_lea.vmem %s9692_s24, %s8714_s6 }
 0x489   : >> { %9036 = vmatpush3.bf16.msra.mxu1 %v8654_v9  ;;  %v7432_v9 = vld [vmem:[%s7429_s29 + $0x10] sm:$0xff] }
 0x48a   : >> { %9060 = vmatpush3.bf16.msra.mxu0 %v8666_v13  ;;  %9037 = vmatprep.subr.bf16.mxu1 %v8655_v0  ;;  %v7431_v13 = vld [vmem:[%s7429_s29 + $0x8] sm:$0xff] }
 0x48b   : >> { %9061 = vmatprep.subr.bf16.mxu0 %v8667_v36 }
 0x48d   : >> { %9038 = vmatpush3.bf16.msra.mxu1 %v8655_v0  ;;  %v7433_v0 = vld [vmem:[%s7429_s29 + $0x18] sm:$0xff] }
 0x48e   : >> { %9062 = vmatpush3.bf16.msra.mxu0 %v8667_v36  ;;  %9039 = vmatprep.subr.bf16.mxu1 %v8656_v18  ;;  %v7434_v36 = vld [vmem:[%s7429_s29 + $0x20] sm:$0xff] }
 0x48f   : >> { %9063 = vmatprep.subr.bf16.mxu0 %v8668_v62 }
 0x491   : >> { %9040 = vmatpush3.bf16.msra.mxu1 %v8656_v18 }
 0x492   : >> { %9064 = vmatpush3.bf16.msra.mxu0 %v8668_v62  ;;  %9041 = vmatprep.subr.bf16.mxu1 %v8657_v24 }
 0x493   : >> { %9065 = vmatprep.subr.bf16.mxu0 %v8669_v46 }
 0x495   : >> { %9042 = vmatpush3.bf16.msra.mxu1 %v8657_v24 }
 0x496   : >> { %9066 = vmatpush3.bf16.msra.mxu0 %v8669_v46  ;;  %9109 = vmatprep.subr.bf16.mxu1 %v8677_v31 }
 0x497   : >> { %9079 = vmatprep.subr.bf16.mxu0 %v8677_v31 }
 0x498   : >> { %9044 = vmatmul.mubr.msk.bf16.vlgmr.msra.gmra.mrb[0].mxu1 %vm7039_vm10, %v7149_v54 }
 0x499   : >> { %9068 = vmatmul.mubr.msk.bf16.vlgmr.msra.gmra.mrb[0].mxu0 %vm7039_vm10, %v7138_v52  ;;  %9115 = vmatpush3.bf16.msra.mxu1 %v8677_v31 }
 0x49a   : >> { %9080 = vmatpush3.bf16.msra.mxu0 %v8677_v31  ;;  %9110 = vmatprep.subr.bf16.mxu1 %v8678_v61 }
 0x49b   : >> { %9081 = vmatprep.subr.bf16.mxu0 %v8678_v61  ;;  %9047 = vmatprep.mubr.msk.bf16.mxu1 %vm7039_vm10, %v7150_v25 }
 0x49c   : >> { %9071 = vmatprep.mubr.msk.bf16.mxu0 %vm7039_vm10, %v7139_v7 }
 0x49d   : >> { %9116 = vmatpush3.bf16.msra.mxu1 %v8678_v61 }
 0x49e   : >> { %9082 = vmatpush3.bf16.msra.mxu0 %v8678_v61  ;;  %9111 = vmatprep.subr.bf16.mxu1 %v8679_v19 }
 0x49f   : >> { %9083 = vmatprep.subr.bf16.mxu0 %v8679_v19 }
 0x4a0   : >> { %9048 = vmatmul.mubr.msk.bf16.gmra.mrb[4].mxu1 %vm7039_vm10, %v7151_v26 }
 0x4a1   : >> { %9072 = vmatmul.mubr.msk.bf16.gmra.mrb[4].mxu0 %vm7039_vm10, %v7140_v32  ;;  %9117 = vmatpush3.bf16.msra.mxu1 %v8679_v19 }
 0x4a2   : >> { %9084 = vmatpush3.bf16.msra.mxu0 %v8679_v19  ;;  %9112 = vmatprep.subr.bf16.mxu1 %v8680_v34 }
 0x4a3   : >> { %9085 = vmatprep.subr.bf16.mxu0 %v8680_v34  ;;  %9051 = vmatprep.mubr.msk.bf16.mxu1 %vm7039_vm10, %v7152_v12 }
 0x4a4   : >> { %9075 = vmatprep.mubr.msk.bf16.mxu0 %vm7039_vm10, %v7141_v8 }
 0x4a5   : >> { %9118 = vmatpush3.bf16.msra.mxu1 %v8680_v34 }
 0x4a6   : >> { %9086 = vmatpush3.bf16.msra.mxu0 %v8680_v34  ;;  %9113 = vmatprep.subr.bf16.mxu1 %v8681_v6 }
 0x4a7   : >> { %9087 = vmatprep.subr.bf16.mxu0 %v8681_v6 }
 0x4a8   : >> { %9052 = vmatmul.mubr.msk.bf16.gmra.mrb[8].mxu1 %vm7039_vm10, %v7153_v17 }
 0x4a9   : >> { %9076 = vmatmul.mubr.msk.bf16.gmra.mrb[8].mxu0 %vm7039_vm10, %v7142_v27  ;;  %9119 = vmatpush3.bf16.msra.mxu1 %v8681_v6 }
 0x4aa   : >> { %9088 = vmatpush3.bf16.msra.mxu0 %v8681_v6  ;;  %9114 = vmatprep.subr.bf16.mxu1 %v8682_v23 }
 0x4ab   : >> { %9089 = vmatprep.subr.bf16.mxu0 %v8682_v23  ;;  %9091 = vmatprep.mubr.msk.bf16.mxu0 %vm7039_vm10, %v7430_v49 }
 0x4ac   : >> { %9095 = vmatprep.mubr.msk.bf16.mxu1 %vm7039_vm10, %v7432_v9 }
 0x4ad   : >> { %9120 = vmatpush3.bf16.msra.mxu1 %v8682_v23 }
 0x4ae   : >> { %9090 = vmatpush3.bf16.msra.mxu0 %v8682_v23 }
 0x4b0   : >> { %9096 = vmatmul.mubr.msk.bf16.vlgmr.msra.gmra.mrb[12].mxu1 %vm7039_vm10, %v7433_v0 }
 0x4b1   : >> { %9092 = vmatmul.mubr.msk.bf16.vlgmr.msra.gmra.mrb[0].mxu0 %vm7039_vm10, %v7431_v13  ;;  %9099 = vmatprep.mubr.msk.bf16.mxu1 %vm7039_vm10, %v7434_v36 }
 0x4b8   : >> { %9100 = vmatmul.mubr.msk.bf16.gmra.mrb[16].mxu1 %vm7039_vm10, %v7435_v60 }
 0x56b   : >> { %v9045_v2 = vpop.f32.mrb[0].mxu1 }
 0x56c   : >> { %v7243_v18 = vpop.f32.mrb[1].mxu1 }
 0x56d   : >> { %v9046_v62 = vpop.f32.mrb[2].mxu1 }
 0x56e   : >> { %v7246_v24 = vpop.f32.mrb[3].mxu1 }
 0x573   : >> { %v9049_v46 = vpop.f32.mrb[4].mxu1 }
 0x574   : >> { %v9073_v31 = vpop.f32.mrb[4].mxu0  ;;  %v7259_v52 = vpop.f32.mrb[5].mxu1 }
 0x575   : >> { %v7403_v54 = vadd.f32 %v9073_v31, %v9049_v46  ;;  %v7394_v61 = vpop.f32.mrb[5].mxu0  ;;  %v9050_v7 = vpop.f32.mrb[6].mxu1  ;;  %v9650_v31 = vmov 1983009808  }
 0x576   : >> { %v7395_v25 = vadd.f32 %v7394_v61, %v7259_v52  ;;  %v9074_v19 = vpop.f32.mrb[6].mxu0  ;;  %v7262_v32 = vpop.f32.mrb[7].mxu1  ;;  %v7615_v52 = vunpack.c.l.s4 %v9650_v31  ;;  %v7617_v61 = vlaneseq }
 0x577   : >> { %v7406_v26 = vadd.f32 %v9074_v19, %v9050_v7  ;;  %v7397_v34 = vpop.f32.mrb[7].mxu0 }
 0x578   : >> { %v7398_v12 = vadd.f32 %v7397_v34, %v7262_v32  ;;  %v7616_v32 = vunpack.c.0.s8 %v7615_v52  ;;  %v7618_v34 = vshrl.u32 %v7617_v61, 7 }
 0x57a   : >> { %v12719_v11 = vsub.s32 %v7616_v32, %v7618_v34 }
 0x57b   : >> { %v9053_v8 = vpop.f32.mrb[8].mxu1 }
 0x57c   : >> { %v9077_v6 = vpop.f32.mrb[8].mxu0  ;;  %v7275_v27 = vpop.f32.mrb[9].mxu1 }
 0x57d   : >> { %v7419_v17 = vadd.f32 %v9077_v6, %v9053_v8  ;;  %v7410_v23 = vpop.f32.mrb[9].mxu0  ;;  %v9054_v9 = vpop.f32.mrb[10].mxu1 }
 0x57e   : >> { %v7411_v49 = vadd.f32 %v7410_v23, %v7275_v27  ;;  %v9078_v13 = vpop.f32.mrb[10].mxu0  ;;  %v7278_v36 = vpop.f32.mrb[11].mxu1 }
 0x57f   : >> { %v12711_v0 = vadd.f32 %v9078_v13, %v9054_v9  ;;  %v7413_v60 = vpop.f32.mrb[11].mxu0 }
 0x580   : >> { %v12713_v46 = vadd.f32 %v7413_v60, %v7278_v36 }
 0x583   : >> { %v9097_v19 = vpop.f32.mrb[12].mxu1 }
 0x584   : >> { %v9093_v7 = vpop.f32.mrb[0].mxu0  ;;  %v7577_v8 = vadd.f32 %v9097_v19, %v7403_v54  ;;  %v7540_v3 = vpop.f32.mrb[13].mxu1 }
 0x585   : >> { %v9121_v1 = vadd.f32 %v9093_v7, %v9045_v2  ;;  %v7524_v6 = vpop.f32.mrb[1].mxu0  ;;  %v7575_v23 = vadd.f32 %v7540_v3, %v7395_v25  ;;  %v9098_v9 = vpop.f32.mrb[14].mxu1 }
 0x586   : >> { %v9122_v27 = vadd.f32 %v7524_v6, %v7243_v18  ;;  %v9094_v4 = vpop.f32.mrb[2].mxu0  ;;  %v7595_v13 = vadd.f32 %v12628_v33, %v7577_v8  ;;  %v7578_v36 = vadd.f32 %v9098_v9, %v7406_v26  ;;  %v7543_v31 = vpop.f32.mrb[15].mxu1 }
 0x587   : >> { %v12716_v5 = vadd.f32 %v9094_v4, %v9046_v62  ;;  %v7527_v60 = vpop.f32.mrb[3].mxu0  ;;  %v7576_v2 = vadd.f32 %v7543_v31, %v7398_v12  ;;  %v12725_v26 = vadd.f32 %v9121_v1, %v12628_v33  ;;  %v12728_v7 = vadd.f32 %v12628_v33, %v7575_v23 }
 0x588   : >> { %v7589_v10 = vadd.f32 %v9122_v27, %v12628_v33  ;;  %v9124_v52 = vadd.f32 %v7527_v60, %v7246_v24  ;;  %v7596_v54 = vadd.f32 %v12628_v33, %v7578_v36 }
 0x589   : >> { %v12731_v24 = vadd.f32 %v12628_v33, %v7576_v2 }
 0x58a   : >> { %v7601_v61 = vmax.f32 %v7589_v10, %v7595_v13  ;;  %v7590_v3 = vadd.f32 %v9124_v52, %v12628_v33 }
 0x58b   : >> { %v9101_v62 = vpop.f32.mrb[16].mxu1 }
 0x58c   : >> { %v7613_v18 = vcombine.high %v7601_v61, %v7601_v61  ;;  %v7620_v25 = vrot.slane %v7601_v61, %v12719_v11  ;;  %v7602_v4 = vmax.f32 %v7590_v3, %v7596_v54  ;;  %v7581_v12 = vadd.f32 %v9101_v62, %v7419_v17  ;;  %v7556_v19 = vpop.f32.mrb[17].mxu1 }
 0x58d   : >> { %v12735_v6 = vpop.f32.mrb[18].mxu1  ;;  %v12741_v23 = vadd.f32 %v7556_v19, %v7411_v49 }
 0x58e   : >> { %v7627_v10 = vrot.slane %v7613_v18, %v12719_v11  ;;  %v7628_v32 = vcombine.high %v7620_v25, %v7620_v25  ;;  %v7740_v34 = vsel %vm7739_vm11, %v7620_v25, -inf  ;;  %v7630_v8 = vcombine.high %v7602_v4, %v7602_v4  ;;  %v12743_v13 = vpop.f32.mrb[19].mxu1 }
 0x58f   : >> { %v7741_v27 = vrot.slane %v7740_v34, 4  ;;  %v7637_v1 = vrot.slane %v7602_v4, %v12719_v11  ;;  %v12739_v9 = vadd.f32 %v12628_v33, %v7581_v12 }
 0x590   : >> { %v7629_v17 = vcombine.high %v7627_v10, %v7627_v10  ;;  %v7747_v36 = vsel %vm7739_vm11, %v7628_v32, -inf  ;;  %v7754_v60 = vsel %vm7739_vm11, %v7627_v10, -inf  ;;  %v7644_v31 = vrot.slane %v7630_v8, %v12719_v11 }
 0x591   : >> { %v7742_v52 = vmax.f32 %v7740_v34, %v7741_v27  ;;  %v7748_v2 = vrot.slane %v7747_v36, 4  ;;  %v7755_v54 = vrot.slane %v7754_v60, 4  ;;  %v7645_v61 = vcombine.high %v7637_v1, %v7637_v1 }
 0x592   : >> { %v7761_v3 = vsel %vm7739_vm11, %v7629_v17, -inf  ;;  %v7646_v18 = vcombine.high %v7644_v31, %v7644_v31  ;;  %v7768_v25 = vsel %vm7739_vm11, %v7637_v1, -inf  ;;  %v7782_v49 = vsel %vm7739_vm11, %v7644_v31, -inf }
 0x593   : >> { %v7743_v4 = vrot.slane %v7742_v52, 2  ;;  %v7749_v62 = vmax.f32 %v7747_v36, %v7748_v2  ;;  %v7756_v12 = vmax.f32 %v7754_v60, %v7755_v54  ;;  %v7762_v19 = vrot.slane %v7761_v3, 4 }
 0x594   : >> { %v7769_v32 = vrot.slane %v7768_v25, 4  ;;  %v7775_v10 = vsel %vm7739_vm11, %v7645_v61, -inf  ;;  %v7783_v14 = vrot.slane %v7782_v49, 4  ;;  %v7789_v34 = vsel %vm7739_vm11, %v7646_v18, -inf }
 0x595   : >> { %v7744_v8 = vmax.f32 %v7742_v52, %v7743_v4  ;;  %v7750_v27 = vrot.slane %v7749_v62, 2  ;;  %v7757_v15 = vrot.slane %v7756_v12, 2  ;;  %v7763_v16 = vmax.f32 %v7761_v3, %v7762_v19 }
 0x596   : >> { %v7770_v17 = vmax.f32 %v7768_v25, %v7769_v32  ;;  %v7776_v20 = vrot.slane %v7775_v10, 4  ;;  %v7784_v1 = vmax.f32 %v7782_v49, %v7783_v14  ;;  %v7790_v21 = vrot.slane %v7789_v34, 4 }
 0x597   : >> { %v7745_v31 = vrot.slane %v7744_v8, 1  ;;  %v7751_v22 = vmax.f32 %v7749_v62, %v7750_v27  ;;  %v7758_v36 = vmax.f32 %v7756_v12, %v7757_v15  ;;  %v7764_v60 = vrot.slane %v7763_v16, 2 }
 0x598   : >> { %v7771_v2 = vrot.slane %v7770_v17, 2  ;;  %v7777_v54 = vmax.f32 %v7775_v10, %v7776_v20  ;;  %v7785_v61 = vrot.slane %v7784_v1, 2  ;;  %v7791_v28 = vmax.f32 %v7789_v34, %v7790_v21 }
 0x599   : >> { %v7746_v18 = vmax.f32 %v7744_v8, %v7745_v31  ;;  %v7752_v52 = vrot.slane %v7751_v22, 1  ;;  %v7759_v4 = vrot.slane %v7758_v36, 1  ;;  %v7765_v29 = vmax.f32 %v7763_v16, %v7764_v60 }
 0x59a   : >> { %v7772_v3 = vmax.f32 %v7770_v17, %v7771_v2  ;;  %v7778_v25 = vrot.slane %v7777_v54, 2  ;;  %v7786_v19 = vmax.f32 %v7784_v1, %v7785_v61  ;;  %v7792_v14 = vrot.slane %v7791_v28, 2 }
 0x59b   : >> { %v7753_v49 = vmax.f32 %v7751_v22, %v7752_v52  ;;  %v7760_v62 = vmax.f32 %v7758_v36, %v7759_v4  ;;  %v7766_v15 = vrot.slane %v7765_v29, 1  ;;  %v8717_v12 = vpack.c.bf16 %v7746_v18, %v7746_v18 }
 0x59c   : >> { %v7773_v32 = vrot.slane %v7772_v3, 1  ;;  %v7779_v20 = vmax.f32 %v7777_v54, %v7778_v25  ;;  %v7787_v10 = vrot.slane %v7786_v19, 1  ;;  %v7793_v21 = vmax.f32 %v7791_v28, %v7792_v14 }
 0x59d   : >> { %v7767_v34 = vmax.f32 %v7765_v29, %v7766_v15  ;;  %v8718_v8 = vpack.c.bf16 %v7753_v49, %v7753_v49  ;;  %v8719_v27 = vpack.c.bf16 %v7760_v62, %v7760_v62  ;;  %v8005_v16 = vunpack.c.l.b16 %v8717_v12 }
 0x59e   : >> { %v7774_v17 = vmax.f32 %v7772_v3, %v7773_v32  ;;  %v7780_v1 = vrot.slane %v7779_v20, 1  ;;  %v7788_v31 = vmax.f32 %v7786_v19, %v7787_v10  ;;  %v7794_v60 = vrot.slane %v7793_v21, 1 }
 0x59f   : >> { %v8720_v22 = vpack.c.bf16 %v7767_v34, %v7767_v34  ;;  %v8006_v36 = vunpack.c.l.b16 %v8718_v8  ;;  %v8007_v2 = vunpack.c.l.b16 %v8719_v27  ;;  %v7605_v61 = vmax.f32 %v12728_v7, %v12739_v9 }
 0x5a0   : >> { %v7781_v54 = vmax.f32 %v7779_v20, %v7780_v1  ;;  %v7795_v18 = vmax.f32 %v7793_v21, %v7794_v60  ;;  %v8721_v28 = vpack.c.bf16 %v7774_v17, %v7774_v17  ;;  %v8723_v52 = vpack.c.bf16 %v7788_v31, %v7788_v31 }
 0x5a1   : >> { %v8008_v29 = vunpack.c.l.b16 %v8720_v22  ;;  %v8030_v4 = vsel %vm8029_vm12, %v8006_v36, %v8005_v16  ;;  %v7681_v25 = vcombine.high %v7605_v61, %v7605_v61  ;;  %v7688_v3 = vrot.slane %v7605_v61, %v12719_v11 }
 0x5a2   : >> { %v8032_v19 = vsel %vm8031_vm13, %v8007_v2, %v8030_v4  ;;  %v8722_v14 = vpack.c.bf16 %v7781_v54, %v7781_v54  ;;  %v8724_v49 = vpack.c.bf16 %v7795_v18, %v7795_v18  ;;  %v8009_v62 = vunpack.c.l.b16 %v8721_v28 }
 0x5a3   : >> { %v8011_v15 = vunpack.c.l.b16 %v8723_v52  ;;  %v8034_v7 = vsel %vm8033_vm14, %v8008_v29, %v8032_v19  ;;  %v7695_v9 = vrot.slane %v7681_v25, %v12719_v11  ;;  %v7696_v12 = vcombine.high %v7688_v3, %v7688_v3 }
 0x5a4   : >> { %v8010_v32 = vunpack.c.l.b16 %v8722_v14  ;;  %v8012_v20 = vunpack.c.l.b16 %v8724_v49  ;;  %v8036_v10 = vsel %vm8035_vm15, %v8009_v62, %v8034_v7  ;;  %v7852_v21 = vsel %vm7739_vm11, %v7688_v3, -inf }
 0x5a5   : >> { %v7697_v34 = vcombine.high %v7695_v9, %v7695_v9  ;;  %v7853_v8 = vrot.slane %v7852_v21, 4  ;;  %v7859_v27 = vsel %vm7739_vm11, %v7696_v12, -inf  ;;  %v7866_v16 = vsel %vm7739_vm11, %v7695_v9, -inf }
 0x5a6   : >> { %v8038_v17 = vsel %vm8037_vm0, %v8010_v32, %v8036_v10  ;;  %v7860_v1 = vrot.slane %v7859_v27, 4  ;;  %v7867_v31 = vrot.slane %v7866_v16, 4  ;;  %v7597_v60 = vadd.f32 %v12628_v33, %v12741_v23 }
 0x5a7   : >> { %v8040_v22 = vsel %vm8039_vm1, %v8011_v15, %v8038_v17  ;;  %v7854_v36 = vmax.f32 %v7852_v21, %v7853_v8  ;;  %v7873_v2 = vsel %vm7739_vm11, %v7697_v34, -inf  ;;  %v7582_v61 = vadd.f32 %v12735_v6, %v12711_v0 }
 0x5a8   : >> { %v8042_v54 = vsel %vm8041_vm2, %v8012_v20, %v8040_v22  ;;  %v7861_v18 = vmax.f32 %v7859_v27, %v7860_v1  ;;  %v7868_v28 = vmax.f32 %v7866_v16, %v7867_v31  ;;  %v7874_v52 = vrot.slane %v7873_v2, 4 }
 0x5a9   : >> { %v8057_v29 = vpack.c.b16 %v8042_v54, %v8042_v54  ;;  %v7855_v4 = vrot.slane %v7854_v36, 2  ;;  %v7603_v23 = vmax.f32 %v12725_v26, %v7597_v60  ;;  %v7600_v25 = vadd.f32 %v12628_v33, %v7582_v61 }
 0x5aa   : >> { %v7862_v3 = vrot.slane %v7861_v18, 2  ;;  %v7869_v19 = vrot.slane %v7868_v28, 2  ;;  %v7875_v14 = vmax.f32 %v7873_v2, %v7874_v52  ;;  %v7580_v0 = vadd.f32 %v12743_v13, %v12713_v46 }
 0x5ab   : >> { %8068 = vst.msk [vmem:[%s12773_s7] sm:$0xf] %vm8067_vm3, %v8057_v29  ;;  %v7856_v6 = vmax.f32 %v7854_v36, %v7855_v4  ;;  %v7647_v49 = vcombine.high %v7603_v23, %v7603_v23  ;;  %v7654_v62 = vrot.slane %v7603_v23, %v12719_v11  ;;  %v7606_v15 = vmax.f32 %v12731_v24, %v7600_v25 }
 0x5ac   : >> { %v7863_v7 = vmax.f32 %v7861_v18, %v7862_v3  ;;  %v7870_v9 = vmax.f32 %v7868_v28, %v7869_v19  ;;  %v7876_v12 = vrot.slane %v7875_v14, 2  ;;  %v7598_v25 = vadd.f32 %v12628_v33, %v7580_v0 }
 0x5ad   : >> { %v7857_v26 = vrot.slane %v7856_v6, 1  ;;  %v7661_v32 = vrot.slane %v7647_v49, %v12719_v11  ;;  %v7662_v20 = vcombine.high %v7654_v62, %v7654_v62  ;;  %v7796_v10 = vsel %vm7739_vm11, %v7654_v62, -inf }
 0x5ae   : >> { %v7864_v21 = vrot.slane %v7863_v7, 1  ;;  %v7871_v34 = vrot.slane %v7870_v9, 1  ;;  %v7877_v46 = vmax.f32 %v7875_v14, %v7876_v12  ;;  %v7797_v13 = vrot.slane %v7796_v10, 4 }
 0x5af   : >> { %v7858_v8 = vmax.f32 %v7856_v6, %v7857_v26  ;;  %v7663_v27 = vcombine.high %v7661_v32, %v7661_v32  ;;  %v7803_v16 = vsel %vm7739_vm11, %v7662_v20, -inf  ;;  %v7810_v17 = vsel %vm7739_vm11, %v7661_v32, -inf }
 0x5b0   : >> { %v7865_v24 = vmax.f32 %v7863_v7, %v7864_v21  ;;  %v7878_v1 = vrot.slane %v7877_v46, 1  ;;  %v7798_v31 = vmax.f32 %v7796_v10, %v7797_v13  ;;  %v7804_v60 = vrot.slane %v7803_v16, 4 }
 0x5b1   : >> { %v7811_v22 = vrot.slane %v7810_v17, 4  ;;  %v7817_v36 = vsel %vm7739_vm11, %v7663_v27, -inf  ;;  %v7872_v2 = vmax.f32 %v7870_v9, %v7871_v34  ;;  %v8733_v61 = vpack.c.bf16 %v7858_v8, %v7858_v8 }
 0x5b2   : >> { %v7799_v54 = vrot.slane %v7798_v31, 2  ;;  %v8734_v18 = vpack.c.bf16 %v7865_v24, %v7865_v24  ;;  %v7805_v28 = vmax.f32 %v7803_v16, %v7804_v60  ;;  %v7818_v29 = vrot.slane %v7817_v36, 4 }
 0x5b3   : >> { %v7812_v52 = vmax.f32 %v7810_v17, %v7811_v22  ;;  %v7879_v4 = vmax.f32 %v7877_v46, %v7878_v1  ;;  %v7698_v6 = vcombine.high %v7606_v15, %v7606_v15  ;;  %v8735_v49 = vpack.c.bf16 %v7872_v2, %v7872_v2 }
 0x5b4   : >> { %v7800_v23 = vmax.f32 %v7798_v31, %v7799_v54  ;;  %v7806_v3 = vrot.slane %v7805_v28, 2  ;;  %v7819_v14 = vmax.f32 %v7817_v36, %v7818_v29  ;;  %v8021_v62 = vunpack.c.l.b16 %v8733_v61 }
 0x5b5   : >> { %v7813_v19 = vrot.slane %v7812_v52, 2  ;;  %v7705_v12 = vrot.slane %v7606_v15, %v12719_v11  ;;  %v8022_v9 = vunpack.c.l.b16 %v8734_v18  ;;  %v7712_v21 = vrot.slane %v7698_v6, %v12719_v11 }
 0x5b6   : >> { %v7801_v7 = vrot.slane %v7800_v23, 1  ;;  %v7807_v26 = vmax.f32 %v7805_v28, %v7806_v3  ;;  %v7820_v20 = vrot.slane %v7819_v14, 2  ;;  %v8736_v16 = vpack.c.bf16 %v7879_v4, %v7879_v4 }
 0x5b7   : >> { %v7814_v32 = vmax.f32 %v7812_v52, %v7813_v19  ;;  %v7713_v34 = vcombine.high %v7705_v12, %v7705_v12  ;;  %v7880_v46 = vsel %vm7739_vm11, %v7705_v12, -inf  ;;  %v7714_v17 = vcombine.high %v7712_v21, %v7712_v21 }
 0x5b8   : >> { %v7802_v10 = vmax.f32 %v7800_v23, %v7801_v7  ;;  %v7808_v0 = vrot.slane %v7807_v26, 1  ;;  %v7821_v8 = vmax.f32 %v7819_v14, %v7820_v20  ;;  %v7881_v27 = vrot.slane %v7880_v46, 4 }
 0x5b9   : >> { %v7815_v13 = vrot.slane %v7814_v32, 1  ;;  %v7887_v24 = vsel %vm7739_vm11, %v7713_v34, -inf  ;;  %v7894_v15 = vsel %vm7739_vm11, %v7712_v21, -inf  ;;  %v8023_v1 = vunpack.c.l.b16 %v8735_v49 }
 0x5ba   : >> { %v7809_v31 = vmax.f32 %v7807_v26, %v7808_v0  ;;  %v7822_v60 = vrot.slane %v7821_v8, 1  ;;  %v7882_v22 = vmax.f32 %v7880_v46, %v7881_v27  ;;  %v8050_v36 = vsel %vm8029_vm12, %v8022_v9, %v8021_v62 }
 0x5bb   : >> { %v7888_v2 = vrot.slane %v7887_v24, 4  ;;  %v7895_v61 = vrot.slane %v7894_v15, 4  ;;  %v7901_v54 = vsel %vm7739_vm11, %v7714_v17, -inf  ;;  %v7592_v18 = vadd.f32 %v12716_v5, %v12628_v33 }
 0x5bc   : >> { %v7816_v28 = vmax.f32 %v7814_v32, %v7815_v13  ;;  %v8725_v52 = vpack.c.bf16 %v7802_v10, %v7802_v10  ;;  %v7883_v29 = vrot.slane %v7882_v22, 2  ;;  %v8024_v4 = vunpack.c.l.b16 %v8736_v16 }
 0x5bd   : >> { %v7889_v23 = vmax.f32 %v7887_v24, %v7888_v2  ;;  %v7896_v3 = vmax.f32 %v7894_v15, %v7895_v61  ;;  %v7902_v19 = vrot.slane %v7901_v54, 4  ;;  %v8051_v14 = vsel %vm8031_vm13, %v8023_v1, %v8050_v36 }
 0x5be   : >> { %v7823_v6 = vmax.f32 %v7821_v8, %v7822_v60  ;;  %v8726_v49 = vpack.c.bf16 %v7809_v31, %v7809_v31  ;;  %v7884_v7 = vmax.f32 %v7882_v22, %v7883_v29  ;;  %v7604_v26 = vmax.f32 %v7592_v18, %v7598_v25 }
 0x5bf   : >> { %v7890_v62 = vrot.slane %v7889_v23, 2  ;;  %v7897_v12 = vrot.slane %v7896_v3, 2  ;;  %v7903_v9 = vmax.f32 %v7901_v54, %v7902_v19  ;;  %v8727_v20 = vpack.c.bf16 %v7816_v28, %v7816_v28 }
 0x5c0   : >> { %v8013_v21 = vunpack.c.l.b16 %v8725_v52  ;;  %v7885_v34 = vrot.slane %v7884_v7, 1  ;;  %v8052_v46 = vsel %vm8033_vm14, %v8024_v4, %v8051_v14  ;;  %v8728_v0 = vpack.c.bf16 %v7823_v6, %v7823_v6 }
 0x5c1   : >> { %v7891_v5 = vmax.f32 %v7889_v23, %v7890_v62  ;;  %v7898_v32 = vmax.f32 %v7896_v3, %v7897_v12  ;;  %v7904_v10 = vrot.slane %v7903_v9, 2  ;;  %v7664_v27 = vcombine.high %v7604_v26, %v7604_v26 }
 0x5c2   : >> { %v7886_v13 = vmax.f32 %v7884_v7, %v7885_v34  ;;  %v7671_v16 = vrot.slane %v7604_v26, %v12719_v11  ;;  %v8014_v8 = vunpack.c.l.b16 %v8726_v49  ;;  %v8015_v49 = vunpack.c.l.b16 %v8727_v20 }
 0x5c3   : >> { %v7892_v17 = vrot.slane %v7891_v5, 1  ;;  %v7899_v24 = vrot.slane %v7898_v32, 1  ;;  %v7905_v15 = vmax.f32 %v7903_v9, %v7904_v10  ;;  %v7678_v25 = vrot.slane %v7664_v27, %v12719_v11 }
 0x5c4   : >> { %v8737_v1 = vpack.c.bf16 %v7886_v13, %v7886_v13  ;;  %v7679_v31 = vcombine.high %v7671_v16, %v7671_v16  ;;  %v7824_v60 = vsel %vm7739_vm11, %v7671_v16, -inf  ;;  %v8016_v20 = vunpack.c.l.b16 %v8728_v0 }
 0x5c5   : >> { %v7893_v22 = vmax.f32 %v7891_v5, %v7892_v17  ;;  %v7900_v36 = vmax.f32 %v7898_v32, %v7899_v24  ;;  %v7906_v2 = vrot.slane %v7905_v15, 1  ;;  %v7825_v61 = vrot.slane %v7824_v60, 4 }
 0x5c6   : >> { %v8025_v54 = vunpack.c.l.b16 %v8737_v1  ;;  %v7680_v18 = vcombine.high %v7678_v25, %v7678_v25  ;;  %v7831_v28 = vsel %vm7739_vm11, %v7679_v31, -inf  ;;  %v7838_v52 = vsel %vm7739_vm11, %v7678_v25, -inf }
 0x5c7   : >> { %v7907_v29 = vmax.f32 %v7905_v15, %v7906_v2  ;;  %v8738_v4 = vpack.c.bf16 %v7893_v22, %v7893_v22  ;;  %v8739_v23 = vpack.c.bf16 %v7900_v36, %v7900_v36  ;;  %v7826_v3 = vmax.f32 %v7824_v60, %v7825_v61 }
 0x5c8   : >> { %v8053_v19 = vsel %vm8035_vm15, %v8025_v54, %v8052_v46  ;;  %v7832_v11 = vrot.slane %v7831_v28, 4  ;;  %v7839_v14 = vrot.slane %v7838_v52, 4  ;;  %v7845_v6 = vsel %vm7739_vm11, %v7680_v18, -inf }
 0x5c9   : >> { %v8740_v7 = vpack.c.bf16 %v7907_v29, %v7907_v29  ;;  %v8026_v62 = vunpack.c.l.b16 %v8738_v4  ;;  %v7827_v12 = vrot.slane %v7826_v3, 2  ;;  %v8027_v9 = vunpack.c.l.b16 %v8739_v23 }
 0x5ca   : >> { %v7833_v26 = vmax.f32 %v7831_v28, %v7832_v11  ;;  %v7840_v34 = vmax.f32 %v7838_v52, %v7839_v14  ;;  %v7846_v5 = vrot.slane %v7845_v6, 4  ;;  %v8043_v32 = vsel %vm8029_vm12, %v8014_v8, %v8013_v21 }
 0x5cb   : >> { %v8028_v10 = vunpack.c.l.b16 %v8740_v7  ;;  %v8054_v13 = vsel %vm8037_vm0, %v8026_v62, %v8053_v19  ;;  %v7828_v27 = vmax.f32 %v7826_v3, %v7827_v12  ;;  %v8044_v21 = vsel %vm8031_vm13, %v8015_v49, %v8043_v32 }
 0x5cc   : >> { %v8055_v46 = vsel %vm8039_vm1, %v8027_v9, %v8054_v13  ;;  %v7834_v16 = vrot.slane %v7833_v26, 2  ;;  %v7841_v17 = vrot.slane %v7840_v34, 2  ;;  %v7847_v24 = vmax.f32 %v7845_v6, %v7846_v5 }
 0x5cd   : >> { %v8056_v15 = vsel %vm8041_vm2, %v8028_v10, %v8055_v46  ;;  %v7829_v1 = vrot.slane %v7828_v27, 1  ;;  %v8045_v52 = vsel %vm8033_vm14, %v8016_v20, %v8044_v21 }
 0x5ce   : >> { %v8059_v25 = vpack.c.b16 %v8056_v15, %v8056_v15  ;;  %v7835_v31 = vmax.f32 %v7833_v26, %v7834_v16  ;;  %v7842_v60 = vmax.f32 %v7840_v34, %v7841_v17  ;;  %v7848_v22 = vrot.slane %v7847_v24, 2 }
 0x5cf   : >> { %v7830_v8 = vmax.f32 %v7828_v27, %v7829_v1 }
 0x5d0   : >> { %8070 = vst.msk [vmem:[%s12773_s7 + $0x8] sm:$0xf] %vm8067_vm3, %v8059_v25  ;;  %v7836_v36 = vrot.slane %v7835_v31, 1  ;;  %v7843_v2 = vrot.slane %v7842_v60, 1  ;;  %v7849_v61 = vmax.f32 %v7847_v24, %v7848_v22 }
 0x5d1   : >> { %v8729_v54 = vpack.c.bf16 %v7830_v8, %v7830_v8 }
 0x5d2   : >> { %v7837_v18 = vmax.f32 %v7835_v31, %v7836_v36  ;;  %v7844_v28 = vmax.f32 %v7842_v60, %v7843_v2  ;;  %v7850_v0 = vrot.slane %v7849_v61, 1 }
 0x5d3   : >> { %v8017_v29 = vunpack.c.l.b16 %v8729_v54 }
 0x5d4   : >> { %v7851_v4 = vmax.f32 %v7849_v61, %v7850_v0  ;;  %v8730_v23 = vpack.c.bf16 %v7837_v18, %v7837_v18  ;;  %v8731_v3 = vpack.c.bf16 %v7844_v28, %v7844_v28 }
 0x5d5   : >> { %v8046_v19 = vsel %vm8035_vm15, %v8017_v29, %v8045_v52 }
 0x5d6   : >> { %v8732_v11 = vpack.c.bf16 %v7851_v4, %v7851_v4  ;;  %v8018_v14 = vunpack.c.l.b16 %v8730_v23  ;;  %v8019_v6 = vunpack.c.l.b16 %v8731_v3 }
 0x5d7   : > { %7130 = sbr.rel (!%p7128_p5) target bundleno = 1150 (0x47e), region = 97 }
 0x5d8   : >> { %v8020_v49 = vunpack.c.l.b16 %v8732_v11  ;;  %v8047_v7 = vsel %vm8037_vm0, %v8018_v14, %v8046_v19 }
 0x5d9   : >> { %v8048_v62 = vsel %vm8039_vm1, %v8019_v6, %v8047_v7 }
 0x5da   : >> { %v8049_v12 = vsel %vm8041_vm2, %v8020_v49, %v8048_v62 }
 0x5db   : >> { %v8058_v9 = vpack.c.b16 %v8049_v12, %v8049_v12 }
 0x5dd   : >> { %8069 = vst.msk [vmem:[%s12773_s7 + $0x4] sm:$0xf] %vm8067_vm3, %v8058_v9 }
 0x5de PF: > { %s14_s15 = sadd.s32 1, %s9635_s15  }
 0x5df   : > { %p11_p6 = scmp.ge.s32.totalorder %s14_s15, 8  }
 0x5e1   :  { %13 = sbr.rel (!%p11_p6) target bundleno = 1 (0x1), region = 108 }

// kernel: hwfnet_forward.3
= control target key start
LH: loop header
LB: loop body
LE: loop exit
PB: predicated region body
PF: predicated region fallthrough
CT: control target
= control target key end

     0   :  { %s6548_s21 = smov 0   ;;  %s7585_s0 = inlined_call_operand.vmem [shape: bf16[6,30976], index: 0, kind: input, shape index: {}]   ;;  %s7586_s1 = inlined_call_operand.vmem [shape: s8[30976,128], index: 1, kind: input, shape index: {}]   ;;  %s7587_s2 = inlined_call_operand.vmem [shape: f32[1,128], index: 2, kind: input, shape index: {}]   ;;  %s7588_s3 = inlined_call_operand.vmem [shape: f32[1,128], index: 3, kind: input, shape index: {}]   ;;  %s7589_s4 = inlined_call_operand.vmem [shape: bf16[128,14], index: 4, kind: input, shape index: {}]   ;;  %s7590_s5 = inlined_call_operand.vmem [shape: f32[1,14], index: 5, kind: input, shape index: {}]   ;;  %s7591_s6 = inlined_call_operand.vmem [shape: f32[6,14], index: 6, kind: output, shape index: {}]  }
   0x1 LB: > { %s6554_s22 = sadd.s32 4294967295, %s6506_s21   ;;  %p4837_p0 = scmp.ge.s32.totalorder %s6506_s21, 1  ;;  %s6506_s21 = sphi %s6548_s21, %s16_s21  }
   0x2   : > { %p219_p1 = scmp.lt.s32.totalorder %s6506_s21, 3 }
   0x4   : > { %p220_p2 = pnand %p4837_p0, %p219_p1 }
   0x5   : > { %s249_s23 = smul.u32 (!%p220_p2), 121, %s6554_s22  ;;  %p4840_p5 = scmp.ne.s32.totalorder (!%p220_p2), %s6554_s22, 0 }
   0x6   : > { %223 = sbr.rel (%p220_p2) target bundleno = 1780 (0x6f4), region = 44 }
   0x7   : > { %s255_s24 = smul.u32 (!%p220_p2), 484, %s6554_s22  ;;  %p250_p3 = scmp.lt.s32.totalorder (!%p220_p2), %s249_s23, 241 }
   0x9   : > { %p256_p4 = scmp.lt.s32.totalorder (!%p220_p2), %s255_s24, 967 }
   0xd   : > { %s7593_s23 = smov (!%p250_p3, %s249_s23), 241  ;;  %s7595_s24 = smov (!%p256_p4, %s255_s24), 967 }
   0xe   : > { %s4838_s25 = sshll.u32 %s7593_s23, 2  ;;  %s4839_s29 = sshll.u32 %s7595_s24, 3  ;;  %v6508_v0 = vmov (!%p4840_p5), 0.0  }
   0xf   : > { %s6563_s28 = scalar_lea.vmem %s7585_s0, %s4838_s25  ;;  %s6568_s8 = scalar_lea.vmem %s7586_s1, %s4839_s29  ;;  %266 = vst [vmem:[#allocation2] sm:$0x3f] (!%p4840_p5), %v6508_v0 }
  0x10   : > { %265 = sbr.rel (%p4840_p5) target bundleno = 23 (0x17), region = 48 }
  0x17 PF: > { %v271_v1 = vld [vmem:[%s6568_s8 + $0x20] sm:$0xff]  ;;  %v272_v11 = vld [vmem:[%s6568_s8 + $0x28] sm:$0xff]  ;;  %v273_v26 = vld [vmem:[%s6568_s8 + $0x30] sm:$0xff]  ;;  %vm6510_vm0 = vmmov 0   ;;  %p4962_p6 = scmp.ne.s32.totalorder %s6554_s22, 1 }
  0x18   : > { %v279_v2 = vld [vmem:[%s6568_s8 + $0x60] sm:$0xff]  ;;  %v759_v4 = vunpack.c.l.s8.bf16 %v271_v1  ;;  %v760_v5 = vunpack.c.h.s8.bf16 %v271_v1  ;;  %v280_v12 = vld [vmem:[%s6568_s8 + $0x68] sm:$0xff]  ;;  %v761_v15 = vunpack.c.l.s8.bf16 %v272_v11  ;;  %v762_v23 = vunpack.c.h.s8.bf16 %v272_v11  ;;  %v281_v27 = vld [vmem:[%s6568_s8 + $0x70] sm:$0xff] }
  0x19   : > { %v267_v3 = vld [vmem:[%s6568_s8] sm:$0xff]  ;;  %v775_v6 = vunpack.c.l.s8.bf16 %v279_v2  ;;  %v776_v7 = vunpack.c.h.s8.bf16 %v279_v2  ;;  %v777_v16 = vunpack.c.l.s8.bf16 %v280_v12  ;;  %v268_v17 = vld [vmem:[%s6568_s8 + $0x8] sm:$0xff]  ;;  %v778_v24 = vunpack.c.h.s8.bf16 %v280_v12  ;;  %v269_v33 = vld [vmem:[%s6568_s8 + $0x10] sm:$0xff] }
  0x1a   : > { %v275_v8 = vld [vmem:[%s6568_s8 + $0x40] sm:$0xff]  ;;  %v751_v9 = vunpack.c.l.s8.bf16 %v267_v3  ;;  %4976 = vmatprep.subr.bf16.mxu0 %v759_v4  ;;  %v752_v13 = vunpack.c.h.s8.bf16 %v267_v3  ;;  %v276_v18 = vld [vmem:[%s6568_s8 + $0x48] sm:$0xff]  ;;  %v753_v21 = vunpack.c.l.s8.bf16 %v268_v17  ;;  %v754_v29 = vunpack.c.h.s8.bf16 %v268_v17  ;;  %v277_v34 = vld [vmem:[%s6568_s8 + $0x50] sm:$0xff] }
  0x1b   : > { %v767_v10 = vunpack.c.l.s8.bf16 %v275_v8  ;;  %4998 = vmatprep.subr.bf16.mxu1 %v775_v6  ;;  %v768_v14 = vunpack.c.h.s8.bf16 %v275_v8  ;;  %v6580_v19 = vld [vmem:[%s6563_s28] sm:$0x77]  ;;  %v6583_v20 = vld [vmem:[%s6563_s28 + $0x8] sm:$0x77]  ;;  %v769_v22 = vunpack.c.l.s8.bf16 %v276_v18  ;;  %v770_v30 = vunpack.c.h.s8.bf16 %v276_v18  ;;  %v274_v39 = vld [vmem:[%s6568_s8 + $0x38] sm:$0xff] }
  0x1c   : > { %4977 = vmatpush3.bf16.msra.mxu0 %v751_v9  ;;  %v4842_v25 = vcombine.high %v6580_v19, %v6580_v19  ;;  %v4844_v28 = vcombine.high %v6583_v20, %v6583_v20  ;;  %v763_v31 = vunpack.c.l.s8.bf16 %v273_v26  ;;  %v779_v32 = vunpack.c.l.s8.bf16 %v281_v27  ;;  %v282_v40 = vld [vmem:[%s6568_s8 + $0x78] sm:$0xff]  ;;  %v287_v51 = vld [vmem:[%s6568_s8 + $0xa0] sm:$0xff]  ;;  %v6606_v61 = vld [vmem:[%s6563_s28 + $0x10] sm:$0x77] }
  0x1d   : > { %4999 = vmatpush3.bf16.msra.mxu1 %v767_v10  ;;  %4978 = vmatprep.subr.bf16.mxu0 %v760_v5  ;;  %v755_v35 = vunpack.c.l.s8.bf16 %v269_v33  ;;  %v771_v36 = vunpack.c.l.s8.bf16 %v277_v34  ;;  %v764_v37 = vunpack.c.h.s8.bf16 %v273_v26  ;;  %v780_v38 = vunpack.c.h.s8.bf16 %v281_v27  ;;  %v270_v45 = vld [vmem:[%s6568_s8 + $0x18] sm:$0xff]  ;;  %v295_v52 = vld [vmem:[%s6568_s8 + $0xe0] sm:$0xff]  ;;  %v288_v3 = vld [vmem:[%s6568_s8 + $0xa8] sm:$0xff] }
  0x1e   : > { %5000 = vmatprep.subr.bf16.mxu1 %v776_v7  ;;  %2237 = vmatprep.mubr.bf16.mxu0 %v4842_v25  ;;  %v756_v41 = vunpack.c.h.s8.bf16 %v269_v33  ;;  %v772_v42 = vunpack.c.h.s8.bf16 %v277_v34  ;;  %v765_v43 = vunpack.c.l.s8.bf16 %v274_v39  ;;  %v781_v44 = vunpack.c.l.s8.bf16 %v282_v40  ;;  %v278_v46 = vld [vmem:[%s6568_s8 + $0x58] sm:$0xff]  ;;  %v283_v56 = vld [vmem:[%s6568_s8 + $0x80] sm:$0xff]  ;;  %v296_v4 = vld [vmem:[%s6568_s8 + $0xe8] sm:$0xff] }
  0x1f   : > { %2277 = vmatprep.mubr.bf16.mxu1 %v4844_v28  ;;  %v757_v47 = vunpack.c.l.s8.bf16 %v270_v45  ;;  %v773_v48 = vunpack.c.l.s8.bf16 %v278_v46  ;;  %v766_v49 = vunpack.c.h.s8.bf16 %v274_v39  ;;  %v782_v50 = vunpack.c.h.s8.bf16 %v282_v40  ;;  %v291_v58 = vld [vmem:[%s6568_s8 + $0xc0] sm:$0xff]  ;;  %v6609_v62 = vld [vmem:[%s6563_s28 + $0x18] sm:$0x77]  ;;  %v284_v10 = vld [vmem:[%s6568_s8 + $0x88] sm:$0xff] }
  0x20   : > { %4979 = vmatpush3.bf16.msra.mxu0 %v752_v13  ;;  %v758_v53 = vunpack.c.h.s8.bf16 %v270_v45  ;;  %v774_v54 = vunpack.c.h.s8.bf16 %v278_v46  ;;  %v791_v55 = vunpack.c.l.s8.bf16 %v287_v51  ;;  %v807_v57 = vunpack.c.l.s8.bf16 %v295_v52  ;;  %v292_v12 = vld [vmem:[%s6568_s8 + $0xc8] sm:$0xff]  ;;  %v289_v17 = vld [vmem:[%s6568_s8 + $0xb0] sm:$0xff]  ;;  %v286_v34 = vld [vmem:[%s6568_s8 + $0x98] sm:$0xff] }
  0x21   : > { %5001 = vmatpush3.bf16.msra.mxu1 %v768_v14  ;;  %4980 = vmatprep.subr.bf16.mxu0 %v761_v15  ;;  %v4841_v59 = vcombine.low %v6580_v19, %v6580_v19  ;;  %v4843_v60 = vcombine.low %v6583_v20, %v6583_v20  ;;  %v783_v63 = vunpack.c.l.s8.bf16 %v283_v56  ;;  %v799_v0 = vunpack.c.l.s8.bf16 %v291_v58  ;;  %v297_v18 = vld [vmem:[%s6568_s8 + $0xf0] sm:$0xff]  ;;  %v299_v46 = vld [vmem:[%s6568_s8 + $0x100] sm:$0xff] }
  0x22   : > { %5002 = vmatprep.subr.bf16.mxu1 %v777_v16  ;;  %v792_v1 = vunpack.c.h.s8.bf16 %v287_v51  ;;  %v808_v2 = vunpack.c.h.s8.bf16 %v295_v52  ;;  %v4846_v5 = vcombine.high %v6606_v61, %v6606_v61  ;;  %v4848_v6 = vcombine.high %v6609_v62, %v6609_v62  ;;  %v6636_v51 = vld [vmem:[%s6563_s28 + $0x20] sm:$0x77]  ;;  %v6639_v52 = vld [vmem:[%s6563_s28 + $0x28] sm:$0x77] }
  0x23   : > { %v784_v7 = vunpack.c.h.s8.bf16 %v283_v56  ;;  %v800_v8 = vunpack.c.h.s8.bf16 %v291_v58  ;;  %v793_v9 = vunpack.c.l.s8.bf16 %v288_v3  ;;  %v809_v11 = vunpack.c.l.s8.bf16 %v296_v4  ;;  %v312_v58 = vld [vmem:[%s6568_s8 + $0x168] sm:$0xff] }
  0x24   : > { %4981 = vmatpush3.bf16.msra.mxu0 %v753_v21  ;;  %v785_v13 = vunpack.c.l.s8.bf16 %v284_v10  ;;  %v801_v14 = vunpack.c.l.s8.bf16 %v292_v12  ;;  %v794_v15 = vunpack.c.h.s8.bf16 %v288_v3  ;;  %v810_v16 = vunpack.c.h.s8.bf16 %v296_v4 }
  0x25   : > { %5003 = vmatpush3.bf16.msra.mxu1 %v769_v22  ;;  %4982 = vmatprep.subr.bf16.mxu0 %v762_v23  ;;  %v786_v19 = vunpack.c.h.s8.bf16 %v284_v10  ;;  %v802_v20 = vunpack.c.h.s8.bf16 %v292_v12  ;;  %v795_v21 = vunpack.c.l.s8.bf16 %v289_v17  ;;  %v285_v22 = vld [vmem:[%s6568_s8 + $0x90] sm:$0xff]  ;;  %v811_v23 = vunpack.c.l.s8.bf16 %v297_v18 }
  0x26   : > { %5004 = vmatprep.subr.bf16.mxu1 %v778_v24  ;;  %v293_v24 = vld [vmem:[%s6568_s8 + $0xd0] sm:$0xff]  ;;  %v787_v25 = vunpack.c.l.s8.bf16 %v285_v22  ;;  %v796_v27 = vunpack.c.h.s8.bf16 %v289_v17  ;;  %v812_v28 = vunpack.c.h.s8.bf16 %v297_v18  ;;  %vm6512_vm1 = vmmov (!%p4962_p6), 0  }
  0x27   : > { %v803_v26 = vunpack.c.l.s8.bf16 %v293_v24  ;;  %v301_v12 = vld [vmem:[%s6568_s8 + $0x110] sm:$0xff]  ;;  %vm4781_vm2 = vcmask (!%p4962_p6), 111616  }
  0x28   : > { %4983 = vmatpush3.bf16.msra.mxu0 %v754_v29  ;;  %v290_v29 = vld [vmem:[%s6568_s8 + $0xb8] sm:$0xff] }
  0x29   : > { %5005 = vmatpush3.bf16.msra.mxu1 %v770_v30  ;;  %4984 = vmatprep.subr.bf16.mxu0 %v763_v31  ;;  %v298_v30 = vld [vmem:[%s6568_s8 + $0xf8] sm:$0xff]  ;;  %v788_v31 = vunpack.c.h.s8.bf16 %v285_v22  ;;  %v797_v33 = vunpack.c.l.s8.bf16 %v290_v29  ;;  %v798_v39 = vunpack.c.h.s8.bf16 %v290_v29 }
  0x2a   : > { %5006 = vmatprep.subr.bf16.mxu1 %v779_v32  ;;  %v804_v32 = vunpack.c.h.s8.bf16 %v293_v24  ;;  %v814_v40 = vunpack.c.h.s8.bf16 %v298_v30  ;;  %v302_v24 = vld [vmem:[%s6568_s8 + $0x118] sm:$0xff] }
  0x2c   : > { %4985 = vmatpush3.bf16.msra.mxu0 %v755_v35  ;;  %v813_v35 = vunpack.c.l.s8.bf16 %v298_v30 }
  0x2d   : > { %5007 = vmatpush3.bf16.msra.mxu1 %v771_v36  ;;  %4986 = vmatprep.subr.bf16.mxu0 %v764_v37  ;;  %v294_v36 = vld [vmem:[%s6568_s8 + $0xd8] sm:$0xff]  ;;  %v789_v37 = vunpack.c.l.s8.bf16 %v286_v34 }
  0x2e   : > { %5008 = vmatprep.subr.bf16.mxu1 %v780_v38  ;;  %v805_v38 = vunpack.c.l.s8.bf16 %v294_v36 }
  0x30   : > { %4987 = vmatpush3.bf16.msra.mxu0 %v756_v41  ;;  %v303_v41 = vld [vmem:[%s6568_s8 + $0x120] sm:$0xff] }
  0x31   : > { %5009 = vmatpush3.bf16.msra.mxu1 %v772_v42  ;;  %4988 = vmatprep.subr.bf16.mxu0 %v765_v43  ;;  %v311_v42 = vld [vmem:[%s6568_s8 + $0x160] sm:$0xff]  ;;  %v790_v43 = vunpack.c.h.s8.bf16 %v286_v34  ;;  %v823_v45 = vunpack.c.l.s8.bf16 %v303_v41 }
  0x32   : > { %5010 = vmatprep.subr.bf16.mxu1 %v781_v44  ;;  %v806_v44 = vunpack.c.h.s8.bf16 %v294_v36  ;;  %v840_v56 = vunpack.c.h.s8.bf16 %v311_v42  ;;  %v315_v36 = vld [vmem:[%s6568_s8 + $0x180] sm:$0xff] }
  0x34   : > { %4989 = vmatpush3.bf16.msra.mxu0 %v757_v47  ;;  %v839_v47 = vunpack.c.l.s8.bf16 %v311_v42  ;;  %v6669_v42 = vld [vmem:[%s6563_s28 + $0x38] sm:$0x77] }
  0x35   : > { %5011 = vmatpush3.bf16.msra.mxu1 %v773_v48  ;;  %4990 = vmatprep.subr.bf16.mxu0 %v766_v49  ;;  %v307_v48 = vld [vmem:[%s6568_s8 + $0x140] sm:$0xff]  ;;  %v4845_v49 = vcombine.low %v6606_v61, %v6606_v61  ;;  %v816_v61 = vunpack.c.h.s8.bf16 %v299_v46 }
  0x36   : > { %5012 = vmatprep.subr.bf16.mxu1 %v782_v50  ;;  %v4847_v50 = vcombine.low %v6609_v62, %v6609_v62  ;;  %v832_v62 = vunpack.c.h.s8.bf16 %v307_v48 }
  0x38   : > { %4991 = vmatpush3.bf16.msra.mxu0 %v758_v53  ;;  %v815_v53 = vunpack.c.l.s8.bf16 %v299_v46 }
  0x39   : > { %5013 = vmatpush3.bf16.msra.mxu1 %v774_v54  ;;  %5020 = vmatprep.subr.bf16.mxu0 %v791_v55  ;;  %v831_v54 = vunpack.c.l.s8.bf16 %v307_v48  ;;  %v824_v55 = vunpack.c.h.s8.bf16 %v303_v41  ;;  %v6666_v41 = vld [vmem:[%s6563_s28 + $0x30] sm:$0x77]  ;;  %v328_v48 = vld [vmem:[%s6568_s8 + $0x1e8] sm:$0xff] }
  0x3a   : > { %5042 = vmatprep.subr.bf16.mxu1 %v807_v57  ;;  %v304_v57 = vld [vmem:[%s6568_s8 + $0x128] sm:$0xff] }
  0x3b   : > { %2238 = vmatmul.mubr.bf16.vlgmr.msra.gmra.mrb[0].mxu0 %v4841_v59  ;;  %v4850_v59 = vcombine.high %v6636_v51, %v6636_v51 }
  0x3c   : > { %2278 = vmatmul.mubr.bf16.vlgmr.msra.gmra.mrb[0].mxu1 %v4843_v60  ;;  %5021 = vmatpush3.bf16.msra.mxu0 %v783_v63  ;;  %v4852_v60 = vcombine.high %v6639_v52, %v6639_v52  ;;  %v825_v63 = vunpack.c.l.s8.bf16 %v304_v57 }
  0x3d   : > { %5043 = vmatpush3.bf16.msra.mxu1 %v799_v0  ;;  %5022 = vmatprep.subr.bf16.mxu0 %v792_v1  ;;  %v300_v0 = vld [vmem:[%s6568_s8 + $0x108] sm:$0xff]  ;;  %v841_v1 = vunpack.c.l.s8.bf16 %v312_v58 }
  0x3e   : > { %5044 = vmatprep.subr.bf16.mxu1 %v808_v2  ;;  %2317 = vmatprep.mubr.bf16.mxu0 %v4846_v5  ;;  %v308_v2 = vld [vmem:[%s6568_s8 + $0x148] sm:$0xff]  ;;  %v817_v3 = vunpack.c.l.s8.bf16 %v300_v0  ;;  %v826_v5 = vunpack.c.h.s8.bf16 %v304_v57 }
  0x3f   : > { %2357 = vmatprep.mubr.bf16.mxu1 %v4848_v6  ;;  %v833_v4 = vunpack.c.l.s8.bf16 %v308_v2  ;;  %v842_v6 = vunpack.c.h.s8.bf16 %v312_v58  ;;  %v834_v10 = vunpack.c.h.s8.bf16 %v308_v2  ;;  %v317_v2 = vld [vmem:[%s6568_s8 + $0x190] sm:$0xff] }
  0x40   : > { %5023 = vmatpush3.bf16.msra.mxu0 %v784_v7  ;;  %v305_v7 = vld [vmem:[%s6568_s8 + $0x130] sm:$0xff] }
  0x41   : > { %5045 = vmatpush3.bf16.msra.mxu1 %v800_v8  ;;  %5024 = vmatprep.subr.bf16.mxu0 %v793_v9  ;;  %v313_v8 = vld [vmem:[%s6568_s8 + $0x170] sm:$0xff]  ;;  %v818_v9 = vunpack.c.h.s8.bf16 %v300_v0  ;;  %v828_v17 = vunpack.c.h.s8.bf16 %v305_v7 }
  0x42   : > { %5046 = vmatprep.subr.bf16.mxu1 %v809_v11  ;;  %v827_v11 = vunpack.c.l.s8.bf16 %v305_v7  ;;  %v844_v18 = vunpack.c.h.s8.bf16 %v313_v8 }
  0x44   : > { %5025 = vmatpush3.bf16.msra.mxu0 %v785_v13  ;;  %v843_v13 = vunpack.c.l.s8.bf16 %v313_v8 }
  0x45   : > { %5047 = vmatpush3.bf16.msra.mxu1 %v801_v14  ;;  %5026 = vmatprep.subr.bf16.mxu0 %v794_v15  ;;  %v309_v14 = vld [vmem:[%s6568_s8 + $0x150] sm:$0xff]  ;;  %v819_v15 = vunpack.c.l.s8.bf16 %v301_v12 }
  0x46   : > { %5048 = vmatprep.subr.bf16.mxu1 %v810_v16  ;;  %v835_v16 = vunpack.c.l.s8.bf16 %v309_v14  ;;  %v836_v22 = vunpack.c.h.s8.bf16 %v309_v14  ;;  %v318_v14 = vld [vmem:[%s6568_s8 + $0x198] sm:$0xff] }
  0x48   : > { %5027 = vmatpush3.bf16.msra.mxu0 %v786_v19  ;;  %v306_v19 = vld [vmem:[%s6568_s8 + $0x138] sm:$0xff] }
  0x49   : > { %5049 = vmatpush3.bf16.msra.mxu1 %v802_v20  ;;  %5028 = vmatprep.subr.bf16.mxu0 %v795_v21  ;;  %v314_v20 = vld [vmem:[%s6568_s8 + $0x178] sm:$0xff]  ;;  %v820_v21 = vunpack.c.h.s8.bf16 %v301_v12  ;;  %v830_v29 = vunpack.c.h.s8.bf16 %v306_v19 }
  0x4a   : > { %5050 = vmatprep.subr.bf16.mxu1 %v811_v23  ;;  %v829_v23 = vunpack.c.l.s8.bf16 %v306_v19  ;;  %v846_v30 = vunpack.c.h.s8.bf16 %v314_v20 }
  0x4c   : > { %5029 = vmatpush3.bf16.msra.mxu0 %v787_v25  ;;  %v845_v25 = vunpack.c.l.s8.bf16 %v314_v20 }
  0x4d   : > { %5051 = vmatpush3.bf16.msra.mxu1 %v803_v26  ;;  %5030 = vmatprep.subr.bf16.mxu0 %v796_v27  ;;  %v310_v26 = vld [vmem:[%s6568_s8 + $0x158] sm:$0xff]  ;;  %v821_v27 = vunpack.c.l.s8.bf16 %v302_v24 }
  0x4e   : > { %5052 = vmatprep.subr.bf16.mxu1 %v812_v28  ;;  %v837_v28 = vunpack.c.l.s8.bf16 %v310_v26  ;;  %v838_v34 = vunpack.c.h.s8.bf16 %v310_v26  ;;  %v331_v26 = vld [vmem:[%s6568_s8 + $0x200] sm:$0xff] }
  0x50   : > { %5031 = vmatpush3.bf16.msra.mxu0 %v788_v31  ;;  %v319_v31 = vld [vmem:[%s6568_s8 + $0x1a0] sm:$0xff] }
  0x51   : > { %5053 = vmatpush3.bf16.msra.mxu1 %v804_v32  ;;  %5032 = vmatprep.subr.bf16.mxu0 %v797_v33  ;;  %v327_v32 = vld [vmem:[%s6568_s8 + $0x1e0] sm:$0xff]  ;;  %v822_v33 = vunpack.c.h.s8.bf16 %v302_v24 }
  0x52   : > { %5054 = vmatprep.subr.bf16.mxu1 %v813_v35  ;;  %v855_v35 = vunpack.c.l.s8.bf16 %v319_v31  ;;  %v872_v46 = vunpack.c.h.s8.bf16 %v327_v32 }
  0x54   : > { %5033 = vmatpush3.bf16.msra.mxu0 %v789_v37  ;;  %v871_v37 = vunpack.c.l.s8.bf16 %v327_v32  ;;  %v6699_v32 = vld [vmem:[%s6563_s28 + $0x48] sm:$0x77] }
  0x55   : > { %5055 = vmatpush3.bf16.msra.mxu1 %v805_v38  ;;  %5034 = vmatprep.subr.bf16.mxu0 %v798_v39  ;;  %v323_v38 = vld [vmem:[%s6568_s8 + $0x1c0] sm:$0xff]  ;;  %v4849_v39 = vcombine.low %v6636_v51, %v6636_v51  ;;  %v848_v51 = vunpack.c.h.s8.bf16 %v315_v36 }
  0x56   : > { %5056 = vmatprep.subr.bf16.mxu1 %v814_v40  ;;  %v4851_v40 = vcombine.low %v6639_v52, %v6639_v52  ;;  %v864_v52 = vunpack.c.h.s8.bf16 %v323_v38 }
  0x58   : > { %5035 = vmatpush3.bf16.msra.mxu0 %v790_v43  ;;  %v847_v43 = vunpack.c.l.s8.bf16 %v315_v36 }
  0x59   : > { %5057 = vmatpush3.bf16.msra.mxu1 %v806_v44  ;;  %5064 = vmatprep.subr.bf16.mxu0 %v823_v45  ;;  %v863_v44 = vunpack.c.l.s8.bf16 %v323_v38  ;;  %v856_v45 = vunpack.c.h.s8.bf16 %v319_v31  ;;  %v6696_v31 = vld [vmem:[%s6563_s28 + $0x40] sm:$0x77]  ;;  %v344_v38 = vld [vmem:[%s6568_s8 + $0x268] sm:$0xff] }
  0x5a   : > { %5086 = vmatprep.subr.bf16.mxu1 %v839_v47  ;;  %v320_v47 = vld [vmem:[%s6568_s8 + $0x1a8] sm:$0xff] }
  0x5b   : > { %2318 = vmatmul.mubr.bf16.vlgmr.msra.gmra.mrb[4].mxu0 %v4845_v49  ;;  %v4854_v49 = vcombine.high %v6666_v41, %v6666_v41 }
  0x5c   : > { %2358 = vmatmul.mubr.bf16.vlgmr.msra.gmra.mrb[4].mxu1 %v4847_v50  ;;  %5065 = vmatpush3.bf16.msra.mxu0 %v815_v53  ;;  %v4856_v50 = vcombine.high %v6669_v42, %v6669_v42  ;;  %v857_v53 = vunpack.c.l.s8.bf16 %v320_v47 }
  0x5d   : > { %5087 = vmatpush3.bf16.msra.mxu1 %v831_v54  ;;  %5066 = vmatprep.subr.bf16.mxu0 %v824_v55  ;;  %v316_v54 = vld [vmem:[%s6568_s8 + $0x188] sm:$0xff]  ;;  %v873_v55 = vunpack.c.l.s8.bf16 %v328_v48 }
  0x5e   : > { %5088 = vmatprep.subr.bf16.mxu1 %v840_v56  ;;  %2397 = vmatprep.mubr.bf16.mxu0 %v4850_v59  ;;  %v324_v56 = vld [vmem:[%s6568_s8 + $0x1c8] sm:$0xff]  ;;  %v849_v57 = vunpack.c.l.s8.bf16 %v316_v54  ;;  %v858_v59 = vunpack.c.h.s8.bf16 %v320_v47 }
  0x5f   : > { %2437 = vmatprep.mubr.bf16.mxu1 %v4852_v60  ;;  %v865_v58 = vunpack.c.l.s8.bf16 %v324_v56  ;;  %v874_v60 = vunpack.c.h.s8.bf16 %v328_v48  ;;  %v866_v0 = vunpack.c.h.s8.bf16 %v324_v56  ;;  %v333_v56 = vld [vmem:[%s6568_s8 + $0x210] sm:$0xff] }
  0x60   : > { %5067 = vmatpush3.bf16.msra.mxu0 %v816_v61  ;;  %v321_v61 = vld [vmem:[%s6568_s8 + $0x1b0] sm:$0xff] }
  0x61   : > { %5089 = vmatpush3.bf16.msra.mxu1 %v832_v62  ;;  %5068 = vmatprep.subr.bf16.mxu0 %v825_v63  ;;  %v329_v62 = vld [vmem:[%s6568_s8 + $0x1f0] sm:$0xff]  ;;  %v850_v63 = vunpack.c.h.s8.bf16 %v316_v54  ;;  %v860_v7 = vunpack.c.h.s8.bf16 %v321_v61 }
  0x62   : > { %5090 = vmatprep.subr.bf16.mxu1 %v841_v1  ;;  %v859_v1 = vunpack.c.l.s8.bf16 %v321_v61  ;;  %v876_v8 = vunpack.c.h.s8.bf16 %v329_v62 }
  0x64   : > { %5069 = vmatpush3.bf16.msra.mxu0 %v817_v3  ;;  %v875_v3 = vunpack.c.l.s8.bf16 %v329_v62 }
  0x65   : > { %5091 = vmatpush3.bf16.msra.mxu1 %v833_v4  ;;  %5070 = vmatprep.subr.bf16.mxu0 %v826_v5  ;;  %v325_v4 = vld [vmem:[%s6568_s8 + $0x1d0] sm:$0xff]  ;;  %v851_v5 = vunpack.c.l.s8.bf16 %v317_v2 }
  0x66   : > { %5092 = vmatprep.subr.bf16.mxu1 %v842_v6  ;;  %v867_v6 = vunpack.c.l.s8.bf16 %v325_v4  ;;  %v868_v12 = vunpack.c.h.s8.bf16 %v325_v4  ;;  %v334_v4 = vld [vmem:[%s6568_s8 + $0x218] sm:$0xff] }
  0x68   : > { %5071 = vmatpush3.bf16.msra.mxu0 %v818_v9  ;;  %v322_v9 = vld [vmem:[%s6568_s8 + $0x1b8] sm:$0xff] }
  0x69   : > { %5093 = vmatpush3.bf16.msra.mxu1 %v834_v10  ;;  %5072 = vmatprep.subr.bf16.mxu0 %v827_v11  ;;  %v330_v10 = vld [vmem:[%s6568_s8 + $0x1f8] sm:$0xff]  ;;  %v852_v11 = vunpack.c.h.s8.bf16 %v317_v2  ;;  %v862_v19 = vunpack.c.h.s8.bf16 %v322_v9 }
  0x6a   : > { %5094 = vmatprep.subr.bf16.mxu1 %v843_v13  ;;  %v861_v13 = vunpack.c.l.s8.bf16 %v322_v9  ;;  %v878_v20 = vunpack.c.h.s8.bf16 %v330_v10 }
  0x6c   : > { %5073 = vmatpush3.bf16.msra.mxu0 %v819_v15  ;;  %v877_v15 = vunpack.c.l.s8.bf16 %v330_v10 }
  0x6d   : > { %5095 = vmatpush3.bf16.msra.mxu1 %v835_v16  ;;  %5074 = vmatprep.subr.bf16.mxu0 %v828_v17  ;;  %v326_v16 = vld [vmem:[%s6568_s8 + $0x1d8] sm:$0xff]  ;;  %v853_v17 = vunpack.c.l.s8.bf16 %v318_v14 }
  0x6e   : > { %5096 = vmatprep.subr.bf16.mxu1 %v844_v18  ;;  %v869_v18 = vunpack.c.l.s8.bf16 %v326_v16  ;;  %v870_v24 = vunpack.c.h.s8.bf16 %v326_v16  ;;  %v347_v16 = vld [vmem:[%s6568_s8 + $0x280] sm:$0xff] }
  0x70   : > { %5075 = vmatpush3.bf16.msra.mxu0 %v820_v21  ;;  %v335_v21 = vld [vmem:[%s6568_s8 + $0x220] sm:$0xff] }
  0x71   : > { %5097 = vmatpush3.bf16.msra.mxu1 %v836_v22  ;;  %5076 = vmatprep.subr.bf16.mxu0 %v829_v23  ;;  %v343_v22 = vld [vmem:[%s6568_s8 + $0x260] sm:$0xff]  ;;  %v854_v23 = vunpack.c.h.s8.bf16 %v318_v14 }
  0x72   : > { %5098 = vmatprep.subr.bf16.mxu1 %v845_v25  ;;  %v887_v25 = vunpack.c.l.s8.bf16 %v335_v21  ;;  %v904_v36 = vunpack.c.h.s8.bf16 %v343_v22 }
  0x74   : > { %5077 = vmatpush3.bf16.msra.mxu0 %v821_v27  ;;  %v903_v27 = vunpack.c.l.s8.bf16 %v343_v22  ;;  %v6729_v22 = vld [vmem:[%s6563_s28 + $0x58] sm:$0x77] }
  0x75   : > { %5099 = vmatpush3.bf16.msra.mxu1 %v837_v28  ;;  %5078 = vmatprep.subr.bf16.mxu0 %v830_v29  ;;  %v339_v28 = vld [vmem:[%s6568_s8 + $0x240] sm:$0xff]  ;;  %v4853_v29 = vcombine.low %v6666_v41, %v6666_v41  ;;  %v880_v41 = vunpack.c.h.s8.bf16 %v331_v26 }
  0x76   : > { %5100 = vmatprep.subr.bf16.mxu1 %v846_v30  ;;  %v4855_v30 = vcombine.low %v6669_v42, %v6669_v42  ;;  %v896_v42 = vunpack.c.h.s8.bf16 %v339_v28 }
  0x78   : > { %5079 = vmatpush3.bf16.msra.mxu0 %v822_v33  ;;  %v879_v33 = vunpack.c.l.s8.bf16 %v331_v26 }
  0x79   : > { %5101 = vmatpush3.bf16.msra.mxu1 %v838_v34  ;;  %5108 = vmatprep.subr.bf16.mxu0 %v855_v35  ;;  %v895_v34 = vunpack.c.l.s8.bf16 %v339_v28  ;;  %v888_v35 = vunpack.c.h.s8.bf16 %v335_v21  ;;  %v6726_v21 = vld [vmem:[%s6563_s28 + $0x50] sm:$0x77]  ;;  %v360_v28 = vld [vmem:[%s6568_s8 + $0x2e8] sm:$0xff] }
  0x7a   : > { %5130 = vmatprep.subr.bf16.mxu1 %v871_v37  ;;  %v336_v37 = vld [vmem:[%s6568_s8 + $0x228] sm:$0xff] }
  0x7b   : > { %2398 = vmatmul.mubr.bf16.vlgmr.msra.gmra.mrb[8].mxu0 %v4849_v39  ;;  %v4858_v39 = vcombine.high %v6696_v31, %v6696_v31 }
  0x7c   : > { %2438 = vmatmul.mubr.bf16.vlgmr.msra.gmra.mrb[8].mxu1 %v4851_v40  ;;  %5109 = vmatpush3.bf16.msra.mxu0 %v847_v43  ;;  %v4860_v40 = vcombine.high %v6699_v32, %v6699_v32  ;;  %v889_v43 = vunpack.c.l.s8.bf16 %v336_v37 }
  0x7d   : > { %5131 = vmatpush3.bf16.msra.mxu1 %v863_v44  ;;  %5110 = vmatprep.subr.bf16.mxu0 %v856_v45  ;;  %v332_v44 = vld [vmem:[%s6568_s8 + $0x208] sm:$0xff]  ;;  %v905_v45 = vunpack.c.l.s8.bf16 %v344_v38 }
  0x7e   : > { %5132 = vmatprep.subr.bf16.mxu1 %v872_v46  ;;  %2477 = vmatprep.mubr.bf16.mxu0 %v4854_v49  ;;  %v340_v46 = vld [vmem:[%s6568_s8 + $0x248] sm:$0xff]  ;;  %v881_v47 = vunpack.c.l.s8.bf16 %v332_v44  ;;  %v890_v49 = vunpack.c.h.s8.bf16 %v336_v37 }
  0x7f   : > { %2517 = vmatprep.mubr.bf16.mxu1 %v4856_v50  ;;  %v897_v48 = vunpack.c.l.s8.bf16 %v340_v46  ;;  %v906_v50 = vunpack.c.h.s8.bf16 %v344_v38  ;;  %v898_v54 = vunpack.c.h.s8.bf16 %v340_v46  ;;  %v349_v46 = vld [vmem:[%s6568_s8 + $0x290] sm:$0xff] }
  0x80   : > { %5111 = vmatpush3.bf16.msra.mxu0 %v848_v51  ;;  %v337_v51 = vld [vmem:[%s6568_s8 + $0x230] sm:$0xff] }
  0x81   : > { %5133 = vmatpush3.bf16.msra.mxu1 %v864_v52  ;;  %5112 = vmatprep.subr.bf16.mxu0 %v857_v53  ;;  %v345_v52 = vld [vmem:[%s6568_s8 + $0x270] sm:$0xff]  ;;  %v882_v53 = vunpack.c.h.s8.bf16 %v332_v44  ;;  %v892_v61 = vunpack.c.h.s8.bf16 %v337_v51 }
  0x82   : > { %5134 = vmatprep.subr.bf16.mxu1 %v873_v55  ;;  %v891_v55 = vunpack.c.l.s8.bf16 %v337_v51  ;;  %v908_v62 = vunpack.c.h.s8.bf16 %v345_v52 }
  0x84   : > { %5113 = vmatpush3.bf16.msra.mxu0 %v849_v57  ;;  %v907_v57 = vunpack.c.l.s8.bf16 %v345_v52 }
  0x85   : > { %5135 = vmatpush3.bf16.msra.mxu1 %v865_v58  ;;  %5114 = vmatprep.subr.bf16.mxu0 %v858_v59  ;;  %v341_v58 = vld [vmem:[%s6568_s8 + $0x250] sm:$0xff]  ;;  %v883_v59 = vunpack.c.l.s8.bf16 %v333_v56 }
  0x86   : > { %5136 = vmatprep.subr.bf16.mxu1 %v874_v60  ;;  %v899_v60 = vunpack.c.l.s8.bf16 %v341_v58  ;;  %v900_v2 = vunpack.c.h.s8.bf16 %v341_v58  ;;  %v350_v58 = vld [vmem:[%s6568_s8 + $0x298] sm:$0xff] }
  0x88   : > { %5115 = vmatpush3.bf16.msra.mxu0 %v850_v63  ;;  %v338_v63 = vld [vmem:[%s6568_s8 + $0x238] sm:$0xff] }
  0x89   : > { %5137 = vmatpush3.bf16.msra.mxu1 %v866_v0  ;;  %5116 = vmatprep.subr.bf16.mxu0 %v859_v1  ;;  %v346_v0 = vld [vmem:[%s6568_s8 + $0x278] sm:$0xff]  ;;  %v884_v1 = vunpack.c.h.s8.bf16 %v333_v56  ;;  %v894_v9 = vunpack.c.h.s8.bf16 %v338_v63 }
  0x8a   : > { %5138 = vmatprep.subr.bf16.mxu1 %v875_v3  ;;  %v893_v3 = vunpack.c.l.s8.bf16 %v338_v63  ;;  %v910_v10 = vunpack.c.h.s8.bf16 %v346_v0 }
  0x8c   : > { %5117 = vmatpush3.bf16.msra.mxu0 %v851_v5  ;;  %v909_v5 = vunpack.c.l.s8.bf16 %v346_v0 }
  0x8d   : > { %5139 = vmatpush3.bf16.msra.mxu1 %v867_v6  ;;  %5118 = vmatprep.subr.bf16.mxu0 %v860_v7  ;;  %v342_v6 = vld [vmem:[%s6568_s8 + $0x258] sm:$0xff]  ;;  %v885_v7 = vunpack.c.l.s8.bf16 %v334_v4 }
  0x8e   : > { %5140 = vmatprep.subr.bf16.mxu1 %v876_v8  ;;  %v901_v8 = vunpack.c.l.s8.bf16 %v342_v6  ;;  %v902_v14 = vunpack.c.h.s8.bf16 %v342_v6  ;;  %v363_v6 = vld [vmem:[%s6568_s8 + $0x300] sm:$0xff] }
  0x90   : > { %5119 = vmatpush3.bf16.msra.mxu0 %v852_v11  ;;  %v351_v11 = vld [vmem:[%s6568_s8 + $0x2a0] sm:$0xff] }
  0x91   : > { %5141 = vmatpush3.bf16.msra.mxu1 %v868_v12  ;;  %5120 = vmatprep.subr.bf16.mxu0 %v861_v13  ;;  %v359_v12 = vld [vmem:[%s6568_s8 + $0x2e0] sm:$0xff]  ;;  %v886_v13 = vunpack.c.h.s8.bf16 %v334_v4 }
  0x92   : > { %5142 = vmatprep.subr.bf16.mxu1 %v877_v15  ;;  %v919_v15 = vunpack.c.l.s8.bf16 %v351_v11  ;;  %v936_v26 = vunpack.c.h.s8.bf16 %v359_v12 }
  0x94   : > { %5121 = vmatpush3.bf16.msra.mxu0 %v853_v17  ;;  %v935_v17 = vunpack.c.l.s8.bf16 %v359_v12  ;;  %v6759_v12 = vld [vmem:[%s6563_s28 + $0x68] sm:$0x77] }
  0x95   : > { %5143 = vmatpush3.bf16.msra.mxu1 %v869_v18  ;;  %5122 = vmatprep.subr.bf16.mxu0 %v862_v19  ;;  %v355_v18 = vld [vmem:[%s6568_s8 + $0x2c0] sm:$0xff]  ;;  %v4857_v19 = vcombine.low %v6696_v31, %v6696_v31  ;;  %v912_v31 = vunpack.c.h.s8.bf16 %v347_v16 }
  0x96   : > { %5144 = vmatprep.subr.bf16.mxu1 %v878_v20  ;;  %v4859_v20 = vcombine.low %v6699_v32, %v6699_v32  ;;  %v928_v32 = vunpack.c.h.s8.bf16 %v355_v18 }
  0x98   : > { %5123 = vmatpush3.bf16.msra.mxu0 %v854_v23  ;;  %v911_v23 = vunpack.c.l.s8.bf16 %v347_v16 }
  0x99   : > { %5145 = vmatpush3.bf16.msra.mxu1 %v870_v24  ;;  %5152 = vmatprep.subr.bf16.mxu0 %v887_v25  ;;  %v927_v24 = vunpack.c.l.s8.bf16 %v355_v18  ;;  %v920_v25 = vunpack.c.h.s8.bf16 %v351_v11  ;;  %v6756_v11 = vld [vmem:[%s6563_s28 + $0x60] sm:$0x77]  ;;  %v376_v18 = vld [vmem:[%s6568_s8 + $0x368] sm:$0xff] }
  0x9a   : > { %5174 = vmatprep.subr.bf16.mxu1 %v903_v27  ;;  %v352_v27 = vld [vmem:[%s6568_s8 + $0x2a8] sm:$0xff] }
  0x9b   : > { %2478 = vmatmul.mubr.bf16.vlgmr.msra.gmra.mrb[12].mxu0 %v4853_v29  ;;  %v4862_v29 = vcombine.high %v6726_v21, %v6726_v21 }
  0x9c   : > { %2518 = vmatmul.mubr.bf16.vlgmr.msra.gmra.mrb[12].mxu1 %v4855_v30  ;;  %5153 = vmatpush3.bf16.msra.mxu0 %v879_v33  ;;  %v4864_v30 = vcombine.high %v6729_v22, %v6729_v22  ;;  %v921_v33 = vunpack.c.l.s8.bf16 %v352_v27 }
  0x9d   : > { %5175 = vmatpush3.bf16.msra.mxu1 %v895_v34  ;;  %5154 = vmatprep.subr.bf16.mxu0 %v888_v35  ;;  %v348_v34 = vld [vmem:[%s6568_s8 + $0x288] sm:$0xff]  ;;  %v937_v35 = vunpack.c.l.s8.bf16 %v360_v28 }
  0x9e   : > { %5176 = vmatprep.subr.bf16.mxu1 %v904_v36  ;;  %2557 = vmatprep.mubr.bf16.mxu0 %v4858_v39  ;;  %v356_v36 = vld [vmem:[%s6568_s8 + $0x2c8] sm:$0xff]  ;;  %v913_v37 = vunpack.c.l.s8.bf16 %v348_v34  ;;  %v922_v39 = vunpack.c.h.s8.bf16 %v352_v27 }
  0x9f   : > { %2597 = vmatprep.mubr.bf16.mxu1 %v4860_v40  ;;  %v929_v38 = vunpack.c.l.s8.bf16 %v356_v36  ;;  %v938_v40 = vunpack.c.h.s8.bf16 %v360_v28  ;;  %v930_v44 = vunpack.c.h.s8.bf16 %v356_v36  ;;  %v365_v36 = vld [vmem:[%s6568_s8 + $0x310] sm:$0xff] }
  0xa0   : > { %5155 = vmatpush3.bf16.msra.mxu0 %v880_v41  ;;  %v353_v41 = vld [vmem:[%s6568_s8 + $0x2b0] sm:$0xff] }
  0xa1   : > { %5177 = vmatpush3.bf16.msra.mxu1 %v896_v42  ;;  %5156 = vmatprep.subr.bf16.mxu0 %v889_v43  ;;  %v361_v42 = vld [vmem:[%s6568_s8 + $0x2f0] sm:$0xff]  ;;  %v914_v43 = vunpack.c.h.s8.bf16 %v348_v34  ;;  %v924_v51 = vunpack.c.h.s8.bf16 %v353_v41 }
  0xa2   : > { %5178 = vmatprep.subr.bf16.mxu1 %v905_v45  ;;  %v923_v45 = vunpack.c.l.s8.bf16 %v353_v41  ;;  %v940_v52 = vunpack.c.h.s8.bf16 %v361_v42 }
  0xa4   : > { %5157 = vmatpush3.bf16.msra.mxu0 %v881_v47  ;;  %v939_v47 = vunpack.c.l.s8.bf16 %v361_v42 }
  0xa5   : > { %5179 = vmatpush3.bf16.msra.mxu1 %v897_v48  ;;  %5158 = vmatprep.subr.bf16.mxu0 %v890_v49  ;;  %v357_v48 = vld [vmem:[%s6568_s8 + $0x2d0] sm:$0xff]  ;;  %v915_v49 = vunpack.c.l.s8.bf16 %v349_v46 }
  0xa6   : > { %5180 = vmatprep.subr.bf16.mxu1 %v906_v50  ;;  %v931_v50 = vunpack.c.l.s8.bf16 %v357_v48  ;;  %v932_v56 = vunpack.c.h.s8.bf16 %v357_v48  ;;  %v366_v48 = vld [vmem:[%s6568_s8 + $0x318] sm:$0xff] }
  0xa8   : > { %5159 = vmatpush3.bf16.msra.mxu0 %v882_v53  ;;  %v354_v53 = vld [vmem:[%s6568_s8 + $0x2b8] sm:$0xff] }
  0xa9   : > { %5181 = vmatpush3.bf16.msra.mxu1 %v898_v54  ;;  %5160 = vmatprep.subr.bf16.mxu0 %v891_v55  ;;  %v362_v54 = vld [vmem:[%s6568_s8 + $0x2f8] sm:$0xff]  ;;  %v916_v55 = vunpack.c.h.s8.bf16 %v349_v46  ;;  %v926_v63 = vunpack.c.h.s8.bf16 %v354_v53 }
  0xaa   : > { %5182 = vmatprep.subr.bf16.mxu1 %v907_v57  ;;  %v925_v57 = vunpack.c.l.s8.bf16 %v354_v53  ;;  %v942_v0 = vunpack.c.h.s8.bf16 %v362_v54 }
  0xac   : > { %5161 = vmatpush3.bf16.msra.mxu0 %v883_v59  ;;  %v941_v59 = vunpack.c.l.s8.bf16 %v362_v54 }
  0xad   : > { %5183 = vmatpush3.bf16.msra.mxu1 %v899_v60  ;;  %5162 = vmatprep.subr.bf16.mxu0 %v892_v61  ;;  %v358_v60 = vld [vmem:[%s6568_s8 + $0x2d8] sm:$0xff]  ;;  %v917_v61 = vunpack.c.l.s8.bf16 %v350_v58 }
  0xae   : > { %5184 = vmatprep.subr.bf16.mxu1 %v908_v62  ;;  %v933_v62 = vunpack.c.l.s8.bf16 %v358_v60  ;;  %v934_v4 = vunpack.c.h.s8.bf16 %v358_v60  ;;  %v379_v60 = vld [vmem:[%s6568_s8 + $0x380] sm:$0xff] }
  0xb0   : > { %5163 = vmatpush3.bf16.msra.mxu0 %v884_v1  ;;  %v367_v1 = vld [vmem:[%s6568_s8 + $0x320] sm:$0xff] }
  0xb1   : > { %5185 = vmatpush3.bf16.msra.mxu1 %v900_v2  ;;  %5164 = vmatprep.subr.bf16.mxu0 %v893_v3  ;;  %v375_v2 = vld [vmem:[%s6568_s8 + $0x360] sm:$0xff]  ;;  %v918_v3 = vunpack.c.h.s8.bf16 %v350_v58 }
  0xb2   : > { %5186 = vmatprep.subr.bf16.mxu1 %v909_v5  ;;  %v951_v5 = vunpack.c.l.s8.bf16 %v367_v1  ;;  %v968_v16 = vunpack.c.h.s8.bf16 %v375_v2 }
  0xb4   : > { %5165 = vmatpush3.bf16.msra.mxu0 %v885_v7  ;;  %v967_v7 = vunpack.c.l.s8.bf16 %v375_v2  ;;  %v6789_v2 = vld [vmem:[%s6563_s28 + $0x78] sm:$0x77] }
  0xb5   : > { %5187 = vmatpush3.bf16.msra.mxu1 %v901_v8  ;;  %5166 = vmatprep.subr.bf16.mxu0 %v894_v9  ;;  %v371_v8 = vld [vmem:[%s6568_s8 + $0x340] sm:$0xff]  ;;  %v4861_v9 = vcombine.low %v6726_v21, %v6726_v21  ;;  %v944_v21 = vunpack.c.h.s8.bf16 %v363_v6 }
  0xb6   : > { %5188 = vmatprep.subr.bf16.mxu1 %v910_v10  ;;  %v4863_v10 = vcombine.low %v6729_v22, %v6729_v22  ;;  %v960_v22 = vunpack.c.h.s8.bf16 %v371_v8 }
  0xb8   : > { %5167 = vmatpush3.bf16.msra.mxu0 %v886_v13  ;;  %v943_v13 = vunpack.c.l.s8.bf16 %v363_v6 }
  0xb9   : > { %5189 = vmatpush3.bf16.msra.mxu1 %v902_v14  ;;  %5196 = vmatprep.subr.bf16.mxu0 %v919_v15  ;;  %v959_v14 = vunpack.c.l.s8.bf16 %v371_v8  ;;  %v952_v15 = vunpack.c.h.s8.bf16 %v367_v1  ;;  %v6786_v1 = vld [vmem:[%s6563_s28 + $0x70] sm:$0x77]  ;;  %v392_v8 = vld [vmem:[%s6568_s8 + $0x3e8] sm:$0xff] }
  0xba   : > { %5218 = vmatprep.subr.bf16.mxu1 %v935_v17  ;;  %v368_v17 = vld [vmem:[%s6568_s8 + $0x328] sm:$0xff] }
  0xbb   : > { %2558 = vmatmul.mubr.bf16.vlgmr.msra.gmra.mrb[16].mxu0 %v4857_v19  ;;  %v4866_v19 = vcombine.high %v6756_v11, %v6756_v11 }
  0xbc   : > { %2598 = vmatmul.mubr.bf16.vlgmr.msra.gmra.mrb[16].mxu1 %v4859_v20  ;;  %5197 = vmatpush3.bf16.msra.mxu0 %v911_v23  ;;  %v4868_v20 = vcombine.high %v6759_v12, %v6759_v12  ;;  %v953_v23 = vunpack.c.l.s8.bf16 %v368_v17 }
  0xbd   : > { %5219 = vmatpush3.bf16.msra.mxu1 %v927_v24  ;;  %5198 = vmatprep.subr.bf16.mxu0 %v920_v25  ;;  %v364_v24 = vld [vmem:[%s6568_s8 + $0x308] sm:$0xff]  ;;  %v969_v25 = vunpack.c.l.s8.bf16 %v376_v18 }
  0xbe   : > { %5220 = vmatprep.subr.bf16.mxu1 %v936_v26  ;;  %2637 = vmatprep.mubr.bf16.mxu0 %v4862_v29  ;;  %v372_v26 = vld [vmem:[%s6568_s8 + $0x348] sm:$0xff]  ;;  %v945_v27 = vunpack.c.l.s8.bf16 %v364_v24  ;;  %v954_v29 = vunpack.c.h.s8.bf16 %v368_v17 }
  0xbf   : > { %2677 = vmatprep.mubr.bf16.mxu1 %v4864_v30  ;;  %v961_v28 = vunpack.c.l.s8.bf16 %v372_v26  ;;  %v970_v30 = vunpack.c.h.s8.bf16 %v376_v18  ;;  %v962_v34 = vunpack.c.h.s8.bf16 %v372_v26  ;;  %v381_v26 = vld [vmem:[%s6568_s8 + $0x390] sm:$0xff] }
  0xc0   : > { %5199 = vmatpush3.bf16.msra.mxu0 %v912_v31  ;;  %v369_v31 = vld [vmem:[%s6568_s8 + $0x330] sm:$0xff] }
  0xc1   : > { %5221 = vmatpush3.bf16.msra.mxu1 %v928_v32  ;;  %5200 = vmatprep.subr.bf16.mxu0 %v921_v33  ;;  %v377_v32 = vld [vmem:[%s6568_s8 + $0x370] sm:$0xff]  ;;  %v946_v33 = vunpack.c.h.s8.bf16 %v364_v24  ;;  %v956_v41 = vunpack.c.h.s8.bf16 %v369_v31 }
  0xc2   : > { %5222 = vmatprep.subr.bf16.mxu1 %v937_v35  ;;  %v955_v35 = vunpack.c.l.s8.bf16 %v369_v31  ;;  %v972_v42 = vunpack.c.h.s8.bf16 %v377_v32 }
  0xc4   : > { %5201 = vmatpush3.bf16.msra.mxu0 %v913_v37  ;;  %v971_v37 = vunpack.c.l.s8.bf16 %v377_v32 }
  0xc5   : > { %5223 = vmatpush3.bf16.msra.mxu1 %v929_v38  ;;  %5202 = vmatprep.subr.bf16.mxu0 %v922_v39  ;;  %v373_v38 = vld [vmem:[%s6568_s8 + $0x350] sm:$0xff]  ;;  %v947_v39 = vunpack.c.l.s8.bf16 %v365_v36 }
  0xc6   : > { %5224 = vmatprep.subr.bf16.mxu1 %v938_v40  ;;  %v963_v40 = vunpack.c.l.s8.bf16 %v373_v38  ;;  %v964_v46 = vunpack.c.h.s8.bf16 %v373_v38  ;;  %v382_v38 = vld [vmem:[%s6568_s8 + $0x398] sm:$0xff] }
  0xc8   : > { %5203 = vmatpush3.bf16.msra.mxu0 %v914_v43  ;;  %v370_v43 = vld [vmem:[%s6568_s8 + $0x338] sm:$0xff] }
  0xc9   : > { %5225 = vmatpush3.bf16.msra.mxu1 %v930_v44  ;;  %5204 = vmatprep.subr.bf16.mxu0 %v923_v45  ;;  %v378_v44 = vld [vmem:[%s6568_s8 + $0x378] sm:$0xff]  ;;  %v948_v45 = vunpack.c.h.s8.bf16 %v365_v36  ;;  %v958_v53 = vunpack.c.h.s8.bf16 %v370_v43 }
  0xca   : > { %5226 = vmatprep.subr.bf16.mxu1 %v939_v47  ;;  %v957_v47 = vunpack.c.l.s8.bf16 %v370_v43  ;;  %v974_v54 = vunpack.c.h.s8.bf16 %v378_v44 }
  0xcc   : > { %5205 = vmatpush3.bf16.msra.mxu0 %v915_v49  ;;  %v973_v49 = vunpack.c.l.s8.bf16 %v378_v44 }
  0xcd   : > { %5227 = vmatpush3.bf16.msra.mxu1 %v931_v50  ;;  %5206 = vmatprep.subr.bf16.mxu0 %v924_v51  ;;  %v374_v50 = vld [vmem:[%s6568_s8 + $0x358] sm:$0xff]  ;;  %v949_v51 = vunpack.c.l.s8.bf16 %v366_v48 }
  0xce   : > { %5228 = vmatprep.subr.bf16.mxu1 %v940_v52  ;;  %v965_v52 = vunpack.c.l.s8.bf16 %v374_v50  ;;  %v966_v58 = vunpack.c.h.s8.bf16 %v374_v50 }
  0xd0   : > { %5207 = vmatpush3.bf16.msra.mxu0 %v916_v55  ;;  %v383_v55 = vld [vmem:[%s6568_s8 + $0x3a0] sm:$0xff] }
  0xd1   : > { %5229 = vmatpush3.bf16.msra.mxu1 %v932_v56  ;;  %5208 = vmatprep.subr.bf16.mxu0 %v925_v57  ;;  %v391_v56 = vld [vmem:[%s6568_s8 + $0x3e0] sm:$0xff]  ;;  %v950_v57 = vunpack.c.h.s8.bf16 %v366_v48  ;;  %v981_v48 = vunpack.c.l.s8.bf16 %v382_v38 }
  0xd2   : > { %5230 = vmatprep.subr.bf16.mxu1 %v941_v59  ;;  %v983_v59 = vunpack.c.l.s8.bf16 %v383_v55  ;;  %v1000_v6 = vunpack.c.h.s8.bf16 %v391_v56 }
  0xd4   : > { %5209 = vmatpush3.bf16.msra.mxu0 %v917_v61  ;;  %v999_v61 = vunpack.c.l.s8.bf16 %v391_v56  ;;  %v399_v56 = vld [vmem:[%s6568_s8 + $0x420] sm:$0xff] }
  0xd5   : > { %5231 = vmatpush3.bf16.msra.mxu1 %v933_v62  ;;  %5210 = vmatprep.subr.bf16.mxu0 %v926_v63  ;;  %v387_v62 = vld [vmem:[%s6568_s8 + $0x3c0] sm:$0xff]  ;;  %v4865_v63 = vcombine.low %v6756_v11, %v6756_v11  ;;  %v976_v11 = vunpack.c.h.s8.bf16 %v379_v60 }
  0xd6   : > { %5232 = vmatprep.subr.bf16.mxu1 %v942_v0  ;;  %v4867_v0 = vcombine.low %v6759_v12, %v6759_v12  ;;  %v992_v12 = vunpack.c.h.s8.bf16 %v387_v62 }
  0xd8   : > { %5211 = vmatpush3.bf16.msra.mxu0 %v918_v3  ;;  %v975_v3 = vunpack.c.l.s8.bf16 %v379_v60  ;;  %v1015_v60 = vunpack.c.l.s8.bf16 %v399_v56 }
  0xd9   : > { %5233 = vmatpush3.bf16.msra.mxu1 %v934_v4  ;;  %5240 = vmatprep.subr.bf16.mxu0 %v951_v5  ;;  %v991_v4 = vunpack.c.l.s8.bf16 %v387_v62  ;;  %v984_v5 = vunpack.c.h.s8.bf16 %v383_v55 }
  0xda   : > { %5262 = vmatprep.subr.bf16.mxu1 %v967_v7  ;;  %v384_v7 = vld [vmem:[%s6568_s8 + $0x3a8] sm:$0xff] }
  0xdb   : > { %2638 = vmatmul.mubr.bf16.vlgmr.msra.gmra.mrb[20].mxu0 %v4861_v9  ;;  %v4870_v9 = vcombine.high %v6786_v1, %v6786_v1 }
  0xdc   : > { %2678 = vmatmul.mubr.bf16.vlgmr.msra.gmra.mrb[20].mxu1 %v4863_v10  ;;  %5241 = vmatpush3.bf16.msra.mxu0 %v943_v13  ;;  %v4872_v10 = vcombine.high %v6789_v2, %v6789_v2  ;;  %v985_v13 = vunpack.c.l.s8.bf16 %v384_v7 }
  0xdd   : > { %5263 = vmatpush3.bf16.msra.mxu1 %v959_v14  ;;  %5242 = vmatprep.subr.bf16.mxu0 %v952_v15  ;;  %v380_v14 = vld [vmem:[%s6568_s8 + $0x388] sm:$0xff]  ;;  %v1001_v15 = vunpack.c.l.s8.bf16 %v392_v8 }
  0xde   : > { %5264 = vmatprep.subr.bf16.mxu1 %v968_v16  ;;  %2717 = vmatprep.mubr.bf16.mxu0 %v4866_v19  ;;  %v388_v16 = vld [vmem:[%s6568_s8 + $0x3c8] sm:$0xff]  ;;  %v977_v17 = vunpack.c.l.s8.bf16 %v380_v14  ;;  %v986_v19 = vunpack.c.h.s8.bf16 %v384_v7 }
  0xdf   : > { %2757 = vmatprep.mubr.bf16.mxu1 %v4868_v20  ;;  %v993_v18 = vunpack.c.l.s8.bf16 %v388_v16  ;;  %v1002_v20 = vunpack.c.h.s8.bf16 %v392_v8  ;;  %v994_v24 = vunpack.c.h.s8.bf16 %v388_v16  ;;  %v1016_v8 = vunpack.c.h.s8.bf16 %v399_v56 }
  0xe0   : > { %5243 = vmatpush3.bf16.msra.mxu0 %v944_v21  ;;  %v385_v21 = vld [vmem:[%s6568_s8 + $0x3b0] sm:$0xff] }
  0xe1   : > { %5265 = vmatpush3.bf16.msra.mxu1 %v960_v22  ;;  %5244 = vmatprep.subr.bf16.mxu0 %v953_v23  ;;  %v393_v22 = vld [vmem:[%s6568_s8 + $0x3f0] sm:$0xff]  ;;  %v978_v23 = vunpack.c.h.s8.bf16 %v380_v14  ;;  %v988_v31 = vunpack.c.h.s8.bf16 %v385_v21 }
  0xe2   : > { %5266 = vmatprep.subr.bf16.mxu1 %v969_v25  ;;  %v987_v25 = vunpack.c.l.s8.bf16 %v385_v21  ;;  %v1004_v32 = vunpack.c.h.s8.bf16 %v393_v22 }
  0xe4   : > { %5245 = vmatpush3.bf16.msra.mxu0 %v945_v27  ;;  %v1003_v27 = vunpack.c.l.s8.bf16 %v393_v22  ;;  %v401_v22 = vld [vmem:[%s6568_s8 + $0x430] sm:$0xff] }
  0xe5   : > { %5267 = vmatpush3.bf16.msra.mxu1 %v961_v28  ;;  %5246 = vmatprep.subr.bf16.mxu0 %v954_v29  ;;  %v389_v28 = vld [vmem:[%s6568_s8 + $0x3d0] sm:$0xff]  ;;  %v979_v29 = vunpack.c.l.s8.bf16 %v381_v26 }
  0xe6   : > { %5268 = vmatprep.subr.bf16.mxu1 %v970_v30  ;;  %v995_v30 = vunpack.c.l.s8.bf16 %v389_v28  ;;  %v996_v36 = vunpack.c.h.s8.bf16 %v389_v28 }
  0xe8   : > { %5247 = vmatpush3.bf16.msra.mxu0 %v946_v33  ;;  %v386_v33 = vld [vmem:[%s6568_s8 + $0x3b8] sm:$0xff] }
  0xe9   : > { %5269 = vmatpush3.bf16.msra.mxu1 %v962_v34  ;;  %5248 = vmatprep.subr.bf16.mxu0 %v955_v35  ;;  %v394_v34 = vld [vmem:[%s6568_s8 + $0x3f8] sm:$0xff]  ;;  %v980_v35 = vunpack.c.h.s8.bf16 %v381_v26  ;;  %v1019_v26 = vunpack.c.l.s8.bf16 %v401_v22 }
  0xea   : > { %5270 = vmatprep.subr.bf16.mxu1 %v971_v37  ;;  %v989_v37 = vunpack.c.l.s8.bf16 %v386_v33 }
  0xec   : > { %5249 = vmatpush3.bf16.msra.mxu0 %v947_v39  ;;  %v1005_v39 = vunpack.c.l.s8.bf16 %v394_v34 }
  0xed   : > { %5271 = vmatpush3.bf16.msra.mxu1 %v963_v40  ;;  %5250 = vmatprep.subr.bf16.mxu0 %v956_v41  ;;  %v390_v40 = vld [vmem:[%s6568_s8 + $0x3d8] sm:$0xff] }
  0xee   : > { %5272 = vmatprep.subr.bf16.mxu1 %v972_v42 }
  0xf0   : > { %5251 = vmatpush3.bf16.msra.mxu0 %v948_v45 }
  0xf1   : > { %5273 = vmatpush3.bf16.msra.mxu1 %v964_v46  ;;  %5252 = vmatprep.subr.bf16.mxu0 %v957_v47 }
  0xf2   : > { %5274 = vmatprep.subr.bf16.mxu1 %v973_v49  ;;  %v997_v49 = vunpack.c.l.s8.bf16 %v390_v40 }
  0xf4   : > { %5253 = vmatpush3.bf16.msra.mxu0 %v949_v51 }
  0xf5   : > { %5275 = vmatpush3.bf16.msra.mxu1 %v965_v52  ;;  %5254 = vmatprep.subr.bf16.mxu0 %v958_v53  ;;  %v990_v52 = vunpack.c.h.s8.bf16 %v386_v33  ;;  %v1006_v53 = vunpack.c.h.s8.bf16 %v394_v34  ;;  %v402_v34 = vld [vmem:[%s6568_s8 + $0x438] sm:$0xff] }
  0xf6   : > { %5276 = vmatprep.subr.bf16.mxu1 %v974_v54 }
  0xf8   : > { %5255 = vmatpush3.bf16.msra.mxu0 %v950_v57  ;;  %v407_v57 = vld [vmem:[%s6568_s8 + $0x460] sm:$0xff] }
  0xf9   : > { %5277 = vmatpush3.bf16.msra.mxu1 %v966_v58  ;;  %5284 = vmatprep.subr.bf16.mxu0 %v983_v59  ;;  %v982_v58 = vunpack.c.h.s8.bf16 %v382_v38  ;;  %v998_v59 = vunpack.c.h.s8.bf16 %v390_v40  ;;  %v1031_v62 = vunpack.c.l.s8.bf16 %v407_v57  ;;  %v1021_v38 = vunpack.c.l.s8.bf16 %v402_v34 }
  0xfa   : > { %5306 = vmatprep.subr.bf16.mxu1 %v999_v61  ;;  %v395_v61 = vld [vmem:[%s6568_s8 + $0x400] sm:$0xff] }
  0xfb   : > { %2718 = vmatmul.mubr.bf16.vlgmr.msra.gmra.mrb[24].mxu0 %v4865_v63  ;;  %v403_v63 = vld [vmem:[%s6568_s8 + $0x440] sm:$0xff] }
  0xfc   : > { %2758 = vmatmul.mubr.bf16.vlgmr.msra.gmra.mrb[24].mxu1 %v4867_v0  ;;  %5285 = vmatpush3.bf16.msra.mxu0 %v975_v3  ;;  %v4869_v0 = vcombine.low %v6786_v1, %v6786_v1  ;;  %v4871_v3 = vcombine.low %v6789_v2, %v6789_v2  ;;  %v1023_v7 = vunpack.c.l.s8.bf16 %v403_v63 }
  0xfd   : > { %5307 = vmatpush3.bf16.msra.mxu1 %v991_v4  ;;  %5286 = vmatprep.subr.bf16.mxu0 %v984_v5  ;;  %v6818_v4 = vld [vmem:[%s6563_s28 + $0x80] sm:$0x77]  ;;  %v6821_v5 = vld [vmem:[%s6563_s28 + $0x88] sm:$0x77] }
  0xfe   : > { %5308 = vmatprep.subr.bf16.mxu1 %v1000_v6  ;;  %2797 = vmatprep.mubr.bf16.mxu0 %v4870_v9  ;;  %v1007_v6 = vunpack.c.l.s8.bf16 %v395_v61  ;;  %v1032_v9 = vunpack.c.h.s8.bf16 %v407_v57  ;;  %v4874_v1 = vcombine.high %v6818_v4, %v6818_v4  ;;  %v4876_v2 = vcombine.high %v6821_v5, %v6821_v5 }
  0xff   : > { %2837 = vmatprep.mubr.bf16.mxu1 %v4872_v10  ;;  %v400_v10 = vld [vmem:[%s6568_s8 + $0x428] sm:$0xff] }
 0x100   : > { %5287 = vmatpush3.bf16.msra.mxu0 %v976_v11  ;;  %v408_v11 = vld [vmem:[%s6568_s8 + $0x468] sm:$0xff]  ;;  %v1017_v14 = vunpack.c.l.s8.bf16 %v400_v10 }
 0x101   : > { %5309 = vmatpush3.bf16.msra.mxu1 %v992_v12  ;;  %5288 = vmatprep.subr.bf16.mxu0 %v985_v13  ;;  %v1008_v12 = vunpack.c.h.s8.bf16 %v395_v61  ;;  %v1024_v13 = vunpack.c.h.s8.bf16 %v403_v63  ;;  %v1033_v16 = vunpack.c.l.s8.bf16 %v408_v11  ;;  %v1034_v21 = vunpack.c.h.s8.bf16 %v408_v11 }
 0x102   : > { %5310 = vmatprep.subr.bf16.mxu1 %v1001_v15  ;;  %v396_v15 = vld [vmem:[%s6568_s8 + $0x408] sm:$0xff] }
 0x104   : > { %5289 = vmatpush3.bf16.msra.mxu0 %v977_v17  ;;  %v404_v17 = vld [vmem:[%s6568_s8 + $0x448] sm:$0xff] }
 0x105   : > { %5311 = vmatpush3.bf16.msra.mxu1 %v993_v18  ;;  %5290 = vmatprep.subr.bf16.mxu0 %v986_v19  ;;  %v1009_v18 = vunpack.c.l.s8.bf16 %v396_v15  ;;  %v1025_v19 = vunpack.c.l.s8.bf16 %v404_v17 }
 0x106   : > { %5312 = vmatprep.subr.bf16.mxu1 %v1002_v20  ;;  %v1018_v20 = vunpack.c.h.s8.bf16 %v400_v10 }
 0x108   : > { %5291 = vmatpush3.bf16.msra.mxu0 %v978_v23  ;;  %v409_v23 = vld [vmem:[%s6568_s8 + $0x470] sm:$0xff] }
 0x109   : > { %5313 = vmatpush3.bf16.msra.mxu1 %v994_v24  ;;  %5292 = vmatprep.subr.bf16.mxu0 %v987_v25  ;;  %v1010_v24 = vunpack.c.h.s8.bf16 %v396_v15  ;;  %v1026_v25 = vunpack.c.h.s8.bf16 %v404_v17  ;;  %v1035_v28 = vunpack.c.l.s8.bf16 %v409_v23  ;;  %v1036_v33 = vunpack.c.h.s8.bf16 %v409_v23  ;;  %v412_v17 = vld [vmem:[%s6568_s8 + $0x488] sm:$0xff] }
 0x10a   : > { %5314 = vmatprep.subr.bf16.mxu1 %v1003_v27  ;;  %v397_v27 = vld [vmem:[%s6568_s8 + $0x410] sm:$0xff] }
 0x10c   : > { %5293 = vmatpush3.bf16.msra.mxu0 %v979_v29  ;;  %v405_v29 = vld [vmem:[%s6568_s8 + $0x450] sm:$0xff] }
 0x10d   : > { %5315 = vmatpush3.bf16.msra.mxu1 %v995_v30  ;;  %5294 = vmatprep.subr.bf16.mxu0 %v988_v31  ;;  %v1011_v30 = vunpack.c.l.s8.bf16 %v397_v27  ;;  %v1027_v31 = vunpack.c.l.s8.bf16 %v405_v29 }
 0x10e   : > { %5316 = vmatprep.subr.bf16.mxu1 %v1004_v32  ;;  %v4992_v41 = vpop.f32.mrb[0].mxu0  ;;  %v1020_v32 = vunpack.c.h.s8.bf16 %v401_v22 }
 0x10f   : > { %v5014_v42 = vpop.f32.mrb[0].mxu1  ;;  %v4993_v43 = vpop.f32.mrb[1].mxu0 }
 0x110   : > { %v5015_v44 = vpop.f32.mrb[1].mxu1  ;;  %v4994_v45 = vadd.f32 %v4993_v43, %v4992_v41  ;;  %v4995_v47 = vpop.f32.mrb[2].mxu0  ;;  %5295 = vmatpush3.bf16.msra.mxu0 %v980_v35  ;;  %v410_v35 = vld [vmem:[%s6568_s8 + $0x478] sm:$0xff] }
 0x111   : > { %v5016_v46 = vadd.f32 %v5015_v44, %v5014_v42  ;;  %5317 = vmatpush3.bf16.msra.mxu1 %v996_v36  ;;  %v5017_v50 = vpop.f32.mrb[2].mxu1  ;;  %v4996_v51 = vpop.f32.mrb[3].mxu0  ;;  %5296 = vmatprep.subr.bf16.mxu0 %v989_v37  ;;  %v1012_v36 = vunpack.c.h.s8.bf16 %v397_v27  ;;  %v1028_v37 = vunpack.c.h.s8.bf16 %v405_v29  ;;  %v1037_v40 = vunpack.c.l.s8.bf16 %v410_v35  ;;  %v406_v41 = vld [vmem:[%s6568_s8 + $0x458] sm:$0xff]  ;;  %v413_v29 = vld [vmem:[%s6568_s8 + $0x490] sm:$0xff] }
 0x112   : > { %5318 = vmatprep.subr.bf16.mxu1 %v1005_v39  ;;  %v5018_v54 = vpop.f32.mrb[3].mxu1  ;;  %v398_v39 = vld [vmem:[%s6568_s8 + $0x418] sm:$0xff]  ;;  %v1029_v50 = vunpack.c.l.s8.bf16 %v406_v41 }
 0x113   : > { %v6807_v55 = vadd.f32 %v5016_v46, %v4994_v45  ;;  %v1038_v54 = vunpack.c.h.s8.bf16 %v410_v35  ;;  %v1014_v61 = vunpack.c.h.s8.bf16 %v398_v39 }
 0x114   : > { %5297 = vmatpush3.bf16.msra.mxu0 %v981_v48 }
 0x115   : > { %5319 = vmatpush3.bf16.msra.mxu1 %v997_v49  ;;  %5298 = vmatprep.subr.bf16.mxu0 %v990_v52  ;;  %v1013_v49 = vunpack.c.l.s8.bf16 %v398_v39 }
 0x116   : > { %5320 = vmatprep.subr.bf16.mxu1 %v1006_v53  ;;  %v1022_v53 = vunpack.c.h.s8.bf16 %v402_v34 }
 0x118   : > { %5299 = vmatpush3.bf16.msra.mxu0 %v982_v58  ;;  %v415_v58 = vld [vmem:[%s6568_s8 + $0x4a0] sm:$0xff] }
 0x119   : > { %5321 = vmatpush3.bf16.msra.mxu1 %v998_v59  ;;  %5328 = vmatprep.subr.bf16.mxu0 %v1015_v60  ;;  %v423_v59 = vld [vmem:[%s6568_s8 + $0x4e0] sm:$0xff]  ;;  %v1047_v63 = vunpack.c.l.s8.bf16 %v415_v58 }
 0x11a   : > { %5350 = vmatprep.subr.bf16.mxu1 %v1031_v62  ;;  %v1030_v62 = vunpack.c.h.s8.bf16 %v406_v41  ;;  %v414_v41 = vld [vmem:[%s6568_s8 + $0x498] sm:$0xff] }
 0x11b   : > { %2798 = vmatmul.mubr.bf16.vlgmr.msra.gmra.mrb[28].mxu0 %v4869_v0  ;;  %v411_v0 = vld [vmem:[%s6568_s8 + $0x480] sm:$0xff] }
 0x11c   : > { %2838 = vmatmul.mubr.bf16.vlgmr.msra.gmra.mrb[28].mxu1 %v4871_v3  ;;  %5329 = vmatpush3.bf16.msra.mxu0 %v1007_v6  ;;  %v1063_v3 = vunpack.c.l.s8.bf16 %v423_v59  ;;  %v419_v6 = vld [vmem:[%s6568_s8 + $0x4c0] sm:$0xff]  ;;  %v1039_v10 = vunpack.c.l.s8.bf16 %v411_v0 }
 0x11d   : > { %5351 = vmatpush3.bf16.msra.mxu1 %v1023_v7  ;;  %5330 = vmatprep.subr.bf16.mxu0 %v1016_v8  ;;  %v4875_v7 = vcombine.low %v6821_v5, %v6821_v5  ;;  %v6851_v8 = vld [vmem:[%s6563_s28 + $0x90] sm:$0x77]  ;;  %v1055_v11 = vunpack.c.l.s8.bf16 %v419_v6  ;;  %v1056_v15 = vunpack.c.h.s8.bf16 %v419_v6 }
 0x11e   : > { %5352 = vmatprep.subr.bf16.mxu1 %v1032_v9  ;;  %2877 = vmatprep.mubr.bf16.mxu0 %v4874_v1  ;;  %v6854_v9 = vld [vmem:[%s6563_s28 + $0x98] sm:$0x77]  ;;  %v1048_v1 = vunpack.c.h.s8.bf16 %v415_v58 }
 0x11f   : > { %2917 = vmatprep.mubr.bf16.mxu1 %v4876_v2  ;;  %v1064_v2 = vunpack.c.h.s8.bf16 %v423_v59  ;;  %v4880_v5 = vcombine.high %v6854_v9, %v6854_v9 }
 0x120   : > { %5331 = vmatpush3.bf16.msra.mxu0 %v1008_v12  ;;  %v416_v12 = vld [vmem:[%s6568_s8 + $0x4a8] sm:$0xff] }
 0x121   : > { %5353 = vmatpush3.bf16.msra.mxu1 %v1024_v13  ;;  %5332 = vmatprep.subr.bf16.mxu0 %v1017_v14  ;;  %v424_v13 = vld [vmem:[%s6568_s8 + $0x4e8] sm:$0xff]  ;;  %v1040_v14 = vunpack.c.h.s8.bf16 %v411_v0  ;;  %v1050_v22 = vunpack.c.h.s8.bf16 %v416_v12  ;;  %v1046_v0 = vunpack.c.h.s8.bf16 %v414_v41 }
 0x122   : > { %5354 = vmatprep.subr.bf16.mxu1 %v1033_v16  ;;  %v1049_v16 = vunpack.c.l.s8.bf16 %v416_v12  ;;  %v1066_v23 = vunpack.c.h.s8.bf16 %v424_v13 }
 0x124   : > { %5333 = vmatpush3.bf16.msra.mxu0 %v1009_v18  ;;  %v1065_v18 = vunpack.c.l.s8.bf16 %v424_v13 }
 0x125   : > { %5355 = vmatpush3.bf16.msra.mxu1 %v1025_v19  ;;  %5334 = vmatprep.subr.bf16.mxu0 %v1018_v20  ;;  %v420_v19 = vld [vmem:[%s6568_s8 + $0x4c8] sm:$0xff]  ;;  %v1041_v20 = vunpack.c.l.s8.bf16 %v412_v17 }
 0x126   : > { %5356 = vmatprep.subr.bf16.mxu1 %v1034_v21  ;;  %v1057_v21 = vunpack.c.l.s8.bf16 %v420_v19  ;;  %v1058_v27 = vunpack.c.h.s8.bf16 %v420_v19  ;;  %v428_v19 = vld [vmem:[%s6568_s8 + $0x508] sm:$0xff] }
 0x128   : > { %5335 = vmatpush3.bf16.msra.mxu0 %v1010_v24  ;;  %v417_v24 = vld [vmem:[%s6568_s8 + $0x4b0] sm:$0xff] }
 0x129   : > { %5357 = vmatpush3.bf16.msra.mxu1 %v1026_v25  ;;  %5336 = vmatprep.subr.bf16.mxu0 %v1019_v26  ;;  %v425_v25 = vld [vmem:[%s6568_s8 + $0x4f0] sm:$0xff]  ;;  %v1042_v26 = vunpack.c.h.s8.bf16 %v412_v17  ;;  %v1052_v34 = vunpack.c.h.s8.bf16 %v417_v24 }
 0x12a   : > { %5358 = vmatprep.subr.bf16.mxu1 %v1035_v28  ;;  %v1051_v28 = vunpack.c.l.s8.bf16 %v417_v24  ;;  %v1068_v35 = vunpack.c.h.s8.bf16 %v425_v25 }
 0x12c   : > { %5337 = vmatpush3.bf16.msra.mxu0 %v1011_v30  ;;  %v1067_v30 = vunpack.c.l.s8.bf16 %v425_v25 }
 0x12d   : > { %5359 = vmatpush3.bf16.msra.mxu1 %v1027_v31  ;;  %5338 = vmatprep.subr.bf16.mxu0 %v1020_v32  ;;  %v421_v31 = vld [vmem:[%s6568_s8 + $0x4d0] sm:$0xff]  ;;  %v1043_v32 = vunpack.c.l.s8.bf16 %v413_v29 }
 0x12e   : > { %5360 = vmatprep.subr.bf16.mxu1 %v1036_v33  ;;  %v5036_v42 = vpop.f32.mrb[4].mxu0  ;;  %v1059_v33 = vunpack.c.l.s8.bf16 %v421_v31  ;;  %v1060_v39 = vunpack.c.h.s8.bf16 %v421_v31  ;;  %v429_v31 = vld [vmem:[%s6568_s8 + $0x510] sm:$0xff] }
 0x12f   : > { %v5058_v43 = vpop.f32.mrb[4].mxu1  ;;  %v5037_v44 = vpop.f32.mrb[5].mxu0 }
 0x130   : > { %v5059_v45 = vpop.f32.mrb[5].mxu1  ;;  %v5038_v46 = vadd.f32 %v5037_v44, %v5036_v42  ;;  %v5039_v47 = vpop.f32.mrb[6].mxu0  ;;  %5339 = vmatpush3.bf16.msra.mxu0 %v1012_v36  ;;  %v418_v36 = vld [vmem:[%s6568_s8 + $0x4b8] sm:$0xff] }
 0x131   : > { %v5060_v48 = vadd.f32 %v5059_v45, %v5058_v43  ;;  %5361 = vmatpush3.bf16.msra.mxu1 %v1028_v37  ;;  %v5061_v51 = vpop.f32.mrb[6].mxu1  ;;  %v5040_v52 = vpop.f32.mrb[7].mxu0  ;;  %5340 = vmatprep.subr.bf16.mxu0 %v1021_v38  ;;  %v426_v37 = vld [vmem:[%s6568_s8 + $0x4f8] sm:$0xff]  ;;  %v1044_v38 = vunpack.c.h.s8.bf16 %v413_v29 }
 0x132   : > { %5362 = vmatprep.subr.bf16.mxu1 %v1037_v40  ;;  %v5062_v56 = vpop.f32.mrb[7].mxu1  ;;  %v2320_v57 = vadd.f32 %v5038_v46, %v6807_v55  ;;  %v4873_v55 = vcombine.low %v6818_v4, %v6818_v4  ;;  %v4878_v4 = vcombine.high %v6851_v8, %v6851_v8  ;;  %v1053_v40 = vunpack.c.l.s8.bf16 %v418_v36  ;;  %v422_v43 = vld [vmem:[%s6568_s8 + $0x4d8] sm:$0xff] }
 0x133   : > { %v1069_v42 = vunpack.c.l.s8.bf16 %v426_v37  ;;  %v1045_v51 = vunpack.c.l.s8.bf16 %v414_v41  ;;  %v1061_v52 = vunpack.c.l.s8.bf16 %v422_v43  ;;  %v1054_v56 = vunpack.c.h.s8.bf16 %v418_v36 }
 0x134   : > { %v6842_v60 = vadd.f32 %v5060_v48, %v2320_v57  ;;  %5341 = vmatpush3.bf16.msra.mxu0 %v1013_v49  ;;  %v1070_v57 = vunpack.c.h.s8.bf16 %v426_v37 }
 0x135   : > { %5363 = vmatpush3.bf16.msra.mxu1 %v1029_v50  ;;  %5342 = vmatprep.subr.bf16.mxu0 %v1022_v53 }
 0x136   : > { %5364 = vmatprep.subr.bf16.mxu1 %v1038_v54 }
 0x138   : > { %5343 = vmatpush3.bf16.msra.mxu0 %v1014_v61  ;;  %v431_v61 = vld [vmem:[%s6568_s8 + $0x520] sm:$0xff] }
 0x139   : > { %5365 = vmatpush3.bf16.msra.mxu1 %v1030_v62  ;;  %5372 = vmatprep.subr.bf16.mxu0 %v1047_v63  ;;  %v439_v62 = vld [vmem:[%s6568_s8 + $0x560] sm:$0xff]  ;;  %v1079_v6 = vunpack.c.l.s8.bf16 %v431_v61 }
 0x13a   : > { %5394 = vmatprep.subr.bf16.mxu1 %v1063_v3  ;;  %v1062_v3 = vunpack.c.h.s8.bf16 %v422_v43  ;;  %v430_v43 = vld [vmem:[%s6568_s8 + $0x518] sm:$0xff] }
 0x13b   : > { %2878 = vmatmul.mubr.bf16.vlgmr.msra.gmra.mrb[32].mxu0 %v4873_v55  ;;  %v427_v55 = vld [vmem:[%s6568_s8 + $0x500] sm:$0xff] }
 0x13c   : > { %2918 = vmatmul.mubr.bf16.vlgmr.msra.gmra.mrb[32].mxu1 %v4875_v7  ;;  %5373 = vmatpush3.bf16.msra.mxu0 %v1039_v10  ;;  %v1095_v7 = vunpack.c.l.s8.bf16 %v439_v62  ;;  %v435_v10 = vld [vmem:[%s6568_s8 + $0x540] sm:$0xff]  ;;  %v1071_v12 = vunpack.c.l.s8.bf16 %v427_v55 }
 0x13d   : > { %5395 = vmatpush3.bf16.msra.mxu1 %v1055_v11  ;;  %5374 = vmatprep.subr.bf16.mxu0 %v1048_v1  ;;  %v4879_v11 = vcombine.low %v6854_v9, %v6854_v9  ;;  %v6884_v1 = vld [vmem:[%s6563_s28 + $0xa0] sm:$0x77]  ;;  %v1087_v13 = vunpack.c.l.s8.bf16 %v435_v10  ;;  %v1088_v17 = vunpack.c.h.s8.bf16 %v435_v10 }
 0x13e   : > { %5396 = vmatprep.subr.bf16.mxu1 %v1064_v2  ;;  %2957 = vmatprep.mubr.bf16.mxu0 %v4878_v4  ;;  %v6887_v2 = vld [vmem:[%s6563_s28 + $0xa8] sm:$0x77]  ;;  %v1080_v4 = vunpack.c.h.s8.bf16 %v431_v61 }
 0x13f   : > { %2997 = vmatprep.mubr.bf16.mxu1 %v4880_v5  ;;  %v1096_v5 = vunpack.c.h.s8.bf16 %v439_v62  ;;  %v4884_v9 = vcombine.high %v6887_v2, %v6887_v2 }
 0x140   : > { %5375 = vmatpush3.bf16.msra.mxu0 %v1040_v14  ;;  %v432_v14 = vld [vmem:[%s6568_s8 + $0x528] sm:$0xff] }
 0x141   : > { %5397 = vmatpush3.bf16.msra.mxu1 %v1056_v15  ;;  %5376 = vmatprep.subr.bf16.mxu0 %v1049_v16  ;;  %v440_v15 = vld [vmem:[%s6568_s8 + $0x568] sm:$0xff]  ;;  %v1072_v16 = vunpack.c.h.s8.bf16 %v427_v55  ;;  %v1082_v24 = vunpack.c.h.s8.bf16 %v432_v14  ;;  %v1078_v55 = vunpack.c.h.s8.bf16 %v430_v43 }
 0x142   : > { %5398 = vmatprep.subr.bf16.mxu1 %v1065_v18  ;;  %v1081_v18 = vunpack.c.l.s8.bf16 %v432_v14  ;;  %v1098_v25 = vunpack.c.h.s8.bf16 %v440_v15 }
 0x144   : > { %5377 = vmatpush3.bf16.msra.mxu0 %v1041_v20  ;;  %v1097_v20 = vunpack.c.l.s8.bf16 %v440_v15 }
 0x145   : > { %5399 = vmatpush3.bf16.msra.mxu1 %v1057_v21  ;;  %5378 = vmatprep.subr.bf16.mxu0 %v1050_v22  ;;  %v436_v21 = vld [vmem:[%s6568_s8 + $0x548] sm:$0xff]  ;;  %v1073_v22 = vunpack.c.l.s8.bf16 %v428_v19 }
 0x146   : > { %5400 = vmatprep.subr.bf16.mxu1 %v1066_v23  ;;  %v1089_v23 = vunpack.c.l.s8.bf16 %v436_v21  ;;  %v1090_v29 = vunpack.c.h.s8.bf16 %v436_v21  ;;  %v444_v21 = vld [vmem:[%s6568_s8 + $0x588] sm:$0xff] }
 0x148   : > { %5379 = vmatpush3.bf16.msra.mxu0 %v1042_v26  ;;  %v433_v26 = vld [vmem:[%s6568_s8 + $0x530] sm:$0xff] }
 0x149   : > { %5401 = vmatpush3.bf16.msra.mxu1 %v1058_v27  ;;  %5380 = vmatprep.subr.bf16.mxu0 %v1051_v28  ;;  %v441_v27 = vld [vmem:[%s6568_s8 + $0x570] sm:$0xff]  ;;  %v1074_v28 = vunpack.c.h.s8.bf16 %v428_v19  ;;  %v1084_v36 = vunpack.c.h.s8.bf16 %v433_v26 }
 0x14a   : > { %5402 = vmatprep.subr.bf16.mxu1 %v1067_v30  ;;  %v1083_v30 = vunpack.c.l.s8.bf16 %v433_v26  ;;  %v1100_v37 = vunpack.c.h.s8.bf16 %v441_v27 }
 0x14c   : > { %5381 = vmatpush3.bf16.msra.mxu0 %v1043_v32  ;;  %v1099_v32 = vunpack.c.l.s8.bf16 %v441_v27 }
 0x14d   : > { %5403 = vmatpush3.bf16.msra.mxu1 %v1059_v33  ;;  %5382 = vmatprep.subr.bf16.mxu0 %v1052_v34  ;;  %v437_v33 = vld [vmem:[%s6568_s8 + $0x550] sm:$0xff]  ;;  %v1075_v34 = vunpack.c.l.s8.bf16 %v429_v31 }
 0x14e   : > { %5404 = vmatprep.subr.bf16.mxu1 %v1068_v35  ;;  %v5080_v44 = vpop.f32.mrb[8].mxu0  ;;  %v1091_v35 = vunpack.c.l.s8.bf16 %v437_v33  ;;  %v1092_v41 = vunpack.c.h.s8.bf16 %v437_v33  ;;  %v445_v33 = vld [vmem:[%s6568_s8 + $0x590] sm:$0xff] }
 0x14f   : > { %v5102_v45 = vpop.f32.mrb[8].mxu1  ;;  %v5081_v46 = vpop.f32.mrb[9].mxu0 }
 0x150   : > { %v5103_v47 = vpop.f32.mrb[9].mxu1  ;;  %v5082_v48 = vadd.f32 %v5081_v46, %v5080_v44  ;;  %v5083_v49 = vpop.f32.mrb[10].mxu0  ;;  %5383 = vmatpush3.bf16.msra.mxu0 %v1044_v38  ;;  %v434_v38 = vld [vmem:[%s6568_s8 + $0x538] sm:$0xff] }
 0x151   : > { %v5104_v50 = vadd.f32 %v5103_v47, %v5102_v45  ;;  %5405 = vmatpush3.bf16.msra.mxu1 %v1060_v39  ;;  %v5105_v53 = vpop.f32.mrb[10].mxu1  ;;  %v5084_v54 = vpop.f32.mrb[11].mxu0  ;;  %5384 = vmatprep.subr.bf16.mxu0 %v1053_v40  ;;  %v442_v39 = vld [vmem:[%s6568_s8 + $0x578] sm:$0xff]  ;;  %v1076_v40 = vunpack.c.h.s8.bf16 %v429_v31 }
 0x152   : > { %5406 = vmatprep.subr.bf16.mxu1 %v1069_v42  ;;  %v5106_v58 = vpop.f32.mrb[11].mxu1  ;;  %v2400_v59 = vadd.f32 %v5082_v48, %v6842_v60  ;;  %v4877_v60 = vcombine.low %v6851_v8, %v6851_v8  ;;  %v4882_v8 = vcombine.high %v6884_v1, %v6884_v1  ;;  %v1085_v42 = vunpack.c.l.s8.bf16 %v434_v38  ;;  %v438_v45 = vld [vmem:[%s6568_s8 + $0x558] sm:$0xff] }
 0x153   : > { %v1101_v44 = vunpack.c.l.s8.bf16 %v442_v39  ;;  %v1077_v53 = vunpack.c.l.s8.bf16 %v430_v43  ;;  %v1093_v54 = vunpack.c.l.s8.bf16 %v438_v45  ;;  %v1086_v58 = vunpack.c.h.s8.bf16 %v434_v38 }
 0x154   : > { %v6875_v63 = vadd.f32 %v5104_v50, %v2400_v59  ;;  %5385 = vmatpush3.bf16.msra.mxu0 %v1045_v51  ;;  %v1102_v59 = vunpack.c.h.s8.bf16 %v442_v39 }
 0x155   : > { %5407 = vmatpush3.bf16.msra.mxu1 %v1061_v52  ;;  %5386 = vmatprep.subr.bf16.mxu0 %v1054_v56 }
 0x156   : > { %5408 = vmatprep.subr.bf16.mxu1 %v1070_v57 }
 0x158   : > { %5387 = vmatpush3.bf16.msra.mxu0 %v1046_v0  ;;  %v447_v0 = vld [vmem:[%s6568_s8 + $0x5a0] sm:$0xff] }
 0x159   : > { %5409 = vmatpush3.bf16.msra.mxu1 %v1062_v3  ;;  %5416 = vmatprep.subr.bf16.mxu0 %v1079_v6  ;;  %v455_v3 = vld [vmem:[%s6568_s8 + $0x5e0] sm:$0xff]  ;;  %v1111_v10 = vunpack.c.l.s8.bf16 %v447_v0 }
 0x15a   : > { %5438 = vmatprep.subr.bf16.mxu1 %v1095_v7  ;;  %v1094_v7 = vunpack.c.h.s8.bf16 %v438_v45  ;;  %v446_v45 = vld [vmem:[%s6568_s8 + $0x598] sm:$0xff] }
 0x15b   : > { %2958 = vmatmul.mubr.bf16.vlgmr.msra.gmra.mrb[36].mxu0 %v4877_v60  ;;  %v443_v60 = vld [vmem:[%s6568_s8 + $0x580] sm:$0xff] }
 0x15c   : > { %2998 = vmatmul.mubr.bf16.vlgmr.msra.gmra.mrb[36].mxu1 %v4879_v11  ;;  %5417 = vmatpush3.bf16.msra.mxu0 %v1071_v12  ;;  %v1127_v11 = vunpack.c.l.s8.bf16 %v455_v3  ;;  %v451_v12 = vld [vmem:[%s6568_s8 + $0x5c0] sm:$0xff]  ;;  %v1103_v14 = vunpack.c.l.s8.bf16 %v443_v60 }
 0x15d   : > { %5439 = vmatpush3.bf16.msra.mxu1 %v1087_v13  ;;  %5418 = vmatprep.subr.bf16.mxu0 %v1080_v4  ;;  %v4883_v13 = vcombine.low %v6887_v2, %v6887_v2  ;;  %v6917_v4 = vld [vmem:[%s6563_s28 + $0xb0] sm:$0x77]  ;;  %v1119_v15 = vunpack.c.l.s8.bf16 %v451_v12  ;;  %v1120_v19 = vunpack.c.h.s8.bf16 %v451_v12 }
 0x15e   : > { %5440 = vmatprep.subr.bf16.mxu1 %v1096_v5  ;;  %3037 = vmatprep.mubr.bf16.mxu0 %v4882_v8  ;;  %v6920_v5 = vld [vmem:[%s6563_s28 + $0xb8] sm:$0x77]  ;;  %v1112_v8 = vunpack.c.h.s8.bf16 %v447_v0 }
 0x15f   : > { %3077 = vmatprep.mubr.bf16.mxu1 %v4884_v9  ;;  %v1128_v9 = vunpack.c.h.s8.bf16 %v455_v3  ;;  %v4888_v2 = vcombine.high %v6920_v5, %v6920_v5 }
 0x160   : > { %5419 = vmatpush3.bf16.msra.mxu0 %v1072_v16  ;;  %v448_v16 = vld [vmem:[%s6568_s8 + $0x5a8] sm:$0xff] }
 0x161   : > { %5441 = vmatpush3.bf16.msra.mxu1 %v1088_v17  ;;  %5420 = vmatprep.subr.bf16.mxu0 %v1081_v18  ;;  %v456_v17 = vld [vmem:[%s6568_s8 + $0x5e8] sm:$0xff]  ;;  %v1104_v18 = vunpack.c.h.s8.bf16 %v443_v60  ;;  %v1114_v26 = vunpack.c.h.s8.bf16 %v448_v16  ;;  %v1110_v60 = vunpack.c.h.s8.bf16 %v446_v45 }
 0x162   : > { %5442 = vmatprep.subr.bf16.mxu1 %v1097_v20  ;;  %v1113_v20 = vunpack.c.l.s8.bf16 %v448_v16  ;;  %v1130_v27 = vunpack.c.h.s8.bf16 %v456_v17 }
 0x164   : > { %5421 = vmatpush3.bf16.msra.mxu0 %v1073_v22  ;;  %v1129_v22 = vunpack.c.l.s8.bf16 %v456_v17 }
 0x165   : > { %5443 = vmatpush3.bf16.msra.mxu1 %v1089_v23  ;;  %5422 = vmatprep.subr.bf16.mxu0 %v1082_v24  ;;  %v452_v23 = vld [vmem:[%s6568_s8 + $0x5c8] sm:$0xff]  ;;  %v1105_v24 = vunpack.c.l.s8.bf16 %v444_v21 }
 0x166   : > { %5444 = vmatprep.subr.bf16.mxu1 %v1098_v25  ;;  %v1121_v25 = vunpack.c.l.s8.bf16 %v452_v23  ;;  %v1122_v31 = vunpack.c.h.s8.bf16 %v452_v23  ;;  %v460_v23 = vld [vmem:[%s6568_s8 + $0x608] sm:$0xff] }
 0x168   : > { %5423 = vmatpush3.bf16.msra.mxu0 %v1074_v28  ;;  %v449_v28 = vld [vmem:[%s6568_s8 + $0x5b0] sm:$0xff] }
 0x169   : > { %5445 = vmatpush3.bf16.msra.mxu1 %v1090_v29  ;;  %5424 = vmatprep.subr.bf16.mxu0 %v1083_v30  ;;  %v457_v29 = vld [vmem:[%s6568_s8 + $0x5f0] sm:$0xff]  ;;  %v1106_v30 = vunpack.c.h.s8.bf16 %v444_v21  ;;  %v1116_v38 = vunpack.c.h.s8.bf16 %v449_v28 }
 0x16a   : > { %5446 = vmatprep.subr.bf16.mxu1 %v1099_v32  ;;  %v1115_v32 = vunpack.c.l.s8.bf16 %v449_v28  ;;  %v1132_v39 = vunpack.c.h.s8.bf16 %v457_v29 }
 0x16c   : > { %5425 = vmatpush3.bf16.msra.mxu0 %v1075_v34  ;;  %v1131_v34 = vunpack.c.l.s8.bf16 %v457_v29 }
 0x16d   : > { %5447 = vmatpush3.bf16.msra.mxu1 %v1091_v35  ;;  %5426 = vmatprep.subr.bf16.mxu0 %v1084_v36  ;;  %v453_v35 = vld [vmem:[%s6568_s8 + $0x5d0] sm:$0xff]  ;;  %v1107_v36 = vunpack.c.l.s8.bf16 %v445_v33 }
 0x16e   : > { %5448 = vmatprep.subr.bf16.mxu1 %v1100_v37  ;;  %v5124_v46 = vpop.f32.mrb[12].mxu0  ;;  %v1123_v37 = vunpack.c.l.s8.bf16 %v453_v35  ;;  %v1124_v43 = vunpack.c.h.s8.bf16 %v453_v35  ;;  %v461_v35 = vld [vmem:[%s6568_s8 + $0x610] sm:$0xff] }
 0x16f   : > { %v5146_v47 = vpop.f32.mrb[12].mxu1  ;;  %v5125_v48 = vpop.f32.mrb[13].mxu0 }
 0x170   : > { %v5147_v49 = vpop.f32.mrb[13].mxu1  ;;  %v5126_v50 = vadd.f32 %v5125_v48, %v5124_v46  ;;  %v5127_v51 = vpop.f32.mrb[14].mxu0  ;;  %5427 = vmatpush3.bf16.msra.mxu0 %v1076_v40  ;;  %v450_v40 = vld [vmem:[%s6568_s8 + $0x5b8] sm:$0xff] }
 0x171   : > { %v5148_v52 = vadd.f32 %v5147_v49, %v5146_v47  ;;  %5449 = vmatpush3.bf16.msra.mxu1 %v1092_v41  ;;  %v5149_v56 = vpop.f32.mrb[14].mxu1  ;;  %v5128_v57 = vpop.f32.mrb[15].mxu0  ;;  %5428 = vmatprep.subr.bf16.mxu0 %v1085_v42  ;;  %v458_v41 = vld [vmem:[%s6568_s8 + $0x5f8] sm:$0xff]  ;;  %v1108_v42 = vunpack.c.h.s8.bf16 %v445_v33 }
 0x172   : > { %5450 = vmatprep.subr.bf16.mxu1 %v1101_v44  ;;  %v5150_v61 = vpop.f32.mrb[15].mxu1  ;;  %v2480_v62 = vadd.f32 %v5126_v50, %v6875_v63  ;;  %v4881_v63 = vcombine.low %v6884_v1, %v6884_v1  ;;  %v4886_v1 = vcombine.high %v6917_v4, %v6917_v4  ;;  %v1117_v44 = vunpack.c.l.s8.bf16 %v450_v40  ;;  %v454_v47 = vld [vmem:[%s6568_s8 + $0x5d8] sm:$0xff] }
 0x173   : > { %v1133_v46 = vunpack.c.l.s8.bf16 %v458_v41  ;;  %v1109_v56 = vunpack.c.l.s8.bf16 %v446_v45  ;;  %v1125_v57 = vunpack.c.l.s8.bf16 %v454_v47  ;;  %v1118_v61 = vunpack.c.h.s8.bf16 %v450_v40 }
 0x174   : > { %v6908_v6 = vadd.f32 %v5148_v52, %v2480_v62  ;;  %5429 = vmatpush3.bf16.msra.mxu0 %v1077_v53  ;;  %v1134_v62 = vunpack.c.h.s8.bf16 %v458_v41 }
 0x175   : > { %5451 = vmatpush3.bf16.msra.mxu1 %v1093_v54  ;;  %5430 = vmatprep.subr.bf16.mxu0 %v1086_v58 }
 0x176   : > { %5452 = vmatprep.subr.bf16.mxu1 %v1102_v59 }
 0x178   : > { %5431 = vmatpush3.bf16.msra.mxu0 %v1078_v55  ;;  %v463_v55 = vld [vmem:[%s6568_s8 + $0x620] sm:$0xff] }
 0x179   : > { %5453 = vmatpush3.bf16.msra.mxu1 %v1094_v7  ;;  %5460 = vmatprep.subr.bf16.mxu0 %v1111_v10  ;;  %v471_v7 = vld [vmem:[%s6568_s8 + $0x660] sm:$0xff]  ;;  %v1143_v12 = vunpack.c.l.s8.bf16 %v463_v55 }
 0x17a   : > { %5482 = vmatprep.subr.bf16.mxu1 %v1127_v11  ;;  %v1126_v11 = vunpack.c.h.s8.bf16 %v454_v47  ;;  %v462_v47 = vld [vmem:[%s6568_s8 + $0x618] sm:$0xff] }
 0x17b   : > { %3038 = vmatmul.mubr.bf16.vlgmr.msra.gmra.mrb[40].mxu0 %v4881_v63  ;;  %v459_v63 = vld [vmem:[%s6568_s8 + $0x600] sm:$0xff] }
 0x17c   : > { %3078 = vmatmul.mubr.bf16.vlgmr.msra.gmra.mrb[40].mxu1 %v4883_v13  ;;  %5461 = vmatpush3.bf16.msra.mxu0 %v1103_v14  ;;  %v1159_v13 = vunpack.c.l.s8.bf16 %v471_v7  ;;  %v467_v14 = vld [vmem:[%s6568_s8 + $0x640] sm:$0xff]  ;;  %v1135_v16 = vunpack.c.l.s8.bf16 %v459_v63 }
 0x17d   : > { %5483 = vmatpush3.bf16.msra.mxu1 %v1119_v15  ;;  %5462 = vmatprep.subr.bf16.mxu0 %v1112_v8  ;;  %v4887_v15 = vcombine.low %v6920_v5, %v6920_v5  ;;  %v6950_v8 = vld [vmem:[%s6563_s28 + $0xc0] sm:$0x77]  ;;  %v1151_v17 = vunpack.c.l.s8.bf16 %v467_v14  ;;  %v1152_v21 = vunpack.c.h.s8.bf16 %v467_v14 }
 0x17e   : > { %5484 = vmatprep.subr.bf16.mxu1 %v1128_v9  ;;  %3117 = vmatprep.mubr.bf16.mxu0 %v4886_v1  ;;  %v6953_v9 = vld [vmem:[%s6563_s28 + $0xc8] sm:$0x77]  ;;  %v1144_v1 = vunpack.c.h.s8.bf16 %v463_v55 }
 0x17f   : > { %3157 = vmatprep.mubr.bf16.mxu1 %v4888_v2  ;;  %v1160_v2 = vunpack.c.h.s8.bf16 %v471_v7  ;;  %v4892_v5 = vcombine.high %v6953_v9, %v6953_v9 }
 0x180   : > { %5463 = vmatpush3.bf16.msra.mxu0 %v1104_v18  ;;  %v464_v18 = vld [vmem:[%s6568_s8 + $0x628] sm:$0xff] }
 0x181   : > { %5485 = vmatpush3.bf16.msra.mxu1 %v1120_v19  ;;  %5464 = vmatprep.subr.bf16.mxu0 %v1113_v20  ;;  %v472_v19 = vld [vmem:[%s6568_s8 + $0x668] sm:$0xff]  ;;  %v1136_v20 = vunpack.c.h.s8.bf16 %v459_v63  ;;  %v1146_v28 = vunpack.c.h.s8.bf16 %v464_v18  ;;  %v1142_v63 = vunpack.c.h.s8.bf16 %v462_v47 }
 0x182   : > { %5486 = vmatprep.subr.bf16.mxu1 %v1129_v22  ;;  %v1145_v22 = vunpack.c.l.s8.bf16 %v464_v18  ;;  %v1162_v29 = vunpack.c.h.s8.bf16 %v472_v19 }
 0x184   : > { %5465 = vmatpush3.bf16.msra.mxu0 %v1105_v24  ;;  %v1161_v24 = vunpack.c.l.s8.bf16 %v472_v19 }
 0x185   : > { %5487 = vmatpush3.bf16.msra.mxu1 %v1121_v25  ;;  %5466 = vmatprep.subr.bf16.mxu0 %v1114_v26  ;;  %v468_v25 = vld [vmem:[%s6568_s8 + $0x648] sm:$0xff]  ;;  %v1137_v26 = vunpack.c.l.s8.bf16 %v460_v23 }
 0x186   : > { %5488 = vmatprep.subr.bf16.mxu1 %v1130_v27  ;;  %v1153_v27 = vunpack.c.l.s8.bf16 %v468_v25  ;;  %v1154_v33 = vunpack.c.h.s8.bf16 %v468_v25  ;;  %v476_v25 = vld [vmem:[%s6568_s8 + $0x688] sm:$0xff] }
 0x188   : > { %5467 = vmatpush3.bf16.msra.mxu0 %v1106_v30  ;;  %v465_v30 = vld [vmem:[%s6568_s8 + $0x630] sm:$0xff] }
 0x189   : > { %5489 = vmatpush3.bf16.msra.mxu1 %v1122_v31  ;;  %5468 = vmatprep.subr.bf16.mxu0 %v1115_v32  ;;  %v473_v31 = vld [vmem:[%s6568_s8 + $0x670] sm:$0xff]  ;;  %v1138_v32 = vunpack.c.h.s8.bf16 %v460_v23  ;;  %v1148_v40 = vunpack.c.h.s8.bf16 %v465_v30 }
 0x18a   : > { %5490 = vmatprep.subr.bf16.mxu1 %v1131_v34  ;;  %v1147_v34 = vunpack.c.l.s8.bf16 %v465_v30  ;;  %v1164_v41 = vunpack.c.h.s8.bf16 %v473_v31 }
 0x18c   : > { %5469 = vmatpush3.bf16.msra.mxu0 %v1107_v36  ;;  %v1163_v36 = vunpack.c.l.s8.bf16 %v473_v31 }
 0x18d   : > { %5491 = vmatpush3.bf16.msra.mxu1 %v1123_v37  ;;  %5470 = vmatprep.subr.bf16.mxu0 %v1116_v38  ;;  %v469_v37 = vld [vmem:[%s6568_s8 + $0x650] sm:$0xff]  ;;  %v1139_v38 = vunpack.c.l.s8.bf16 %v461_v35 }
 0x18e   : > { %5492 = vmatprep.subr.bf16.mxu1 %v1132_v39  ;;  %v5168_v48 = vpop.f32.mrb[16].mxu0  ;;  %v1155_v39 = vunpack.c.l.s8.bf16 %v469_v37  ;;  %v1156_v45 = vunpack.c.h.s8.bf16 %v469_v37  ;;  %v477_v37 = vld [vmem:[%s6568_s8 + $0x690] sm:$0xff] }
 0x18f   : > { %v5190_v49 = vpop.f32.mrb[16].mxu1  ;;  %v5169_v50 = vpop.f32.mrb[17].mxu0 }
 0x190   : > { %v5191_v51 = vpop.f32.mrb[17].mxu1  ;;  %v5170_v52 = vadd.f32 %v5169_v50, %v5168_v48  ;;  %v5171_v53 = vpop.f32.mrb[18].mxu0  ;;  %5471 = vmatpush3.bf16.msra.mxu0 %v1108_v42  ;;  %v466_v42 = vld [vmem:[%s6568_s8 + $0x638] sm:$0xff] }
 0x191   : > { %v5192_v54 = vadd.f32 %v5191_v51, %v5190_v49  ;;  %5493 = vmatpush3.bf16.msra.mxu1 %v1124_v43  ;;  %v5193_v58 = vpop.f32.mrb[18].mxu1  ;;  %v5172_v59 = vpop.f32.mrb[19].mxu0  ;;  %5472 = vmatprep.subr.bf16.mxu0 %v1117_v44  ;;  %v474_v43 = vld [vmem:[%s6568_s8 + $0x678] sm:$0xff]  ;;  %v1140_v44 = vunpack.c.h.s8.bf16 %v461_v35 }
 0x192   : > { %5494 = vmatprep.subr.bf16.mxu1 %v1133_v46  ;;  %v5194_v0 = vpop.f32.mrb[19].mxu1  ;;  %v2560_v3 = vadd.f32 %v5170_v52, %v6908_v6  ;;  %v4885_v6 = vcombine.low %v6917_v4, %v6917_v4  ;;  %v4890_v4 = vcombine.high %v6950_v8, %v6950_v8  ;;  %v1149_v46 = vunpack.c.l.s8.bf16 %v466_v42  ;;  %v470_v49 = vld [vmem:[%s6568_s8 + $0x658] sm:$0xff] }
 0x193   : > { %v1165_v48 = vunpack.c.l.s8.bf16 %v474_v43  ;;  %v1141_v58 = vunpack.c.l.s8.bf16 %v462_v47  ;;  %v1157_v59 = vunpack.c.l.s8.bf16 %v470_v49  ;;  %v1150_v0 = vunpack.c.h.s8.bf16 %v466_v42 }
 0x194   : > { %v6941_v10 = vadd.f32 %v5192_v54, %v2560_v3  ;;  %5473 = vmatpush3.bf16.msra.mxu0 %v1109_v56  ;;  %v1166_v3 = vunpack.c.h.s8.bf16 %v474_v43 }
 0x195   : > { %5495 = vmatpush3.bf16.msra.mxu1 %v1125_v57  ;;  %5474 = vmatprep.subr.bf16.mxu0 %v1118_v61 }
 0x196   : > { %5496 = vmatprep.subr.bf16.mxu1 %v1134_v62 }
 0x198   : > { %5475 = vmatpush3.bf16.msra.mxu0 %v1110_v60  ;;  %v479_v60 = vld [vmem:[%s6568_s8 + $0x6a0] sm:$0xff] }
 0x199   : > { %5497 = vmatpush3.bf16.msra.mxu1 %v1126_v11  ;;  %5504 = vmatprep.subr.bf16.mxu0 %v1143_v12  ;;  %v487_v11 = vld [vmem:[%s6568_s8 + $0x6e0] sm:$0xff]  ;;  %v1175_v14 = vunpack.c.l.s8.bf16 %v479_v60 }
 0x19a   : > { %5526 = vmatprep.subr.bf16.mxu1 %v1159_v13  ;;  %v1158_v13 = vunpack.c.h.s8.bf16 %v470_v49  ;;  %v478_v49 = vld [vmem:[%s6568_s8 + $0x698] sm:$0xff] }
 0x19b   : > { %3118 = vmatmul.mubr.bf16.vlgmr.msra.gmra.mrb[44].mxu0 %v4885_v6  ;;  %v475_v6 = vld [vmem:[%s6568_s8 + $0x680] sm:$0xff] }
 0x19c   : > { %3158 = vmatmul.mubr.bf16.vlgmr.msra.gmra.mrb[44].mxu1 %v4887_v15  ;;  %5505 = vmatpush3.bf16.msra.mxu0 %v1135_v16  ;;  %v1191_v15 = vunpack.c.l.s8.bf16 %v487_v11  ;;  %v483_v16 = vld [vmem:[%s6568_s8 + $0x6c0] sm:$0xff]  ;;  %v1167_v18 = vunpack.c.l.s8.bf16 %v475_v6 }
 0x19d   : > { %5527 = vmatpush3.bf16.msra.mxu1 %v1151_v17  ;;  %5506 = vmatprep.subr.bf16.mxu0 %v1144_v1  ;;  %v4891_v17 = vcombine.low %v6953_v9, %v6953_v9  ;;  %v6983_v1 = vld [vmem:[%s6563_s28 + $0xd0] sm:$0x77]  ;;  %v1183_v19 = vunpack.c.l.s8.bf16 %v483_v16  ;;  %v1184_v23 = vunpack.c.h.s8.bf16 %v483_v16 }
 0x19e   : > { %5528 = vmatprep.subr.bf16.mxu1 %v1160_v2  ;;  %3197 = vmatprep.mubr.bf16.mxu0 %v4890_v4  ;;  %v6986_v2 = vld [vmem:[%s6563_s28 + $0xd8] sm:$0x77]  ;;  %v1176_v4 = vunpack.c.h.s8.bf16 %v479_v60 }
 0x19f   : > { %3237 = vmatprep.mubr.bf16.mxu1 %v4892_v5  ;;  %v1192_v5 = vunpack.c.h.s8.bf16 %v487_v11  ;;  %v4896_v9 = vcombine.high %v6986_v2, %v6986_v2 }
 0x1a0   : > { %5507 = vmatpush3.bf16.msra.mxu0 %v1136_v20  ;;  %v480_v20 = vld [vmem:[%s6568_s8 + $0x6a8] sm:$0xff] }
 0x1a1   : > { %5529 = vmatpush3.bf16.msra.mxu1 %v1152_v21  ;;  %5508 = vmatprep.subr.bf16.mxu0 %v1145_v22  ;;  %v488_v21 = vld [vmem:[%s6568_s8 + $0x6e8] sm:$0xff]  ;;  %v1168_v22 = vunpack.c.h.s8.bf16 %v475_v6  ;;  %v1178_v30 = vunpack.c.h.s8.bf16 %v480_v20  ;;  %v1174_v6 = vunpack.c.h.s8.bf16 %v478_v49 }
 0x1a2   : > { %5530 = vmatprep.subr.bf16.mxu1 %v1161_v24  ;;  %v1177_v24 = vunpack.c.l.s8.bf16 %v480_v20  ;;  %v1194_v31 = vunpack.c.h.s8.bf16 %v488_v21 }
 0x1a4   : > { %5509 = vmatpush3.bf16.msra.mxu0 %v1137_v26  ;;  %v1193_v26 = vunpack.c.l.s8.bf16 %v488_v21 }
 0x1a5   : > { %5531 = vmatpush3.bf16.msra.mxu1 %v1153_v27  ;;  %5510 = vmatprep.subr.bf16.mxu0 %v1146_v28  ;;  %v484_v27 = vld [vmem:[%s6568_s8 + $0x6c8] sm:$0xff]  ;;  %v1169_v28 = vunpack.c.l.s8.bf16 %v476_v25 }
 0x1a6   : > { %5532 = vmatprep.subr.bf16.mxu1 %v1162_v29  ;;  %v1185_v29 = vunpack.c.l.s8.bf16 %v484_v27  ;;  %v1186_v35 = vunpack.c.h.s8.bf16 %v484_v27  ;;  %v492_v27 = vld [vmem:[%s6568_s8 + $0x708] sm:$0xff] }
 0x1a8   : > { %5511 = vmatpush3.bf16.msra.mxu0 %v1138_v32  ;;  %v481_v32 = vld [vmem:[%s6568_s8 + $0x6b0] sm:$0xff] }
 0x1a9   : > { %5533 = vmatpush3.bf16.msra.mxu1 %v1154_v33  ;;  %5512 = vmatprep.subr.bf16.mxu0 %v1147_v34  ;;  %v489_v33 = vld [vmem:[%s6568_s8 + $0x6f0] sm:$0xff]  ;;  %v1170_v34 = vunpack.c.h.s8.bf16 %v476_v25  ;;  %v1180_v42 = vunpack.c.h.s8.bf16 %v481_v32 }
 0x1aa   : > { %5534 = vmatprep.subr.bf16.mxu1 %v1163_v36  ;;  %v1179_v36 = vunpack.c.l.s8.bf16 %v481_v32  ;;  %v1196_v43 = vunpack.c.h.s8.bf16 %v489_v33 }
 0x1ac   : > { %5513 = vmatpush3.bf16.msra.mxu0 %v1139_v38  ;;  %v1195_v38 = vunpack.c.l.s8.bf16 %v489_v33 }
 0x1ad   : > { %5535 = vmatpush3.bf16.msra.mxu1 %v1155_v39  ;;  %5514 = vmatprep.subr.bf16.mxu0 %v1148_v40  ;;  %v485_v39 = vld [vmem:[%s6568_s8 + $0x6d0] sm:$0xff]  ;;  %v1171_v40 = vunpack.c.l.s8.bf16 %v477_v37 }
 0x1ae   : > { %5536 = vmatprep.subr.bf16.mxu1 %v1164_v41  ;;  %v5212_v50 = vpop.f32.mrb[20].mxu0  ;;  %v1187_v41 = vunpack.c.l.s8.bf16 %v485_v39  ;;  %v1188_v47 = vunpack.c.h.s8.bf16 %v485_v39  ;;  %v493_v39 = vld [vmem:[%s6568_s8 + $0x710] sm:$0xff] }
 0x1af   : > { %v5234_v51 = vpop.f32.mrb[20].mxu1  ;;  %v5213_v52 = vpop.f32.mrb[21].mxu0 }
 0x1b0   : > { %v5235_v53 = vpop.f32.mrb[21].mxu1  ;;  %v5214_v54 = vadd.f32 %v5213_v52, %v5212_v50  ;;  %v5215_v56 = vpop.f32.mrb[22].mxu0  ;;  %5515 = vmatpush3.bf16.msra.mxu0 %v1140_v44  ;;  %v482_v44 = vld [vmem:[%s6568_s8 + $0x6b8] sm:$0xff] }
 0x1b1   : > { %v5236_v57 = vadd.f32 %v5235_v53, %v5234_v51  ;;  %5537 = vmatpush3.bf16.msra.mxu1 %v1156_v45  ;;  %v5237_v61 = vpop.f32.mrb[22].mxu1  ;;  %v5216_v62 = vpop.f32.mrb[23].mxu0  ;;  %5516 = vmatprep.subr.bf16.mxu0 %v1149_v46  ;;  %v490_v45 = vld [vmem:[%s6568_s8 + $0x6f8] sm:$0xff]  ;;  %v1172_v46 = vunpack.c.h.s8.bf16 %v477_v37 }
 0x1b2   : > { %5538 = vmatprep.subr.bf16.mxu1 %v1165_v48  ;;  %v5238_v55 = vpop.f32.mrb[23].mxu1  ;;  %v2640_v7 = vadd.f32 %v5214_v54, %v6941_v10  ;;  %v4889_v10 = vcombine.low %v6950_v8, %v6950_v8  ;;  %v4894_v8 = vcombine.high %v6983_v1, %v6983_v1  ;;  %v1181_v48 = vunpack.c.l.s8.bf16 %v482_v44  ;;  %v486_v51 = vld [vmem:[%s6568_s8 + $0x6d8] sm:$0xff] }
 0x1b3   : > { %v1197_v50 = vunpack.c.l.s8.bf16 %v490_v45  ;;  %v1173_v61 = vunpack.c.l.s8.bf16 %v478_v49  ;;  %v1189_v62 = vunpack.c.l.s8.bf16 %v486_v51  ;;  %v1182_v55 = vunpack.c.h.s8.bf16 %v482_v44 }
 0x1b4   : > { %v6974_v12 = vadd.f32 %v5236_v57, %v2640_v7  ;;  %5517 = vmatpush3.bf16.msra.mxu0 %v1141_v58  ;;  %v1198_v7 = vunpack.c.h.s8.bf16 %v490_v45 }
 0x1b5   : > { %5539 = vmatpush3.bf16.msra.mxu1 %v1157_v59  ;;  %5518 = vmatprep.subr.bf16.mxu0 %v1150_v0 }
 0x1b6   : > { %5540 = vmatprep.subr.bf16.mxu1 %v1166_v3 }
 0x1b8   : > { %5519 = vmatpush3.bf16.msra.mxu0 %v1142_v63  ;;  %v495_v63 = vld [vmem:[%s6568_s8 + $0x720] sm:$0xff] }
 0x1b9   : > { %5541 = vmatpush3.bf16.msra.mxu1 %v1158_v13  ;;  %5548 = vmatprep.subr.bf16.mxu0 %v1175_v14  ;;  %v503_v13 = vld [vmem:[%s6568_s8 + $0x760] sm:$0xff]  ;;  %v1207_v16 = vunpack.c.l.s8.bf16 %v495_v63 }
 0x1ba   : > { %5570 = vmatprep.subr.bf16.mxu1 %v1191_v15  ;;  %v1190_v15 = vunpack.c.h.s8.bf16 %v486_v51  ;;  %v494_v51 = vld [vmem:[%s6568_s8 + $0x718] sm:$0xff] }
 0x1bb   : > { %3198 = vmatmul.mubr.bf16.vlgmr.msra.gmra.mrb[48].mxu0 %v4889_v10  ;;  %v491_v10 = vld [vmem:[%s6568_s8 + $0x700] sm:$0xff] }
 0x1bc   : > { %3238 = vmatmul.mubr.bf16.vlgmr.msra.gmra.mrb[48].mxu1 %v4891_v17  ;;  %5549 = vmatpush3.bf16.msra.mxu0 %v1167_v18  ;;  %v1223_v17 = vunpack.c.l.s8.bf16 %v503_v13  ;;  %v499_v18 = vld [vmem:[%s6568_s8 + $0x740] sm:$0xff]  ;;  %v1199_v20 = vunpack.c.l.s8.bf16 %v491_v10 }
 0x1bd   : > { %5571 = vmatpush3.bf16.msra.mxu1 %v1183_v19  ;;  %5550 = vmatprep.subr.bf16.mxu0 %v1176_v4  ;;  %v4895_v19 = vcombine.low %v6986_v2, %v6986_v2  ;;  %v7016_v4 = vld [vmem:[%s6563_s28 + $0xe0] sm:$0x77]  ;;  %v1215_v21 = vunpack.c.l.s8.bf16 %v499_v18  ;;  %v1216_v25 = vunpack.c.h.s8.bf16 %v499_v18 }
 0x1be   : > { %5572 = vmatprep.subr.bf16.mxu1 %v1192_v5  ;;  %3277 = vmatprep.mubr.bf16.mxu0 %v4894_v8  ;;  %v7019_v5 = vld [vmem:[%s6563_s28 + $0xe8] sm:$0x77]  ;;  %v1208_v8 = vunpack.c.h.s8.bf16 %v495_v63 }
 0x1bf   : > { %3317 = vmatprep.mubr.bf16.mxu1 %v4896_v9  ;;  %v1224_v9 = vunpack.c.h.s8.bf16 %v503_v13  ;;  %v4900_v2 = vcombine.high %v7019_v5, %v7019_v5 }
 0x1c0   : > { %5551 = vmatpush3.bf16.msra.mxu0 %v1168_v22  ;;  %v496_v22 = vld [vmem:[%s6568_s8 + $0x728] sm:$0xff] }
 0x1c1   : > { %5573 = vmatpush3.bf16.msra.mxu1 %v1184_v23  ;;  %5552 = vmatprep.subr.bf16.mxu0 %v1177_v24  ;;  %v504_v23 = vld [vmem:[%s6568_s8 + $0x768] sm:$0xff]  ;;  %v1200_v24 = vunpack.c.h.s8.bf16 %v491_v10  ;;  %v1210_v32 = vunpack.c.h.s8.bf16 %v496_v22  ;;  %v1206_v10 = vunpack.c.h.s8.bf16 %v494_v51 }
 0x1c2   : > { %5574 = vmatprep.subr.bf16.mxu1 %v1193_v26  ;;  %v1209_v26 = vunpack.c.l.s8.bf16 %v496_v22  ;;  %v1226_v33 = vunpack.c.h.s8.bf16 %v504_v23 }
 0x1c4   : > { %5553 = vmatpush3.bf16.msra.mxu0 %v1169_v28  ;;  %v1225_v28 = vunpack.c.l.s8.bf16 %v504_v23 }
 0x1c5   : > { %5575 = vmatpush3.bf16.msra.mxu1 %v1185_v29  ;;  %5554 = vmatprep.subr.bf16.mxu0 %v1178_v30  ;;  %v500_v29 = vld [vmem:[%s6568_s8 + $0x748] sm:$0xff]  ;;  %v1201_v30 = vunpack.c.l.s8.bf16 %v492_v27 }
 0x1c6   : > { %5576 = vmatprep.subr.bf16.mxu1 %v1194_v31  ;;  %v1217_v31 = vunpack.c.l.s8.bf16 %v500_v29  ;;  %v1218_v37 = vunpack.c.h.s8.bf16 %v500_v29  ;;  %v508_v29 = vld [vmem:[%s6568_s8 + $0x788] sm:$0xff] }
 0x1c8   : > { %5555 = vmatpush3.bf16.msra.mxu0 %v1170_v34  ;;  %v497_v34 = vld [vmem:[%s6568_s8 + $0x730] sm:$0xff] }
 0x1c9   : > { %5577 = vmatpush3.bf16.msra.mxu1 %v1186_v35  ;;  %5556 = vmatprep.subr.bf16.mxu0 %v1179_v36  ;;  %v505_v35 = vld [vmem:[%s6568_s8 + $0x770] sm:$0xff]  ;;  %v1202_v36 = vunpack.c.h.s8.bf16 %v492_v27  ;;  %v1212_v44 = vunpack.c.h.s8.bf16 %v497_v34 }
 0x1ca   : > { %5578 = vmatprep.subr.bf16.mxu1 %v1195_v38  ;;  %v1211_v38 = vunpack.c.l.s8.bf16 %v497_v34  ;;  %v1228_v45 = vunpack.c.h.s8.bf16 %v505_v35 }
 0x1cc   : > { %5557 = vmatpush3.bf16.msra.mxu0 %v1171_v40  ;;  %v1227_v40 = vunpack.c.l.s8.bf16 %v505_v35 }
 0x1cd   : > { %5579 = vmatpush3.bf16.msra.mxu1 %v1187_v41  ;;  %5558 = vmatprep.subr.bf16.mxu0 %v1180_v42  ;;  %v501_v41 = vld [vmem:[%s6568_s8 + $0x750] sm:$0xff]  ;;  %v1203_v42 = vunpack.c.l.s8.bf16 %v493_v39 }
 0x1ce   : > { %5580 = vmatprep.subr.bf16.mxu1 %v1196_v43  ;;  %v5256_v52 = vpop.f32.mrb[24].mxu0  ;;  %v1219_v43 = vunpack.c.l.s8.bf16 %v501_v41  ;;  %v1220_v49 = vunpack.c.h.s8.bf16 %v501_v41  ;;  %v509_v41 = vld [vmem:[%s6568_s8 + $0x790] sm:$0xff] }
 0x1cf   : > { %v5278_v53 = vpop.f32.mrb[24].mxu1  ;;  %v5257_v54 = vpop.f32.mrb[25].mxu0 }
 0x1d0   : > { %v5279_v56 = vpop.f32.mrb[25].mxu1  ;;  %v5258_v57 = vadd.f32 %v5257_v54, %v5256_v52  ;;  %v5259_v58 = vpop.f32.mrb[26].mxu0  ;;  %5559 = vmatpush3.bf16.msra.mxu0 %v1172_v46  ;;  %v498_v46 = vld [vmem:[%s6568_s8 + $0x738] sm:$0xff] }
 0x1d1   : > { %v5280_v59 = vadd.f32 %v5279_v56, %v5278_v53  ;;  %5581 = vmatpush3.bf16.msra.mxu1 %v1188_v47  ;;  %v5281_v0 = vpop.f32.mrb[26].mxu1  ;;  %v5260_v3 = vpop.f32.mrb[27].mxu0  ;;  %5560 = vmatprep.subr.bf16.mxu0 %v1181_v48  ;;  %v506_v47 = vld [vmem:[%s6568_s8 + $0x778] sm:$0xff]  ;;  %v1204_v48 = vunpack.c.h.s8.bf16 %v493_v39 }
 0x1d2   : > { %5582 = vmatprep.subr.bf16.mxu1 %v1197_v50  ;;  %v5282_v60 = vpop.f32.mrb[27].mxu1  ;;  %v2720_v11 = vadd.f32 %v5258_v57, %v6974_v12  ;;  %v4893_v12 = vcombine.low %v6983_v1, %v6983_v1  ;;  %v4898_v1 = vcombine.high %v7016_v4, %v7016_v4  ;;  %v1213_v50 = vunpack.c.l.s8.bf16 %v498_v46  ;;  %v502_v53 = vld [vmem:[%s6568_s8 + $0x758] sm:$0xff] }
 0x1d3   : > { %v1229_v52 = vunpack.c.l.s8.bf16 %v506_v47  ;;  %v1205_v0 = vunpack.c.l.s8.bf16 %v494_v51  ;;  %v1221_v3 = vunpack.c.l.s8.bf16 %v502_v53  ;;  %v1214_v60 = vunpack.c.h.s8.bf16 %v498_v46 }
 0x1d4   : > { %v7007_v14 = vadd.f32 %v5280_v59, %v2720_v11  ;;  %5561 = vmatpush3.bf16.msra.mxu0 %v1173_v61  ;;  %v1230_v11 = vunpack.c.h.s8.bf16 %v506_v47 }
 0x1d5   : > { %5583 = vmatpush3.bf16.msra.mxu1 %v1189_v62  ;;  %5562 = vmatprep.subr.bf16.mxu0 %v1182_v55 }
 0x1d6   : > { %5584 = vmatprep.subr.bf16.mxu1 %v1198_v7 }
 0x1d8   : > { %5563 = vmatpush3.bf16.msra.mxu0 %v1174_v6  ;;  %v511_v6 = vld [vmem:[%s6568_s8 + $0x7a0] sm:$0xff] }
 0x1d9   : > { %5585 = vmatpush3.bf16.msra.mxu1 %v1190_v15  ;;  %5592 = vmatprep.subr.bf16.mxu0 %v1207_v16  ;;  %v519_v15 = vld [vmem:[%s6568_s8 + $0x7e0] sm:$0xff]  ;;  %v1239_v18 = vunpack.c.l.s8.bf16 %v511_v6 }
 0x1da   : > { %5614 = vmatprep.subr.bf16.mxu1 %v1223_v17  ;;  %v1222_v17 = vunpack.c.h.s8.bf16 %v502_v53  ;;  %v510_v53 = vld [vmem:[%s6568_s8 + $0x798] sm:$0xff] }
 0x1db   : > { %3278 = vmatmul.mubr.bf16.vlgmr.msra.gmra.mrb[52].mxu0 %v4893_v12  ;;  %v507_v12 = vld [vmem:[%s6568_s8 + $0x780] sm:$0xff] }
 0x1dc   : > { %3318 = vmatmul.mubr.bf16.vlgmr.msra.gmra.mrb[52].mxu1 %v4895_v19  ;;  %5593 = vmatpush3.bf16.msra.mxu0 %v1199_v20  ;;  %v1255_v19 = vunpack.c.l.s8.bf16 %v519_v15  ;;  %v515_v20 = vld [vmem:[%s6568_s8 + $0x7c0] sm:$0xff]  ;;  %v1231_v22 = vunpack.c.l.s8.bf16 %v507_v12 }
 0x1dd   : > { %5615 = vmatpush3.bf16.msra.mxu1 %v1215_v21  ;;  %5594 = vmatprep.subr.bf16.mxu0 %v1208_v8  ;;  %v4899_v21 = vcombine.low %v7019_v5, %v7019_v5  ;;  %v7049_v8 = vld [vmem:[%s6563_s28 + $0xf0] sm:$0x77]  ;;  %v1247_v23 = vunpack.c.l.s8.bf16 %v515_v20  ;;  %v1248_v27 = vunpack.c.h.s8.bf16 %v515_v20 }
 0x1de   : > { %5616 = vmatprep.subr.bf16.mxu1 %v1224_v9  ;;  %3357 = vmatprep.mubr.bf16.mxu0 %v4898_v1  ;;  %v7052_v9 = vld [vmem:[%s6563_s28 + $0xf8] sm:$0x77]  ;;  %v1240_v1 = vunpack.c.h.s8.bf16 %v511_v6 }
 0x1df   : > { %3397 = vmatprep.mubr.bf16.mxu1 %v4900_v2  ;;  %v1256_v2 = vunpack.c.h.s8.bf16 %v519_v15  ;;  %v4904_v5 = vcombine.high %v7052_v9, %v7052_v9 }
 0x1e0   : > { %5595 = vmatpush3.bf16.msra.mxu0 %v1200_v24  ;;  %v512_v24 = vld [vmem:[%s6568_s8 + $0x7a8] sm:$0xff] }
 0x1e1   : > { %5617 = vmatpush3.bf16.msra.mxu1 %v1216_v25  ;;  %5596 = vmatprep.subr.bf16.mxu0 %v1209_v26  ;;  %v520_v25 = vld [vmem:[%s6568_s8 + $0x7e8] sm:$0xff]  ;;  %v1232_v26 = vunpack.c.h.s8.bf16 %v507_v12  ;;  %v1242_v34 = vunpack.c.h.s8.bf16 %v512_v24  ;;  %v1238_v12 = vunpack.c.h.s8.bf16 %v510_v53 }
 0x1e2   : > { %5618 = vmatprep.subr.bf16.mxu1 %v1225_v28  ;;  %v1241_v28 = vunpack.c.l.s8.bf16 %v512_v24  ;;  %v1258_v35 = vunpack.c.h.s8.bf16 %v520_v25 }
 0x1e4   : > { %5597 = vmatpush3.bf16.msra.mxu0 %v1201_v30  ;;  %v1257_v30 = vunpack.c.l.s8.bf16 %v520_v25 }
 0x1e5   : > { %5619 = vmatpush3.bf16.msra.mxu1 %v1217_v31  ;;  %5598 = vmatprep.subr.bf16.mxu0 %v1210_v32  ;;  %v516_v31 = vld [vmem:[%s6568_s8 + $0x7c8] sm:$0xff]  ;;  %v1233_v32 = vunpack.c.l.s8.bf16 %v508_v29 }
 0x1e6   : > { %5620 = vmatprep.subr.bf16.mxu1 %v1226_v33  ;;  %v1249_v33 = vunpack.c.l.s8.bf16 %v516_v31  ;;  %v1250_v39 = vunpack.c.h.s8.bf16 %v516_v31  ;;  %v524_v31 = vld [vmem:[%s6568_s8 + $0x808] sm:$0xff] }
 0x1e8   : > { %5599 = vmatpush3.bf16.msra.mxu0 %v1202_v36  ;;  %v513_v36 = vld [vmem:[%s6568_s8 + $0x7b0] sm:$0xff] }
 0x1e9   : > { %5621 = vmatpush3.bf16.msra.mxu1 %v1218_v37  ;;  %5600 = vmatprep.subr.bf16.mxu0 %v1211_v38  ;;  %v521_v37 = vld [vmem:[%s6568_s8 + $0x7f0] sm:$0xff]  ;;  %v1234_v38 = vunpack.c.h.s8.bf16 %v508_v29  ;;  %v1244_v46 = vunpack.c.h.s8.bf16 %v513_v36 }
 0x1ea   : > { %5622 = vmatprep.subr.bf16.mxu1 %v1227_v40  ;;  %v1243_v40 = vunpack.c.l.s8.bf16 %v513_v36  ;;  %v1260_v47 = vunpack.c.h.s8.bf16 %v521_v37 }
 0x1ec   : > { %5601 = vmatpush3.bf16.msra.mxu0 %v1203_v42  ;;  %v1259_v42 = vunpack.c.l.s8.bf16 %v521_v37 }
 0x1ed   : > { %5623 = vmatpush3.bf16.msra.mxu1 %v1219_v43  ;;  %5602 = vmatprep.subr.bf16.mxu0 %v1212_v44  ;;  %v517_v43 = vld [vmem:[%s6568_s8 + $0x7d0] sm:$0xff]  ;;  %v1235_v44 = vunpack.c.l.s8.bf16 %v509_v41 }
 0x1ee   : > { %5624 = vmatprep.subr.bf16.mxu1 %v1228_v45  ;;  %v5300_v54 = vpop.f32.mrb[28].mxu0  ;;  %v1251_v45 = vunpack.c.l.s8.bf16 %v517_v43  ;;  %v1252_v51 = vunpack.c.h.s8.bf16 %v517_v43  ;;  %v525_v43 = vld [vmem:[%s6568_s8 + $0x810] sm:$0xff] }
 0x1ef   : > { %v5322_v56 = vpop.f32.mrb[28].mxu1  ;;  %v5301_v57 = vpop.f32.mrb[29].mxu0 }
 0x1f0   : > { %v5323_v58 = vpop.f32.mrb[29].mxu1  ;;  %v5302_v59 = vadd.f32 %v5301_v57, %v5300_v54  ;;  %v5303_v61 = vpop.f32.mrb[30].mxu0  ;;  %5603 = vmatpush3.bf16.msra.mxu0 %v1204_v48  ;;  %v514_v48 = vld [vmem:[%s6568_s8 + $0x7b8] sm:$0xff] }
 0x1f1   : > { %v5324_v62 = vadd.f32 %v5323_v58, %v5322_v56  ;;  %5625 = vmatpush3.bf16.msra.mxu1 %v1220_v49  ;;  %v5325_v55 = vpop.f32.mrb[30].mxu1  ;;  %v5304_v7 = vpop.f32.mrb[31].mxu0  ;;  %5604 = vmatprep.subr.bf16.mxu0 %v1213_v50  ;;  %v522_v49 = vld [vmem:[%s6568_s8 + $0x7f8] sm:$0xff]  ;;  %v1236_v50 = vunpack.c.h.s8.bf16 %v509_v41 }
 0x1f2   : > { %5626 = vmatprep.subr.bf16.mxu1 %v1229_v52  ;;  %v5326_v63 = vpop.f32.mrb[31].mxu1  ;;  %v2800_v13 = vadd.f32 %v5302_v59, %v7007_v14  ;;  %v4897_v14 = vcombine.low %v7016_v4, %v7016_v4  ;;  %v4902_v4 = vcombine.high %v7049_v8, %v7049_v8  ;;  %v1245_v52 = vunpack.c.l.s8.bf16 %v514_v48  ;;  %v518_v56 = vld [vmem:[%s6568_s8 + $0x7d8] sm:$0xff] }
 0x1f3   : > { %v1261_v54 = vunpack.c.l.s8.bf16 %v522_v49  ;;  %v1237_v55 = vunpack.c.l.s8.bf16 %v510_v53  ;;  %v1253_v7 = vunpack.c.l.s8.bf16 %v518_v56  ;;  %v1246_v63 = vunpack.c.h.s8.bf16 %v514_v48 }
 0x1f4   : > { %v7040_v16 = vadd.f32 %v5324_v62, %v2800_v13  ;;  %5605 = vmatpush3.bf16.msra.mxu0 %v1205_v0  ;;  %v1262_v13 = vunpack.c.h.s8.bf16 %v522_v49 }
 0x1f5   : > { %5627 = vmatpush3.bf16.msra.mxu1 %v1221_v3  ;;  %5606 = vmatprep.subr.bf16.mxu0 %v1214_v60 }
 0x1f6   : > { %5628 = vmatprep.subr.bf16.mxu1 %v1230_v11 }
 0x1f8   : > { %5607 = vmatpush3.bf16.msra.mxu0 %v1206_v10  ;;  %v527_v10 = vld [vmem:[%s6568_s8 + $0x820] sm:$0xff] }
 0x1f9   : > { %5629 = vmatpush3.bf16.msra.mxu1 %v1222_v17  ;;  %5636 = vmatprep.subr.bf16.mxu0 %v1239_v18  ;;  %v535_v17 = vld [vmem:[%s6568_s8 + $0x860] sm:$0xff]  ;;  %v1271_v20 = vunpack.c.l.s8.bf16 %v527_v10 }
 0x1fa   : > { %5658 = vmatprep.subr.bf16.mxu1 %v1255_v19  ;;  %v1254_v19 = vunpack.c.h.s8.bf16 %v518_v56  ;;  %v526_v56 = vld [vmem:[%s6568_s8 + $0x818] sm:$0xff] }
 0x1fb   : > { %3358 = vmatmul.mubr.bf16.vlgmr.msra.gmra.mrb[56].mxu0 %v4897_v14  ;;  %v523_v14 = vld [vmem:[%s6568_s8 + $0x800] sm:$0xff] }
 0x1fc   : > { %3398 = vmatmul.mubr.bf16.vlgmr.msra.gmra.mrb[56].mxu1 %v4899_v21  ;;  %5637 = vmatpush3.bf16.msra.mxu0 %v1231_v22  ;;  %v1287_v21 = vunpack.c.l.s8.bf16 %v535_v17  ;;  %v531_v22 = vld [vmem:[%s6568_s8 + $0x840] sm:$0xff]  ;;  %v1263_v24 = vunpack.c.l.s8.bf16 %v523_v14 }
 0x1fd   : > { %5659 = vmatpush3.bf16.msra.mxu1 %v1247_v23  ;;  %5638 = vmatprep.subr.bf16.mxu0 %v1240_v1  ;;  %v4903_v23 = vcombine.low %v7052_v9, %v7052_v9  ;;  %v7082_v1 = vld [vmem:[%s6563_s28 + $0x100] sm:$0x77]  ;;  %v1279_v25 = vunpack.c.l.s8.bf16 %v531_v22  ;;  %v1280_v29 = vunpack.c.h.s8.bf16 %v531_v22 }
 0x1fe   : > { %5660 = vmatprep.subr.bf16.mxu1 %v1256_v2  ;;  %3437 = vmatprep.mubr.bf16.mxu0 %v4902_v4  ;;  %v7085_v2 = vld [vmem:[%s6563_s28 + $0x108] sm:$0x77]  ;;  %v1272_v4 = vunpack.c.h.s8.bf16 %v527_v10 }
 0x1ff   : > { %3477 = vmatprep.mubr.bf16.mxu1 %v4904_v5  ;;  %v1288_v5 = vunpack.c.h.s8.bf16 %v535_v17  ;;  %v4908_v9 = vcombine.high %v7085_v2, %v7085_v2 }
 0x200   : > { %5639 = vmatpush3.bf16.msra.mxu0 %v1232_v26  ;;  %v528_v26 = vld [vmem:[%s6568_s8 + $0x828] sm:$0xff] }
 0x201   : > { %5661 = vmatpush3.bf16.msra.mxu1 %v1248_v27  ;;  %5640 = vmatprep.subr.bf16.mxu0 %v1241_v28  ;;  %v536_v27 = vld [vmem:[%s6568_s8 + $0x868] sm:$0xff]  ;;  %v1264_v28 = vunpack.c.h.s8.bf16 %v523_v14  ;;  %v1274_v36 = vunpack.c.h.s8.bf16 %v528_v26  ;;  %v1270_v14 = vunpack.c.h.s8.bf16 %v526_v56 }
 0x202   : > { %5662 = vmatprep.subr.bf16.mxu1 %v1257_v30  ;;  %v1273_v30 = vunpack.c.l.s8.bf16 %v528_v26  ;;  %v1290_v37 = vunpack.c.h.s8.bf16 %v536_v27 }
 0x204   : > { %5641 = vmatpush3.bf16.msra.mxu0 %v1233_v32  ;;  %v1289_v32 = vunpack.c.l.s8.bf16 %v536_v27 }
 0x205   : > { %5663 = vmatpush3.bf16.msra.mxu1 %v1249_v33  ;;  %5642 = vmatprep.subr.bf16.mxu0 %v1242_v34  ;;  %v532_v33 = vld [vmem:[%s6568_s8 + $0x848] sm:$0xff]  ;;  %v1265_v34 = vunpack.c.l.s8.bf16 %v524_v31 }
 0x206   : > { %5664 = vmatprep.subr.bf16.mxu1 %v1258_v35  ;;  %v1281_v35 = vunpack.c.l.s8.bf16 %v532_v33  ;;  %v1282_v41 = vunpack.c.h.s8.bf16 %v532_v33  ;;  %v540_v33 = vld [vmem:[%s6568_s8 + $0x888] sm:$0xff] }
 0x208   : > { %5643 = vmatpush3.bf16.msra.mxu0 %v1234_v38  ;;  %v529_v38 = vld [vmem:[%s6568_s8 + $0x830] sm:$0xff] }
 0x209   : > { %5665 = vmatpush3.bf16.msra.mxu1 %v1250_v39  ;;  %5644 = vmatprep.subr.bf16.mxu0 %v1243_v40  ;;  %v537_v39 = vld [vmem:[%s6568_s8 + $0x870] sm:$0xff]  ;;  %v1266_v40 = vunpack.c.h.s8.bf16 %v524_v31  ;;  %v1276_v48 = vunpack.c.h.s8.bf16 %v529_v38 }
 0x20a   : > { %5666 = vmatprep.subr.bf16.mxu1 %v1259_v42  ;;  %v1275_v42 = vunpack.c.l.s8.bf16 %v529_v38  ;;  %v1292_v49 = vunpack.c.h.s8.bf16 %v537_v39 }
 0x20c   : > { %5645 = vmatpush3.bf16.msra.mxu0 %v1235_v44  ;;  %v1291_v44 = vunpack.c.l.s8.bf16 %v537_v39 }
 0x20d   : > { %5667 = vmatpush3.bf16.msra.mxu1 %v1251_v45  ;;  %5646 = vmatprep.subr.bf16.mxu0 %v1244_v46  ;;  %v533_v45 = vld [vmem:[%s6568_s8 + $0x850] sm:$0xff]  ;;  %v1267_v46 = vunpack.c.l.s8.bf16 %v525_v43 }
 0x20e   : > { %5668 = vmatprep.subr.bf16.mxu1 %v1260_v47  ;;  %v5344_v57 = vpop.f32.mrb[32].mxu0  ;;  %v1283_v47 = vunpack.c.l.s8.bf16 %v533_v45  ;;  %v1284_v53 = vunpack.c.h.s8.bf16 %v533_v45  ;;  %v541_v45 = vld [vmem:[%s6568_s8 + $0x890] sm:$0xff] }
 0x20f   : > { %v5366_v58 = vpop.f32.mrb[32].mxu1  ;;  %v5345_v59 = vpop.f32.mrb[33].mxu0 }
 0x210   : > { %v5367_v61 = vpop.f32.mrb[33].mxu1  ;;  %v5346_v62 = vadd.f32 %v5345_v59, %v5344_v57  ;;  %v5347_v0 = vpop.f32.mrb[34].mxu0  ;;  %5647 = vmatpush3.bf16.msra.mxu0 %v1236_v50  ;;  %v530_v50 = vld [vmem:[%s6568_s8 + $0x838] sm:$0xff] }
 0x211   : > { %v5368_v3 = vadd.f32 %v5367_v61, %v5366_v58  ;;  %5669 = vmatpush3.bf16.msra.mxu1 %v1252_v51  ;;  %v5369_v60 = vpop.f32.mrb[34].mxu1  ;;  %v5348_v11 = vpop.f32.mrb[35].mxu0  ;;  %5648 = vmatprep.subr.bf16.mxu0 %v1245_v52  ;;  %v538_v51 = vld [vmem:[%s6568_s8 + $0x878] sm:$0xff]  ;;  %v1268_v52 = vunpack.c.h.s8.bf16 %v525_v43 }
 0x212   : > { %5670 = vmatprep.subr.bf16.mxu1 %v1261_v54  ;;  %v5370_v6 = vpop.f32.mrb[35].mxu1  ;;  %v2880_v15 = vadd.f32 %v5346_v62, %v7040_v16  ;;  %v4901_v16 = vcombine.low %v7049_v8, %v7049_v8  ;;  %v4906_v8 = vcombine.high %v7082_v1, %v7082_v1  ;;  %v1277_v54 = vunpack.c.l.s8.bf16 %v530_v50  ;;  %v534_v58 = vld [vmem:[%s6568_s8 + $0x858] sm:$0xff] }
 0x213   : > { %v1293_v57 = vunpack.c.l.s8.bf16 %v538_v51  ;;  %v1269_v60 = vunpack.c.l.s8.bf16 %v526_v56  ;;  %v1285_v11 = vunpack.c.l.s8.bf16 %v534_v58  ;;  %v1278_v6 = vunpack.c.h.s8.bf16 %v530_v50 }
 0x214   : > { %v7073_v18 = vadd.f32 %v5368_v3, %v2880_v15  ;;  %5649 = vmatpush3.bf16.msra.mxu0 %v1237_v55  ;;  %v1294_v15 = vunpack.c.h.s8.bf16 %v538_v51 }
 0x215   : > { %5671 = vmatpush3.bf16.msra.mxu1 %v1253_v7  ;;  %5650 = vmatprep.subr.bf16.mxu0 %v1246_v63 }
 0x216   : > { %5672 = vmatprep.subr.bf16.mxu1 %v1262_v13 }
 0x218   : > { %5651 = vmatpush3.bf16.msra.mxu0 %v1238_v12  ;;  %v543_v12 = vld [vmem:[%s6568_s8 + $0x8a0] sm:$0xff] }
 0x219   : > { %5673 = vmatpush3.bf16.msra.mxu1 %v1254_v19  ;;  %5680 = vmatprep.subr.bf16.mxu0 %v1271_v20  ;;  %v551_v19 = vld [vmem:[%s6568_s8 + $0x8e0] sm:$0xff]  ;;  %v1303_v22 = vunpack.c.l.s8.bf16 %v543_v12 }
 0x21a   : > { %5702 = vmatprep.subr.bf16.mxu1 %v1287_v21  ;;  %v1286_v21 = vunpack.c.h.s8.bf16 %v534_v58  ;;  %v542_v58 = vld [vmem:[%s6568_s8 + $0x898] sm:$0xff] }
 0x21b   : > { %3438 = vmatmul.mubr.bf16.vlgmr.msra.gmra.mrb[60].mxu0 %v4901_v16  ;;  %v539_v16 = vld [vmem:[%s6568_s8 + $0x880] sm:$0xff] }
 0x21c   : > { %3478 = vmatmul.mubr.bf16.vlgmr.msra.gmra.mrb[60].mxu1 %v4903_v23  ;;  %5681 = vmatpush3.bf16.msra.mxu0 %v1263_v24  ;;  %v1319_v23 = vunpack.c.l.s8.bf16 %v551_v19  ;;  %v547_v24 = vld [vmem:[%s6568_s8 + $0x8c0] sm:$0xff]  ;;  %v1295_v26 = vunpack.c.l.s8.bf16 %v539_v16 }
 0x21d   : > { %5703 = vmatpush3.bf16.msra.mxu1 %v1279_v25  ;;  %5682 = vmatprep.subr.bf16.mxu0 %v1272_v4  ;;  %v4907_v25 = vcombine.low %v7085_v2, %v7085_v2  ;;  %v7115_v4 = vld [vmem:[%s6563_s28 + $0x110] sm:$0x77]  ;;  %v1311_v27 = vunpack.c.l.s8.bf16 %v547_v24  ;;  %v1312_v31 = vunpack.c.h.s8.bf16 %v547_v24 }
 0x21e   : > { %5704 = vmatprep.subr.bf16.mxu1 %v1288_v5  ;;  %3517 = vmatprep.mubr.bf16.mxu0 %v4906_v8  ;;  %v7118_v5 = vld [vmem:[%s6563_s28 + $0x118] sm:$0x77]  ;;  %v1304_v8 = vunpack.c.h.s8.bf16 %v543_v12 }
 0x21f   : > { %3557 = vmatprep.mubr.bf16.mxu1 %v4908_v9  ;;  %v1320_v9 = vunpack.c.h.s8.bf16 %v551_v19  ;;  %v4912_v2 = vcombine.high %v7118_v5, %v7118_v5 }
 0x220   : > { %5683 = vmatpush3.bf16.msra.mxu0 %v1264_v28  ;;  %v544_v28 = vld [vmem:[%s6568_s8 + $0x8a8] sm:$0xff] }
 0x221   : > { %5705 = vmatpush3.bf16.msra.mxu1 %v1280_v29  ;;  %5684 = vmatprep.subr.bf16.mxu0 %v1273_v30  ;;  %v552_v29 = vld [vmem:[%s6568_s8 + $0x8e8] sm:$0xff]  ;;  %v1296_v30 = vunpack.c.h.s8.bf16 %v539_v16  ;;  %v1306_v38 = vunpack.c.h.s8.bf16 %v544_v28  ;;  %v1302_v16 = vunpack.c.h.s8.bf16 %v542_v58 }
 0x222   : > { %5706 = vmatprep.subr.bf16.mxu1 %v1289_v32  ;;  %v1305_v32 = vunpack.c.l.s8.bf16 %v544_v28  ;;  %v1322_v39 = vunpack.c.h.s8.bf16 %v552_v29 }
 0x224   : > { %5685 = vmatpush3.bf16.msra.mxu0 %v1265_v34  ;;  %v1321_v34 = vunpack.c.l.s8.bf16 %v552_v29 }
 0x225   : > { %5707 = vmatpush3.bf16.msra.mxu1 %v1281_v35  ;;  %5686 = vmatprep.subr.bf16.mxu0 %v1274_v36  ;;  %v548_v35 = vld [vmem:[%s6568_s8 + $0x8c8] sm:$0xff]  ;;  %v1297_v36 = vunpack.c.l.s8.bf16 %v540_v33 }
 0x226   : > { %5708 = vmatprep.subr.bf16.mxu1 %v1290_v37  ;;  %v1313_v37 = vunpack.c.l.s8.bf16 %v548_v35  ;;  %v1314_v43 = vunpack.c.h.s8.bf16 %v548_v35  ;;  %v556_v35 = vld [vmem:[%s6568_s8 + $0x908] sm:$0xff] }
 0x228   : > { %5687 = vmatpush3.bf16.msra.mxu0 %v1266_v40  ;;  %v545_v40 = vld [vmem:[%s6568_s8 + $0x8b0] sm:$0xff] }
 0x229   : > { %5709 = vmatpush3.bf16.msra.mxu1 %v1282_v41  ;;  %5688 = vmatprep.subr.bf16.mxu0 %v1275_v42  ;;  %v553_v41 = vld [vmem:[%s6568_s8 + $0x8f0] sm:$0xff]  ;;  %v1298_v42 = vunpack.c.h.s8.bf16 %v540_v33  ;;  %v1308_v50 = vunpack.c.h.s8.bf16 %v545_v40 }
 0x22a   : > { %5710 = vmatprep.subr.bf16.mxu1 %v1291_v44  ;;  %v1307_v44 = vunpack.c.l.s8.bf16 %v545_v40  ;;  %v1324_v51 = vunpack.c.h.s8.bf16 %v553_v41 }
 0x22c   : > { %5689 = vmatpush3.bf16.msra.mxu0 %v1267_v46  ;;  %v1323_v46 = vunpack.c.l.s8.bf16 %v553_v41 }
 0x22d   : > { %5711 = vmatpush3.bf16.msra.mxu1 %v1283_v47  ;;  %5690 = vmatprep.subr.bf16.mxu0 %v1276_v48  ;;  %v549_v47 = vld [vmem:[%s6568_s8 + $0x8d0] sm:$0xff]  ;;  %v1299_v48 = vunpack.c.l.s8.bf16 %v541_v45 }
 0x22e   : > { %5712 = vmatprep.subr.bf16.mxu1 %v1292_v49  ;;  %v5388_v59 = vpop.f32.mrb[36].mxu0  ;;  %v1315_v49 = vunpack.c.l.s8.bf16 %v549_v47  ;;  %v1316_v56 = vunpack.c.h.s8.bf16 %v549_v47  ;;  %v557_v47 = vld [vmem:[%s6568_s8 + $0x910] sm:$0xff] }
 0x22f   : > { %v5410_v61 = vpop.f32.mrb[36].mxu1  ;;  %v5389_v62 = vpop.f32.mrb[37].mxu0 }
 0x230   : > { %v5411_v0 = vpop.f32.mrb[37].mxu1  ;;  %v5390_v3 = vadd.f32 %v5389_v62, %v5388_v59  ;;  %v5391_v55 = vpop.f32.mrb[38].mxu0  ;;  %5691 = vmatpush3.bf16.msra.mxu0 %v1268_v52  ;;  %v546_v52 = vld [vmem:[%s6568_s8 + $0x8b8] sm:$0xff] }
 0x231   : > { %v5412_v7 = vadd.f32 %v5411_v0, %v5410_v61  ;;  %5713 = vmatpush3.bf16.msra.mxu1 %v1284_v53  ;;  %v5413_v63 = vpop.f32.mrb[38].mxu1  ;;  %v5392_v13 = vpop.f32.mrb[39].mxu0  ;;  %5692 = vmatprep.subr.bf16.mxu0 %v1277_v54  ;;  %v554_v53 = vld [vmem:[%s6568_s8 + $0x8f8] sm:$0xff]  ;;  %v1300_v54 = vunpack.c.h.s8.bf16 %v541_v45 }
 0x232   : > { %5714 = vmatprep.subr.bf16.mxu1 %v1293_v57  ;;  %v5414_v10 = vpop.f32.mrb[39].mxu1  ;;  %v2960_v17 = vadd.f32 %v5390_v3, %v7073_v18  ;;  %v4905_v18 = vcombine.low %v7082_v1, %v7082_v1  ;;  %v4910_v1 = vcombine.high %v7115_v4, %v7115_v4  ;;  %v1309_v57 = vunpack.c.l.s8.bf16 %v546_v52  ;;  %v550_v61 = vld [vmem:[%s6568_s8 + $0x8d8] sm:$0xff] }
 0x233   : > { %v1325_v59 = vunpack.c.l.s8.bf16 %v554_v53  ;;  %v1301_v63 = vunpack.c.l.s8.bf16 %v542_v58  ;;  %v1317_v13 = vunpack.c.l.s8.bf16 %v550_v61  ;;  %v1310_v10 = vunpack.c.h.s8.bf16 %v546_v52 }
 0x234   : > { %v7106_v20 = vadd.f32 %v5412_v7, %v2960_v17  ;;  %5693 = vmatpush3.bf16.msra.mxu0 %v1269_v60  ;;  %v1326_v17 = vunpack.c.h.s8.bf16 %v554_v53 }
 0x235   : > { %5715 = vmatpush3.bf16.msra.mxu1 %v1285_v11  ;;  %5694 = vmatprep.subr.bf16.mxu0 %v1278_v6 }
 0x236   : > { %5716 = vmatprep.subr.bf16.mxu1 %v1294_v15 }
 0x238   : > { %5695 = vmatpush3.bf16.msra.mxu0 %v1270_v14  ;;  %v559_v14 = vld [vmem:[%s6568_s8 + $0x920] sm:$0xff] }
 0x239   : > { %5717 = vmatpush3.bf16.msra.mxu1 %v1286_v21  ;;  %5724 = vmatprep.subr.bf16.mxu0 %v1303_v22  ;;  %v567_v21 = vld [vmem:[%s6568_s8 + $0x960] sm:$0xff]  ;;  %v1335_v24 = vunpack.c.l.s8.bf16 %v559_v14 }
 0x23a   : > { %5746 = vmatprep.subr.bf16.mxu1 %v1319_v23  ;;  %v1318_v23 = vunpack.c.h.s8.bf16 %v550_v61  ;;  %v558_v61 = vld [vmem:[%s6568_s8 + $0x918] sm:$0xff] }
 0x23b   : > { %3518 = vmatmul.mubr.bf16.vlgmr.msra.gmra.mrb[64].mxu0 %v4905_v18  ;;  %v555_v18 = vld [vmem:[%s6568_s8 + $0x900] sm:$0xff] }
 0x23c   : > { %3558 = vmatmul.mubr.bf16.vlgmr.msra.gmra.mrb[64].mxu1 %v4907_v25  ;;  %5725 = vmatpush3.bf16.msra.mxu0 %v1295_v26  ;;  %v1351_v25 = vunpack.c.l.s8.bf16 %v567_v21  ;;  %v563_v26 = vld [vmem:[%s6568_s8 + $0x940] sm:$0xff]  ;;  %v1327_v28 = vunpack.c.l.s8.bf16 %v555_v18 }
 0x23d   : > { %5747 = vmatpush3.bf16.msra.mxu1 %v1311_v27  ;;  %5726 = vmatprep.subr.bf16.mxu0 %v1304_v8  ;;  %v4911_v27 = vcombine.low %v7118_v5, %v7118_v5  ;;  %v7148_v8 = vld [vmem:[%s6563_s28 + $0x120] sm:$0x77]  ;;  %v1343_v29 = vunpack.c.l.s8.bf16 %v563_v26  ;;  %v1344_v33 = vunpack.c.h.s8.bf16 %v563_v26 }
 0x23e   : > { %5748 = vmatprep.subr.bf16.mxu1 %v1320_v9  ;;  %3597 = vmatprep.mubr.bf16.mxu0 %v4910_v1  ;;  %v7151_v9 = vld [vmem:[%s6563_s28 + $0x128] sm:$0x77]  ;;  %v1336_v1 = vunpack.c.h.s8.bf16 %v559_v14 }
 0x23f   : > { %3637 = vmatprep.mubr.bf16.mxu1 %v4912_v2  ;;  %v1352_v2 = vunpack.c.h.s8.bf16 %v567_v21  ;;  %v4916_v5 = vcombine.high %v7151_v9, %v7151_v9 }
 0x240   : > { %5727 = vmatpush3.bf16.msra.mxu0 %v1296_v30  ;;  %v560_v30 = vld [vmem:[%s6568_s8 + $0x928] sm:$0xff] }
 0x241   : > { %5749 = vmatpush3.bf16.msra.mxu1 %v1312_v31  ;;  %5728 = vmatprep.subr.bf16.mxu0 %v1305_v32  ;;  %v568_v31 = vld [vmem:[%s6568_s8 + $0x968] sm:$0xff]  ;;  %v1328_v32 = vunpack.c.h.s8.bf16 %v555_v18  ;;  %v1338_v40 = vunpack.c.h.s8.bf16 %v560_v30  ;;  %v1334_v18 = vunpack.c.h.s8.bf16 %v558_v61 }
 0x242   : > { %5750 = vmatprep.subr.bf16.mxu1 %v1321_v34  ;;  %v1337_v34 = vunpack.c.l.s8.bf16 %v560_v30  ;;  %v1354_v41 = vunpack.c.h.s8.bf16 %v568_v31 }
 0x244   : > { %5729 = vmatpush3.bf16.msra.mxu0 %v1297_v36  ;;  %v1353_v36 = vunpack.c.l.s8.bf16 %v568_v31 }
 0x245   : > { %5751 = vmatpush3.bf16.msra.mxu1 %v1313_v37  ;;  %5730 = vmatprep.subr.bf16.mxu0 %v1306_v38  ;;  %v564_v37 = vld [vmem:[%s6568_s8 + $0x948] sm:$0xff]  ;;  %v1329_v38 = vunpack.c.l.s8.bf16 %v556_v35 }
 0x246   : > { %5752 = vmatprep.subr.bf16.mxu1 %v1322_v39  ;;  %v1345_v39 = vunpack.c.l.s8.bf16 %v564_v37  ;;  %v1346_v45 = vunpack.c.h.s8.bf16 %v564_v37  ;;  %v572_v37 = vld [vmem:[%s6568_s8 + $0x988] sm:$0xff] }
 0x248   : > { %5731 = vmatpush3.bf16.msra.mxu0 %v1298_v42  ;;  %v561_v42 = vld [vmem:[%s6568_s8 + $0x930] sm:$0xff] }
 0x249   : > { %5753 = vmatpush3.bf16.msra.mxu1 %v1314_v43  ;;  %5732 = vmatprep.subr.bf16.mxu0 %v1307_v44  ;;  %v569_v43 = vld [vmem:[%s6568_s8 + $0x970] sm:$0xff]  ;;  %v1330_v44 = vunpack.c.h.s8.bf16 %v556_v35  ;;  %v1340_v52 = vunpack.c.h.s8.bf16 %v561_v42 }
 0x24a   : > { %5754 = vmatprep.subr.bf16.mxu1 %v1323_v46  ;;  %v1339_v46 = vunpack.c.l.s8.bf16 %v561_v42  ;;  %v1356_v53 = vunpack.c.h.s8.bf16 %v569_v43 }
 0x24c   : > { %5733 = vmatpush3.bf16.msra.mxu0 %v1299_v48  ;;  %v1355_v48 = vunpack.c.l.s8.bf16 %v569_v43 }
 0x24d   : > { %5755 = vmatpush3.bf16.msra.mxu1 %v1315_v49  ;;  %5734 = vmatprep.subr.bf16.mxu0 %v1308_v50  ;;  %v565_v49 = vld [vmem:[%s6568_s8 + $0x950] sm:$0xff]  ;;  %v1331_v50 = vunpack.c.l.s8.bf16 %v557_v47 }
 0x24e   : > { %5756 = vmatprep.subr.bf16.mxu1 %v1324_v51  ;;  %v5432_v62 = vpop.f32.mrb[40].mxu0  ;;  %v1347_v51 = vunpack.c.l.s8.bf16 %v565_v49  ;;  %v1348_v58 = vunpack.c.h.s8.bf16 %v565_v49  ;;  %v573_v49 = vld [vmem:[%s6568_s8 + $0x990] sm:$0xff] }
 0x24f   : > { %v5454_v0 = vpop.f32.mrb[40].mxu1  ;;  %v5433_v3 = vpop.f32.mrb[41].mxu0 }
 0x250   : > { %v5455_v55 = vpop.f32.mrb[41].mxu1  ;;  %v5434_v7 = vadd.f32 %v5433_v3, %v5432_v62  ;;  %v5435_v60 = vpop.f32.mrb[42].mxu0  ;;  %5735 = vmatpush3.bf16.msra.mxu0 %v1300_v54  ;;  %v562_v54 = vld [vmem:[%s6568_s8 + $0x938] sm:$0xff] }
 0x251   : > { %v5456_v11 = vadd.f32 %v5455_v55, %v5454_v0  ;;  %5757 = vmatpush3.bf16.msra.mxu1 %v1316_v56  ;;  %v5457_v6 = vpop.f32.mrb[42].mxu1  ;;  %v5436_v15 = vpop.f32.mrb[43].mxu0  ;;  %5736 = vmatprep.subr.bf16.mxu0 %v1309_v57  ;;  %v570_v56 = vld [vmem:[%s6568_s8 + $0x978] sm:$0xff]  ;;  %v1332_v57 = vunpack.c.h.s8.bf16 %v557_v47 }
 0x252   : > { %5758 = vmatprep.subr.bf16.mxu1 %v1325_v59  ;;  %v5458_v12 = vpop.f32.mrb[43].mxu1  ;;  %v3040_v19 = vadd.f32 %v5434_v7, %v7106_v20  ;;  %v4909_v20 = vcombine.low %v7115_v4, %v7115_v4  ;;  %v4914_v4 = vcombine.high %v7148_v8, %v7148_v8  ;;  %v1341_v59 = vunpack.c.l.s8.bf16 %v562_v54  ;;  %v566_v0 = vld [vmem:[%s6568_s8 + $0x958] sm:$0xff] }
 0x253   : > { %v1357_v62 = vunpack.c.l.s8.bf16 %v570_v56  ;;  %v1333_v6 = vunpack.c.l.s8.bf16 %v558_v61  ;;  %v1349_v15 = vunpack.c.l.s8.bf16 %v566_v0  ;;  %v1342_v12 = vunpack.c.h.s8.bf16 %v562_v54 }
 0x254   : > { %v7139_v22 = vadd.f32 %v5456_v11, %v3040_v19  ;;  %5737 = vmatpush3.bf16.msra.mxu0 %v1301_v63  ;;  %v1358_v19 = vunpack.c.h.s8.bf16 %v570_v56 }
 0x255   : > { %5759 = vmatpush3.bf16.msra.mxu1 %v1317_v13  ;;  %5738 = vmatprep.subr.bf16.mxu0 %v1310_v10 }
 0x256   : > { %5760 = vmatprep.subr.bf16.mxu1 %v1326_v17 }
 0x258   : > { %5739 = vmatpush3.bf16.msra.mxu0 %v1302_v16  ;;  %v575_v16 = vld [vmem:[%s6568_s8 + $0x9a0] sm:$0xff] }
 0x259   : > { %5761 = vmatpush3.bf16.msra.mxu1 %v1318_v23  ;;  %5768 = vmatprep.subr.bf16.mxu0 %v1335_v24  ;;  %v583_v23 = vld [vmem:[%s6568_s8 + $0x9e0] sm:$0xff]  ;;  %v1367_v26 = vunpack.c.l.s8.bf16 %v575_v16 }
 0x25a   : > { %5790 = vmatprep.subr.bf16.mxu1 %v1351_v25  ;;  %v1350_v25 = vunpack.c.h.s8.bf16 %v566_v0  ;;  %v574_v0 = vld [vmem:[%s6568_s8 + $0x998] sm:$0xff] }
 0x25b   : > { %3598 = vmatmul.mubr.bf16.vlgmr.msra.gmra.mrb[68].mxu0 %v4909_v20  ;;  %v571_v20 = vld [vmem:[%s6568_s8 + $0x980] sm:$0xff] }
 0x25c   : > { %3638 = vmatmul.mubr.bf16.vlgmr.msra.gmra.mrb[68].mxu1 %v4911_v27  ;;  %5769 = vmatpush3.bf16.msra.mxu0 %v1327_v28  ;;  %v1383_v27 = vunpack.c.l.s8.bf16 %v583_v23  ;;  %v579_v28 = vld [vmem:[%s6568_s8 + $0x9c0] sm:$0xff]  ;;  %v1359_v30 = vunpack.c.l.s8.bf16 %v571_v20 }
 0x25d   : > { %5791 = vmatpush3.bf16.msra.mxu1 %v1343_v29  ;;  %5770 = vmatprep.subr.bf16.mxu0 %v1336_v1  ;;  %v4915_v29 = vcombine.low %v7151_v9, %v7151_v9  ;;  %v7181_v1 = vld [vmem:[%s6563_s28 + $0x130] sm:$0x77]  ;;  %v1375_v31 = vunpack.c.l.s8.bf16 %v579_v28  ;;  %v1376_v35 = vunpack.c.h.s8.bf16 %v579_v28 }
 0x25e   : > { %5792 = vmatprep.subr.bf16.mxu1 %v1352_v2  ;;  %3677 = vmatprep.mubr.bf16.mxu0 %v4914_v4  ;;  %v7184_v2 = vld [vmem:[%s6563_s28 + $0x138] sm:$0x77]  ;;  %v1368_v4 = vunpack.c.h.s8.bf16 %v575_v16 }
 0x25f   : > { %3717 = vmatprep.mubr.bf16.mxu1 %v4916_v5  ;;  %v1384_v5 = vunpack.c.h.s8.bf16 %v583_v23  ;;  %v4920_v9 = vcombine.high %v7184_v2, %v7184_v2 }
 0x260   : > { %5771 = vmatpush3.bf16.msra.mxu0 %v1328_v32  ;;  %v576_v32 = vld [vmem:[%s6568_s8 + $0x9a8] sm:$0xff] }
 0x261   : > { %5793 = vmatpush3.bf16.msra.mxu1 %v1344_v33  ;;  %5772 = vmatprep.subr.bf16.mxu0 %v1337_v34  ;;  %v584_v33 = vld [vmem:[%s6568_s8 + $0x9e8] sm:$0xff]  ;;  %v1360_v34 = vunpack.c.h.s8.bf16 %v571_v20  ;;  %v1370_v42 = vunpack.c.h.s8.bf16 %v576_v32  ;;  %v1366_v20 = vunpack.c.h.s8.bf16 %v574_v0 }
 0x262   : > { %5794 = vmatprep.subr.bf16.mxu1 %v1353_v36  ;;  %v1369_v36 = vunpack.c.l.s8.bf16 %v576_v32  ;;  %v1386_v43 = vunpack.c.h.s8.bf16 %v584_v33 }
 0x264   : > { %5773 = vmatpush3.bf16.msra.mxu0 %v1329_v38  ;;  %v1385_v38 = vunpack.c.l.s8.bf16 %v584_v33 }
 0x265   : > { %5795 = vmatpush3.bf16.msra.mxu1 %v1345_v39  ;;  %5774 = vmatprep.subr.bf16.mxu0 %v1338_v40  ;;  %v580_v39 = vld [vmem:[%s6568_s8 + $0x9c8] sm:$0xff]  ;;  %v1361_v40 = vunpack.c.l.s8.bf16 %v572_v37 }
 0x266   : > { %5796 = vmatprep.subr.bf16.mxu1 %v1354_v41  ;;  %v1377_v41 = vunpack.c.l.s8.bf16 %v580_v39  ;;  %v1378_v47 = vunpack.c.h.s8.bf16 %v580_v39  ;;  %v588_v39 = vld [vmem:[%s6568_s8 + $0xa08] sm:$0xff] }
 0x268   : > { %5775 = vmatpush3.bf16.msra.mxu0 %v1330_v44  ;;  %v577_v44 = vld [vmem:[%s6568_s8 + $0x9b0] sm:$0xff] }
 0x269   : > { %5797 = vmatpush3.bf16.msra.mxu1 %v1346_v45  ;;  %5776 = vmatprep.subr.bf16.mxu0 %v1339_v46  ;;  %v585_v45 = vld [vmem:[%s6568_s8 + $0x9f0] sm:$0xff]  ;;  %v1362_v46 = vunpack.c.h.s8.bf16 %v572_v37  ;;  %v1372_v54 = vunpack.c.h.s8.bf16 %v577_v44 }
 0x26a   : > { %5798 = vmatprep.subr.bf16.mxu1 %v1355_v48  ;;  %v1371_v48 = vunpack.c.l.s8.bf16 %v577_v44  ;;  %v1388_v56 = vunpack.c.h.s8.bf16 %v585_v45 }
 0x26c   : > { %5777 = vmatpush3.bf16.msra.mxu0 %v1331_v50  ;;  %v1387_v50 = vunpack.c.l.s8.bf16 %v585_v45 }
 0x26d   : > { %5799 = vmatpush3.bf16.msra.mxu1 %v1347_v51  ;;  %5778 = vmatprep.subr.bf16.mxu0 %v1340_v52  ;;  %v581_v51 = vld [vmem:[%s6568_s8 + $0x9d0] sm:$0xff]  ;;  %v1363_v52 = vunpack.c.l.s8.bf16 %v573_v49 }
 0x26e   : > { %5800 = vmatprep.subr.bf16.mxu1 %v1356_v53  ;;  %v5476_v3 = vpop.f32.mrb[44].mxu0  ;;  %v1379_v53 = vunpack.c.l.s8.bf16 %v581_v51  ;;  %v1380_v61 = vunpack.c.h.s8.bf16 %v581_v51  ;;  %v589_v51 = vld [vmem:[%s6568_s8 + $0xa10] sm:$0xff] }
 0x26f   : > { %v5498_v55 = vpop.f32.mrb[44].mxu1  ;;  %v5477_v7 = vpop.f32.mrb[45].mxu0 }
 0x270   : > { %v5499_v60 = vpop.f32.mrb[45].mxu1  ;;  %v5478_v11 = vadd.f32 %v5477_v7, %v5476_v3  ;;  %v5479_v63 = vpop.f32.mrb[46].mxu0  ;;  %5779 = vmatpush3.bf16.msra.mxu0 %v1332_v57  ;;  %v578_v57 = vld [vmem:[%s6568_s8 + $0x9b8] sm:$0xff] }
 0x271   : > { %v5500_v13 = vadd.f32 %v5499_v60, %v5498_v55  ;;  %5801 = vmatpush3.bf16.msra.mxu1 %v1348_v58  ;;  %v5501_v10 = vpop.f32.mrb[46].mxu1  ;;  %v5480_v17 = vpop.f32.mrb[47].mxu0  ;;  %5780 = vmatprep.subr.bf16.mxu0 %v1341_v59  ;;  %v586_v58 = vld [vmem:[%s6568_s8 + $0x9f8] sm:$0xff]  ;;  %v1364_v59 = vunpack.c.h.s8.bf16 %v573_v49 }
 0x272   : > { %5802 = vmatprep.subr.bf16.mxu1 %v1357_v62  ;;  %v5502_v14 = vpop.f32.mrb[47].mxu1  ;;  %v3120_v21 = vadd.f32 %v5478_v11, %v7139_v22  ;;  %v4913_v22 = vcombine.low %v7148_v8, %v7148_v8  ;;  %v4918_v8 = vcombine.high %v7181_v1, %v7181_v1  ;;  %v1373_v62 = vunpack.c.l.s8.bf16 %v578_v57  ;;  %v582_v55 = vld [vmem:[%s6568_s8 + $0x9d8] sm:$0xff] }
 0x273   : > { %v1389_v3 = vunpack.c.l.s8.bf16 %v586_v58  ;;  %v1365_v10 = vunpack.c.l.s8.bf16 %v574_v0  ;;  %v1381_v17 = vunpack.c.l.s8.bf16 %v582_v55  ;;  %v1374_v14 = vunpack.c.h.s8.bf16 %v578_v57 }
 0x274   : > { %v7172_v24 = vadd.f32 %v5500_v13, %v3120_v21  ;;  %5781 = vmatpush3.bf16.msra.mxu0 %v1333_v6  ;;  %v1390_v21 = vunpack.c.h.s8.bf16 %v586_v58 }
 0x275   : > { %5803 = vmatpush3.bf16.msra.mxu1 %v1349_v15  ;;  %5782 = vmatprep.subr.bf16.mxu0 %v1342_v12 }
 0x276   : > { %5804 = vmatprep.subr.bf16.mxu1 %v1358_v19 }
 0x278   : > { %5783 = vmatpush3.bf16.msra.mxu0 %v1334_v18  ;;  %v591_v18 = vld [vmem:[%s6568_s8 + $0xa20] sm:$0xff] }
 0x279   : > { %5805 = vmatpush3.bf16.msra.mxu1 %v1350_v25  ;;  %5812 = vmatprep.subr.bf16.mxu0 %v1367_v26  ;;  %v599_v25 = vld [vmem:[%s6568_s8 + $0xa60] sm:$0xff]  ;;  %v1399_v28 = vunpack.c.l.s8.bf16 %v591_v18 }
 0x27a   : > { %5834 = vmatprep.subr.bf16.mxu1 %v1383_v27  ;;  %v1382_v27 = vunpack.c.h.s8.bf16 %v582_v55  ;;  %v590_v55 = vld [vmem:[%s6568_s8 + $0xa18] sm:$0xff] }
 0x27b   : > { %3678 = vmatmul.mubr.bf16.vlgmr.msra.gmra.mrb[72].mxu0 %v4913_v22  ;;  %v587_v22 = vld [vmem:[%s6568_s8 + $0xa00] sm:$0xff] }
 0x27c   : > { %3718 = vmatmul.mubr.bf16.vlgmr.msra.gmra.mrb[72].mxu1 %v4915_v29  ;;  %5813 = vmatpush3.bf16.msra.mxu0 %v1359_v30  ;;  %v1415_v29 = vunpack.c.l.s8.bf16 %v599_v25  ;;  %v595_v30 = vld [vmem:[%s6568_s8 + $0xa40] sm:$0xff]  ;;  %v1391_v32 = vunpack.c.l.s8.bf16 %v587_v22 }
 0x27d   : > { %5835 = vmatpush3.bf16.msra.mxu1 %v1375_v31  ;;  %5814 = vmatprep.subr.bf16.mxu0 %v1368_v4  ;;  %v4919_v31 = vcombine.low %v7184_v2, %v7184_v2  ;;  %v7214_v4 = vld [vmem:[%s6563_s28 + $0x140] sm:$0x77]  ;;  %v1407_v33 = vunpack.c.l.s8.bf16 %v595_v30  ;;  %v1408_v37 = vunpack.c.h.s8.bf16 %v595_v30 }
 0x27e   : > { %5836 = vmatprep.subr.bf16.mxu1 %v1384_v5  ;;  %3757 = vmatprep.mubr.bf16.mxu0 %v4918_v8  ;;  %v7217_v5 = vld [vmem:[%s6563_s28 + $0x148] sm:$0x77]  ;;  %v1400_v8 = vunpack.c.h.s8.bf16 %v591_v18 }
 0x27f   : > { %3797 = vmatprep.mubr.bf16.mxu1 %v4920_v9  ;;  %v1416_v9 = vunpack.c.h.s8.bf16 %v599_v25  ;;  %v4924_v2 = vcombine.high %v7217_v5, %v7217_v5 }
 0x280   : > { %5815 = vmatpush3.bf16.msra.mxu0 %v1360_v34  ;;  %v592_v34 = vld [vmem:[%s6568_s8 + $0xa28] sm:$0xff] }
 0x281   : > { %5837 = vmatpush3.bf16.msra.mxu1 %v1376_v35  ;;  %5816 = vmatprep.subr.bf16.mxu0 %v1369_v36  ;;  %v600_v35 = vld [vmem:[%s6568_s8 + $0xa68] sm:$0xff]  ;;  %v1392_v36 = vunpack.c.h.s8.bf16 %v587_v22  ;;  %v1402_v44 = vunpack.c.h.s8.bf16 %v592_v34  ;;  %v1398_v22 = vunpack.c.h.s8.bf16 %v590_v55 }
 0x282   : > { %5838 = vmatprep.subr.bf16.mxu1 %v1385_v38  ;;  %v1401_v38 = vunpack.c.l.s8.bf16 %v592_v34  ;;  %v1418_v45 = vunpack.c.h.s8.bf16 %v600_v35 }
 0x284   : > { %5817 = vmatpush3.bf16.msra.mxu0 %v1361_v40  ;;  %v1417_v40 = vunpack.c.l.s8.bf16 %v600_v35 }
 0x285   : > { %5839 = vmatpush3.bf16.msra.mxu1 %v1377_v41  ;;  %5818 = vmatprep.subr.bf16.mxu0 %v1370_v42  ;;  %v596_v41 = vld [vmem:[%s6568_s8 + $0xa48] sm:$0xff]  ;;  %v1393_v42 = vunpack.c.l.s8.bf16 %v588_v39 }
 0x286   : > { %5840 = vmatprep.subr.bf16.mxu1 %v1386_v43  ;;  %v1409_v43 = vunpack.c.l.s8.bf16 %v596_v41  ;;  %v1410_v49 = vunpack.c.h.s8.bf16 %v596_v41  ;;  %v604_v41 = vld [vmem:[%s6568_s8 + $0xa88] sm:$0xff] }
 0x288   : > { %5819 = vmatpush3.bf16.msra.mxu0 %v1362_v46  ;;  %v593_v46 = vld [vmem:[%s6568_s8 + $0xa30] sm:$0xff] }
 0x289   : > { %5841 = vmatpush3.bf16.msra.mxu1 %v1378_v47  ;;  %5820 = vmatprep.subr.bf16.mxu0 %v1371_v48  ;;  %v601_v47 = vld [vmem:[%s6568_s8 + $0xa70] sm:$0xff]  ;;  %v1394_v48 = vunpack.c.h.s8.bf16 %v588_v39  ;;  %v1404_v57 = vunpack.c.h.s8.bf16 %v593_v46 }
 0x28a   : > { %5842 = vmatprep.subr.bf16.mxu1 %v1387_v50  ;;  %v1403_v50 = vunpack.c.l.s8.bf16 %v593_v46  ;;  %v1420_v58 = vunpack.c.h.s8.bf16 %v601_v47 }
 0x28c   : > { %5821 = vmatpush3.bf16.msra.mxu0 %v1363_v52  ;;  %v1419_v52 = vunpack.c.l.s8.bf16 %v601_v47 }
 0x28d   : > { %5843 = vmatpush3.bf16.msra.mxu1 %v1379_v53  ;;  %5822 = vmatprep.subr.bf16.mxu0 %v1372_v54  ;;  %v597_v53 = vld [vmem:[%s6568_s8 + $0xa50] sm:$0xff]  ;;  %v1395_v54 = vunpack.c.l.s8.bf16 %v589_v51 }
 0x28e   : > { %5844 = vmatprep.subr.bf16.mxu1 %v1388_v56  ;;  %v5520_v7 = vpop.f32.mrb[48].mxu0  ;;  %v1411_v56 = vunpack.c.l.s8.bf16 %v597_v53  ;;  %v1412_v0 = vunpack.c.h.s8.bf16 %v597_v53  ;;  %v605_v53 = vld [vmem:[%s6568_s8 + $0xa90] sm:$0xff] }
 0x28f   : > { %v5542_v60 = vpop.f32.mrb[48].mxu1  ;;  %v5521_v11 = vpop.f32.mrb[49].mxu0 }
 0x290   : > { %v5543_v63 = vpop.f32.mrb[49].mxu1  ;;  %v5522_v13 = vadd.f32 %v5521_v11, %v5520_v7  ;;  %v5523_v6 = vpop.f32.mrb[50].mxu0  ;;  %5823 = vmatpush3.bf16.msra.mxu0 %v1364_v59  ;;  %v594_v59 = vld [vmem:[%s6568_s8 + $0xa38] sm:$0xff] }
 0x291   : > { %v5544_v15 = vadd.f32 %v5543_v63, %v5542_v60  ;;  %5845 = vmatpush3.bf16.msra.mxu1 %v1380_v61  ;;  %v5545_v12 = vpop.f32.mrb[50].mxu1  ;;  %v5524_v19 = vpop.f32.mrb[51].mxu0  ;;  %5824 = vmatprep.subr.bf16.mxu0 %v1373_v62  ;;  %v602_v61 = vld [vmem:[%s6568_s8 + $0xa78] sm:$0xff]  ;;  %v1396_v62 = vunpack.c.h.s8.bf16 %v589_v51 }
 0x292   : > { %5846 = vmatprep.subr.bf16.mxu1 %v1389_v3  ;;  %v5546_v16 = vpop.f32.mrb[51].mxu1  ;;  %v3200_v23 = vadd.f32 %v5522_v13, %v7172_v24  ;;  %v4917_v24 = vcombine.low %v7181_v1, %v7181_v1  ;;  %v4922_v1 = vcombine.high %v7214_v4, %v7214_v4  ;;  %v1405_v3 = vunpack.c.l.s8.bf16 %v594_v59  ;;  %v598_v60 = vld [vmem:[%s6568_s8 + $0xa58] sm:$0xff] }
 0x293   : > { %v1421_v7 = vunpack.c.l.s8.bf16 %v602_v61  ;;  %v1397_v12 = vunpack.c.l.s8.bf16 %v590_v55  ;;  %v1413_v19 = vunpack.c.l.s8.bf16 %v598_v60  ;;  %v1406_v16 = vunpack.c.h.s8.bf16 %v594_v59 }
 0x294   : > { %v7205_v26 = vadd.f32 %v5544_v15, %v3200_v23  ;;  %5825 = vmatpush3.bf16.msra.mxu0 %v1365_v10  ;;  %v1422_v23 = vunpack.c.h.s8.bf16 %v602_v61 }
 0x295   : > { %5847 = vmatpush3.bf16.msra.mxu1 %v1381_v17  ;;  %5826 = vmatprep.subr.bf16.mxu0 %v1374_v14 }
 0x296   : > { %5848 = vmatprep.subr.bf16.mxu1 %v1390_v21 }
 0x298   : > { %5827 = vmatpush3.bf16.msra.mxu0 %v1366_v20  ;;  %v607_v20 = vld [vmem:[%s6568_s8 + $0xaa0] sm:$0xff] }
 0x299   : > { %5849 = vmatpush3.bf16.msra.mxu1 %v1382_v27  ;;  %5856 = vmatprep.subr.bf16.mxu0 %v1399_v28  ;;  %v615_v27 = vld [vmem:[%s6568_s8 + $0xae0] sm:$0xff]  ;;  %v1431_v30 = vunpack.c.l.s8.bf16 %v607_v20 }
 0x29a   : > { %5878 = vmatprep.subr.bf16.mxu1 %v1415_v29  ;;  %v1414_v29 = vunpack.c.h.s8.bf16 %v598_v60  ;;  %v606_v60 = vld [vmem:[%s6568_s8 + $0xa98] sm:$0xff] }
 0x29b   : > { %3758 = vmatmul.mubr.bf16.vlgmr.msra.gmra.mrb[76].mxu0 %v4917_v24  ;;  %v603_v24 = vld [vmem:[%s6568_s8 + $0xa80] sm:$0xff] }
 0x29c   : > { %3798 = vmatmul.mubr.bf16.vlgmr.msra.gmra.mrb[76].mxu1 %v4919_v31  ;;  %5857 = vmatpush3.bf16.msra.mxu0 %v1391_v32  ;;  %v1447_v31 = vunpack.c.l.s8.bf16 %v615_v27  ;;  %v611_v32 = vld [vmem:[%s6568_s8 + $0xac0] sm:$0xff]  ;;  %v1423_v34 = vunpack.c.l.s8.bf16 %v603_v24 }
 0x29d   : > { %5879 = vmatpush3.bf16.msra.mxu1 %v1407_v33  ;;  %5858 = vmatprep.subr.bf16.mxu0 %v1400_v8  ;;  %v4923_v33 = vcombine.low %v7217_v5, %v7217_v5  ;;  %v7247_v8 = vld [vmem:[%s6563_s28 + $0x150] sm:$0x77]  ;;  %v1439_v35 = vunpack.c.l.s8.bf16 %v611_v32  ;;  %v1440_v39 = vunpack.c.h.s8.bf16 %v611_v32 }
 0x29e   : > { %5880 = vmatprep.subr.bf16.mxu1 %v1416_v9  ;;  %3837 = vmatprep.mubr.bf16.mxu0 %v4922_v1  ;;  %v7250_v9 = vld [vmem:[%s6563_s28 + $0x158] sm:$0x77]  ;;  %v1432_v1 = vunpack.c.h.s8.bf16 %v607_v20 }
 0x29f   : > { %3877 = vmatprep.mubr.bf16.mxu1 %v4924_v2  ;;  %v1448_v2 = vunpack.c.h.s8.bf16 %v615_v27  ;;  %v4928_v5 = vcombine.high %v7250_v9, %v7250_v9 }
 0x2a0   : > { %5859 = vmatpush3.bf16.msra.mxu0 %v1392_v36  ;;  %v608_v36 = vld [vmem:[%s6568_s8 + $0xaa8] sm:$0xff] }
 0x2a1   : > { %5881 = vmatpush3.bf16.msra.mxu1 %v1408_v37  ;;  %5860 = vmatprep.subr.bf16.mxu0 %v1401_v38  ;;  %v616_v37 = vld [vmem:[%s6568_s8 + $0xae8] sm:$0xff]  ;;  %v1424_v38 = vunpack.c.h.s8.bf16 %v603_v24  ;;  %v1434_v46 = vunpack.c.h.s8.bf16 %v608_v36  ;;  %v1430_v24 = vunpack.c.h.s8.bf16 %v606_v60 }
 0x2a2   : > { %5882 = vmatprep.subr.bf16.mxu1 %v1417_v40  ;;  %v1433_v40 = vunpack.c.l.s8.bf16 %v608_v36  ;;  %v1450_v47 = vunpack.c.h.s8.bf16 %v616_v37 }
 0x2a4   : > { %5861 = vmatpush3.bf16.msra.mxu0 %v1393_v42  ;;  %v1449_v42 = vunpack.c.l.s8.bf16 %v616_v37 }
 0x2a5   : > { %5883 = vmatpush3.bf16.msra.mxu1 %v1409_v43  ;;  %5862 = vmatprep.subr.bf16.mxu0 %v1402_v44  ;;  %v612_v43 = vld [vmem:[%s6568_s8 + $0xac8] sm:$0xff]  ;;  %v1425_v44 = vunpack.c.l.s8.bf16 %v604_v41 }
 0x2a6   : > { %5884 = vmatprep.subr.bf16.mxu1 %v1418_v45  ;;  %v1441_v45 = vunpack.c.l.s8.bf16 %v612_v43  ;;  %v1442_v51 = vunpack.c.h.s8.bf16 %v612_v43  ;;  %v620_v43 = vld [vmem:[%s6568_s8 + $0xb08] sm:$0xff] }
 0x2a8   : > { %5863 = vmatpush3.bf16.msra.mxu0 %v1394_v48  ;;  %v609_v48 = vld [vmem:[%s6568_s8 + $0xab0] sm:$0xff] }
 0x2a9   : > { %5885 = vmatpush3.bf16.msra.mxu1 %v1410_v49  ;;  %5864 = vmatprep.subr.bf16.mxu0 %v1403_v50  ;;  %v617_v49 = vld [vmem:[%s6568_s8 + $0xaf0] sm:$0xff]  ;;  %v1426_v50 = vunpack.c.h.s8.bf16 %v604_v41  ;;  %v1436_v59 = vunpack.c.h.s8.bf16 %v609_v48 }
 0x2aa   : > { %5886 = vmatprep.subr.bf16.mxu1 %v1419_v52  ;;  %v1435_v52 = vunpack.c.l.s8.bf16 %v609_v48  ;;  %v1452_v61 = vunpack.c.h.s8.bf16 %v617_v49 }
 0x2ac   : > { %5865 = vmatpush3.bf16.msra.mxu0 %v1395_v54  ;;  %v1451_v54 = vunpack.c.l.s8.bf16 %v617_v49 }
 0x2ad   : > { %5887 = vmatpush3.bf16.msra.mxu1 %v1411_v56  ;;  %5866 = vmatprep.subr.bf16.mxu0 %v1404_v57  ;;  %v613_v56 = vld [vmem:[%s6568_s8 + $0xad0] sm:$0xff]  ;;  %v1427_v57 = vunpack.c.l.s8.bf16 %v605_v53 }
 0x2ae   : > { %5888 = vmatprep.subr.bf16.mxu1 %v1420_v58  ;;  %v5564_v11 = vpop.f32.mrb[52].mxu0  ;;  %v1443_v58 = vunpack.c.l.s8.bf16 %v613_v56  ;;  %v1444_v55 = vunpack.c.h.s8.bf16 %v613_v56  ;;  %v621_v56 = vld [vmem:[%s6568_s8 + $0xb10] sm:$0xff] }
 0x2af   : > { %v5586_v63 = vpop.f32.mrb[52].mxu1  ;;  %v5565_v13 = vpop.f32.mrb[53].mxu0 }
 0x2b0   : > { %v5587_v6 = vpop.f32.mrb[53].mxu1  ;;  %v5566_v15 = vadd.f32 %v5565_v13, %v5564_v11  ;;  %v5567_v10 = vpop.f32.mrb[54].mxu0  ;;  %5867 = vmatpush3.bf16.msra.mxu0 %v1396_v62  ;;  %v610_v62 = vld [vmem:[%s6568_s8 + $0xab8] sm:$0xff] }
 0x2b1   : > { %v5588_v17 = vadd.f32 %v5587_v6, %v5586_v63  ;;  %5889 = vmatpush3.bf16.msra.mxu1 %v1412_v0  ;;  %v5589_v14 = vpop.f32.mrb[54].mxu1  ;;  %v5568_v21 = vpop.f32.mrb[55].mxu0  ;;  %5868 = vmatprep.subr.bf16.mxu0 %v1405_v3  ;;  %v618_v0 = vld [vmem:[%s6568_s8 + $0xaf8] sm:$0xff]  ;;  %v1428_v3 = vunpack.c.h.s8.bf16 %v605_v53 }
 0x2b2   : > { %5890 = vmatprep.subr.bf16.mxu1 %v1421_v7  ;;  %v5590_v18 = vpop.f32.mrb[55].mxu1  ;;  %v3280_v25 = vadd.f32 %v5566_v15, %v7205_v26  ;;  %v4921_v26 = vcombine.low %v7214_v4, %v7214_v4  ;;  %v4926_v4 = vcombine.high %v7247_v8, %v7247_v8  ;;  %v1437_v7 = vunpack.c.l.s8.bf16 %v610_v62  ;;  %v614_v63 = vld [vmem:[%s6568_s8 + $0xad8] sm:$0xff] }
 0x2b3   : > { %v1453_v11 = vunpack.c.l.s8.bf16 %v618_v0  ;;  %v1429_v14 = vunpack.c.l.s8.bf16 %v606_v60  ;;  %v1445_v21 = vunpack.c.l.s8.bf16 %v614_v63  ;;  %v1438_v18 = vunpack.c.h.s8.bf16 %v610_v62 }
 0x2b4   : > { %v7238_v28 = vadd.f32 %v5588_v17, %v3280_v25  ;;  %5869 = vmatpush3.bf16.msra.mxu0 %v1397_v12  ;;  %v1454_v25 = vunpack.c.h.s8.bf16 %v618_v0 }
 0x2b5   : > { %5891 = vmatpush3.bf16.msra.mxu1 %v1413_v19  ;;  %5870 = vmatprep.subr.bf16.mxu0 %v1406_v16 }
 0x2b6   : > { %5892 = vmatprep.subr.bf16.mxu1 %v1422_v23 }
 0x2b8   : > { %5871 = vmatpush3.bf16.msra.mxu0 %v1398_v22  ;;  %v623_v22 = vld [vmem:[%s6568_s8 + $0xb20] sm:$0xff] }
 0x2b9   : > { %5893 = vmatpush3.bf16.msra.mxu1 %v1414_v29  ;;  %5900 = vmatprep.subr.bf16.mxu0 %v1431_v30  ;;  %v631_v29 = vld [vmem:[%s6568_s8 + $0xb60] sm:$0xff]  ;;  %v1463_v32 = vunpack.c.l.s8.bf16 %v623_v22 }
 0x2ba   : > { %5922 = vmatprep.subr.bf16.mxu1 %v1447_v31  ;;  %v1446_v31 = vunpack.c.h.s8.bf16 %v614_v63  ;;  %v622_v63 = vld [vmem:[%s6568_s8 + $0xb18] sm:$0xff] }
 0x2bb   : > { %3838 = vmatmul.mubr.bf16.vlgmr.msra.gmra.mrb[80].mxu0 %v4921_v26  ;;  %v619_v26 = vld [vmem:[%s6568_s8 + $0xb00] sm:$0xff] }
 0x2bc   : > { %3878 = vmatmul.mubr.bf16.vlgmr.msra.gmra.mrb[80].mxu1 %v4923_v33  ;;  %5901 = vmatpush3.bf16.msra.mxu0 %v1423_v34  ;;  %v1479_v33 = vunpack.c.l.s8.bf16 %v631_v29  ;;  %v627_v34 = vld [vmem:[%s6568_s8 + $0xb40] sm:$0xff]  ;;  %v1455_v36 = vunpack.c.l.s8.bf16 %v619_v26 }
 0x2bd   : > { %5923 = vmatpush3.bf16.msra.mxu1 %v1439_v35  ;;  %5902 = vmatprep.subr.bf16.mxu0 %v1432_v1  ;;  %v4927_v35 = vcombine.low %v7250_v9, %v7250_v9  ;;  %v7280_v1 = vld [vmem:[%s6563_s28 + $0x160] sm:$0x77]  ;;  %v1471_v37 = vunpack.c.l.s8.bf16 %v627_v34  ;;  %v1472_v41 = vunpack.c.h.s8.bf16 %v627_v34 }
 0x2be   : > { %5924 = vmatprep.subr.bf16.mxu1 %v1448_v2  ;;  %3917 = vmatprep.mubr.bf16.mxu0 %v4926_v4  ;;  %v7283_v2 = vld [vmem:[%s6563_s28 + $0x168] sm:$0x77]  ;;  %v1464_v4 = vunpack.c.h.s8.bf16 %v623_v22 }
 0x2bf   : > { %3957 = vmatprep.mubr.bf16.mxu1 %v4928_v5  ;;  %v1480_v5 = vunpack.c.h.s8.bf16 %v631_v29  ;;  %v4932_v9 = vcombine.high %v7283_v2, %v7283_v2 }
 0x2c0   : > { %5903 = vmatpush3.bf16.msra.mxu0 %v1424_v38  ;;  %v624_v38 = vld [vmem:[%s6568_s8 + $0xb28] sm:$0xff] }
 0x2c1   : > { %5925 = vmatpush3.bf16.msra.mxu1 %v1440_v39  ;;  %5904 = vmatprep.subr.bf16.mxu0 %v1433_v40  ;;  %v632_v39 = vld [vmem:[%s6568_s8 + $0xb68] sm:$0xff]  ;;  %v1456_v40 = vunpack.c.h.s8.bf16 %v619_v26  ;;  %v1466_v48 = vunpack.c.h.s8.bf16 %v624_v38  ;;  %v1462_v26 = vunpack.c.h.s8.bf16 %v622_v63 }
 0x2c2   : > { %5926 = vmatprep.subr.bf16.mxu1 %v1449_v42  ;;  %v1465_v42 = vunpack.c.l.s8.bf16 %v624_v38  ;;  %v1482_v49 = vunpack.c.h.s8.bf16 %v632_v39 }
 0x2c4   : > { %5905 = vmatpush3.bf16.msra.mxu0 %v1425_v44  ;;  %v1481_v44 = vunpack.c.l.s8.bf16 %v632_v39 }
 0x2c5   : > { %5927 = vmatpush3.bf16.msra.mxu1 %v1441_v45  ;;  %5906 = vmatprep.subr.bf16.mxu0 %v1434_v46  ;;  %v628_v45 = vld [vmem:[%s6568_s8 + $0xb48] sm:$0xff]  ;;  %v1457_v46 = vunpack.c.l.s8.bf16 %v620_v43 }
 0x2c6   : > { %5928 = vmatprep.subr.bf16.mxu1 %v1450_v47  ;;  %v1473_v47 = vunpack.c.l.s8.bf16 %v628_v45  ;;  %v1474_v53 = vunpack.c.h.s8.bf16 %v628_v45  ;;  %v636_v45 = vld [vmem:[%s6568_s8 + $0xb88] sm:$0xff] }
 0x2c8   : > { %5907 = vmatpush3.bf16.msra.mxu0 %v1426_v50  ;;  %v625_v50 = vld [vmem:[%s6568_s8 + $0xb30] sm:$0xff] }
 0x2c9   : > { %5929 = vmatpush3.bf16.msra.mxu1 %v1442_v51  ;;  %5908 = vmatprep.subr.bf16.mxu0 %v1435_v52  ;;  %v633_v51 = vld [vmem:[%s6568_s8 + $0xb70] sm:$0xff]  ;;  %v1458_v52 = vunpack.c.h.s8.bf16 %v620_v43  ;;  %v1468_v62 = vunpack.c.h.s8.bf16 %v625_v50 }
 0x2ca   : > { %5930 = vmatprep.subr.bf16.mxu1 %v1451_v54  ;;  %v1467_v54 = vunpack.c.l.s8.bf16 %v625_v50  ;;  %v1484_v0 = vunpack.c.h.s8.bf16 %v633_v51 }
 0x2cc   : > { %5909 = vmatpush3.bf16.msra.mxu0 %v1427_v57  ;;  %v1483_v57 = vunpack.c.l.s8.bf16 %v633_v51 }
 0x2cd   : > { %5931 = vmatpush3.bf16.msra.mxu1 %v1443_v58  ;;  %5910 = vmatprep.subr.bf16.mxu0 %v1436_v59  ;;  %v629_v58 = vld [vmem:[%s6568_s8 + $0xb50] sm:$0xff]  ;;  %v1459_v59 = vunpack.c.l.s8.bf16 %v621_v56 }
 0x2ce   : > { %5932 = vmatprep.subr.bf16.mxu1 %v1452_v61  ;;  %v5608_v13 = vpop.f32.mrb[56].mxu0  ;;  %v1475_v61 = vunpack.c.l.s8.bf16 %v629_v58  ;;  %v1476_v60 = vunpack.c.h.s8.bf16 %v629_v58  ;;  %v637_v58 = vld [vmem:[%s6568_s8 + $0xb90] sm:$0xff] }
 0x2cf   : > { %v5630_v6 = vpop.f32.mrb[56].mxu1  ;;  %v5609_v15 = vpop.f32.mrb[57].mxu0 }
 0x2d0   : > { %v5631_v10 = vpop.f32.mrb[57].mxu1  ;;  %v5610_v17 = vadd.f32 %v5609_v15, %v5608_v13  ;;  %v5611_v12 = vpop.f32.mrb[58].mxu0  ;;  %5911 = vmatpush3.bf16.msra.mxu0 %v1428_v3  ;;  %v626_v3 = vld [vmem:[%s6568_s8 + $0xb38] sm:$0xff] }
 0x2d1   : > { %v5632_v19 = vadd.f32 %v5631_v10, %v5630_v6  ;;  %5933 = vmatpush3.bf16.msra.mxu1 %v1444_v55  ;;  %v5633_v16 = vpop.f32.mrb[58].mxu1  ;;  %v5612_v23 = vpop.f32.mrb[59].mxu0  ;;  %5912 = vmatprep.subr.bf16.mxu0 %v1437_v7  ;;  %v634_v55 = vld [vmem:[%s6568_s8 + $0xb78] sm:$0xff]  ;;  %v1460_v7 = vunpack.c.h.s8.bf16 %v621_v56 }
 0x2d2   : > { %5934 = vmatprep.subr.bf16.mxu1 %v1453_v11  ;;  %v5634_v20 = vpop.f32.mrb[59].mxu1  ;;  %v3360_v27 = vadd.f32 %v5610_v17, %v7238_v28  ;;  %v4925_v28 = vcombine.low %v7247_v8, %v7247_v8  ;;  %v4930_v8 = vcombine.high %v7280_v1, %v7280_v1  ;;  %v1469_v11 = vunpack.c.l.s8.bf16 %v626_v3  ;;  %v630_v6 = vld [vmem:[%s6568_s8 + $0xb58] sm:$0xff] }
 0x2d3   : > { %v1485_v13 = vunpack.c.l.s8.bf16 %v634_v55  ;;  %v1461_v16 = vunpack.c.l.s8.bf16 %v622_v63  ;;  %v1477_v23 = vunpack.c.l.s8.bf16 %v630_v6  ;;  %v1470_v20 = vunpack.c.h.s8.bf16 %v626_v3 }
 0x2d4   : > { %v7271_v30 = vadd.f32 %v5632_v19, %v3360_v27  ;;  %5913 = vmatpush3.bf16.msra.mxu0 %v1429_v14  ;;  %v1486_v27 = vunpack.c.h.s8.bf16 %v634_v55 }
 0x2d5   : > { %5935 = vmatpush3.bf16.msra.mxu1 %v1445_v21  ;;  %5914 = vmatprep.subr.bf16.mxu0 %v1438_v18 }
 0x2d6   : > { %5936 = vmatprep.subr.bf16.mxu1 %v1454_v25 }
 0x2d8   : > { %5915 = vmatpush3.bf16.msra.mxu0 %v1430_v24  ;;  %v639_v24 = vld [vmem:[%s6568_s8 + $0xba0] sm:$0xff] }
 0x2d9   : > { %5937 = vmatpush3.bf16.msra.mxu1 %v1446_v31  ;;  %5944 = vmatprep.subr.bf16.mxu0 %v1463_v32  ;;  %v647_v31 = vld [vmem:[%s6568_s8 + $0xbe0] sm:$0xff]  ;;  %v1495_v34 = vunpack.c.l.s8.bf16 %v639_v24 }
 0x2da   : > { %5966 = vmatprep.subr.bf16.mxu1 %v1479_v33  ;;  %v1478_v33 = vunpack.c.h.s8.bf16 %v630_v6  ;;  %v638_v6 = vld [vmem:[%s6568_s8 + $0xb98] sm:$0xff] }
 0x2db   : > { %3918 = vmatmul.mubr.bf16.vlgmr.msra.gmra.mrb[84].mxu0 %v4925_v28  ;;  %v635_v28 = vld [vmem:[%s6568_s8 + $0xb80] sm:$0xff] }
 0x2dc   : > { %3958 = vmatmul.mubr.bf16.vlgmr.msra.gmra.mrb[84].mxu1 %v4927_v35  ;;  %5945 = vmatpush3.bf16.msra.mxu0 %v1455_v36  ;;  %v1511_v35 = vunpack.c.l.s8.bf16 %v647_v31  ;;  %v643_v36 = vld [vmem:[%s6568_s8 + $0xbc0] sm:$0xff]  ;;  %v1487_v38 = vunpack.c.l.s8.bf16 %v635_v28 }
 0x2dd   : > { %5967 = vmatpush3.bf16.msra.mxu1 %v1471_v37  ;;  %5946 = vmatprep.subr.bf16.mxu0 %v1464_v4  ;;  %v4931_v37 = vcombine.low %v7283_v2, %v7283_v2  ;;  %v7313_v4 = vld [vmem:[%s6563_s28 + $0x170] sm:$0x77]  ;;  %v1503_v39 = vunpack.c.l.s8.bf16 %v643_v36  ;;  %v1504_v43 = vunpack.c.h.s8.bf16 %v643_v36 }
 0x2de   : > { %5968 = vmatprep.subr.bf16.mxu1 %v1480_v5  ;;  %3997 = vmatprep.mubr.bf16.mxu0 %v4930_v8  ;;  %v7316_v5 = vld [vmem:[%s6563_s28 + $0x178] sm:$0x77]  ;;  %v1496_v8 = vunpack.c.h.s8.bf16 %v639_v24 }
 0x2df   : > { %4037 = vmatprep.mubr.bf16.mxu1 %v4932_v9  ;;  %v1512_v9 = vunpack.c.h.s8.bf16 %v647_v31  ;;  %v4936_v2 = vcombine.high %v7316_v5, %v7316_v5 }
 0x2e0   : > { %5947 = vmatpush3.bf16.msra.mxu0 %v1456_v40  ;;  %v640_v40 = vld [vmem:[%s6568_s8 + $0xba8] sm:$0xff] }
 0x2e1   : > { %5969 = vmatpush3.bf16.msra.mxu1 %v1472_v41  ;;  %5948 = vmatprep.subr.bf16.mxu0 %v1465_v42  ;;  %v648_v41 = vld [vmem:[%s6568_s8 + $0xbe8] sm:$0xff]  ;;  %v1488_v42 = vunpack.c.h.s8.bf16 %v635_v28  ;;  %v1498_v50 = vunpack.c.h.s8.bf16 %v640_v40  ;;  %v1494_v28 = vunpack.c.h.s8.bf16 %v638_v6 }
 0x2e2   : > { %5970 = vmatprep.subr.bf16.mxu1 %v1481_v44  ;;  %v1497_v44 = vunpack.c.l.s8.bf16 %v640_v40  ;;  %v1514_v51 = vunpack.c.h.s8.bf16 %v648_v41 }
 0x2e4   : > { %5949 = vmatpush3.bf16.msra.mxu0 %v1457_v46  ;;  %v1513_v46 = vunpack.c.l.s8.bf16 %v648_v41 }
 0x2e5   : > { %5971 = vmatpush3.bf16.msra.mxu1 %v1473_v47  ;;  %5950 = vmatprep.subr.bf16.mxu0 %v1466_v48  ;;  %v644_v47 = vld [vmem:[%s6568_s8 + $0xbc8] sm:$0xff]  ;;  %v1489_v48 = vunpack.c.l.s8.bf16 %v636_v45 }
 0x2e6   : > { %5972 = vmatprep.subr.bf16.mxu1 %v1482_v49  ;;  %v1505_v49 = vunpack.c.l.s8.bf16 %v644_v47  ;;  %v1506_v56 = vunpack.c.h.s8.bf16 %v644_v47  ;;  %v652_v47 = vld [vmem:[%s6568_s8 + $0xc08] sm:$0xff] }
 0x2e8   : > { %5951 = vmatpush3.bf16.msra.mxu0 %v1458_v52  ;;  %v641_v52 = vld [vmem:[%s6568_s8 + $0xbb0] sm:$0xff] }
 0x2e9   : > { %5973 = vmatpush3.bf16.msra.mxu1 %v1474_v53  ;;  %5952 = vmatprep.subr.bf16.mxu0 %v1467_v54  ;;  %v649_v53 = vld [vmem:[%s6568_s8 + $0xbf0] sm:$0xff]  ;;  %v1490_v54 = vunpack.c.h.s8.bf16 %v636_v45  ;;  %v1500_v3 = vunpack.c.h.s8.bf16 %v641_v52 }
 0x2ea   : > { %5974 = vmatprep.subr.bf16.mxu1 %v1483_v57  ;;  %v1499_v57 = vunpack.c.l.s8.bf16 %v641_v52  ;;  %v1516_v55 = vunpack.c.h.s8.bf16 %v649_v53 }
 0x2ec   : > { %5953 = vmatpush3.bf16.msra.mxu0 %v1459_v59  ;;  %v1515_v59 = vunpack.c.l.s8.bf16 %v649_v53 }
 0x2ed   : > { %5975 = vmatpush3.bf16.msra.mxu1 %v1475_v61  ;;  %5954 = vmatprep.subr.bf16.mxu0 %v1468_v62  ;;  %v645_v61 = vld [vmem:[%s6568_s8 + $0xbd0] sm:$0xff]  ;;  %v1491_v62 = vunpack.c.l.s8.bf16 %v637_v58 }
 0x2ee   : > { %5976 = vmatprep.subr.bf16.mxu1 %v1484_v0  ;;  %v5652_v15 = vpop.f32.mrb[60].mxu0  ;;  %v1507_v0 = vunpack.c.l.s8.bf16 %v645_v61  ;;  %v1508_v63 = vunpack.c.h.s8.bf16 %v645_v61  ;;  %v653_v61 = vld [vmem:[%s6568_s8 + $0xc10] sm:$0xff] }
 0x2ef   : > { %v5674_v10 = vpop.f32.mrb[60].mxu1  ;;  %v5653_v17 = vpop.f32.mrb[61].mxu0 }
 0x2f0   : > { %v5675_v12 = vpop.f32.mrb[61].mxu1  ;;  %v5654_v19 = vadd.f32 %v5653_v17, %v5652_v15  ;;  %v5655_v14 = vpop.f32.mrb[62].mxu0  ;;  %5955 = vmatpush3.bf16.msra.mxu0 %v1460_v7  ;;  %v642_v7 = vld [vmem:[%s6568_s8 + $0xbb8] sm:$0xff] }
 0x2f1   : > { %v5676_v21 = vadd.f32 %v5675_v12, %v5674_v10  ;;  %5977 = vmatpush3.bf16.msra.mxu1 %v1476_v60  ;;  %v5677_v18 = vpop.f32.mrb[62].mxu1  ;;  %v5656_v25 = vpop.f32.mrb[63].mxu0  ;;  %5956 = vmatprep.subr.bf16.mxu0 %v1469_v11  ;;  %v650_v60 = vld [vmem:[%s6568_s8 + $0xbf8] sm:$0xff]  ;;  %v1492_v11 = vunpack.c.h.s8.bf16 %v637_v58 }
 0x2f2   : > { %5978 = vmatprep.subr.bf16.mxu1 %v1485_v13  ;;  %v5678_v22 = vpop.f32.mrb[63].mxu1  ;;  %v3440_v29 = vadd.f32 %v5654_v19, %v7271_v30  ;;  %v4929_v30 = vcombine.low %v7280_v1, %v7280_v1  ;;  %v4934_v1 = vcombine.high %v7313_v4, %v7313_v4  ;;  %v1501_v13 = vunpack.c.l.s8.bf16 %v642_v7  ;;  %v646_v10 = vld [vmem:[%s6568_s8 + $0xbd8] sm:$0xff] }
 0x2f3   : > { %v1517_v15 = vunpack.c.l.s8.bf16 %v650_v60  ;;  %v1493_v18 = vunpack.c.l.s8.bf16 %v638_v6  ;;  %v1509_v25 = vunpack.c.l.s8.bf16 %v646_v10  ;;  %v1502_v22 = vunpack.c.h.s8.bf16 %v642_v7 }
 0x2f4   : > { %v7304_v32 = vadd.f32 %v5676_v21, %v3440_v29  ;;  %5957 = vmatpush3.bf16.msra.mxu0 %v1461_v16  ;;  %v1518_v29 = vunpack.c.h.s8.bf16 %v650_v60 }
 0x2f5   : > { %5979 = vmatpush3.bf16.msra.mxu1 %v1477_v23  ;;  %5958 = vmatprep.subr.bf16.mxu0 %v1470_v20 }
 0x2f6   : > { %5980 = vmatprep.subr.bf16.mxu1 %v1486_v27 }
 0x2f8   : > { %5959 = vmatpush3.bf16.msra.mxu0 %v1462_v26  ;;  %v655_v26 = vld [vmem:[%s6568_s8 + $0xc20] sm:$0xff] }
 0x2f9   : > { %5981 = vmatpush3.bf16.msra.mxu1 %v1478_v33  ;;  %5988 = vmatprep.subr.bf16.mxu0 %v1495_v34  ;;  %v663_v33 = vld [vmem:[%s6568_s8 + $0xc60] sm:$0xff]  ;;  %v1527_v36 = vunpack.c.l.s8.bf16 %v655_v26 }
 0x2fa   : > { %6010 = vmatprep.subr.bf16.mxu1 %v1511_v35  ;;  %v1510_v35 = vunpack.c.h.s8.bf16 %v646_v10  ;;  %v654_v10 = vld [vmem:[%s6568_s8 + $0xc18] sm:$0xff] }
 0x2fb   : > { %3998 = vmatmul.mubr.bf16.vlgmr.msra.gmra.mrb[88].mxu0 %v4929_v30  ;;  %v651_v30 = vld [vmem:[%s6568_s8 + $0xc00] sm:$0xff] }
 0x2fc   : > { %4038 = vmatmul.mubr.bf16.vlgmr.msra.gmra.mrb[88].mxu1 %v4931_v37  ;;  %5989 = vmatpush3.bf16.msra.mxu0 %v1487_v38  ;;  %v1543_v37 = vunpack.c.l.s8.bf16 %v663_v33  ;;  %v659_v38 = vld [vmem:[%s6568_s8 + $0xc40] sm:$0xff]  ;;  %v1519_v40 = vunpack.c.l.s8.bf16 %v651_v30 }
 0x2fd   : > { %6011 = vmatpush3.bf16.msra.mxu1 %v1503_v39  ;;  %5990 = vmatprep.subr.bf16.mxu0 %v1496_v8  ;;  %v4935_v39 = vcombine.low %v7316_v5, %v7316_v5  ;;  %v7346_v8 = vld [vmem:[%s6563_s28 + $0x180] sm:$0x77]  ;;  %v1535_v41 = vunpack.c.l.s8.bf16 %v659_v38  ;;  %v1536_v45 = vunpack.c.h.s8.bf16 %v659_v38 }
 0x2fe   : > { %6012 = vmatprep.subr.bf16.mxu1 %v1512_v9  ;;  %4077 = vmatprep.mubr.bf16.mxu0 %v4934_v1  ;;  %v7349_v9 = vld [vmem:[%s6563_s28 + $0x188] sm:$0x77]  ;;  %v1528_v1 = vunpack.c.h.s8.bf16 %v655_v26 }
 0x2ff   : > { %4117 = vmatprep.mubr.bf16.mxu1 %v4936_v2  ;;  %v1544_v2 = vunpack.c.h.s8.bf16 %v663_v33  ;;  %v4940_v5 = vcombine.high %v7349_v9, %v7349_v9 }
 0x300   : > { %5991 = vmatpush3.bf16.msra.mxu0 %v1488_v42  ;;  %v656_v42 = vld [vmem:[%s6568_s8 + $0xc28] sm:$0xff] }
 0x301   : > { %6013 = vmatpush3.bf16.msra.mxu1 %v1504_v43  ;;  %5992 = vmatprep.subr.bf16.mxu0 %v1497_v44  ;;  %v664_v43 = vld [vmem:[%s6568_s8 + $0xc68] sm:$0xff]  ;;  %v1520_v44 = vunpack.c.h.s8.bf16 %v651_v30  ;;  %v1530_v52 = vunpack.c.h.s8.bf16 %v656_v42  ;;  %v1526_v30 = vunpack.c.h.s8.bf16 %v654_v10 }
 0x302   : > { %6014 = vmatprep.subr.bf16.mxu1 %v1513_v46  ;;  %v1529_v46 = vunpack.c.l.s8.bf16 %v656_v42  ;;  %v1546_v53 = vunpack.c.h.s8.bf16 %v664_v43 }
 0x304   : > { %5993 = vmatpush3.bf16.msra.mxu0 %v1489_v48  ;;  %v1545_v48 = vunpack.c.l.s8.bf16 %v664_v43 }
 0x305   : > { %6015 = vmatpush3.bf16.msra.mxu1 %v1505_v49  ;;  %5994 = vmatprep.subr.bf16.mxu0 %v1498_v50  ;;  %v660_v49 = vld [vmem:[%s6568_s8 + $0xc48] sm:$0xff]  ;;  %v1521_v50 = vunpack.c.l.s8.bf16 %v652_v47 }
 0x306   : > { %6016 = vmatprep.subr.bf16.mxu1 %v1514_v51  ;;  %v1537_v51 = vunpack.c.l.s8.bf16 %v660_v49  ;;  %v1538_v58 = vunpack.c.h.s8.bf16 %v660_v49  ;;  %v668_v49 = vld [vmem:[%s6568_s8 + $0xc88] sm:$0xff] }
 0x308   : > { %5995 = vmatpush3.bf16.msra.mxu0 %v1490_v54  ;;  %v657_v54 = vld [vmem:[%s6568_s8 + $0xc30] sm:$0xff] }
 0x309   : > { %6017 = vmatpush3.bf16.msra.mxu1 %v1506_v56  ;;  %5996 = vmatprep.subr.bf16.mxu0 %v1499_v57  ;;  %v665_v56 = vld [vmem:[%s6568_s8 + $0xc70] sm:$0xff]  ;;  %v1522_v57 = vunpack.c.h.s8.bf16 %v652_v47  ;;  %v1532_v7 = vunpack.c.h.s8.bf16 %v657_v54 }
 0x30a   : > { %6018 = vmatprep.subr.bf16.mxu1 %v1515_v59  ;;  %v1531_v59 = vunpack.c.l.s8.bf16 %v657_v54  ;;  %v1548_v60 = vunpack.c.h.s8.bf16 %v665_v56 }
 0x30c   : > { %5997 = vmatpush3.bf16.msra.mxu0 %v1491_v62  ;;  %v1547_v62 = vunpack.c.l.s8.bf16 %v665_v56 }
 0x30d   : > { %6019 = vmatpush3.bf16.msra.mxu1 %v1507_v0  ;;  %5998 = vmatprep.subr.bf16.mxu0 %v1500_v3  ;;  %v661_v0 = vld [vmem:[%s6568_s8 + $0xc50] sm:$0xff]  ;;  %v1523_v3 = vunpack.c.l.s8.bf16 %v653_v61 }
 0x30e   : > { %6020 = vmatprep.subr.bf16.mxu1 %v1516_v55  ;;  %v5696_v17 = vpop.f32.mrb[64].mxu0  ;;  %v1539_v55 = vunpack.c.l.s8.bf16 %v661_v0  ;;  %v1540_v6 = vunpack.c.h.s8.bf16 %v661_v0  ;;  %v669_v0 = vld [vmem:[%s6568_s8 + $0xc90] sm:$0xff] }
 0x30f   : > { %v5718_v12 = vpop.f32.mrb[64].mxu1  ;;  %v5697_v19 = vpop.f32.mrb[65].mxu0 }
 0x310   : > { %v5719_v14 = vpop.f32.mrb[65].mxu1  ;;  %v5698_v21 = vadd.f32 %v5697_v19, %v5696_v17  ;;  %v5699_v16 = vpop.f32.mrb[66].mxu0  ;;  %5999 = vmatpush3.bf16.msra.mxu0 %v1492_v11  ;;  %v658_v11 = vld [vmem:[%s6568_s8 + $0xc38] sm:$0xff] }
 0x311   : > { %v5720_v23 = vadd.f32 %v5719_v14, %v5718_v12  ;;  %6021 = vmatpush3.bf16.msra.mxu1 %v1508_v63  ;;  %v5721_v20 = vpop.f32.mrb[66].mxu1  ;;  %v5700_v27 = vpop.f32.mrb[67].mxu0  ;;  %6000 = vmatprep.subr.bf16.mxu0 %v1501_v13  ;;  %v666_v63 = vld [vmem:[%s6568_s8 + $0xc78] sm:$0xff]  ;;  %v1524_v13 = vunpack.c.h.s8.bf16 %v653_v61 }
 0x312   : > { %6022 = vmatprep.subr.bf16.mxu1 %v1517_v15  ;;  %v5722_v24 = vpop.f32.mrb[67].mxu1  ;;  %v3520_v31 = vadd.f32 %v5698_v21, %v7304_v32  ;;  %v4933_v32 = vcombine.low %v7313_v4, %v7313_v4  ;;  %v4938_v4 = vcombine.high %v7346_v8, %v7346_v8  ;;  %v1533_v15 = vunpack.c.l.s8.bf16 %v658_v11  ;;  %v662_v12 = vld [vmem:[%s6568_s8 + $0xc58] sm:$0xff] }
 0x313   : > { %v1549_v17 = vunpack.c.l.s8.bf16 %v666_v63  ;;  %v1525_v20 = vunpack.c.l.s8.bf16 %v654_v10  ;;  %v1541_v27 = vunpack.c.l.s8.bf16 %v662_v12  ;;  %v1534_v24 = vunpack.c.h.s8.bf16 %v658_v11 }
 0x314   : > { %v7337_v34 = vadd.f32 %v5720_v23, %v3520_v31  ;;  %6001 = vmatpush3.bf16.msra.mxu0 %v1493_v18  ;;  %v1550_v31 = vunpack.c.h.s8.bf16 %v666_v63 }
 0x315   : > { %6023 = vmatpush3.bf16.msra.mxu1 %v1509_v25  ;;  %6002 = vmatprep.subr.bf16.mxu0 %v1502_v22 }
 0x316   : > { %6024 = vmatprep.subr.bf16.mxu1 %v1518_v29 }
 0x318   : > { %6003 = vmatpush3.bf16.msra.mxu0 %v1494_v28  ;;  %v671_v28 = vld [vmem:[%s6568_s8 + $0xca0] sm:$0xff] }
 0x319   : > { %6025 = vmatpush3.bf16.msra.mxu1 %v1510_v35  ;;  %6032 = vmatprep.subr.bf16.mxu0 %v1527_v36  ;;  %v679_v35 = vld [vmem:[%s6568_s8 + $0xce0] sm:$0xff]  ;;  %v1559_v38 = vunpack.c.l.s8.bf16 %v671_v28 }
 0x31a   : > { %6054 = vmatprep.subr.bf16.mxu1 %v1543_v37  ;;  %v1542_v37 = vunpack.c.h.s8.bf16 %v662_v12  ;;  %v670_v12 = vld [vmem:[%s6568_s8 + $0xc98] sm:$0xff] }
 0x31b   : > { %4078 = vmatmul.mubr.bf16.vlgmr.msra.gmra.mrb[92].mxu0 %v4933_v32  ;;  %v667_v32 = vld [vmem:[%s6568_s8 + $0xc80] sm:$0xff] }
 0x31c   : > { %4118 = vmatmul.mubr.bf16.vlgmr.msra.gmra.mrb[92].mxu1 %v4935_v39  ;;  %6033 = vmatpush3.bf16.msra.mxu0 %v1519_v40  ;;  %v1575_v39 = vunpack.c.l.s8.bf16 %v679_v35  ;;  %v675_v40 = vld [vmem:[%s6568_s8 + $0xcc0] sm:$0xff]  ;;  %v1551_v42 = vunpack.c.l.s8.bf16 %v667_v32 }
 0x31d   : > { %6055 = vmatpush3.bf16.msra.mxu1 %v1535_v41  ;;  %6034 = vmatprep.subr.bf16.mxu0 %v1528_v1  ;;  %v4939_v41 = vcombine.low %v7349_v9, %v7349_v9  ;;  %v7379_v1 = vld [vmem:[%s6563_s28 + $0x190] sm:$0x77]  ;;  %v1567_v43 = vunpack.c.l.s8.bf16 %v675_v40  ;;  %v1568_v47 = vunpack.c.h.s8.bf16 %v675_v40 }
 0x31e   : > { %6056 = vmatprep.subr.bf16.mxu1 %v1544_v2  ;;  %4157 = vmatprep.mubr.bf16.mxu0 %v4938_v4  ;;  %v7382_v2 = vld [vmem:[%s6563_s28 + $0x198] sm:$0x77]  ;;  %v1560_v4 = vunpack.c.h.s8.bf16 %v671_v28 }
 0x31f   : > { %4197 = vmatprep.mubr.bf16.mxu1 %v4940_v5  ;;  %v1576_v5 = vunpack.c.h.s8.bf16 %v679_v35  ;;  %v4944_v9 = vcombine.high %v7382_v2, %v7382_v2 }
 0x320   : > { %6035 = vmatpush3.bf16.msra.mxu0 %v1520_v44  ;;  %v672_v44 = vld [vmem:[%s6568_s8 + $0xca8] sm:$0xff] }
 0x321   : > { %6057 = vmatpush3.bf16.msra.mxu1 %v1536_v45  ;;  %6036 = vmatprep.subr.bf16.mxu0 %v1529_v46  ;;  %v680_v45 = vld [vmem:[%s6568_s8 + $0xce8] sm:$0xff]  ;;  %v1552_v46 = vunpack.c.h.s8.bf16 %v667_v32  ;;  %v1562_v54 = vunpack.c.h.s8.bf16 %v672_v44  ;;  %v1558_v32 = vunpack.c.h.s8.bf16 %v670_v12 }
 0x322   : > { %6058 = vmatprep.subr.bf16.mxu1 %v1545_v48  ;;  %v1561_v48 = vunpack.c.l.s8.bf16 %v672_v44  ;;  %v1578_v56 = vunpack.c.h.s8.bf16 %v680_v45 }
 0x324   : > { %6037 = vmatpush3.bf16.msra.mxu0 %v1521_v50  ;;  %v1577_v50 = vunpack.c.l.s8.bf16 %v680_v45 }
 0x325   : > { %6059 = vmatpush3.bf16.msra.mxu1 %v1537_v51  ;;  %6038 = vmatprep.subr.bf16.mxu0 %v1530_v52  ;;  %v676_v51 = vld [vmem:[%s6568_s8 + $0xcc8] sm:$0xff]  ;;  %v1553_v52 = vunpack.c.l.s8.bf16 %v668_v49 }
 0x326   : > { %6060 = vmatprep.subr.bf16.mxu1 %v1546_v53  ;;  %v1569_v53 = vunpack.c.l.s8.bf16 %v676_v51  ;;  %v1570_v61 = vunpack.c.h.s8.bf16 %v676_v51  ;;  %v684_v51 = vld [vmem:[%s6568_s8 + $0xd08] sm:$0xff] }
 0x328   : > { %6039 = vmatpush3.bf16.msra.mxu0 %v1522_v57  ;;  %v673_v57 = vld [vmem:[%s6568_s8 + $0xcb0] sm:$0xff] }
 0x329   : > { %6061 = vmatpush3.bf16.msra.mxu1 %v1538_v58  ;;  %6040 = vmatprep.subr.bf16.mxu0 %v1531_v59  ;;  %v681_v58 = vld [vmem:[%s6568_s8 + $0xcf0] sm:$0xff]  ;;  %v1554_v59 = vunpack.c.h.s8.bf16 %v668_v49  ;;  %v1564_v11 = vunpack.c.h.s8.bf16 %v673_v57 }
 0x32a   : > { %6062 = vmatprep.subr.bf16.mxu1 %v1547_v62  ;;  %v1563_v62 = vunpack.c.l.s8.bf16 %v673_v57  ;;  %v1580_v63 = vunpack.c.h.s8.bf16 %v681_v58 }
 0x32c   : > { %6041 = vmatpush3.bf16.msra.mxu0 %v1523_v3  ;;  %v1579_v3 = vunpack.c.l.s8.bf16 %v681_v58 }
 0x32d   : > { %6063 = vmatpush3.bf16.msra.mxu1 %v1539_v55  ;;  %6042 = vmatprep.subr.bf16.mxu0 %v1532_v7  ;;  %v677_v55 = vld [vmem:[%s6568_s8 + $0xcd0] sm:$0xff]  ;;  %v1555_v7 = vunpack.c.l.s8.bf16 %v669_v0 }
 0x32e   : > { %6064 = vmatprep.subr.bf16.mxu1 %v1548_v60  ;;  %v5740_v19 = vpop.f32.mrb[68].mxu0  ;;  %v1571_v60 = vunpack.c.l.s8.bf16 %v677_v55  ;;  %v1572_v10 = vunpack.c.h.s8.bf16 %v677_v55  ;;  %v685_v55 = vld [vmem:[%s6568_s8 + $0xd10] sm:$0xff] }
 0x32f   : > { %v5762_v14 = vpop.f32.mrb[68].mxu1  ;;  %v5741_v21 = vpop.f32.mrb[69].mxu0 }
 0x330   : > { %v5763_v16 = vpop.f32.mrb[69].mxu1  ;;  %v5742_v23 = vadd.f32 %v5741_v21, %v5740_v19  ;;  %v5743_v18 = vpop.f32.mrb[70].mxu0  ;;  %6043 = vmatpush3.bf16.msra.mxu0 %v1524_v13  ;;  %v674_v13 = vld [vmem:[%s6568_s8 + $0xcb8] sm:$0xff] }
 0x331   : > { %v5764_v25 = vadd.f32 %v5763_v16, %v5762_v14  ;;  %6065 = vmatpush3.bf16.msra.mxu1 %v1540_v6  ;;  %v5765_v22 = vpop.f32.mrb[70].mxu1  ;;  %v5744_v29 = vpop.f32.mrb[71].mxu0  ;;  %6044 = vmatprep.subr.bf16.mxu0 %v1533_v15  ;;  %v682_v6 = vld [vmem:[%s6568_s8 + $0xcf8] sm:$0xff]  ;;  %v1556_v15 = vunpack.c.h.s8.bf16 %v669_v0 }
 0x332   : > { %6066 = vmatprep.subr.bf16.mxu1 %v1549_v17  ;;  %v5766_v26 = vpop.f32.mrb[71].mxu1  ;;  %v3600_v33 = vadd.f32 %v5742_v23, %v7337_v34  ;;  %v4937_v34 = vcombine.low %v7346_v8, %v7346_v8  ;;  %v4942_v8 = vcombine.high %v7379_v1, %v7379_v1  ;;  %v1565_v17 = vunpack.c.l.s8.bf16 %v674_v13  ;;  %v678_v14 = vld [vmem:[%s6568_s8 + $0xcd8] sm:$0xff] }
 0x333   : > { %v1581_v19 = vunpack.c.l.s8.bf16 %v682_v6  ;;  %v1557_v22 = vunpack.c.l.s8.bf16 %v670_v12  ;;  %v1573_v29 = vunpack.c.l.s8.bf16 %v678_v14  ;;  %v1566_v26 = vunpack.c.h.s8.bf16 %v674_v13 }
 0x334   : > { %v7370_v36 = vadd.f32 %v5764_v25, %v3600_v33  ;;  %6045 = vmatpush3.bf16.msra.mxu0 %v1525_v20  ;;  %v1582_v33 = vunpack.c.h.s8.bf16 %v682_v6 }
 0x335   : > { %6067 = vmatpush3.bf16.msra.mxu1 %v1541_v27  ;;  %6046 = vmatprep.subr.bf16.mxu0 %v1534_v24 }
 0x336   : > { %6068 = vmatprep.subr.bf16.mxu1 %v1550_v31 }
 0x338   : > { %6047 = vmatpush3.bf16.msra.mxu0 %v1526_v30  ;;  %v687_v30 = vld [vmem:[%s6568_s8 + $0xd20] sm:$0xff] }
 0x339   : > { %6069 = vmatpush3.bf16.msra.mxu1 %v1542_v37  ;;  %6076 = vmatprep.subr.bf16.mxu0 %v1559_v38  ;;  %v695_v37 = vld [vmem:[%s6568_s8 + $0xd60] sm:$0xff]  ;;  %v1591_v40 = vunpack.c.l.s8.bf16 %v687_v30 }
 0x33a   : > { %6098 = vmatprep.subr.bf16.mxu1 %v1575_v39  ;;  %v1574_v39 = vunpack.c.h.s8.bf16 %v678_v14  ;;  %v686_v14 = vld [vmem:[%s6568_s8 + $0xd18] sm:$0xff] }
 0x33b   : > { %4158 = vmatmul.mubr.bf16.vlgmr.msra.gmra.mrb[96].mxu0 %v4937_v34  ;;  %v683_v34 = vld [vmem:[%s6568_s8 + $0xd00] sm:$0xff] }
 0x33c   : > { %4198 = vmatmul.mubr.bf16.vlgmr.msra.gmra.mrb[96].mxu1 %v4939_v41  ;;  %6077 = vmatpush3.bf16.msra.mxu0 %v1551_v42  ;;  %v1607_v41 = vunpack.c.l.s8.bf16 %v695_v37  ;;  %v691_v42 = vld [vmem:[%s6568_s8 + $0xd40] sm:$0xff]  ;;  %v1583_v44 = vunpack.c.l.s8.bf16 %v683_v34 }
 0x33d   : > { %6099 = vmatpush3.bf16.msra.mxu1 %v1567_v43  ;;  %6078 = vmatprep.subr.bf16.mxu0 %v1560_v4  ;;  %v4943_v43 = vcombine.low %v7382_v2, %v7382_v2  ;;  %v7412_v4 = vld [vmem:[%s6563_s28 + $0x1a0] sm:$0x77]  ;;  %v1599_v45 = vunpack.c.l.s8.bf16 %v691_v42  ;;  %v1600_v49 = vunpack.c.h.s8.bf16 %v691_v42 }
 0x33e   : > { %6100 = vmatprep.subr.bf16.mxu1 %v1576_v5  ;;  %4237 = vmatprep.mubr.bf16.mxu0 %v4942_v8  ;;  %v7415_v5 = vld [vmem:[%s6563_s28 + $0x1a8] sm:$0x77]  ;;  %v1592_v8 = vunpack.c.h.s8.bf16 %v687_v30 }
 0x33f   : > { %4277 = vmatprep.mubr.bf16.mxu1 %v4944_v9  ;;  %v1608_v9 = vunpack.c.h.s8.bf16 %v695_v37  ;;  %v4948_v2 = vcombine.high %v7415_v5, %v7415_v5 }
 0x340   : > { %6079 = vmatpush3.bf16.msra.mxu0 %v1552_v46  ;;  %v688_v46 = vld [vmem:[%s6568_s8 + $0xd28] sm:$0xff] }
 0x341   : > { %6101 = vmatpush3.bf16.msra.mxu1 %v1568_v47  ;;  %6080 = vmatprep.subr.bf16.mxu0 %v1561_v48  ;;  %v696_v47 = vld [vmem:[%s6568_s8 + $0xd68] sm:$0xff]  ;;  %v1584_v48 = vunpack.c.h.s8.bf16 %v683_v34  ;;  %v1594_v57 = vunpack.c.h.s8.bf16 %v688_v46  ;;  %v1590_v34 = vunpack.c.h.s8.bf16 %v686_v14 }
 0x342   : > { %6102 = vmatprep.subr.bf16.mxu1 %v1577_v50  ;;  %v1593_v50 = vunpack.c.l.s8.bf16 %v688_v46  ;;  %v1610_v58 = vunpack.c.h.s8.bf16 %v696_v47 }
 0x344   : > { %6081 = vmatpush3.bf16.msra.mxu0 %v1553_v52  ;;  %v1609_v52 = vunpack.c.l.s8.bf16 %v696_v47 }
 0x345   : > { %6103 = vmatpush3.bf16.msra.mxu1 %v1569_v53  ;;  %6082 = vmatprep.subr.bf16.mxu0 %v1562_v54  ;;  %v692_v53 = vld [vmem:[%s6568_s8 + $0xd48] sm:$0xff]  ;;  %v1585_v54 = vunpack.c.l.s8.bf16 %v684_v51 }
 0x346   : > { %6104 = vmatprep.subr.bf16.mxu1 %v1578_v56  ;;  %v1601_v56 = vunpack.c.l.s8.bf16 %v692_v53  ;;  %v1602_v0 = vunpack.c.h.s8.bf16 %v692_v53  ;;  %v700_v53 = vld [vmem:[%s6568_s8 + $0xd88] sm:$0xff] }
 0x348   : > { %6083 = vmatpush3.bf16.msra.mxu0 %v1554_v59  ;;  %v689_v59 = vld [vmem:[%s6568_s8 + $0xd30] sm:$0xff] }
 0x349   : > { %6105 = vmatpush3.bf16.msra.mxu1 %v1570_v61  ;;  %6084 = vmatprep.subr.bf16.mxu0 %v1563_v62  ;;  %v697_v61 = vld [vmem:[%s6568_s8 + $0xd70] sm:$0xff]  ;;  %v1586_v62 = vunpack.c.h.s8.bf16 %v684_v51  ;;  %v1596_v13 = vunpack.c.h.s8.bf16 %v689_v59 }
 0x34a   : > { %6106 = vmatprep.subr.bf16.mxu1 %v1579_v3  ;;  %v1595_v3 = vunpack.c.l.s8.bf16 %v689_v59  ;;  %v1612_v6 = vunpack.c.h.s8.bf16 %v697_v61 }
 0x34c   : > { %6085 = vmatpush3.bf16.msra.mxu0 %v1555_v7  ;;  %v1611_v7 = vunpack.c.l.s8.bf16 %v697_v61 }
 0x34d   : > { %6107 = vmatpush3.bf16.msra.mxu1 %v1571_v60  ;;  %6086 = vmatprep.subr.bf16.mxu0 %v1564_v11  ;;  %v693_v60 = vld [vmem:[%s6568_s8 + $0xd50] sm:$0xff]  ;;  %v1587_v11 = vunpack.c.l.s8.bf16 %v685_v55 }
 0x34e   : > { %6108 = vmatprep.subr.bf16.mxu1 %v1580_v63  ;;  %v5784_v21 = vpop.f32.mrb[72].mxu0  ;;  %v1603_v63 = vunpack.c.l.s8.bf16 %v693_v60  ;;  %v1604_v12 = vunpack.c.h.s8.bf16 %v693_v60  ;;  %v701_v60 = vld [vmem:[%s6568_s8 + $0xd90] sm:$0xff] }
 0x34f   : > { %v5806_v16 = vpop.f32.mrb[72].mxu1  ;;  %v5785_v23 = vpop.f32.mrb[73].mxu0 }
 0x350   : > { %v5807_v18 = vpop.f32.mrb[73].mxu1  ;;  %v5786_v25 = vadd.f32 %v5785_v23, %v5784_v21  ;;  %v5787_v20 = vpop.f32.mrb[74].mxu0  ;;  %6087 = vmatpush3.bf16.msra.mxu0 %v1556_v15  ;;  %v690_v15 = vld [vmem:[%s6568_s8 + $0xd38] sm:$0xff] }
 0x351   : > { %v5808_v27 = vadd.f32 %v5807_v18, %v5806_v16  ;;  %6109 = vmatpush3.bf16.msra.mxu1 %v1572_v10  ;;  %v5809_v24 = vpop.f32.mrb[74].mxu1  ;;  %v5788_v31 = vpop.f32.mrb[75].mxu0  ;;  %6088 = vmatprep.subr.bf16.mxu0 %v1565_v17  ;;  %v698_v10 = vld [vmem:[%s6568_s8 + $0xd78] sm:$0xff]  ;;  %v1588_v17 = vunpack.c.h.s8.bf16 %v685_v55 }
 0x352   : > { %6110 = vmatprep.subr.bf16.mxu1 %v1581_v19  ;;  %v5810_v28 = vpop.f32.mrb[75].mxu1  ;;  %v3680_v35 = vadd.f32 %v5786_v25, %v7370_v36  ;;  %v4941_v36 = vcombine.low %v7379_v1, %v7379_v1  ;;  %v4946_v1 = vcombine.high %v7412_v4, %v7412_v4  ;;  %v1597_v19 = vunpack.c.l.s8.bf16 %v690_v15  ;;  %v694_v16 = vld [vmem:[%s6568_s8 + $0xd58] sm:$0xff] }
 0x353   : > { %v1613_v21 = vunpack.c.l.s8.bf16 %v698_v10  ;;  %v1589_v24 = vunpack.c.l.s8.bf16 %v686_v14  ;;  %v1605_v31 = vunpack.c.l.s8.bf16 %v694_v16  ;;  %v1598_v28 = vunpack.c.h.s8.bf16 %v690_v15 }
 0x354   : > { %v7403_v38 = vadd.f32 %v5808_v27, %v3680_v35  ;;  %6089 = vmatpush3.bf16.msra.mxu0 %v1557_v22  ;;  %v1614_v35 = vunpack.c.h.s8.bf16 %v698_v10 }
 0x355   : > { %6111 = vmatpush3.bf16.msra.mxu1 %v1573_v29  ;;  %6090 = vmatprep.subr.bf16.mxu0 %v1566_v26 }
 0x356   : > { %6112 = vmatprep.subr.bf16.mxu1 %v1582_v33 }
 0x358   : > { %6091 = vmatpush3.bf16.msra.mxu0 %v1558_v32  ;;  %v703_v32 = vld [vmem:[%s6568_s8 + $0xda0] sm:$0xff] }
 0x359   : > { %6113 = vmatpush3.bf16.msra.mxu1 %v1574_v39  ;;  %6120 = vmatprep.subr.bf16.mxu0 %v1591_v40  ;;  %v711_v39 = vld [vmem:[%s6568_s8 + $0xde0] sm:$0xff]  ;;  %v1623_v42 = vunpack.c.l.s8.bf16 %v703_v32 }
 0x35a   : > { %6142 = vmatprep.subr.bf16.mxu1 %v1607_v41  ;;  %v1606_v41 = vunpack.c.h.s8.bf16 %v694_v16  ;;  %v702_v16 = vld [vmem:[%s6568_s8 + $0xd98] sm:$0xff] }
 0x35b   : > { %4238 = vmatmul.mubr.bf16.vlgmr.msra.gmra.mrb[100].mxu0 %v4941_v36  ;;  %v699_v36 = vld [vmem:[%s6568_s8 + $0xd80] sm:$0xff] }
 0x35c   : > { %4278 = vmatmul.mubr.bf16.vlgmr.msra.gmra.mrb[100].mxu1 %v4943_v43  ;;  %6121 = vmatpush3.bf16.msra.mxu0 %v1583_v44  ;;  %v1639_v43 = vunpack.c.l.s8.bf16 %v711_v39  ;;  %v707_v44 = vld [vmem:[%s6568_s8 + $0xdc0] sm:$0xff]  ;;  %v1615_v46 = vunpack.c.l.s8.bf16 %v699_v36 }
 0x35d   : > { %6143 = vmatpush3.bf16.msra.mxu1 %v1599_v45  ;;  %6122 = vmatprep.subr.bf16.mxu0 %v1592_v8  ;;  %v4947_v45 = vcombine.low %v7415_v5, %v7415_v5  ;;  %v7445_v8 = vld [vmem:[%s6563_s28 + $0x1b0] sm:$0x77]  ;;  %v1631_v47 = vunpack.c.l.s8.bf16 %v707_v44  ;;  %v1632_v51 = vunpack.c.h.s8.bf16 %v707_v44 }
 0x35e   : > { %6144 = vmatprep.subr.bf16.mxu1 %v1608_v9  ;;  %4317 = vmatprep.mubr.bf16.mxu0 %v4946_v1  ;;  %v7448_v9 = vld [vmem:[%s6563_s28 + $0x1b8] sm:$0x77]  ;;  %v1624_v1 = vunpack.c.h.s8.bf16 %v703_v32 }
 0x35f   : > { %4357 = vmatprep.mubr.bf16.mxu1 %v4948_v2  ;;  %v1640_v2 = vunpack.c.h.s8.bf16 %v711_v39  ;;  %v4952_v5 = vcombine.high %v7448_v9, %v7448_v9 }
 0x360   : > { %6123 = vmatpush3.bf16.msra.mxu0 %v1584_v48  ;;  %v704_v48 = vld [vmem:[%s6568_s8 + $0xda8] sm:$0xff] }
 0x361   : > { %6145 = vmatpush3.bf16.msra.mxu1 %v1600_v49  ;;  %6124 = vmatprep.subr.bf16.mxu0 %v1593_v50  ;;  %v712_v49 = vld [vmem:[%s6568_s8 + $0xde8] sm:$0xff]  ;;  %v1616_v50 = vunpack.c.h.s8.bf16 %v699_v36  ;;  %v1626_v59 = vunpack.c.h.s8.bf16 %v704_v48  ;;  %v1622_v36 = vunpack.c.h.s8.bf16 %v702_v16 }
 0x362   : > { %6146 = vmatprep.subr.bf16.mxu1 %v1609_v52  ;;  %v1625_v52 = vunpack.c.l.s8.bf16 %v704_v48  ;;  %v1642_v61 = vunpack.c.h.s8.bf16 %v712_v49 }
 0x364   : > { %6125 = vmatpush3.bf16.msra.mxu0 %v1585_v54  ;;  %v1641_v54 = vunpack.c.l.s8.bf16 %v712_v49 }
 0x365   : > { %6147 = vmatpush3.bf16.msra.mxu1 %v1601_v56  ;;  %6126 = vmatprep.subr.bf16.mxu0 %v1594_v57  ;;  %v708_v56 = vld [vmem:[%s6568_s8 + $0xdc8] sm:$0xff]  ;;  %v1617_v57 = vunpack.c.l.s8.bf16 %v700_v53 }
 0x366   : > { %6148 = vmatprep.subr.bf16.mxu1 %v1610_v58  ;;  %v1633_v58 = vunpack.c.l.s8.bf16 %v708_v56  ;;  %v1634_v55 = vunpack.c.h.s8.bf16 %v708_v56  ;;  %v716_v56 = vld [vmem:[%s6568_s8 + $0xe08] sm:$0xff] }
 0x368   : > { %6127 = vmatpush3.bf16.msra.mxu0 %v1586_v62  ;;  %v705_v62 = vld [vmem:[%s6568_s8 + $0xdb0] sm:$0xff] }
 0x369   : > { %6149 = vmatpush3.bf16.msra.mxu1 %v1602_v0  ;;  %6128 = vmatprep.subr.bf16.mxu0 %v1595_v3  ;;  %v713_v0 = vld [vmem:[%s6568_s8 + $0xdf0] sm:$0xff]  ;;  %v1618_v3 = vunpack.c.h.s8.bf16 %v700_v53  ;;  %v1628_v15 = vunpack.c.h.s8.bf16 %v705_v62 }
 0x36a   : > { %6150 = vmatprep.subr.bf16.mxu1 %v1611_v7  ;;  %v1627_v7 = vunpack.c.l.s8.bf16 %v705_v62  ;;  %v1644_v10 = vunpack.c.h.s8.bf16 %v713_v0 }
 0x36c   : > { %6129 = vmatpush3.bf16.msra.mxu0 %v1587_v11  ;;  %v1643_v11 = vunpack.c.l.s8.bf16 %v713_v0 }
 0x36d   : > { %6151 = vmatpush3.bf16.msra.mxu1 %v1603_v63  ;;  %6130 = vmatprep.subr.bf16.mxu0 %v1596_v13  ;;  %v709_v63 = vld [vmem:[%s6568_s8 + $0xdd0] sm:$0xff]  ;;  %v1619_v13 = vunpack.c.l.s8.bf16 %v701_v60 }
 0x36e   : > { %6152 = vmatprep.subr.bf16.mxu1 %v1612_v6  ;;  %v5828_v23 = vpop.f32.mrb[76].mxu0  ;;  %v1635_v6 = vunpack.c.l.s8.bf16 %v709_v63  ;;  %v1636_v14 = vunpack.c.h.s8.bf16 %v709_v63  ;;  %v717_v63 = vld [vmem:[%s6568_s8 + $0xe10] sm:$0xff] }
 0x36f   : > { %v5850_v18 = vpop.f32.mrb[76].mxu1  ;;  %v5829_v25 = vpop.f32.mrb[77].mxu0 }
 0x370   : > { %v5851_v20 = vpop.f32.mrb[77].mxu1  ;;  %v5830_v27 = vadd.f32 %v5829_v25, %v5828_v23  ;;  %v5831_v22 = vpop.f32.mrb[78].mxu0  ;;  %6131 = vmatpush3.bf16.msra.mxu0 %v1588_v17  ;;  %v706_v17 = vld [vmem:[%s6568_s8 + $0xdb8] sm:$0xff] }
 0x371   : > { %v5852_v29 = vadd.f32 %v5851_v20, %v5850_v18  ;;  %6153 = vmatpush3.bf16.msra.mxu1 %v1604_v12  ;;  %v5853_v26 = vpop.f32.mrb[78].mxu1  ;;  %v5832_v33 = vpop.f32.mrb[79].mxu0  ;;  %6132 = vmatprep.subr.bf16.mxu0 %v1597_v19  ;;  %v714_v12 = vld [vmem:[%s6568_s8 + $0xdf8] sm:$0xff]  ;;  %v1620_v19 = vunpack.c.h.s8.bf16 %v701_v60 }
 0x372   : > { %6154 = vmatprep.subr.bf16.mxu1 %v1613_v21  ;;  %v5854_v30 = vpop.f32.mrb[79].mxu1  ;;  %v3760_v37 = vadd.f32 %v5830_v27, %v7403_v38  ;;  %v4945_v38 = vcombine.low %v7412_v4, %v7412_v4  ;;  %v4950_v4 = vcombine.high %v7445_v8, %v7445_v8  ;;  %v1629_v21 = vunpack.c.l.s8.bf16 %v706_v17  ;;  %v710_v18 = vld [vmem:[%s6568_s8 + $0xdd8] sm:$0xff] }
 0x373   : > { %v1645_v23 = vunpack.c.l.s8.bf16 %v714_v12  ;;  %v1621_v26 = vunpack.c.l.s8.bf16 %v702_v16  ;;  %v1637_v33 = vunpack.c.l.s8.bf16 %v710_v18  ;;  %v1630_v30 = vunpack.c.h.s8.bf16 %v706_v17 }
 0x374   : > { %v7436_v40 = vadd.f32 %v5852_v29, %v3760_v37  ;;  %6133 = vmatpush3.bf16.msra.mxu0 %v1589_v24  ;;  %v1646_v37 = vunpack.c.h.s8.bf16 %v714_v12 }
 0x375   : > { %6155 = vmatpush3.bf16.msra.mxu1 %v1605_v31  ;;  %6134 = vmatprep.subr.bf16.mxu0 %v1598_v28 }
 0x376   : > { %6156 = vmatprep.subr.bf16.mxu1 %v1614_v35 }
 0x378   : > { %6135 = vmatpush3.bf16.msra.mxu0 %v1590_v34  ;;  %v719_v34 = vld [vmem:[%s6568_s8 + $0xe20] sm:$0xff] }
 0x379   : > { %6157 = vmatpush3.bf16.msra.mxu1 %v1606_v41  ;;  %6164 = vmatprep.subr.bf16.mxu0 %v1623_v42  ;;  %v727_v41 = vld [vmem:[%s6568_s8 + $0xe60] sm:$0xff]  ;;  %v1655_v44 = vunpack.c.l.s8.bf16 %v719_v34 }
 0x37a   : > { %6186 = vmatprep.subr.bf16.mxu1 %v1639_v43  ;;  %v1638_v43 = vunpack.c.h.s8.bf16 %v710_v18  ;;  %v718_v18 = vld [vmem:[%s6568_s8 + $0xe18] sm:$0xff] }
 0x37b   : > { %4318 = vmatmul.mubr.bf16.vlgmr.msra.gmra.mrb[104].mxu0 %v4945_v38  ;;  %v715_v38 = vld [vmem:[%s6568_s8 + $0xe00] sm:$0xff] }
 0x37c   : > { %4358 = vmatmul.mubr.bf16.vlgmr.msra.gmra.mrb[104].mxu1 %v4947_v45  ;;  %6165 = vmatpush3.bf16.msra.mxu0 %v1615_v46  ;;  %v1671_v45 = vunpack.c.l.s8.bf16 %v727_v41  ;;  %v723_v46 = vld [vmem:[%s6568_s8 + $0xe40] sm:$0xff]  ;;  %v1647_v48 = vunpack.c.l.s8.bf16 %v715_v38 }
 0x37d   : > { %6187 = vmatpush3.bf16.msra.mxu1 %v1631_v47  ;;  %6166 = vmatprep.subr.bf16.mxu0 %v1624_v1  ;;  %v4951_v47 = vcombine.low %v7448_v9, %v7448_v9  ;;  %v7478_v1 = vld [vmem:[%s6563_s28 + $0x1c0] sm:$0x77]  ;;  %v1663_v49 = vunpack.c.l.s8.bf16 %v723_v46  ;;  %v1664_v53 = vunpack.c.h.s8.bf16 %v723_v46 }
 0x37e   : > { %6188 = vmatprep.subr.bf16.mxu1 %v1640_v2  ;;  %4397 = vmatprep.mubr.bf16.mxu0 %v4950_v4  ;;  %v7481_v2 = vld [vmem:[%s6563_s28 + $0x1c8] sm:$0x77]  ;;  %v1656_v4 = vunpack.c.h.s8.bf16 %v719_v34 }
 0x37f   : > { %4437 = vmatprep.mubr.bf16.mxu1 %v4952_v5  ;;  %v1672_v5 = vunpack.c.h.s8.bf16 %v727_v41  ;;  %v4956_v9 = vcombine.high %v7481_v2, %v7481_v2 }
 0x380   : > { %6167 = vmatpush3.bf16.msra.mxu0 %v1616_v50  ;;  %v720_v50 = vld [vmem:[%s6568_s8 + $0xe28] sm:$0xff] }
 0x381   : > { %6189 = vmatpush3.bf16.msra.mxu1 %v1632_v51  ;;  %6168 = vmatprep.subr.bf16.mxu0 %v1625_v52  ;;  %v728_v51 = vld [vmem:[%s6568_s8 + $0xe68] sm:$0xff]  ;;  %v1648_v52 = vunpack.c.h.s8.bf16 %v715_v38  ;;  %v1658_v62 = vunpack.c.h.s8.bf16 %v720_v50  ;;  %v1654_v38 = vunpack.c.h.s8.bf16 %v718_v18 }
 0x382   : > { %6190 = vmatprep.subr.bf16.mxu1 %v1641_v54  ;;  %v1657_v54 = vunpack.c.l.s8.bf16 %v720_v50  ;;  %v1674_v0 = vunpack.c.h.s8.bf16 %v728_v51 }
 0x384   : > { %6169 = vmatpush3.bf16.msra.mxu0 %v1617_v57  ;;  %v1673_v57 = vunpack.c.l.s8.bf16 %v728_v51 }
 0x385   : > { %6191 = vmatpush3.bf16.msra.mxu1 %v1633_v58  ;;  %6170 = vmatprep.subr.bf16.mxu0 %v1626_v59  ;;  %v724_v58 = vld [vmem:[%s6568_s8 + $0xe48] sm:$0xff]  ;;  %v1649_v59 = vunpack.c.l.s8.bf16 %v716_v56 }
 0x386   : > { %6192 = vmatprep.subr.bf16.mxu1 %v1642_v61  ;;  %v1665_v61 = vunpack.c.l.s8.bf16 %v724_v58  ;;  %v1666_v60 = vunpack.c.h.s8.bf16 %v724_v58  ;;  %v732_v58 = vld [vmem:[%s6568_s8 + $0xe88] sm:$0xff] }
 0x388   : > { %6171 = vmatpush3.bf16.msra.mxu0 %v1618_v3  ;;  %v721_v3 = vld [vmem:[%s6568_s8 + $0xe30] sm:$0xff] }
 0x389   : > { %6193 = vmatpush3.bf16.msra.mxu1 %v1634_v55  ;;  %6172 = vmatprep.subr.bf16.mxu0 %v1627_v7  ;;  %v729_v55 = vld [vmem:[%s6568_s8 + $0xe70] sm:$0xff]  ;;  %v1650_v7 = vunpack.c.h.s8.bf16 %v716_v56  ;;  %v1660_v17 = vunpack.c.h.s8.bf16 %v721_v3 }
 0x38a   : > { %6194 = vmatprep.subr.bf16.mxu1 %v1643_v11  ;;  %v1659_v11 = vunpack.c.l.s8.bf16 %v721_v3  ;;  %v1676_v12 = vunpack.c.h.s8.bf16 %v729_v55 }
 0x38c   : > { %6173 = vmatpush3.bf16.msra.mxu0 %v1619_v13  ;;  %v1675_v13 = vunpack.c.l.s8.bf16 %v729_v55 }
 0x38d   : > { %6195 = vmatpush3.bf16.msra.mxu1 %v1635_v6  ;;  %6174 = vmatprep.subr.bf16.mxu0 %v1628_v15  ;;  %v725_v6 = vld [vmem:[%s6568_s8 + $0xe50] sm:$0xff]  ;;  %v1651_v15 = vunpack.c.l.s8.bf16 %v717_v63 }
 0x38e   : > { %6196 = vmatprep.subr.bf16.mxu1 %v1644_v10  ;;  %v5872_v25 = vpop.f32.mrb[80].mxu0  ;;  %v1667_v10 = vunpack.c.l.s8.bf16 %v725_v6  ;;  %v1668_v16 = vunpack.c.h.s8.bf16 %v725_v6  ;;  %v733_v6 = vld [vmem:[%s6568_s8 + $0xe90] sm:$0xff] }
 0x38f   : > { %v5894_v20 = vpop.f32.mrb[80].mxu1  ;;  %v5873_v27 = vpop.f32.mrb[81].mxu0 }
 0x390   : > { %v5895_v22 = vpop.f32.mrb[81].mxu1  ;;  %v5874_v29 = vadd.f32 %v5873_v27, %v5872_v25  ;;  %v5875_v24 = vpop.f32.mrb[82].mxu0  ;;  %6175 = vmatpush3.bf16.msra.mxu0 %v1620_v19  ;;  %v722_v19 = vld [vmem:[%s6568_s8 + $0xe38] sm:$0xff] }
 0x391   : > { %v5896_v31 = vadd.f32 %v5895_v22, %v5894_v20  ;;  %6197 = vmatpush3.bf16.msra.mxu1 %v1636_v14  ;;  %v5897_v28 = vpop.f32.mrb[82].mxu1  ;;  %v5876_v35 = vpop.f32.mrb[83].mxu0  ;;  %6176 = vmatprep.subr.bf16.mxu0 %v1629_v21  ;;  %v730_v14 = vld [vmem:[%s6568_s8 + $0xe78] sm:$0xff]  ;;  %v1652_v21 = vunpack.c.h.s8.bf16 %v717_v63 }
 0x392   : > { %6198 = vmatprep.subr.bf16.mxu1 %v1645_v23  ;;  %v5898_v32 = vpop.f32.mrb[83].mxu1  ;;  %v3840_v39 = vadd.f32 %v5874_v29, %v7436_v40  ;;  %v4949_v40 = vcombine.low %v7445_v8, %v7445_v8  ;;  %v4954_v8 = vcombine.high %v7478_v1, %v7478_v1  ;;  %v1661_v23 = vunpack.c.l.s8.bf16 %v722_v19  ;;  %v726_v20 = vld [vmem:[%s6568_s8 + $0xe58] sm:$0xff] }
 0x393   : > { %v1677_v25 = vunpack.c.l.s8.bf16 %v730_v14  ;;  %v1653_v28 = vunpack.c.l.s8.bf16 %v718_v18  ;;  %v1669_v35 = vunpack.c.l.s8.bf16 %v726_v20  ;;  %v1662_v32 = vunpack.c.h.s8.bf16 %v722_v19 }
 0x394   : > { %v7469_v42 = vadd.f32 %v5896_v31, %v3840_v39  ;;  %6177 = vmatpush3.bf16.msra.mxu0 %v1621_v26  ;;  %v1678_v39 = vunpack.c.h.s8.bf16 %v730_v14 }
 0x395   : > { %6199 = vmatpush3.bf16.msra.mxu1 %v1637_v33  ;;  %6178 = vmatprep.subr.bf16.mxu0 %v1630_v30 }
 0x396   : > { %6200 = vmatprep.subr.bf16.mxu1 %v1646_v37 }
 0x398   : > { %6179 = vmatpush3.bf16.msra.mxu0 %v1622_v36  ;;  %v735_v36 = vld [vmem:[%s6568_s8 + $0xea0] sm:$0xff] }
 0x399   : > { %6201 = vmatpush3.bf16.msra.mxu1 %v1638_v43  ;;  %6208 = vmatprep.subr.bf16.mxu0 %v1655_v44  ;;  %v743_v43 = vld [vmem:[%s6568_s8 + $0xee0] sm:$0xff]  ;;  %v1687_v46 = vunpack.c.l.s8.bf16 %v735_v36 }
 0x39a   : > { %6230 = vmatprep.subr.bf16.mxu1 %v1671_v45  ;;  %v1670_v45 = vunpack.c.h.s8.bf16 %v726_v20  ;;  %v734_v20 = vld [vmem:[%s6568_s8 + $0xe98] sm:$0xff] }
 0x39b   : > { %4398 = vmatmul.mubr.bf16.vlgmr.msra.gmra.mrb[108].mxu0 %v4949_v40  ;;  %v731_v40 = vld [vmem:[%s6568_s8 + $0xe80] sm:$0xff] }
 0x39c   : > { %4438 = vmatmul.mubr.bf16.vlgmr.msra.gmra.mrb[108].mxu1 %v4951_v47  ;;  %6209 = vmatpush3.bf16.msra.mxu0 %v1647_v48  ;;  %v1703_v47 = vunpack.c.l.s8.bf16 %v743_v43  ;;  %v739_v48 = vld [vmem:[%s6568_s8 + $0xec0] sm:$0xff]  ;;  %v1679_v50 = vunpack.c.l.s8.bf16 %v731_v40 }
 0x39d   : > { %6231 = vmatpush3.bf16.msra.mxu1 %v1663_v49  ;;  %6210 = vmatprep.subr.bf16.mxu0 %v1656_v4  ;;  %v4955_v49 = vcombine.low %v7481_v2, %v7481_v2  ;;  %v7511_v4 = vld [vmem:[%s6563_s28 + $0x1d0] sm:$0x77]  ;;  %v1695_v51 = vunpack.c.l.s8.bf16 %v739_v48  ;;  %v1696_v56 = vunpack.c.h.s8.bf16 %v739_v48 }
 0x39e   : > { %6232 = vmatprep.subr.bf16.mxu1 %v1672_v5  ;;  %4477 = vmatprep.mubr.bf16.mxu0 %v4954_v8  ;;  %v7514_v5 = vld [vmem:[%s6563_s28 + $0x1d8] sm:$0x77]  ;;  %v1688_v8 = vunpack.c.h.s8.bf16 %v735_v36 }
 0x39f   : > { %4517 = vmatprep.mubr.bf16.mxu1 %v4956_v9  ;;  %v1704_v9 = vunpack.c.h.s8.bf16 %v743_v43  ;;  %v4960_v2 = vcombine.high %v7514_v5, %v7514_v5  ;;  %v4959_v48 = vcombine.low %v7514_v5, %v7514_v5 }
 0x3a0   : > { %6211 = vmatpush3.bf16.msra.mxu0 %v1648_v52  ;;  %v736_v52 = vld [vmem:[%s6568_s8 + $0xea8] sm:$0xff] }
 0x3a1   : > { %6233 = vmatpush3.bf16.msra.mxu1 %v1664_v53  ;;  %6212 = vmatprep.subr.bf16.mxu0 %v1657_v54  ;;  %v744_v53 = vld [vmem:[%s6568_s8 + $0xee8] sm:$0xff]  ;;  %v1680_v54 = vunpack.c.h.s8.bf16 %v731_v40  ;;  %v1690_v3 = vunpack.c.h.s8.bf16 %v736_v52  ;;  %v747_v40 = vld [vmem:[%s6568_s8 + $0xf00] sm:$0xff] }
 0x3a2   : > { %6234 = vmatprep.subr.bf16.mxu1 %v1673_v57  ;;  %v1689_v57 = vunpack.c.l.s8.bf16 %v736_v52  ;;  %v1706_v55 = vunpack.c.h.s8.bf16 %v744_v53  ;;  %v750_v52 = vld [vmem:[%s6568_s8 + $0xf18] sm:$0xff] }
 0x3a4   : > { %6213 = vmatpush3.bf16.msra.mxu0 %v1649_v59  ;;  %v1705_v59 = vunpack.c.l.s8.bf16 %v744_v53 }
 0x3a5   : > { %6235 = vmatpush3.bf16.msra.mxu1 %v1665_v61  ;;  %6214 = vmatprep.subr.bf16.mxu0 %v1658_v62  ;;  %v740_v61 = vld [vmem:[%s6568_s8 + $0xec8] sm:$0xff]  ;;  %v1681_v62 = vunpack.c.l.s8.bf16 %v732_v58 }
 0x3a6   : > { %6236 = vmatprep.subr.bf16.mxu1 %v1674_v0  ;;  %v1697_v0 = vunpack.c.l.s8.bf16 %v740_v61  ;;  %v1698_v63 = vunpack.c.h.s8.bf16 %v740_v61 }
 0x3a8   : > { %6215 = vmatpush3.bf16.msra.mxu0 %v1650_v7  ;;  %v737_v7 = vld [vmem:[%s6568_s8 + $0xeb0] sm:$0xff] }
 0x3a9   : > { %6237 = vmatpush3.bf16.msra.mxu1 %v1666_v60  ;;  %6216 = vmatprep.subr.bf16.mxu0 %v1659_v11  ;;  %v745_v60 = vld [vmem:[%s6568_s8 + $0xef0] sm:$0xff]  ;;  %v1682_v11 = vunpack.c.h.s8.bf16 %v732_v58  ;;  %v1692_v19 = vunpack.c.h.s8.bf16 %v737_v7 }
 0x3aa   : > { %6238 = vmatprep.subr.bf16.mxu1 %v1675_v13  ;;  %v1691_v13 = vunpack.c.l.s8.bf16 %v737_v7  ;;  %v1708_v14 = vunpack.c.h.s8.bf16 %v745_v60  ;;  %v1718_v7 = vunpack.c.h.s8.bf16 %v750_v52 }
 0x3ac   : > { %6217 = vmatpush3.bf16.msra.mxu0 %v1651_v15  ;;  %v1707_v15 = vunpack.c.l.s8.bf16 %v745_v60  ;;  %v6487_v60 = vld [vmem:[%s6563_s28 + $0x1e0] ss:$0 sps:$4 sm:$0x77]  }
 0x3ad   : > { %6239 = vmatpush3.bf16.msra.mxu1 %v1667_v10  ;;  %6218 = vmatprep.subr.bf16.mxu0 %v1660_v17  ;;  %v741_v10 = vld [vmem:[%s6568_s8 + $0xed0] sm:$0xff]  ;;  %v1683_v17 = vunpack.c.l.s8.bf16 %v733_v6 }
 0x3ae   : > { %6240 = vmatprep.subr.bf16.mxu1 %v1676_v12  ;;  %v5916_v27 = vpop.f32.mrb[84].mxu0  ;;  %v1699_v12 = vunpack.c.l.s8.bf16 %v741_v10  ;;  %v1700_v18 = vunpack.c.h.s8.bf16 %v741_v10 }
 0x3af   : > { %v5938_v22 = vpop.f32.mrb[84].mxu1  ;;  %v5917_v29 = vpop.f32.mrb[85].mxu0 }
 0x3b0   : > { %v5939_v24 = vpop.f32.mrb[85].mxu1  ;;  %v5918_v31 = vadd.f32 %v5917_v29, %v5916_v27  ;;  %v5919_v26 = vpop.f32.mrb[86].mxu0  ;;  %6219 = vmatpush3.bf16.msra.mxu0 %v1652_v21  ;;  %v738_v21 = vld [vmem:[%s6568_s8 + $0xeb8] sm:$0xff] }
 0x3b1   : > { %v5940_v33 = vadd.f32 %v5939_v24, %v5938_v22  ;;  %6241 = vmatpush3.bf16.msra.mxu1 %v1668_v16  ;;  %v5941_v30 = vpop.f32.mrb[86].mxu1  ;;  %v5920_v37 = vpop.f32.mrb[87].mxu0  ;;  %6220 = vmatprep.subr.bf16.mxu0 %v1661_v23  ;;  %v746_v16 = vld [vmem:[%s6568_s8 + $0xef8] sm:$0xff]  ;;  %v1684_v23 = vunpack.c.h.s8.bf16 %v733_v6 }
 0x3b2   : > { %6242 = vmatprep.subr.bf16.mxu1 %v1677_v25  ;;  %v5942_v34 = vpop.f32.mrb[87].mxu1  ;;  %v3920_v41 = vadd.f32 %v5918_v31, %v7469_v42  ;;  %v4953_v42 = vcombine.low %v7478_v1, %v7478_v1  ;;  %v4958_v1 = vcombine.high %v7511_v4, %v7511_v4  ;;  %v1693_v25 = vunpack.c.l.s8.bf16 %v738_v21  ;;  %v742_v22 = vld [vmem:[%s6568_s8 + $0xed8] sm:$0xff] }
 0x3b3   : > { %v1709_v27 = vunpack.c.l.s8.bf16 %v746_v16  ;;  %v1685_v30 = vunpack.c.l.s8.bf16 %v734_v20  ;;  %v1701_v37 = vunpack.c.l.s8.bf16 %v742_v22  ;;  %v1694_v34 = vunpack.c.h.s8.bf16 %v738_v21 }
 0x3b4   : > { %v7502_v44 = vadd.f32 %v5940_v33, %v3920_v41  ;;  %6221 = vmatpush3.bf16.msra.mxu0 %v1653_v28  ;;  %v1710_v41 = vunpack.c.h.s8.bf16 %v746_v16 }
 0x3b5   : > { %6243 = vmatpush3.bf16.msra.mxu1 %v1669_v35  ;;  %6222 = vmatprep.subr.bf16.mxu0 %v1662_v32 }
 0x3b6   : > { %6244 = vmatprep.subr.bf16.mxu1 %v1678_v39 }
 0x3b8   : > { %6223 = vmatpush3.bf16.msra.mxu0 %v1654_v38 }
 0x3b9   : > { %6245 = vmatpush3.bf16.msra.mxu1 %v1670_v45  ;;  %6252 = vmatprep.subr.bf16.mxu0 %v1687_v46  ;;  %v1686_v45 = vunpack.c.h.s8.bf16 %v734_v20  ;;  %v1702_v46 = vunpack.c.h.s8.bf16 %v742_v22 }
 0x3ba   : > { %6274 = vmatprep.subr.bf16.mxu1 %v1703_v47  ;;  %v4957_v47 = vcombine.low %v7511_v4, %v7511_v4 }
 0x3bb   : > { %4478 = vmatmul.mubr.bf16.vlgmr.msra.gmra.mrb[112].mxu0 %v4953_v42  ;;  %v1711_v42 = vunpack.c.l.s8.bf16 %v747_v40 }
 0x3bc   : > { %4518 = vmatmul.mubr.bf16.vlgmr.msra.gmra.mrb[112].mxu1 %v4955_v49  ;;  %6253 = vmatpush3.bf16.msra.mxu0 %v1679_v50  ;;  %v6509_v49 = vmov 0.0   ;;  %v748_v50 = vld [vmem:[%s6568_s8 + $0xf08] sm:$0xff] }
 0x3bd   : > { %6275 = vmatpush3.bf16.msra.mxu1 %v1695_v51  ;;  %6254 = vmatprep.subr.bf16.mxu0 %v1688_v8  ;;  %v1713_v4 = vunpack.c.l.s8.bf16 %v748_v50  ;;  %v1714_v5 = vunpack.c.h.s8.bf16 %v748_v50  ;;  %v749_v51 = vld [vmem:[%s6568_s8 + $0xf10] sm:$0xff] }
 0x3be   : > { %6276 = vmatprep.subr.bf16.mxu1 %v1704_v9  ;;  %4557 = vmatprep.mubr.bf16.mxu0 %v4958_v1  ;;  %v1715_v8 = vunpack.c.l.s8.bf16 %v749_v51  ;;  %v1716_v9 = vunpack.c.h.s8.bf16 %v749_v51 }
 0x3bf   : > { %4597 = vmatprep.mubr.bf16.mxu1 %v4960_v2 }
 0x3c0   : > { %6255 = vmatpush3.bf16.msra.mxu0 %v1680_v54 }
 0x3c1   : > { %6277 = vmatpush3.bf16.msra.mxu1 %v1696_v56  ;;  %6256 = vmatprep.subr.bf16.mxu0 %v1689_v57 }
 0x3c2   : > { %6278 = vmatprep.subr.bf16.mxu1 %v1705_v59  ;;  %v1717_v59 = vunpack.c.l.s8.bf16 %v750_v52 }
 0x3c4   : > { %6257 = vmatpush3.bf16.msra.mxu0 %v1681_v62 }
 0x3c5   : > { %6279 = vmatpush3.bf16.msra.mxu1 %v1697_v0  ;;  %6258 = vmatprep.subr.bf16.mxu0 %v1690_v3 }
 0x3c6   : > { %6280 = vmatprep.subr.bf16.mxu1 %v1706_v55 }
 0x3c8   : > { %6259 = vmatpush3.bf16.msra.mxu0 %v1682_v11 }
 0x3c9   : > { %6281 = vmatpush3.bf16.msra.mxu1 %v1698_v63  ;;  %6260 = vmatprep.subr.bf16.mxu0 %v1691_v13 }
 0x3ca   : > { %6282 = vmatprep.subr.bf16.mxu1 %v1707_v15 }
 0x3cc   : > { %6261 = vmatpush3.bf16.msra.mxu0 %v1683_v17 }
 0x3cd   : > { %6283 = vmatpush3.bf16.msra.mxu1 %v1699_v12  ;;  %6262 = vmatprep.subr.bf16.mxu0 %v1692_v19 }
 0x3ce   : > { %6284 = vmatprep.subr.bf16.mxu1 %v1708_v14  ;;  %v5960_v29 = vpop.f32.mrb[88].mxu0 }
 0x3cf   : > { %v5982_v24 = vpop.f32.mrb[88].mxu1  ;;  %v5961_v31 = vpop.f32.mrb[89].mxu0 }
 0x3d0   : > { %v5983_v26 = vpop.f32.mrb[89].mxu1  ;;  %v5962_v33 = vadd.f32 %v5961_v31, %v5960_v29  ;;  %v5963_v28 = vpop.f32.mrb[90].mxu0  ;;  %6263 = vmatpush3.bf16.msra.mxu0 %v1684_v23 }
 0x3d1   : > { %v5984_v35 = vadd.f32 %v5983_v26, %v5982_v24  ;;  %6285 = vmatpush3.bf16.msra.mxu1 %v1700_v18  ;;  %v5985_v32 = vpop.f32.mrb[90].mxu1  ;;  %v5964_v39 = vpop.f32.mrb[91].mxu0  ;;  %6264 = vmatprep.subr.bf16.mxu0 %v1693_v25 }
 0x3d2   : > { %6286 = vmatprep.subr.bf16.mxu1 %v1709_v27  ;;  %v5986_v36 = vpop.f32.mrb[91].mxu1  ;;  %v4000_v43 = vadd.f32 %v5962_v33, %v7502_v44  ;;  %v1712_v44 = vunpack.c.h.s8.bf16 %v747_v40 }
 0x3d4   : > { %v4040_v38 = vadd.f32 %v5984_v35, %v4000_v43  ;;  %6265 = vmatpush3.bf16.msra.mxu0 %v1685_v30 }
 0x3d5   : > { %6287 = vmatpush3.bf16.msra.mxu1 %v1701_v37  ;;  %6266 = vmatprep.subr.bf16.mxu0 %v1694_v34 }
 0x3d6   : > { %6288 = vmatprep.subr.bf16.mxu1 %v1710_v41 }
 0x3d8   : > { %6267 = vmatpush3.bf16.msra.mxu0 %v1686_v45 }
 0x3d9   : > { %6289 = vmatpush3.bf16.msra.mxu1 %v1702_v46  ;;  %6314 = vmatprep.subr.bf16.mxu0 %v6509_v49 }
 0x3db   : > { %4558 = vmatmul.mubr.bf16.vlgmr.msra.gmra.mrb[116].mxu0 %v4957_v47 }
 0x3dc   : > { %4598 = vmatmul.mubr.bf16.vlgmr.msra.gmra.mrb[116].mxu1 %v4959_v48  ;;  %6315 = vmatpush3.bf16.msra.mxu0 %v1711_v42 }
 0x3dd   : > { %6330 = vmatprep.mubr.msk.bf16.mxu0 %vm6510_vm0, %v6509_v49  ;;  %6316 = vmatprep.subr.bf16.mxu0 %v6509_v49 }
 0x3e0   : > { %6317 = vmatpush3.bf16.msra.mxu0 %v1712_v44 }
 0x3e1   : > { %6318 = vmatprep.subr.bf16.mxu0 %v6509_v49 }
 0x3e4   : > { %6319 = vmatpush3.bf16.msra.mxu0 %v1713_v4 }
 0x3e5   : > { %6320 = vmatprep.subr.bf16.mxu0 %v6509_v49 }
 0x3e8   : > { %6321 = vmatpush3.bf16.msra.mxu0 %v1714_v5 }
 0x3e9   : > { %6322 = vmatprep.subr.bf16.mxu0 %v6509_v49 }
 0x3ec   : > { %6323 = vmatpush3.bf16.msra.mxu0 %v1715_v8 }
 0x3ed   : > { %6324 = vmatprep.subr.bf16.mxu0 %v6509_v49 }
 0x3ee   : > { %v6004_v53 = vpop.f32.mrb[92].mxu0 }
 0x3ef   : > { %v6026_v1 = vpop.f32.mrb[92].mxu1  ;;  %v6005_v2 = vpop.f32.mrb[93].mxu0 }
 0x3f0   : > { %v6027_v54 = vpop.f32.mrb[93].mxu1  ;;  %v6006_v56 = vadd.f32 %v6005_v2, %v6004_v53  ;;  %v6007_v57 = vpop.f32.mrb[94].mxu0  ;;  %6325 = vmatpush3.bf16.msra.mxu0 %v1716_v9 }
 0x3f1   : > { %v6028_v58 = vadd.f32 %v6027_v54, %v6026_v1  ;;  %v6029_v61 = vpop.f32.mrb[94].mxu1  ;;  %v6008_v62 = vpop.f32.mrb[95].mxu0  ;;  %6326 = vmatprep.subr.bf16.mxu0 %v6509_v49 }
 0x3f2   : > { %v6030_v0 = vpop.f32.mrb[95].mxu1  ;;  %v4080_v3 = vadd.f32 %v6006_v56, %v4040_v38 }
 0x3f4   : > { %v4120_v55 = vadd.f32 %v6028_v58, %v4080_v3  ;;  %6327 = vmatpush3.bf16.msra.mxu0 %v1717_v59 }
 0x3f5   : > { %6328 = vmatprep.subr.bf16.mxu0 %v6509_v49 }
 0x3f8   : > { %6329 = vmatpush3.bf16.msra.mxu0 %v1718_v7 }
 0x3fb   : > { %6331 = vmatmul.mubr.bf16.vlgmr.msra.gmra.mrb[120].mxu0 %v6487_v60 }
 0x40e   : > { %v6048_v11 = vpop.f32.mrb[96].mxu0 }
 0x40f   : > { %v6070_v63 = vpop.f32.mrb[96].mxu1  ;;  %v6049_v13 = vpop.f32.mrb[97].mxu0 }
 0x410   : > { %v6071_v6 = vpop.f32.mrb[97].mxu1  ;;  %v6050_v15 = vadd.f32 %v6049_v13, %v6048_v11  ;;  %v6051_v10 = vpop.f32.mrb[98].mxu0 }
 0x411   : > { %v6072_v17 = vadd.f32 %v6071_v6, %v6070_v63  ;;  %v6073_v12 = vpop.f32.mrb[98].mxu1  ;;  %v6052_v19 = vpop.f32.mrb[99].mxu0 }
 0x412   : > { %v6074_v14 = vpop.f32.mrb[99].mxu1  ;;  %v4160_v21 = vadd.f32 %v6050_v15, %v4120_v55  ;;  %v1719_v19 = vld [vmem:[#allocation2] sm:$0x3f] }
 0x414   : > { %v4200_v16 = vadd.f32 %v6072_v17, %v4160_v21 }
 0x42e   : > { %v6092_v23 = vpop.f32.mrb[100].mxu0 }
 0x42f   : > { %v6114_v18 = vpop.f32.mrb[100].mxu1  ;;  %v6093_v25 = vpop.f32.mrb[101].mxu0 }
 0x430   : > { %v6115_v20 = vpop.f32.mrb[101].mxu1  ;;  %v6094_v27 = vadd.f32 %v6093_v25, %v6092_v23  ;;  %v6095_v22 = vpop.f32.mrb[102].mxu0 }
 0x431   : > { %v6116_v29 = vadd.f32 %v6115_v20, %v6114_v18  ;;  %v6117_v24 = vpop.f32.mrb[102].mxu1  ;;  %v6096_v31 = vpop.f32.mrb[103].mxu0  ;;  %v6488_v20 = vld [vmem:[%s7589_s4] sm:$0xff] (!%p4962_p6)   ;;  %v6489_v22 = vld [vmem:[%s7589_s4 + $0x8] sm:$0xff] (!%p4962_p6)  }
 0x432   : > { %v6118_v26 = vpop.f32.mrb[103].mxu1  ;;  %v4240_v33 = vadd.f32 %v6094_v27, %v4200_v16  ;;  %v6511_v27 = vmov (!%p4962_p6), 0.0   ;;  %v6491_v24 = vld [vmem:[%s7589_s4 + $0x18] sm:$0xff] (!%p4962_p6)   ;;  %v6492_v31 = vld [vmem:[%s7589_s4 + $0x20] sm:$0xff] (!%p4962_p6)  }
 0x433   : > { %6334 = vmatprep.subr.bf16.mxu0 (!%p4962_p6), %v6511_v27  ;;  %6350 = vmatprep.mubr.msk.bf16.mxu0 (!%p4962_p6), %vm6512_vm1, %v6511_v27 }
 0x434   : > { %v4280_v28 = vadd.f32 %v6116_v29, %v4240_v33  ;;  %6335 = vmatpush3.bf16.msra.mxu0 (!%p4962_p6), %v6488_v20  ;;  %v6490_v29 = vld [vmem:[%s7589_s4 + $0x10] sm:$0xff] (!%p4962_p6)   ;;  %v4963_v33 = vld [vmem:[%s7587_s2] ss:$0 sm:$0xff] (!%p4962_p6) }
 0x435   : > { %6336 = vmatprep.subr.bf16.mxu0 (!%p4962_p6), %v6511_v27 }
 0x438   : > { %6337 = vmatpush3.bf16.msra.mxu0 (!%p4962_p6), %v6489_v22 }
 0x439   : > { %6338 = vmatprep.subr.bf16.mxu0 (!%p4962_p6), %v6511_v27 }
 0x43c   : > { %6339 = vmatpush3.bf16.msra.mxu0 (!%p4962_p6), %v6490_v29 }
 0x43d   : > { %6340 = vmatprep.subr.bf16.mxu0 (!%p4962_p6), %v6511_v27 }
 0x440   : > { %6341 = vmatpush3.bf16.msra.mxu0 (!%p4962_p6), %v6491_v24 }
 0x441   : > { %6342 = vmatprep.subr.bf16.mxu0 (!%p4962_p6), %v6511_v27 }
 0x444   : > { %6343 = vmatpush3.bf16.msra.mxu0 (!%p4962_p6), %v6492_v31 }
 0x445   : > { %6344 = vmatprep.subr.bf16.mxu0 (!%p4962_p6), %v6511_v27 }
 0x44e   : > { %v6136_v35 = vpop.f32.mrb[104].mxu0 }
 0x44f   : > { %v6158_v30 = vpop.f32.mrb[104].mxu1  ;;  %v6137_v37 = vpop.f32.mrb[105].mxu0 }
 0x450   : > { %v6159_v32 = vpop.f32.mrb[105].mxu1  ;;  %v6138_v39 = vadd.f32 %v6137_v37, %v6136_v35  ;;  %v6139_v34 = vpop.f32.mrb[106].mxu0  ;;  %v6493_v35 = vld [vmem:[%s7589_s4 + $0x28] sm:$0xff] (!%p4962_p6)  }
 0x451   : > { %v6160_v41 = vadd.f32 %v6159_v32, %v6158_v30  ;;  %v6161_v36 = vpop.f32.mrb[106].mxu1  ;;  %v6140_v43 = vpop.f32.mrb[107].mxu0  ;;  %v4964_v30 = vld [vmem:[%s7588_s3] ss:$0 sm:$0xff] (!%p4962_p6)  ;;  %6345 = vmatpush3.bf16.msra.mxu0 (!%p4962_p6), %v6493_v35  ;;  %v6494_v32 = vld [vmem:[%s7589_s4 + $0x30] sm:$0xff] (!%p4962_p6)   ;;  %v6495_v34 = vld [vmem:[%s7589_s4 + $0x38] sm:$0xff] (!%p4962_p6)  }
 0x452   : > { %v6162_v38 = vpop.f32.mrb[107].mxu1  ;;  %v4320_v45 = vadd.f32 %v6138_v39, %v4280_v28  ;;  %6346 = vmatprep.subr.bf16.mxu0 (!%p4962_p6), %v6511_v27  ;;  %v4965_v36 = vld [vmem:[%s7590_s5] ss:$0 sm:$0xff] (!%p4962_p6) }
 0x454   : > { %v4360_v46 = vadd.f32 %v6160_v41, %v4320_v45 }
 0x455   : > { %6347 = vmatpush3.bf16.msra.mxu0 (!%p4962_p6), %v6494_v32 }
 0x456   : > { %6348 = vmatprep.subr.bf16.mxu0 (!%p4962_p6), %v6511_v27 }
 0x459   : > { %6349 = vmatpush3.bf16.msra.mxu0 (!%p4962_p6), %v6495_v34 }
 0x46e   : > { %v6180_v40 = vpop.f32.mrb[108].mxu0 }
 0x46f   : > { %v6202_v47 = vpop.f32.mrb[108].mxu1  ;;  %v6181_v48 = vpop.f32.mrb[109].mxu0 }
 0x470   : > { %v6203_v42 = vpop.f32.mrb[109].mxu1  ;;  %v6182_v49 = vadd.f32 %v6181_v48, %v6180_v40  ;;  %v6183_v44 = vpop.f32.mrb[110].mxu0 }
 0x471   : > { %v6204_v50 = vadd.f32 %v6203_v42, %v6202_v47  ;;  %v6205_v4 = vpop.f32.mrb[110].mxu1  ;;  %v6184_v5 = vpop.f32.mrb[111].mxu0 }
 0x472   : > { %v6206_v51 = vpop.f32.mrb[111].mxu1  ;;  %v4400_v8 = vadd.f32 %v6182_v49, %v4360_v46 }
 0x474   : > { %v4440_v9 = vadd.f32 %v6204_v50, %v4400_v8 }
 0x48e   : > { %v6224_v52 = vpop.f32.mrb[112].mxu0 }
 0x48f   : > { %v6246_v53 = vpop.f32.mrb[112].mxu1  ;;  %v6225_v1 = vpop.f32.mrb[113].mxu0 }
 0x490   : > { %v6247_v2 = vpop.f32.mrb[113].mxu1  ;;  %v6226_v54 = vadd.f32 %v6225_v1, %v6224_v52  ;;  %v6227_v56 = vpop.f32.mrb[114].mxu0 }
 0x491   : > { %v6248_v57 = vadd.f32 %v6247_v2, %v6246_v53  ;;  %v6249_v58 = vpop.f32.mrb[114].mxu1  ;;  %v6228_v59 = vpop.f32.mrb[115].mxu0 }
 0x492   : > { %v6250_v61 = vpop.f32.mrb[115].mxu1  ;;  %v4480_v62 = vadd.f32 %v6226_v54, %v4440_v9 }
 0x494   : > { %v4520_v0 = vadd.f32 %v6248_v57, %v4480_v62 }
 0x4ae   : > { %v6268_v3 = vpop.f32.mrb[116].mxu0 }
 0x4af   : > { %v6290_v55 = vpop.f32.mrb[116].mxu1  ;;  %v6269_v7 = vpop.f32.mrb[117].mxu0 }
 0x4b0   : > { %v6291_v60 = vpop.f32.mrb[117].mxu1  ;;  %v6270_v11 = vadd.f32 %v6269_v7, %v6268_v3  ;;  %v6271_v63 = vpop.f32.mrb[118].mxu0 }
 0x4b1   : > { %v6292_v13 = vadd.f32 %v6291_v60, %v6290_v55  ;;  %v6293_v6 = vpop.f32.mrb[118].mxu1  ;;  %v6272_v15 = vpop.f32.mrb[119].mxu0 }
 0x4b2   : > { %v6294_v10 = vpop.f32.mrb[119].mxu1  ;;  %v4560_v17 = vadd.f32 %v6270_v11, %v4520_v0 }
 0x4b4   : > { %v4600_v12 = vadd.f32 %v6292_v13, %v4560_v17 }
 0x4cd   : > { %4650 = sbr.rel (%p4962_p6) target bundleno = 1780 (0x6f4), region = 52 }
 0x4ce   : > { %v4639_v14 = vpop.f32.mrb[120].mxu0 }
 0x4cf   : > { %v4640_v21 = vadd.f32 %v4639_v14, %v4600_v12  ;;  %v6332_v16 = vpop.f32.mrb[121].mxu0 }
 0x4d0   : > { %v4642_v23 = vpop.f32.mrb[122].mxu0 }
 0x4d1   : > { %v4645_v18 = vadd.f32 %v4640_v21, %v1719_v19  ;;  %v6333_v25 = vpop.f32.mrb[123].mxu0 }
 0x4d3   : > { %4646 = vst [vmem:[#allocation2] sm:$0x3f] %v4645_v18 }
 0x4da   : > { %v4651_v26 = vld [vmem:[#allocation2] sm:$0x3f] }
 0x4db   : > { %v4659_v28 = vmul.f32 %v4963_v33, %v4651_v26 }
 0x4dd   : > { %v4667_v37 = vadd.f32 %v4964_v30, %v4659_v28 }
 0x4df   : > { %v4668_v39 = vmax.f32 %v4667_v37, 0.0 }
 0x4e1   : > { %v4669_v41 = vpack.c.bf16 %v4668_v39, %v4668_v39 }
 0x4e3   : > { %6351 = vmatmul.mubr.bf16.vlgmr.msra.gmra.mrb[0].mxu0 %v4669_v41 }
 0x5b6   : > { %v4775_v43 = vpop.f32.mrb[0].mxu0 }
 0x5b7   : > { %v4776_v38 = vadd.f32 %v4965_v36, %v4775_v43  ;;  %v6352_v45 = vpop.f32.mrb[1].mxu0 }
 0x5b8   : > { %v4778_v46 = vpop.f32.mrb[2].mxu0 }
 0x5b9   : > { %v6353_v40 = vpop.f32.mrb[3].mxu0  ;;  %v4782_v47 = vsel %vm4781_vm2, %v4776_v38, -inf }
 0x5ba   : > { %4783 = vmax.xlane.f32.xlu0 %v4782_v47 }
 0x647   : > { %v4784_v48 = vpop.xlane.xlu0 %4783 }
 0x648   : > { %v4785_v42 = vsub.f32 %v4776_v38, %v4784_v48 }
 0x64a   : > { %v4786_v49 = vmul.f32 1.442695, %v4785_v42 }
 0x64c   : > { %6496 = vpow2.f32 %v4786_v49 }
 0x656   : > { %v6497_v44 = vpop.eup %6496 }
 0x657   : > { %v4788_v50 = vsel %vm4781_vm2, %v6497_v44, 0.0 }
 0x658   : > { %4789 = vadd.xlane.f32.xlu0 %v4788_v50 }
 0x6e5   : > { %v4790_v4 = vpop.xlane.xlu0 %4789 }
 0x6e6   : > { %6498 = vrcp.f32 %v4790_v4 }
 0x6f0   : > { %v6499_v5 = vpop.eup %6498 }
 0x6f1   : > { %v4792_v51 = vmul.f32 %v6499_v5, %v6497_v44 }
 0x6f3   : > { %4793 = vst.msk [vmem:[%s7591_s6] sm:$0x3f] %vm4781_vm2, %v4792_v51 }
 0x6f4 PF: > { %s16_s21 = sadd.s32 1, %s6506_s21  }
 0x6f5   : > { %p13_p7 = scmp.ge.s32.totalorder %s16_s21, 4  }
 0x6f7   :  { %15 = sbr.rel (!%p13_p7) target bundleno = 1 (0x1), region = 81 }

</bundles_post_ra>
